<compile_context>
chip_gen: v7x
topology: tpu7x:2x2x1
jax: 0.10.0
libtpu: 0.0.40
codegen_flags: <defaults>
</compile_context>

<pallas_src>
import functools

import numpy as np
import jax
import jax.numpy as jnp
from jax import lax
from jax.experimental import pallas as pl
from jax.experimental.pallas import tpu as pltpu

EPS = 1e-5          # nn.BatchNorm1d default eps
NEG_SLOPE = 0.2     # nn.LeakyReLU(0.2)
KSIZE = 3           # conv kernel size of the non-final layers
POOL_K = 3          # MaxPool1d kernel size
STRIDE = 2          # conv & pool stride of the non-final layers


def _round_up(x, m):
    return (x + m - 1) // m * m


# --------------------------------------------------------------------------
# In-kernel building blocks.  Layout everywhere: (length, channels) with the
# batch flattened into the length/sublane axis: row  b * L_per_batch + pos.
# --------------------------------------------------------------------------
def _stage(in_ref, w_ref, p_ref, col_ref, z_ref, out_ref, *,
           n_batch, c_in, c_out, l_pad, l_conv, l_pool, w_off, p_row):
    """Conv1d(k=3,s=2) -> BN(train) -> MaxPool1d(3,2) -> LeakyReLU(0.2).

    in_ref : (n_batch * l_pad, c_in)        zero-padded input, length-major
    w_ref  : packed im2col conv weights; block at rows [w_off, w_off+3*c_in)
    p_ref  : packed params; gamma = row p_row, beta = row p_row+1
    col_ref: (n_batch * l_conv, 3*c_in)     im2col scratch
    z_ref  : (n_batch * l_conv, c_out)      raw conv output scratch
    out_ref: (n_batch * (l_pool+2), c_out)  padded input of the next stage
    """
    kw = KSIZE * c_in
    # (3*c_in, c_out) weight block, hoisted out of the batch loop so the MXU
    # RHS is loaded once per stage.
    w_blk = w_ref[pl.ds(w_off, kw), pl.ds(0, c_out)]

    inv_cnt = 1.0 / float(n_batch * l_conv)
    ssum = jnp.zeros((1, c_out), jnp.float32)
    ssq = jnp.zeros((1, c_out), jnp.float32)

    # ---- im2col + single conv matmul per batch + single-pass BN stats ----
    # Conv bias is omitted: it cancels exactly under training-mode BatchNorm.
    for b in range(n_batch):
        for k in range(KSIZE):
            # strided sublane gather: rows b*l_pad + k + 2*j, j in [0, l_conv)
            col_ref[pl.ds(b * l_conv, l_conv), pl.ds(k * c_in, c_in)] = \
                in_ref[pl.ds(b * l_pad + k, l_conv, stride=STRIDE), :]
        acc = jnp.dot(col_ref[pl.ds(b * l_conv, l_conv), :], w_blk,
                      preferred_element_type=jnp.float32)        # (l_conv, c_out)
        z_ref[pl.ds(b * l_conv, l_conv), :] = acc
        ssum = ssum + jnp.sum(acc, axis=0, keepdims=True)
        ssq = ssq + jnp.sum(acc * acc, axis=0, keepdims=True)

    mean = ssum * inv_cnt
    var = jnp.maximum(ssq * inv_cnt - mean * mean, 0.0)   # biased var, clamped
    gamma = p_ref[pl.ds(p_row, 1), pl.ds(0, c_out)]
    beta = p_ref[pl.ds(p_row + 1, 1), pl.ds(0, c_out)]
    scale = gamma * lax.rsqrt(var + EPS)                   # (1, c_out)
    shift = beta - mean * scale                            # (1, c_out)

    # ---- MaxPool1d(3,2) + LeakyReLU(0.2) ----
    # `scale` must be applied per tap (gamma may be negative), but `shift`
    # is constant across the window so it is added once after the max.
    l_out_pad = l_pool + 2
    zero_row = jnp.zeros((1, c_out), jnp.float32)
    for b in range(n_batch):
        base = b * l_out_pad
        # zero only the 2 pad rows of the next stage (data rows fully written)
        out_ref[pl.ds(base, 1), :] = zero_row
        out_ref[pl.ds(base + l_pool + 1, 1), :] = zero_row

        p = z_ref[pl.ds(b * l_conv, l_pool, stride=STRIDE), :] * scale
        for j in range(1, POOL_K):
            zj = z_ref[pl.ds(b * l_conv + j, l_pool, stride=STRIDE), :] * scale
            p = jnp.maximum(p, zj)
        p = p + shift
        p = jnp.where(p >= 0, p, NEG_SLOPE * p)
        out_ref[pl.ds(base + 1, l_pool), :] = p


def _head(in_ref, p_ref, o_ref, *, n_batch, c_head, l_pad, p_base):
    """Folded head: Conv1d(C->1,k=2,pad=1) -> Linear(3,1) -> Sigmoid.

    The conv and linear weights were folded (exactly) at prep time into a
    (l_pad, c_head) tensor W_eff and a scalar bias, so the head is a pure
    VPU elementwise multiply + reduction (no MXU round trip).
    """
    weff = p_ref[pl.ds(p_base, l_pad), pl.ds(0, c_head)]          # (4, c)
    bias = p_ref[pl.ds(p_base + l_pad, 1), pl.ds(0, 1)]           # (1, 1)
    for b in range(n_batch):
        xb = in_ref[pl.ds(b * l_pad, l_pad), :]                   # (4, c)
        lin = jnp.sum(xb * weff, axis=(0, 1), keepdims=True)      # (1, 1)
        o_ref[pl.ds(b, 1), :] = jax.nn.sigmoid(lin + bias)


def _fused_kernel(x_ref, w_ref, p_ref, o_ref, *scratch,
                  n_batch, stage_meta, head_meta):
    """Entire Conv1D_v4 forward in one kernel invocation."""
    cur = x_ref
    for i, (c_in, c_out, l_pad, l_conv, l_pool, w_off) in enumerate(stage_meta):
        col_ref, z_ref, nxt_ref = scratch[3 * i], scratch[3 * i + 1], scratch[3 * i + 2]
        _stage(cur, w_ref, p_ref, col_ref, z_ref, nxt_ref,
               n_batch=n_batch, c_in=c_in, c_out=c_out, l_pad=l_pad,
               l_conv=l_conv, l_pool=l_pool, w_off=w_off, p_row=2 * i)
        cur = nxt_ref
    c_head, head_l_pad, p_base = head_meta
    _head(cur, p_ref, o_ref, n_batch=n_batch, c_head=c_head,
          l_pad=head_l_pad, p_base=p_base)


# --------------------------------------------------------------------------
# One-time parameter prep: static shape derivation + packed weight layout.
# --------------------------------------------------------------------------
def prepare_params(params, length):
    layers = params["layers"]
    fp = params["final"]
    n_stages = len(layers)

    metas = []
    ci = int(layers[0]["w"].shape[1])
    l = int(length)
    w_off = 0
    for lp in layers:
        co = int(lp["w"].shape[0])
        l_pad = l + 2
        l_conv = (l_pad - KSIZE) // STRIDE + 1
        l_pool = (l_conv - POOL_K) // STRIDE + 1
        metas.append((ci, co, l_pad, l_conv, l_pool, w_off))
        w_off += _round_up(KSIZE * ci, 8)
        ci, l = co, l_pool
    if l != 2:
        raise ValueError(
            f"input length {length} must reduce to 2 before the head "
            f"(required by nn.Linear(3, 1)); got {l}")
    c_head = ci
    head_l_pad = l + 2                                   # = 4
    max_c = max(max(m[1] for m in metas), c_head, 4)

    # ---- packed conv weights, im2col layout: block[k*c_in + ic, oc] = w[oc, ic, k]
    w_pack = np.zeros((w_off, max_c), np.float32)
    for lp, (ci_, co_, _, _, _, off) in zip(layers, metas):
        w = np.asarray(lp["w"], np.float32)              # (co, ci, 3)
        blk = np.transpose(w, (2, 1, 0)).reshape(KSIZE * ci_, co_)
        w_pack[off:off + KSIZE * ci_, :co_] = blk

    # ---- packed small params: gamma/beta rows + folded head weights ----
    p_base = 2 * n_stages
    p_rows = _round_up(p_base + head_l_pad + 1, 8)
    p_pack = np.zeros((p_rows, max_c), np.float32)
    for i, (lp, (_, co_, *_rest)) in enumerate(zip(layers, metas)):
        p_pack[2 * i, :co_] = np.asarray(lp["gamma"], np.float32)
        p_pack[2 * i + 1, :co_] = np.asarray(lp["beta"], np.float32)

    # Exact fold of Conv1d(c->1, k=2, pad=1) + Linear(3, 1):
    #   lin = sum_{r,c} x_pad[r, c] * W_eff[r, c] + bias_eff
    #   W_eff[r, c] = sum_{k: 0<=r-k<=2} w_lin[r-k] * w_conv[0, c, k]
    wf = np.asarray(fp["w"], np.float32)[0]              # (c_head, 2)
    wl = np.asarray(fp["w_lin"], np.float32)[0]          # (3,)
    weff = np.zeros((head_l_pad, c_head), np.float32)
    for k in range(2):
        for j in range(3):
            weff[j + k, :] += wl[j] * wf[:, k]
    bias_eff = (float(np.asarray(fp["b"], np.float32)[0]) * float(wl.sum())
                + float(np.asarray(fp["b_lin"], np.float32)[0]))
    p_pack[p_base:p_base + head_l_pad, :c_head] = weff
    p_pack[p_base + head_l_pad, 0] = bias_eff

    meta = (tuple(metas), (c_head, head_l_pad, p_base))
    return dict(w_pack=jnp.asarray(w_pack), p_pack=jnp.asarray(p_pack), meta=meta)


# --------------------------------------------------------------------------
# Jitted forward: input pad/transpose (one fused op) + single pallas_call.
# --------------------------------------------------------------------------
def _full_spec(shape):
    zeros = (0,) * len(shape)
    return pl.BlockSpec(shape, lambda i, _z=zeros: _z)


@functools.partial(jax.jit, static_argnames=("meta",))
def _forward_impl(x, w_pack, p_pack, *, meta):
    stage_meta, head_meta = meta
    n, c_in, l_in = x.shape
    if c_in != stage_meta[0][0] or l_in + 2 != stage_meta[0][2]:
        raise ValueError("input shape does not match prepared parameters")

    # length-major, zero-padded input: row  b*(l_in+2) + pos, col = channel
    l_pad0 = stage_meta[0][2]
    xp = jnp.pad(x, ((0, 0), (0, 0), (1, 1))).transpose(0, 2, 1)
    xp = xp.reshape(n * l_pad0, c_in)

    scratch = []
    for (ci, co, l_pad, l_conv, l_pool, _off) in stage_meta:
        scratch.append(pltpu.VMEM((n * l_conv, KSIZE * ci), jnp.float32))  # im2col
        scratch.append(pltpu.VMEM((n * l_conv, co), jnp.float32))          # raw conv
        scratch.append(pltpu.VMEM((n * (l_pool + 2), co), jnp.float32))    # next input

    kern = functools.partial(_fused_kernel, n_batch=n,
                             stage_meta=stage_meta, head_meta=head_meta)

    flops = 0
    for (ci, co, _lp, l_conv, _lpo, _off) in stage_meta:
        flops += n * (2 * l_conv * KSIZE * ci * co + 6 * l_conv * co)
    c_head, head_l_pad, _ = head_meta
    flops += n * (2 * head_l_pad * c_head + 8)
    cost = pl.CostEstimate(
        flops=int(flops),
        transcendentals=int(n + 64),
        bytes_accessed=int(4 * (xp.size + w_pack.size + p_pack.size + n)))

    out2d = pl.pallas_call(
        kern,
        out_shape=jax.ShapeDtypeStruct((n, 1), jnp.float32),
        grid=(1,),
        in_specs=[_full_spec(xp.shape),
                  _full_spec(w_pack.shape),
                  _full_spec(p_pack.shape)],
        out_specs=_full_spec((n, 1)),
        scratch_shapes=scratch,
        cost_estimate=cost,
    )(xp, w_pack, p_pack)
    return out2d.reshape(n, 1, 1)


def conv1d_v4_forward(x, prepped):
    return _forward_impl(x, prepped["w_pack"], prepped["p_pack"],
                         meta=prepped["meta"])


# --------------------------------------------------------------------------
# Deterministic parameter init (shapes from Conv1D_v4.__init__, channels=C)
# --------------------------------------------------------------------------
def init_params(key, channels):
    chan_pairs = [(channels, channels * 2), (channels * 2, channels * 4),
                  (channels * 4, channels * 2), (channels * 2, channels)]
    layers = []
    for c_in, c_out in chan_pairs:
        key, k1, k2, k3, k4 = jax.random.split(key, 5)
        scale = 1.0 / jnp.sqrt(c_in * 3.0)
        layers.append(dict(
            w=scale * jax.random.normal(k1, (c_out, c_in, 3), jnp.float32),
            b=0.1 * jax.random.normal(k2, (c_out,), jnp.float32),
            gamma=1.0 + 0.1 * jax.random.normal(k3, (c_out,), jnp.float32),
            beta=0.1 * jax.random.normal(k4, (c_out,), jnp.float32)))
    key, k1, k2, k3, k4 = jax.random.split(key, 5)
    final = dict(
        w=(1.0 / jnp.sqrt(channels * 2.0))
          * jax.random.normal(k1, (1, channels, 2), jnp.float32),
        b=0.1 * jax.random.normal(k2, (1,), jnp.float32),
        w_lin=(1.0 / jnp.sqrt(3.0)) * jax.random.normal(k3, (1, 3), jnp.float32),
        b_lin=0.1 * jax.random.normal(k4, (1,), jnp.float32))
    return dict(layers=layers, final=final)


# --------------------------------------------------------------------------
# Pure-JAX reference (mirrors PyTorch forward in training mode) for checking
# --------------------------------------------------------------------------
def reference_forward(x, params):
    h = x
    for lp in params["layers"]:
        y = lax.conv_general_dilated(
            h, lp["w"], window_strides=(2,), padding=[(1, 1)],
            dimension_numbers=("NCH", "OIH", "NCH")) + lp["b"][None, :, None]
        m = jnp.mean(y, axis=(0, 2), keepdims=True)
        v = jnp.mean((y - m) ** 2, axis=(0, 2), keepdims=True)
        z = (y - m) * lax.rsqrt(v + EPS) * lp["gamma"][None, :, None] \
            + lp["beta"][None, :, None]
        p = lax.reduce_window(z, -jnp.inf, lax.max, (1, 1, 3), (1, 1, 2), "VALID")
        h = jnp.where(p >= 0, p, NEG_SLOPE * p)
    fp = params["final"]
    y = lax.conv_general_dilated(
        h, fp["w"], window_strides=(1,), padding=[(1, 1)],
        dimension_numbers=("NCH", "OIH", "NCH")) + fp["b"][None, :, None]
    lin = jnp.einsum("ncl,ol->nco", y, fp["w_lin"]) + fp["b_lin"][None, None, :]
    return jax.nn.sigmoid(lin)


if __name__ == "__main__":
    # Length 600: the four conv(s=2)+maxpool(s=2) stages leave exactly 2
    # samples, so the final Conv1d(k=2, pad=1) yields 3 features for Linear(3,1).
    batch, channels, length = 2, 4, 600
    key = jax.random.PRNGKey(0)
    kx, kp = jax.random.split(key)
    x = jax.random.normal(kx, (batch, channels, length), jnp.float32)
    params = init_params(kp, channels)

    prepped = prepare_params(params, length)            # one-time weight layout
    out = jax.block_until_ready(conv1d_v4_forward(x, prepped))
    ref = jax.block_until_ready(reference_forward(x, params))

    assert out.shape == (batch, 1, 1), out.shape
    assert bool(jnp.all(jnp.isfinite(out)))
    max_diff = float(jnp.max(jnp.abs(out - ref)))
    assert max_diff < 1e-3, f"kernel/reference mismatch: {max_diff}"
    print("KERNEL_OK")
</pallas_src>

<mosaic_0001>
module attributes {stable_mosaic.version = 11 : i64} {
  func.func @_fused_kernel(%arg0: i32, %arg1: memref<1204x4xf32, #tpu.memory_space<vmem>>, %arg2: memref<112x16xf32, #tpu.memory_space<vmem>>, %arg3: memref<16x16xf32, #tpu.memory_space<vmem>>, %arg4: memref<2x1xf32, #tpu.memory_space<vmem>>, %arg5: memref<600x12xf32, #tpu.memory_space<vmem>>, %arg6: memref<600x8xf32, #tpu.memory_space<vmem>>, %arg7: memref<302x8xf32, #tpu.memory_space<vmem>>, %arg8: memref<150x24xf32, #tpu.memory_space<vmem>>, %arg9: memref<150x16xf32, #tpu.memory_space<vmem>>, %arg10: memref<78x16xf32, #tpu.memory_space<vmem>>, %arg11: memref<38x48xf32, #tpu.memory_space<vmem>>, %arg12: memref<38x8xf32, #tpu.memory_space<vmem>>, %arg13: memref<22x8xf32, #tpu.memory_space<vmem>>, %arg14: memref<10x24xf32, #tpu.memory_space<vmem>>, %arg15: memref<10x4xf32, #tpu.memory_space<vmem>>, %arg16: memref<8x4xf32, #tpu.memory_space<vmem>>) attributes {dimension_semantics = [#tpu.dimension_semantics<arbitrary>], iteration_bounds = array<i64: 1>, scalar_prefetch = 0 : i64, scratch_operands = 12 : i64, tpu.core_type = #tpu.core_type<tc>, window_params = [{pipeline_mode = #tpu.pipeline_mode<synchronous>, transform_indices = @transform_0, window_bounds = array<i64: 1204, 4>}, {pipeline_mode = #tpu.pipeline_mode<synchronous>, transform_indices = @transform_1, window_bounds = array<i64: 112, 16>}, {pipeline_mode = #tpu.pipeline_mode<synchronous>, transform_indices = @transform_2, window_bounds = array<i64: 16, 16>}, {pipeline_mode = #tpu.pipeline_mode<synchronous>, transform_indices = @transform_3, window_bounds = array<i64: 2, 1>}]} {
    %c0 = arith.constant 0 : index
    %c0_0 = arith.constant 0 : index
    %0 = vector.load %arg2[%c0, %c0_0] : memref<112x16xf32, #tpu.memory_space<vmem>>, vector<12x8xf32>
    %cst = arith.constant 0.000000e+00 : f32
    %1 = vector.broadcast %cst : f32 to vector<1x8xf32>
    %cst_1 = arith.constant 0.000000e+00 : f32
    %2 = vector.broadcast %cst_1 : f32 to vector<1x8xf32>
    %c0_2 = arith.constant 0 : index
    %c0_3 = arith.constant 0 : index
    %3 = tpu.strided_load %arg1[%c0_2, %c0_3] {strides = array<i32: 2, 1>} : memref<1204x4xf32, #tpu.memory_space<vmem>>, vector<300x4xf32>
    %c0_4 = arith.constant 0 : index
    %c0_5 = arith.constant 0 : index
    %4 = vector.load %arg5[%c0_4, %c0_5] : memref<600x12xf32, #tpu.memory_space<vmem>>, vector<300x4xf32>
    tpu.vector_store %arg5[%c0_4, %c0_5], %3 {strides = array<i32>} : memref<600x12xf32, #tpu.memory_space<vmem>>, vector<300x4xf32>,
    %c1 = arith.constant 1 : index
    %c0_6 = arith.constant 0 : index
    %5 = tpu.strided_load %arg1[%c1, %c0_6] {strides = array<i32: 2, 1>} : memref<1204x4xf32, #tpu.memory_space<vmem>>, vector<300x4xf32>
    %c0_7 = arith.constant 0 : index
    %c4 = arith.constant 4 : index
    %6 = vector.load %arg5[%c0_7, %c4] : memref<600x12xf32, #tpu.memory_space<vmem>>, vector<300x4xf32>
    tpu.vector_store %arg5[%c0_7, %c4], %5 {strides = array<i32>} : memref<600x12xf32, #tpu.memory_space<vmem>>, vector<300x4xf32>,
    %c2 = arith.constant 2 : index
    %c0_8 = arith.constant 0 : index
    %7 = tpu.strided_load %arg1[%c2, %c0_8] {strides = array<i32: 2, 1>} : memref<1204x4xf32, #tpu.memory_space<vmem>>, vector<300x4xf32>
    %c0_9 = arith.constant 0 : index
    %c8 = arith.constant 8 : index
    %8 = vector.load %arg5[%c0_9, %c8] : memref<600x12xf32, #tpu.memory_space<vmem>>, vector<300x4xf32>
    tpu.vector_store %arg5[%c0_9, %c8], %7 {strides = array<i32>} : memref<600x12xf32, #tpu.memory_space<vmem>>, vector<300x4xf32>,
    %c0_10 = arith.constant 0 : index
    %c0_11 = arith.constant 0 : index
    %9 = vector.load %arg5[%c0_10, %c0_11] : memref<600x12xf32, #tpu.memory_space<vmem>>, vector<300x12xf32>
    %cst_12 = arith.constant dense<0.000000e+00> : vector<300x8xf32>
    %10 = tpu.matmul %9, %0, %cst_12 {dimension_numbers = #tpu.dot_dimension_numbers<[1], [0], [0], [1], [0, 0, 1, 1], [], []>} : vector<300x12xf32>, vector<12x8xf32>, vector<300x8xf32> -> vector<300x8xf32>
    %c0_13 = arith.constant 0 : index
    %c0_14 = arith.constant 0 : index
    %11 = vector.load %arg6[%c0_13, %c0_14] : memref<600x8xf32, #tpu.memory_space<vmem>>, vector<300x8xf32>
    tpu.vector_store %arg6[%c0_13, %c0_14], %10 {strides = array<i32>} : memref<600x8xf32, #tpu.memory_space<vmem>>, vector<300x8xf32>,
    %cst_15 = arith.constant dense<0.000000e+00> : vector<8xf32>
    %12 = vector.multi_reduction <add>, %10, %cst_15 [0] : vector<300x8xf32> to vector<8xf32>
    %13 = vector.shape_cast %12 : vector<8xf32> to vector<1x8xf32>
    %14 = arith.addf %1, %13 : vector<1x8xf32>
    %15 = arith.mulf %10, %10 : vector<300x8xf32>
    %cst_16 = arith.constant dense<0.000000e+00> : vector<8xf32>
    %16 = vector.multi_reduction <add>, %15, %cst_16 [0] : vector<300x8xf32> to vector<8xf32>
    %17 = vector.shape_cast %16 : vector<8xf32> to vector<1x8xf32>
    %18 = arith.addf %2, %17 : vector<1x8xf32>
    %c602 = arith.constant 602 : index
    %c0_17 = arith.constant 0 : index
    %19 = tpu.strided_load %arg1[%c602, %c0_17] {strides = array<i32: 2, 1>} : memref<1204x4xf32, #tpu.memory_space<vmem>>, vector<300x4xf32>
    %c300 = arith.constant 300 : index
    %c0_18 = arith.constant 0 : index
    %20 = vector.load %arg5[%c300, %c0_18] : memref<600x12xf32, #tpu.memory_space<vmem>>, vector<300x4xf32>
    tpu.vector_store %arg5[%c300, %c0_18], %19 {strides = array<i32>} : memref<600x12xf32, #tpu.memory_space<vmem>>, vector<300x4xf32>,
    %c603 = arith.constant 603 : index
    %c0_19 = arith.constant 0 : index
    %21 = tpu.strided_load %arg1[%c603, %c0_19] {strides = array<i32: 2, 1>} : memref<1204x4xf32, #tpu.memory_space<vmem>>, vector<300x4xf32>
    %c300_20 = arith.constant 300 : index
    %c4_21 = arith.constant 4 : index
    %22 = vector.load %arg5[%c300_20, %c4_21] : memref<600x12xf32, #tpu.memory_space<vmem>>, vector<300x4xf32>
    tpu.vector_store %arg5[%c300_20, %c4_21], %21 {strides = array<i32>} : memref<600x12xf32, #tpu.memory_space<vmem>>, vector<300x4xf32>,
    %c604 = arith.constant 604 : index
    %c0_22 = arith.constant 0 : index
    %23 = tpu.strided_load %arg1[%c604, %c0_22] {strides = array<i32: 2, 1>} : memref<1204x4xf32, #tpu.memory_space<vmem>>, vector<300x4xf32>
    %c300_23 = arith.constant 300 : index
    %c8_24 = arith.constant 8 : index
    %24 = vector.load %arg5[%c300_23, %c8_24] : memref<600x12xf32, #tpu.memory_space<vmem>>, vector<300x4xf32>
    tpu.vector_store %arg5[%c300_23, %c8_24], %23 {strides = array<i32>} : memref<600x12xf32, #tpu.memory_space<vmem>>, vector<300x4xf32>,
    %c300_25 = arith.constant 300 : index
    %c0_26 = arith.constant 0 : index
    %25 = vector.load %arg5[%c300_25, %c0_26] : memref<600x12xf32, #tpu.memory_space<vmem>>, vector<300x12xf32>
    %cst_27 = arith.constant dense<0.000000e+00> : vector<300x8xf32>
    %26 = tpu.matmul %25, %0, %cst_27 {dimension_numbers = #tpu.dot_dimension_numbers<[1], [0], [0], [1], [0, 0, 1, 1], [], []>} : vector<300x12xf32>, vector<12x8xf32>, vector<300x8xf32> -> vector<300x8xf32>
    %c300_28 = arith.constant 300 : index
    %c0_29 = arith.constant 0 : index
    %27 = vector.load %arg6[%c300_28, %c0_29] : memref<600x8xf32, #tpu.memory_space<vmem>>, vector<300x8xf32>
    tpu.vector_store %arg6[%c300_28, %c0_29], %26 {strides = array<i32>} : memref<600x8xf32, #tpu.memory_space<vmem>>, vector<300x8xf32>,
    %cst_30 = arith.constant dense<0.000000e+00> : vector<8xf32>
    %28 = vector.multi_reduction <add>, %26, %cst_30 [0] : vector<300x8xf32> to vector<8xf32>
    %29 = vector.shape_cast %28 : vector<8xf32> to vector<1x8xf32>
    %30 = arith.addf %14, %29 : vector<1x8xf32>
    %31 = arith.mulf %26, %26 : vector<300x8xf32>
    %cst_31 = arith.constant dense<0.000000e+00> : vector<8xf32>
    %32 = vector.multi_reduction <add>, %31, %cst_31 [0] : vector<300x8xf32> to vector<8xf32>
    %33 = vector.shape_cast %32 : vector<8xf32> to vector<1x8xf32>
    %34 = arith.addf %18, %33 : vector<1x8xf32>
    %cst_32 = arith.constant 0.00166666671 : f32
    %35 = vector.broadcast %cst_32 : f32 to vector<1x8xf32>
    %36 = arith.mulf %30, %35 : vector<1x8xf32>
    %cst_33 = arith.constant 0.00166666671 : f32
    %37 = vector.broadcast %cst_33 : f32 to vector<1x8xf32>
    %38 = arith.mulf %34, %37 : vector<1x8xf32>
    %39 = arith.mulf %36, %36 : vector<1x8xf32>
    %40 = arith.subf %38, %39 : vector<1x8xf32>
    %cst_34 = arith.constant 0.000000e+00 : f32
    %41 = vector.broadcast %cst_34 : f32 to vector<1x8xf32>
    %42 = arith.maximumf %40, %41 : vector<1x8xf32>
    %c0_35 = arith.constant 0 : index
    %c0_36 = arith.constant 0 : index
    %43 = vector.load %arg3[%c0_35, %c0_36] : memref<16x16xf32, #tpu.memory_space<vmem>>, vector<1x8xf32>
    %c1_37 = arith.constant 1 : index
    %c0_38 = arith.constant 0 : index
    %44 = vector.load %arg3[%c1_37, %c0_38] : memref<16x16xf32, #tpu.memory_space<vmem>>, vector<1x8xf32>
    %cst_39 = arith.constant 9.99999974E-6 : f32
    %45 = vector.broadcast %cst_39 : f32 to vector<1x8xf32>
    %46 = arith.addf %42, %45 : vector<1x8xf32>
    %47 = math.rsqrt %46 : vector<1x8xf32>
    %48 = arith.mulf %43, %47 : vector<1x8xf32>
    %49 = arith.mulf %36, %48 : vector<1x8xf32>
    %50 = arith.subf %44, %49 : vector<1x8xf32>
    %cst_40 = arith.constant 0.000000e+00 : f32
    %51 = vector.broadcast %cst_40 : f32 to vector<1x8xf32>
    %c0_41 = arith.constant 0 : index
    %c0_42 = arith.constant 0 : index
    %52 = vector.load %arg7[%c0_41, %c0_42] : memref<302x8xf32, #tpu.memory_space<vmem>>, vector<1x8xf32>
    tpu.vector_store %arg7[%c0_41, %c0_42], %51 {strides = array<i32>} : memref<302x8xf32, #tpu.memory_space<vmem>>, vector<1x8xf32>,
    %c150 = arith.constant 150 : index
    %c0_43 = arith.constant 0 : index
    %53 = vector.load %arg7[%c150, %c0_43] : memref<302x8xf32, #tpu.memory_space<vmem>>, vector<1x8xf32>
    tpu.vector_store %arg7[%c150, %c0_43], %51 {strides = array<i32>} : memref<302x8xf32, #tpu.memory_space<vmem>>, vector<1x8xf32>,
    %c0_44 = arith.constant 0 : index
    %c0_45 = arith.constant 0 : index
    %54 = tpu.strided_load %arg6[%c0_44, %c0_45] {strides = array<i32: 2, 1>} : memref<600x8xf32, #tpu.memory_space<vmem>>, vector<149x8xf32>
    %55 = vector.broadcast %48 : vector<1x8xf32> to vector<149x8xf32>
    %56 = arith.mulf %54, %55 : vector<149x8xf32>
    %c1_46 = arith.constant 1 : index
    %c0_47 = arith.constant 0 : index
    %57 = tpu.strided_load %arg6[%c1_46, %c0_47] {strides = array<i32: 2, 1>} : memref<600x8xf32, #tpu.memory_space<vmem>>, vector<149x8xf32>
    %58 = vector.broadcast %48 : vector<1x8xf32> to vector<149x8xf32>
    %59 = arith.mulf %57, %58 : vector<149x8xf32>
    %60 = arith.maximumf %56, %59 : vector<149x8xf32>
    %c2_48 = arith.constant 2 : index
    %c0_49 = arith.constant 0 : index
    %61 = tpu.strided_load %arg6[%c2_48, %c0_49] {strides = array<i32: 2, 1>} : memref<600x8xf32, #tpu.memory_space<vmem>>, vector<149x8xf32>
    %62 = vector.broadcast %48 : vector<1x8xf32> to vector<149x8xf32>
    %63 = arith.mulf %61, %62 : vector<149x8xf32>
    %64 = arith.maximumf %60, %63 : vector<149x8xf32>
    %65 = vector.broadcast %50 : vector<1x8xf32> to vector<149x8xf32>
    %66 = arith.addf %64, %65 : vector<149x8xf32>
    %cst_50 = arith.constant 0.000000e+00 : f32
    %67 = vector.broadcast %cst_50 : f32 to vector<149x8xf32>
    %68 = arith.cmpf oge, %66, %67 : vector<149x8xf32>
    %cst_51 = arith.constant 2.000000e-01 : f32
    %69 = vector.broadcast %cst_51 : f32 to vector<149x8xf32>
    %70 = arith.mulf %69, %66 : vector<149x8xf32>
    %71 = arith.select %68, %66, %70 : vector<149x8xi1>, vector<149x8xf32>
    %c1_52 = arith.constant 1 : index
    %c0_53 = arith.constant 0 : index
    %72 = vector.load %arg7[%c1_52, %c0_53] : memref<302x8xf32, #tpu.memory_space<vmem>>, vector<149x8xf32>
    tpu.vector_store %arg7[%c1_52, %c0_53], %71 {strides = array<i32>} : memref<302x8xf32, #tpu.memory_space<vmem>>, vector<149x8xf32>,
    %c151 = arith.constant 151 : index
    %c0_54 = arith.constant 0 : index
    %73 = vector.load %arg7[%c151, %c0_54] : memref<302x8xf32, #tpu.memory_space<vmem>>, vector<1x8xf32>
    tpu.vector_store %arg7[%c151, %c0_54], %51 {strides = array<i32>} : memref<302x8xf32, #tpu.memory_space<vmem>>, vector<1x8xf32>,
    %c301 = arith.constant 301 : index
    %c0_55 = arith.constant 0 : index
    %74 = vector.load %arg7[%c301, %c0_55] : memref<302x8xf32, #tpu.memory_space<vmem>>, vector<1x8xf32>
    tpu.vector_store %arg7[%c301, %c0_55], %51 {strides = array<i32>} : memref<302x8xf32, #tpu.memory_space<vmem>>, vector<1x8xf32>,
    %c300_56 = arith.constant 300 : index
    %c0_57 = arith.constant 0 : index
    %75 = tpu.strided_load %arg6[%c300_56, %c0_57] {strides = array<i32: 2, 1>} : memref<600x8xf32, #tpu.memory_space<vmem>>, vector<149x8xf32>
    %76 = vector.broadcast %48 : vector<1x8xf32> to vector<149x8xf32>
    %77 = arith.mulf %75, %76 : vector<149x8xf32>
    %c301_58 = arith.constant 301 : index
    %c0_59 = arith.constant 0 : index
    %78 = tpu.strided_load %arg6[%c301_58, %c0_59] {strides = array<i32: 2, 1>} : memref<600x8xf32, #tpu.memory_space<vmem>>, vector<149x8xf32>
    %79 = vector.broadcast %48 : vector<1x8xf32> to vector<149x8xf32>
    %80 = arith.mulf %78, %79 : vector<149x8xf32>
    %81 = arith.maximumf %77, %80 : vector<149x8xf32>
    %c302 = arith.constant 302 : index
    %c0_60 = arith.constant 0 : index
    %82 = tpu.strided_load %arg6[%c302, %c0_60] {strides = array<i32: 2, 1>} : memref<600x8xf32, #tpu.memory_space<vmem>>, vector<149x8xf32>
    %83 = vector.broadcast %48 : vector<1x8xf32> to vector<149x8xf32>
    %84 = arith.mulf %82, %83 : vector<149x8xf32>
    %85 = arith.maximumf %81, %84 : vector<149x8xf32>
    %86 = vector.broadcast %50 : vector<1x8xf32> to vector<149x8xf32>
    %87 = arith.addf %85, %86 : vector<149x8xf32>
    %cst_61 = arith.constant 0.000000e+00 : f32
    %88 = vector.broadcast %cst_61 : f32 to vector<149x8xf32>
    %89 = arith.cmpf oge, %87, %88 : vector<149x8xf32>
    %cst_62 = arith.constant 2.000000e-01 : f32
    %90 = vector.broadcast %cst_62 : f32 to vector<149x8xf32>
    %91 = arith.mulf %90, %87 : vector<149x8xf32>
    %92 = arith.select %89, %87, %91 : vector<149x8xi1>, vector<149x8xf32>
    %c152 = arith.constant 152 : index
    %c0_63 = arith.constant 0 : index
    %93 = vector.load %arg7[%c152, %c0_63] : memref<302x8xf32, #tpu.memory_space<vmem>>, vector<149x8xf32>
    tpu.vector_store %arg7[%c152, %c0_63], %92 {strides = array<i32>} : memref<302x8xf32, #tpu.memory_space<vmem>>, vector<149x8xf32>,
    %c16 = arith.constant 16 : index
    %c0_64 = arith.constant 0 : index
    %94 = vector.load %arg2[%c16, %c0_64] : memref<112x16xf32, #tpu.memory_space<vmem>>, vector<24x16xf32>
    %cst_65 = arith.constant 0.000000e+00 : f32
    %95 = vector.broadcast %cst_65 : f32 to vector<1x16xf32>
    %cst_66 = arith.constant 0.000000e+00 : f32
    %96 = vector.broadcast %cst_66 : f32 to vector<1x16xf32>
    %c0_67 = arith.constant 0 : index
    %c0_68 = arith.constant 0 : index
    %97 = tpu.strided_load %arg7[%c0_67, %c0_68] {strides = array<i32: 2, 1>} : memref<302x8xf32, #tpu.memory_space<vmem>>, vector<75x8xf32>
    %c0_69 = arith.constant 0 : index
    %c0_70 = arith.constant 0 : index
    %98 = vector.load %arg8[%c0_69, %c0_70] : memref<150x24xf32, #tpu.memory_space<vmem>>, vector<75x8xf32>
    tpu.vector_store %arg8[%c0_69, %c0_70], %97 {strides = array<i32>} : memref<150x24xf32, #tpu.memory_space<vmem>>, vector<75x8xf32>,
    %c1_71 = arith.constant 1 : index
    %c0_72 = arith.constant 0 : index
    %99 = tpu.strided_load %arg7[%c1_71, %c0_72] {strides = array<i32: 2, 1>} : memref<302x8xf32, #tpu.memory_space<vmem>>, vector<75x8xf32>
    %c0_73 = arith.constant 0 : index
    %c8_74 = arith.constant 8 : index
    %100 = vector.load %arg8[%c0_73, %c8_74] : memref<150x24xf32, #tpu.memory_space<vmem>>, vector<75x8xf32>
    tpu.vector_store %arg8[%c0_73, %c8_74], %99 {strides = array<i32>} : memref<150x24xf32, #tpu.memory_space<vmem>>, vector<75x8xf32>,
    %c2_75 = arith.constant 2 : index
    %c0_76 = arith.constant 0 : index
    %101 = tpu.strided_load %arg7[%c2_75, %c0_76] {strides = array<i32: 2, 1>} : memref<302x8xf32, #tpu.memory_space<vmem>>, vector<75x8xf32>
    %c0_77 = arith.constant 0 : index
    %c16_78 = arith.constant 16 : index
    %102 = vector.load %arg8[%c0_77, %c16_78] : memref<150x24xf32, #tpu.memory_space<vmem>>, vector<75x8xf32>
    tpu.vector_store %arg8[%c0_77, %c16_78], %101 {strides = array<i32>} : memref<150x24xf32, #tpu.memory_space<vmem>>, vector<75x8xf32>,
    %c0_79 = arith.constant 0 : index
    %c0_80 = arith.constant 0 : index
    %103 = vector.load %arg8[%c0_79, %c0_80] : memref<150x24xf32, #tpu.memory_space<vmem>>, vector<75x24xf32>
    %cst_81 = arith.constant dense<0.000000e+00> : vector<75x16xf32>
    %104 = tpu.matmul %103, %94, %cst_81 {dimension_numbers = #tpu.dot_dimension_numbers<[1], [0], [0], [1], [0, 0, 1, 1], [], []>} : vector<75x24xf32>, vector<24x16xf32>, vector<75x16xf32> -> vector<75x16xf32>
    %c0_82 = arith.constant 0 : index
    %c0_83 = arith.constant 0 : index
    %105 = vector.load %arg9[%c0_82, %c0_83] : memref<150x16xf32, #tpu.memory_space<vmem>>, vector<75x16xf32>
    tpu.vector_store %arg9[%c0_82, %c0_83], %104 {strides = array<i32>} : memref<150x16xf32, #tpu.memory_space<vmem>>, vector<75x16xf32>,
    %cst_84 = arith.constant dense<0.000000e+00> : vector<16xf32>
    %106 = vector.multi_reduction <add>, %104, %cst_84 [0] : vector<75x16xf32> to vector<16xf32>
    %107 = vector.shape_cast %106 : vector<16xf32> to vector<1x16xf32>
    %108 = arith.addf %95, %107 : vector<1x16xf32>
    %109 = arith.mulf %104, %104 : vector<75x16xf32>
    %cst_85 = arith.constant dense<0.000000e+00> : vector<16xf32>
    %110 = vector.multi_reduction <add>, %109, %cst_85 [0] : vector<75x16xf32> to vector<16xf32>
    %111 = vector.shape_cast %110 : vector<16xf32> to vector<1x16xf32>
    %112 = arith.addf %96, %111 : vector<1x16xf32>
    %c151_86 = arith.constant 151 : index
    %c0_87 = arith.constant 0 : index
    %113 = tpu.strided_load %arg7[%c151_86, %c0_87] {strides = array<i32: 2, 1>} : memref<302x8xf32, #tpu.memory_space<vmem>>, vector<75x8xf32>
    %c75 = arith.constant 75 : index
    %c0_88 = arith.constant 0 : index
    %114 = vector.load %arg8[%c75, %c0_88] : memref<150x24xf32, #tpu.memory_space<vmem>>, vector<75x8xf32>
    tpu.vector_store %arg8[%c75, %c0_88], %113 {strides = array<i32>} : memref<150x24xf32, #tpu.memory_space<vmem>>, vector<75x8xf32>,
    %c152_89 = arith.constant 152 : index
    %c0_90 = arith.constant 0 : index
    %115 = tpu.strided_load %arg7[%c152_89, %c0_90] {strides = array<i32: 2, 1>} : memref<302x8xf32, #tpu.memory_space<vmem>>, vector<75x8xf32>
    %c75_91 = arith.constant 75 : index
    %c8_92 = arith.constant 8 : index
    %116 = vector.load %arg8[%c75_91, %c8_92] : memref<150x24xf32, #tpu.memory_space<vmem>>, vector<75x8xf32>
    tpu.vector_store %arg8[%c75_91, %c8_92], %115 {strides = array<i32>} : memref<150x24xf32, #tpu.memory_space<vmem>>, vector<75x8xf32>,
    %c153 = arith.constant 153 : index
    %c0_93 = arith.constant 0 : index
    %117 = tpu.strided_load %arg7[%c153, %c0_93] {strides = array<i32: 2, 1>} : memref<302x8xf32, #tpu.memory_space<vmem>>, vector<75x8xf32>
    %c75_94 = arith.constant 75 : index
    %c16_95 = arith.constant 16 : index
    %118 = vector.load %arg8[%c75_94, %c16_95] : memref<150x24xf32, #tpu.memory_space<vmem>>, vector<75x8xf32>
    tpu.vector_store %arg8[%c75_94, %c16_95], %117 {strides = array<i32>} : memref<150x24xf32, #tpu.memory_space<vmem>>, vector<75x8xf32>,
    %c75_96 = arith.constant 75 : index
    %c0_97 = arith.constant 0 : index
    %119 = vector.load %arg8[%c75_96, %c0_97] : memref<150x24xf32, #tpu.memory_space<vmem>>, vector<75x24xf32>
    %cst_98 = arith.constant dense<0.000000e+00> : vector<75x16xf32>
    %120 = tpu.matmul %119, %94, %cst_98 {dimension_numbers = #tpu.dot_dimension_numbers<[1], [0], [0], [1], [0, 0, 1, 1], [], []>} : vector<75x24xf32>, vector<24x16xf32>, vector<75x16xf32> -> vector<75x16xf32>
    %c75_99 = arith.constant 75 : index
    %c0_100 = arith.constant 0 : index
    %121 = vector.load %arg9[%c75_99, %c0_100] : memref<150x16xf32, #tpu.memory_space<vmem>>, vector<75x16xf32>
    tpu.vector_store %arg9[%c75_99, %c0_100], %120 {strides = array<i32>} : memref<150x16xf32, #tpu.memory_space<vmem>>, vector<75x16xf32>,
    %cst_101 = arith.constant dense<0.000000e+00> : vector<16xf32>
    %122 = vector.multi_reduction <add>, %120, %cst_101 [0] : vector<75x16xf32> to vector<16xf32>
    %123 = vector.shape_cast %122 : vector<16xf32> to vector<1x16xf32>
    %124 = arith.addf %108, %123 : vector<1x16xf32>
    %125 = arith.mulf %120, %120 : vector<75x16xf32>
    %cst_102 = arith.constant dense<0.000000e+00> : vector<16xf32>
    %126 = vector.multi_reduction <add>, %125, %cst_102 [0] : vector<75x16xf32> to vector<16xf32>
    %127 = vector.shape_cast %126 : vector<16xf32> to vector<1x16xf32>
    %128 = arith.addf %112, %127 : vector<1x16xf32>
    %cst_103 = arith.constant 0.00666666683 : f32
    %129 = vector.broadcast %cst_103 : f32 to vector<1x16xf32>
    %130 = arith.mulf %124, %129 : vector<1x16xf32>
    %cst_104 = arith.constant 0.00666666683 : f32
    %131 = vector.broadcast %cst_104 : f32 to vector<1x16xf32>
    %132 = arith.mulf %128, %131 : vector<1x16xf32>
    %133 = arith.mulf %130, %130 : vector<1x16xf32>
    %134 = arith.subf %132, %133 : vector<1x16xf32>
    %cst_105 = arith.constant 0.000000e+00 : f32
    %135 = vector.broadcast %cst_105 : f32 to vector<1x16xf32>
    %136 = arith.maximumf %134, %135 : vector<1x16xf32>
    %c2_106 = arith.constant 2 : index
    %c0_107 = arith.constant 0 : index
    %137 = vector.load %arg3[%c2_106, %c0_107] : memref<16x16xf32, #tpu.memory_space<vmem>>, vector<1x16xf32>
    %c3 = arith.constant 3 : index
    %c0_108 = arith.constant 0 : index
    %138 = vector.load %arg3[%c3, %c0_108] : memref<16x16xf32, #tpu.memory_space<vmem>>, vector<1x16xf32>
    %cst_109 = arith.constant 9.99999974E-6 : f32
    %139 = vector.broadcast %cst_109 : f32 to vector<1x16xf32>
    %140 = arith.addf %136, %139 : vector<1x16xf32>
    %141 = math.rsqrt %140 : vector<1x16xf32>
    %142 = arith.mulf %137, %141 : vector<1x16xf32>
    %143 = arith.mulf %130, %142 : vector<1x16xf32>
    %144 = arith.subf %138, %143 : vector<1x16xf32>
    %cst_110 = arith.constant 0.000000e+00 : f32
    %145 = vector.broadcast %cst_110 : f32 to vector<1x16xf32>
    %c0_111 = arith.constant 0 : index
    %c0_112 = arith.constant 0 : index
    %146 = vector.load %arg10[%c0_111, %c0_112] : memref<78x16xf32, #tpu.memory_space<vmem>>, vector<1x16xf32>
    tpu.vector_store %arg10[%c0_111, %c0_112], %145 {strides = array<i32>} : memref<78x16xf32, #tpu.memory_space<vmem>>, vector<1x16xf32>,
    %c38 = arith.constant 38 : index
    %c0_113 = arith.constant 0 : index
    %147 = vector.load %arg10[%c38, %c0_113] : memref<78x16xf32, #tpu.memory_space<vmem>>, vector<1x16xf32>
    tpu.vector_store %arg10[%c38, %c0_113], %145 {strides = array<i32>} : memref<78x16xf32, #tpu.memory_space<vmem>>, vector<1x16xf32>,
    %c0_114 = arith.constant 0 : index
    %c0_115 = arith.constant 0 : index
    %148 = tpu.strided_load %arg9[%c0_114, %c0_115] {strides = array<i32: 2, 1>} : memref<150x16xf32, #tpu.memory_space<vmem>>, vector<37x16xf32>
    %149 = vector.broadcast %142 : vector<1x16xf32> to vector<37x16xf32>
    %150 = arith.mulf %148, %149 : vector<37x16xf32>
    %c1_116 = arith.constant 1 : index
    %c0_117 = arith.constant 0 : index
    %151 = tpu.strided_load %arg9[%c1_116, %c0_117] {strides = array<i32: 2, 1>} : memref<150x16xf32, #tpu.memory_space<vmem>>, vector<37x16xf32>
    %152 = vector.broadcast %142 : vector<1x16xf32> to vector<37x16xf32>
    %153 = arith.mulf %151, %152 : vector<37x16xf32>
    %154 = arith.maximumf %150, %153 : vector<37x16xf32>
    %c2_118 = arith.constant 2 : index
    %c0_119 = arith.constant 0 : index
    %155 = tpu.strided_load %arg9[%c2_118, %c0_119] {strides = array<i32: 2, 1>} : memref<150x16xf32, #tpu.memory_space<vmem>>, vector<37x16xf32>
    %156 = vector.broadcast %142 : vector<1x16xf32> to vector<37x16xf32>
    %157 = arith.mulf %155, %156 : vector<37x16xf32>
    %158 = arith.maximumf %154, %157 : vector<37x16xf32>
    %159 = vector.broadcast %144 : vector<1x16xf32> to vector<37x16xf32>
    %160 = arith.addf %158, %159 : vector<37x16xf32>
    %cst_120 = arith.constant 0.000000e+00 : f32
    %161 = vector.broadcast %cst_120 : f32 to vector<37x16xf32>
    %162 = arith.cmpf oge, %160, %161 : vector<37x16xf32>
    %cst_121 = arith.constant 2.000000e-01 : f32
    %163 = vector.broadcast %cst_121 : f32 to vector<37x16xf32>
    %164 = arith.mulf %163, %160 : vector<37x16xf32>
    %165 = arith.select %162, %160, %164 : vector<37x16xi1>, vector<37x16xf32>
    %c1_122 = arith.constant 1 : index
    %c0_123 = arith.constant 0 : index
    %166 = vector.load %arg10[%c1_122, %c0_123] : memref<78x16xf32, #tpu.memory_space<vmem>>, vector<37x16xf32>
    tpu.vector_store %arg10[%c1_122, %c0_123], %165 {strides = array<i32>} : memref<78x16xf32, #tpu.memory_space<vmem>>, vector<37x16xf32>,
    %c39 = arith.constant 39 : index
    %c0_124 = arith.constant 0 : index
    %167 = vector.load %arg10[%c39, %c0_124] : memref<78x16xf32, #tpu.memory_space<vmem>>, vector<1x16xf32>
    tpu.vector_store %arg10[%c39, %c0_124], %145 {strides = array<i32>} : memref<78x16xf32, #tpu.memory_space<vmem>>, vector<1x16xf32>,
    %c77 = arith.constant 77 : index
    %c0_125 = arith.constant 0 : index
    %168 = vector.load %arg10[%c77, %c0_125] : memref<78x16xf32, #tpu.memory_space<vmem>>, vector<1x16xf32>
    tpu.vector_store %arg10[%c77, %c0_125], %145 {strides = array<i32>} : memref<78x16xf32, #tpu.memory_space<vmem>>, vector<1x16xf32>,
    %c75_126 = arith.constant 75 : index
    %c0_127 = arith.constant 0 : index
    %169 = tpu.strided_load %arg9[%c75_126, %c0_127] {strides = array<i32: 2, 1>} : memref<150x16xf32, #tpu.memory_space<vmem>>, vector<37x16xf32>
    %170 = vector.broadcast %142 : vector<1x16xf32> to vector<37x16xf32>
    %171 = arith.mulf %169, %170 : vector<37x16xf32>
    %c76 = arith.constant 76 : index
    %c0_128 = arith.constant 0 : index
    %172 = tpu.strided_load %arg9[%c76, %c0_128] {strides = array<i32: 2, 1>} : memref<150x16xf32, #tpu.memory_space<vmem>>, vector<37x16xf32>
    %173 = vector.broadcast %142 : vector<1x16xf32> to vector<37x16xf32>
    %174 = arith.mulf %172, %173 : vector<37x16xf32>
    %175 = arith.maximumf %171, %174 : vector<37x16xf32>
    %c77_129 = arith.constant 77 : index
    %c0_130 = arith.constant 0 : index
    %176 = tpu.strided_load %arg9[%c77_129, %c0_130] {strides = array<i32: 2, 1>} : memref<150x16xf32, #tpu.memory_space<vmem>>, vector<37x16xf32>
    %177 = vector.broadcast %142 : vector<1x16xf32> to vector<37x16xf32>
    %178 = arith.mulf %176, %177 : vector<37x16xf32>
    %179 = arith.maximumf %175, %178 : vector<37x16xf32>
    %180 = vector.broadcast %144 : vector<1x16xf32> to vector<37x16xf32>
    %181 = arith.addf %179, %180 : vector<37x16xf32>
    %cst_131 = arith.constant 0.000000e+00 : f32
    %182 = vector.broadcast %cst_131 : f32 to vector<37x16xf32>
    %183 = arith.cmpf oge, %181, %182 : vector<37x16xf32>
    %cst_132 = arith.constant 2.000000e-01 : f32
    %184 = vector.broadcast %cst_132 : f32 to vector<37x16xf32>
    %185 = arith.mulf %184, %181 : vector<37x16xf32>
    %186 = arith.select %183, %181, %185 : vector<37x16xi1>, vector<37x16xf32>
    %c40 = arith.constant 40 : index
    %c0_133 = arith.constant 0 : index
    %187 = vector.load %arg10[%c40, %c0_133] : memref<78x16xf32, #tpu.memory_space<vmem>>, vector<37x16xf32>
    tpu.vector_store %arg10[%c40, %c0_133], %186 {strides = array<i32>} : memref<78x16xf32, #tpu.memory_space<vmem>>, vector<37x16xf32>,
    %c40_134 = arith.constant 40 : index
    %c0_135 = arith.constant 0 : index
    %188 = vector.load %arg2[%c40_134, %c0_135] : memref<112x16xf32, #tpu.memory_space<vmem>>, vector<48x8xf32>
    %cst_136 = arith.constant 0.000000e+00 : f32
    %189 = vector.broadcast %cst_136 : f32 to vector<1x8xf32>
    %cst_137 = arith.constant 0.000000e+00 : f32
    %190 = vector.broadcast %cst_137 : f32 to vector<1x8xf32>
    %c0_138 = arith.constant 0 : index
    %c0_139 = arith.constant 0 : index
    %191 = tpu.strided_load %arg10[%c0_138, %c0_139] {strides = array<i32: 2, 1>} : memref<78x16xf32, #tpu.memory_space<vmem>>, vector<19x16xf32>
    %c0_140 = arith.constant 0 : index
    %c0_141 = arith.constant 0 : index
    %192 = vector.load %arg11[%c0_140, %c0_141] : memref<38x48xf32, #tpu.memory_space<vmem>>, vector<19x16xf32>
    tpu.vector_store %arg11[%c0_140, %c0_141], %191 {strides = array<i32>} : memref<38x48xf32, #tpu.memory_space<vmem>>, vector<19x16xf32>,
    %c1_142 = arith.constant 1 : index
    %c0_143 = arith.constant 0 : index
    %193 = tpu.strided_load %arg10[%c1_142, %c0_143] {strides = array<i32: 2, 1>} : memref<78x16xf32, #tpu.memory_space<vmem>>, vector<19x16xf32>
    %c0_144 = arith.constant 0 : index
    %c16_145 = arith.constant 16 : index
    %194 = vector.load %arg11[%c0_144, %c16_145] : memref<38x48xf32, #tpu.memory_space<vmem>>, vector<19x16xf32>
    tpu.vector_store %arg11[%c0_144, %c16_145], %193 {strides = array<i32>} : memref<38x48xf32, #tpu.memory_space<vmem>>, vector<19x16xf32>,
    %c2_146 = arith.constant 2 : index
    %c0_147 = arith.constant 0 : index
    %195 = tpu.strided_load %arg10[%c2_146, %c0_147] {strides = array<i32: 2, 1>} : memref<78x16xf32, #tpu.memory_space<vmem>>, vector<19x16xf32>
    %c0_148 = arith.constant 0 : index
    %c32 = arith.constant 32 : index
    %196 = vector.load %arg11[%c0_148, %c32] : memref<38x48xf32, #tpu.memory_space<vmem>>, vector<19x16xf32>
    tpu.vector_store %arg11[%c0_148, %c32], %195 {strides = array<i32>} : memref<38x48xf32, #tpu.memory_space<vmem>>, vector<19x16xf32>,
    %c0_149 = arith.constant 0 : index
    %c0_150 = arith.constant 0 : index
    %197 = vector.load %arg11[%c0_149, %c0_150] : memref<38x48xf32, #tpu.memory_space<vmem>>, vector<19x48xf32>
    %cst_151 = arith.constant dense<0.000000e+00> : vector<19x8xf32>
    %198 = tpu.matmul %197, %188, %cst_151 {dimension_numbers = #tpu.dot_dimension_numbers<[1], [0], [0], [1], [0, 0, 1, 1], [], []>} : vector<19x48xf32>, vector<48x8xf32>, vector<19x8xf32> -> vector<19x8xf32>
    %c0_152 = arith.constant 0 : index
    %c0_153 = arith.constant 0 : index
    %199 = vector.load %arg12[%c0_152, %c0_153] : memref<38x8xf32, #tpu.memory_space<vmem>>, vector<19x8xf32>
    tpu.vector_store %arg12[%c0_152, %c0_153], %198 {strides = array<i32>} : memref<38x8xf32, #tpu.memory_space<vmem>>, vector<19x8xf32>,
    %cst_154 = arith.constant dense<0.000000e+00> : vector<8xf32>
    %200 = vector.multi_reduction <add>, %198, %cst_154 [0] : vector<19x8xf32> to vector<8xf32>
    %201 = vector.shape_cast %200 : vector<8xf32> to vector<1x8xf32>
    %202 = arith.addf %189, %201 : vector<1x8xf32>
    %203 = arith.mulf %198, %198 : vector<19x8xf32>
    %cst_155 = arith.constant dense<0.000000e+00> : vector<8xf32>
    %204 = vector.multi_reduction <add>, %203, %cst_155 [0] : vector<19x8xf32> to vector<8xf32>
    %205 = vector.shape_cast %204 : vector<8xf32> to vector<1x8xf32>
    %206 = arith.addf %190, %205 : vector<1x8xf32>
    %c39_156 = arith.constant 39 : index
    %c0_157 = arith.constant 0 : index
    %207 = tpu.strided_load %arg10[%c39_156, %c0_157] {strides = array<i32: 2, 1>} : memref<78x16xf32, #tpu.memory_space<vmem>>, vector<19x16xf32>
    %c19 = arith.constant 19 : index
    %c0_158 = arith.constant 0 : index
    %208 = vector.load %arg11[%c19, %c0_158] : memref<38x48xf32, #tpu.memory_space<vmem>>, vector<19x16xf32>
    tpu.vector_store %arg11[%c19, %c0_158], %207 {strides = array<i32>} : memref<38x48xf32, #tpu.memory_space<vmem>>, vector<19x16xf32>,
    %c40_159 = arith.constant 40 : index
    %c0_160 = arith.constant 0 : index
    %209 = tpu.strided_load %arg10[%c40_159, %c0_160] {strides = array<i32: 2, 1>} : memref<78x16xf32, #tpu.memory_space<vmem>>, vector<19x16xf32>
    %c19_161 = arith.constant 19 : index
    %c16_162 = arith.constant 16 : index
    %210 = vector.load %arg11[%c19_161, %c16_162] : memref<38x48xf32, #tpu.memory_space<vmem>>, vector<19x16xf32>
    tpu.vector_store %arg11[%c19_161, %c16_162], %209 {strides = array<i32>} : memref<38x48xf32, #tpu.memory_space<vmem>>, vector<19x16xf32>,
    %c41 = arith.constant 41 : index
    %c0_163 = arith.constant 0 : index
    %211 = tpu.strided_load %arg10[%c41, %c0_163] {strides = array<i32: 2, 1>} : memref<78x16xf32, #tpu.memory_space<vmem>>, vector<19x16xf32>
    %c19_164 = arith.constant 19 : index
    %c32_165 = arith.constant 32 : index
    %212 = vector.load %arg11[%c19_164, %c32_165] : memref<38x48xf32, #tpu.memory_space<vmem>>, vector<19x16xf32>
    tpu.vector_store %arg11[%c19_164, %c32_165], %211 {strides = array<i32>} : memref<38x48xf32, #tpu.memory_space<vmem>>, vector<19x16xf32>,
    %c19_166 = arith.constant 19 : index
    %c0_167 = arith.constant 0 : index
    %213 = vector.load %arg11[%c19_166, %c0_167] : memref<38x48xf32, #tpu.memory_space<vmem>>, vector<19x48xf32>
    %cst_168 = arith.constant dense<0.000000e+00> : vector<19x8xf32>
    %214 = tpu.matmul %213, %188, %cst_168 {dimension_numbers = #tpu.dot_dimension_numbers<[1], [0], [0], [1], [0, 0, 1, 1], [], []>} : vector<19x48xf32>, vector<48x8xf32>, vector<19x8xf32> -> vector<19x8xf32>
    %c19_169 = arith.constant 19 : index
    %c0_170 = arith.constant 0 : index
    %215 = vector.load %arg12[%c19_169, %c0_170] : memref<38x8xf32, #tpu.memory_space<vmem>>, vector<19x8xf32>
    tpu.vector_store %arg12[%c19_169, %c0_170], %214 {strides = array<i32>} : memref<38x8xf32, #tpu.memory_space<vmem>>, vector<19x8xf32>,
    %cst_171 = arith.constant dense<0.000000e+00> : vector<8xf32>
    %216 = vector.multi_reduction <add>, %214, %cst_171 [0] : vector<19x8xf32> to vector<8xf32>
    %217 = vector.shape_cast %216 : vector<8xf32> to vector<1x8xf32>
    %218 = arith.addf %202, %217 : vector<1x8xf32>
    %219 = arith.mulf %214, %214 : vector<19x8xf32>
    %cst_172 = arith.constant dense<0.000000e+00> : vector<8xf32>
    %220 = vector.multi_reduction <add>, %219, %cst_172 [0] : vector<19x8xf32> to vector<8xf32>
    %221 = vector.shape_cast %220 : vector<8xf32> to vector<1x8xf32>
    %222 = arith.addf %206, %221 : vector<1x8xf32>
    %cst_173 = arith.constant 0.0263157897 : f32
    %223 = vector.broadcast %cst_173 : f32 to vector<1x8xf32>
    %224 = arith.mulf %218, %223 : vector<1x8xf32>
    %cst_174 = arith.constant 0.0263157897 : f32
    %225 = vector.broadcast %cst_174 : f32 to vector<1x8xf32>
    %226 = arith.mulf %222, %225 : vector<1x8xf32>
    %227 = arith.mulf %224, %224 : vector<1x8xf32>
    %228 = arith.subf %226, %227 : vector<1x8xf32>
    %cst_175 = arith.constant 0.000000e+00 : f32
    %229 = vector.broadcast %cst_175 : f32 to vector<1x8xf32>
    %230 = arith.maximumf %228, %229 : vector<1x8xf32>
    %c4_176 = arith.constant 4 : index
    %c0_177 = arith.constant 0 : index
    %231 = vector.load %arg3[%c4_176, %c0_177] : memref<16x16xf32, #tpu.memory_space<vmem>>, vector<1x8xf32>
    %c5 = arith.constant 5 : index
    %c0_178 = arith.constant 0 : index
    %232 = vector.load %arg3[%c5, %c0_178] : memref<16x16xf32, #tpu.memory_space<vmem>>, vector<1x8xf32>
    %cst_179 = arith.constant 9.99999974E-6 : f32
    %233 = vector.broadcast %cst_179 : f32 to vector<1x8xf32>
    %234 = arith.addf %230, %233 : vector<1x8xf32>
    %235 = math.rsqrt %234 : vector<1x8xf32>
    %236 = arith.mulf %231, %235 : vector<1x8xf32>
    %237 = arith.mulf %224, %236 : vector<1x8xf32>
    %238 = arith.subf %232, %237 : vector<1x8xf32>
    %cst_180 = arith.constant 0.000000e+00 : f32
    %239 = vector.broadcast %cst_180 : f32 to vector<1x8xf32>
    %c0_181 = arith.constant 0 : index
    %c0_182 = arith.constant 0 : index
    %240 = vector.load %arg13[%c0_181, %c0_182] : memref<22x8xf32, #tpu.memory_space<vmem>>, vector<1x8xf32>
    tpu.vector_store %arg13[%c0_181, %c0_182], %239 {strides = array<i32>} : memref<22x8xf32, #tpu.memory_space<vmem>>, vector<1x8xf32>,
    %c10 = arith.constant 10 : index
    %c0_183 = arith.constant 0 : index
    %241 = vector.load %arg13[%c10, %c0_183] : memref<22x8xf32, #tpu.memory_space<vmem>>, vector<1x8xf32>
    tpu.vector_store %arg13[%c10, %c0_183], %239 {strides = array<i32>} : memref<22x8xf32, #tpu.memory_space<vmem>>, vector<1x8xf32>,
    %c0_184 = arith.constant 0 : index
    %c0_185 = arith.constant 0 : index
    %242 = tpu.strided_load %arg12[%c0_184, %c0_185] {strides = array<i32: 2, 1>} : memref<38x8xf32, #tpu.memory_space<vmem>>, vector<9x8xf32>
    %243 = vector.broadcast %236 : vector<1x8xf32> to vector<9x8xf32>
    %244 = arith.mulf %242, %243 : vector<9x8xf32>
    %c1_186 = arith.constant 1 : index
    %c0_187 = arith.constant 0 : index
    %245 = tpu.strided_load %arg12[%c1_186, %c0_187] {strides = array<i32: 2, 1>} : memref<38x8xf32, #tpu.memory_space<vmem>>, vector<9x8xf32>
    %246 = vector.broadcast %236 : vector<1x8xf32> to vector<9x8xf32>
    %247 = arith.mulf %245, %246 : vector<9x8xf32>
    %248 = arith.maximumf %244, %247 : vector<9x8xf32>
    %c2_188 = arith.constant 2 : index
    %c0_189 = arith.constant 0 : index
    %249 = tpu.strided_load %arg12[%c2_188, %c0_189] {strides = array<i32: 2, 1>} : memref<38x8xf32, #tpu.memory_space<vmem>>, vector<9x8xf32>
    %250 = vector.broadcast %236 : vector<1x8xf32> to vector<9x8xf32>
    %251 = arith.mulf %249, %250 : vector<9x8xf32>
    %252 = arith.maximumf %248, %251 : vector<9x8xf32>
    %253 = vector.broadcast %238 : vector<1x8xf32> to vector<9x8xf32>
    %254 = arith.addf %252, %253 : vector<9x8xf32>
    %cst_190 = arith.constant 0.000000e+00 : f32
    %255 = vector.broadcast %cst_190 : f32 to vector<9x8xf32>
    %256 = arith.cmpf oge, %254, %255 : vector<9x8xf32>
    %cst_191 = arith.constant 2.000000e-01 : f32
    %257 = vector.broadcast %cst_191 : f32 to vector<9x8xf32>
    %258 = arith.mulf %257, %254 : vector<9x8xf32>
    %259 = arith.select %256, %254, %258 : vector<9x8xi1>, vector<9x8xf32>
    %c1_192 = arith.constant 1 : index
    %c0_193 = arith.constant 0 : index
    %260 = vector.load %arg13[%c1_192, %c0_193] : memref<22x8xf32, #tpu.memory_space<vmem>>, vector<9x8xf32>
    tpu.vector_store %arg13[%c1_192, %c0_193], %259 {strides = array<i32>} : memref<22x8xf32, #tpu.memory_space<vmem>>, vector<9x8xf32>,
    %c11 = arith.constant 11 : index
    %c0_194 = arith.constant 0 : index
    %261 = vector.load %arg13[%c11, %c0_194] : memref<22x8xf32, #tpu.memory_space<vmem>>, vector<1x8xf32>
    tpu.vector_store %arg13[%c11, %c0_194], %239 {strides = array<i32>} : memref<22x8xf32, #tpu.memory_space<vmem>>, vector<1x8xf32>,
    %c21 = arith.constant 21 : index
    %c0_195 = arith.constant 0 : index
    %262 = vector.load %arg13[%c21, %c0_195] : memref<22x8xf32, #tpu.memory_space<vmem>>, vector<1x8xf32>
    tpu.vector_store %arg13[%c21, %c0_195], %239 {strides = array<i32>} : memref<22x8xf32, #tpu.memory_space<vmem>>, vector<1x8xf32>,
    %c19_196 = arith.constant 19 : index
    %c0_197 = arith.constant 0 : index
    %263 = tpu.strided_load %arg12[%c19_196, %c0_197] {strides = array<i32: 2, 1>} : memref<38x8xf32, #tpu.memory_space<vmem>>, vector<9x8xf32>
    %264 = vector.broadcast %236 : vector<1x8xf32> to vector<9x8xf32>
    %265 = arith.mulf %263, %264 : vector<9x8xf32>
    %c20 = arith.constant 20 : index
    %c0_198 = arith.constant 0 : index
    %266 = tpu.strided_load %arg12[%c20, %c0_198] {strides = array<i32: 2, 1>} : memref<38x8xf32, #tpu.memory_space<vmem>>, vector<9x8xf32>
    %267 = vector.broadcast %236 : vector<1x8xf32> to vector<9x8xf32>
    %268 = arith.mulf %266, %267 : vector<9x8xf32>
    %269 = arith.maximumf %265, %268 : vector<9x8xf32>
    %c21_199 = arith.constant 21 : index
    %c0_200 = arith.constant 0 : index
    %270 = tpu.strided_load %arg12[%c21_199, %c0_200] {strides = array<i32: 2, 1>} : memref<38x8xf32, #tpu.memory_space<vmem>>, vector<9x8xf32>
    %271 = vector.broadcast %236 : vector<1x8xf32> to vector<9x8xf32>
    %272 = arith.mulf %270, %271 : vector<9x8xf32>
    %273 = arith.maximumf %269, %272 : vector<9x8xf32>
    %274 = vector.broadcast %238 : vector<1x8xf32> to vector<9x8xf32>
    %275 = arith.addf %273, %274 : vector<9x8xf32>
    %cst_201 = arith.constant 0.000000e+00 : f32
    %276 = vector.broadcast %cst_201 : f32 to vector<9x8xf32>
    %277 = arith.cmpf oge, %275, %276 : vector<9x8xf32>
    %cst_202 = arith.constant 2.000000e-01 : f32
    %278 = vector.broadcast %cst_202 : f32 to vector<9x8xf32>
    %279 = arith.mulf %278, %275 : vector<9x8xf32>
    %280 = arith.select %277, %275, %279 : vector<9x8xi1>, vector<9x8xf32>
    %c12 = arith.constant 12 : index
    %c0_203 = arith.constant 0 : index
    %281 = vector.load %arg13[%c12, %c0_203] : memref<22x8xf32, #tpu.memory_space<vmem>>, vector<9x8xf32>
    tpu.vector_store %arg13[%c12, %c0_203], %280 {strides = array<i32>} : memref<22x8xf32, #tpu.memory_space<vmem>>, vector<9x8xf32>,
    %c88 = arith.constant 88 : index
    %c0_204 = arith.constant 0 : index
    %282 = vector.load %arg2[%c88, %c0_204] : memref<112x16xf32, #tpu.memory_space<vmem>>, vector<24x4xf32>
    %cst_205 = arith.constant 0.000000e+00 : f32
    %283 = vector.broadcast %cst_205 : f32 to vector<1x4xf32>
    %cst_206 = arith.constant 0.000000e+00 : f32
    %284 = vector.broadcast %cst_206 : f32 to vector<1x4xf32>
    %c0_207 = arith.constant 0 : index
    %c0_208 = arith.constant 0 : index
    %285 = tpu.strided_load %arg13[%c0_207, %c0_208] {strides = array<i32: 2, 1>} : memref<22x8xf32, #tpu.memory_space<vmem>>, vector<5x8xf32>
    %c0_209 = arith.constant 0 : index
    %c0_210 = arith.constant 0 : index
    %286 = vector.load %arg14[%c0_209, %c0_210] : memref<10x24xf32, #tpu.memory_space<vmem>>, vector<5x8xf32>
    tpu.vector_store %arg14[%c0_209, %c0_210], %285 {strides = array<i32>} : memref<10x24xf32, #tpu.memory_space<vmem>>, vector<5x8xf32>,
    %c1_211 = arith.constant 1 : index
    %c0_212 = arith.constant 0 : index
    %287 = tpu.strided_load %arg13[%c1_211, %c0_212] {strides = array<i32: 2, 1>} : memref<22x8xf32, #tpu.memory_space<vmem>>, vector<5x8xf32>
    %c0_213 = arith.constant 0 : index
    %c8_214 = arith.constant 8 : index
    %288 = vector.load %arg14[%c0_213, %c8_214] : memref<10x24xf32, #tpu.memory_space<vmem>>, vector<5x8xf32>
    tpu.vector_store %arg14[%c0_213, %c8_214], %287 {strides = array<i32>} : memref<10x24xf32, #tpu.memory_space<vmem>>, vector<5x8xf32>,
    %c2_215 = arith.constant 2 : index
    %c0_216 = arith.constant 0 : index
    %289 = tpu.strided_load %arg13[%c2_215, %c0_216] {strides = array<i32: 2, 1>} : memref<22x8xf32, #tpu.memory_space<vmem>>, vector<5x8xf32>
    %c0_217 = arith.constant 0 : index
    %c16_218 = arith.constant 16 : index
    %290 = vector.load %arg14[%c0_217, %c16_218] : memref<10x24xf32, #tpu.memory_space<vmem>>, vector<5x8xf32>
    tpu.vector_store %arg14[%c0_217, %c16_218], %289 {strides = array<i32>} : memref<10x24xf32, #tpu.memory_space<vmem>>, vector<5x8xf32>,
    %c0_219 = arith.constant 0 : index
    %c0_220 = arith.constant 0 : index
    %291 = vector.load %arg14[%c0_219, %c0_220] : memref<10x24xf32, #tpu.memory_space<vmem>>, vector<5x24xf32>
    %cst_221 = arith.constant dense<0.000000e+00> : vector<5x4xf32>
    %292 = tpu.matmul %291, %282, %cst_221 {dimension_numbers = #tpu.dot_dimension_numbers<[1], [0], [0], [1], [0, 0, 1, 1], [], []>} : vector<5x24xf32>, vector<24x4xf32>, vector<5x4xf32> -> vector<5x4xf32>
    %c0_222 = arith.constant 0 : index
    %c0_223 = arith.constant 0 : index
    %293 = vector.load %arg15[%c0_222, %c0_223] : memref<10x4xf32, #tpu.memory_space<vmem>>, vector<5x4xf32>
    tpu.vector_store %arg15[%c0_222, %c0_223], %292 {strides = array<i32>} : memref<10x4xf32, #tpu.memory_space<vmem>>, vector<5x4xf32>,
    %cst_224 = arith.constant dense<0.000000e+00> : vector<4xf32>
    %294 = vector.multi_reduction <add>, %292, %cst_224 [0] : vector<5x4xf32> to vector<4xf32>
    %295 = vector.shape_cast %294 : vector<4xf32> to vector<1x4xf32>
    %296 = arith.addf %283, %295 : vector<1x4xf32>
    %297 = arith.mulf %292, %292 : vector<5x4xf32>
    %cst_225 = arith.constant dense<0.000000e+00> : vector<4xf32>
    %298 = vector.multi_reduction <add>, %297, %cst_225 [0] : vector<5x4xf32> to vector<4xf32>
    %299 = vector.shape_cast %298 : vector<4xf32> to vector<1x4xf32>
    %300 = arith.addf %284, %299 : vector<1x4xf32>
    %c11_226 = arith.constant 11 : index
    %c0_227 = arith.constant 0 : index
    %301 = tpu.strided_load %arg13[%c11_226, %c0_227] {strides = array<i32: 2, 1>} : memref<22x8xf32, #tpu.memory_space<vmem>>, vector<5x8xf32>
    %c5_228 = arith.constant 5 : index
    %c0_229 = arith.constant 0 : index
    %302 = vector.load %arg14[%c5_228, %c0_229] : memref<10x24xf32, #tpu.memory_space<vmem>>, vector<5x8xf32>
    tpu.vector_store %arg14[%c5_228, %c0_229], %301 {strides = array<i32>} : memref<10x24xf32, #tpu.memory_space<vmem>>, vector<5x8xf32>,
    %c12_230 = arith.constant 12 : index
    %c0_231 = arith.constant 0 : index
    %303 = tpu.strided_load %arg13[%c12_230, %c0_231] {strides = array<i32: 2, 1>} : memref<22x8xf32, #tpu.memory_space<vmem>>, vector<5x8xf32>
    %c5_232 = arith.constant 5 : index
    %c8_233 = arith.constant 8 : index
    %304 = vector.load %arg14[%c5_232, %c8_233] : memref<10x24xf32, #tpu.memory_space<vmem>>, vector<5x8xf32>
    tpu.vector_store %arg14[%c5_232, %c8_233], %303 {strides = array<i32>} : memref<10x24xf32, #tpu.memory_space<vmem>>, vector<5x8xf32>,
    %c13 = arith.constant 13 : index
    %c0_234 = arith.constant 0 : index
    %305 = tpu.strided_load %arg13[%c13, %c0_234] {strides = array<i32: 2, 1>} : memref<22x8xf32, #tpu.memory_space<vmem>>, vector<5x8xf32>
    %c5_235 = arith.constant 5 : index
    %c16_236 = arith.constant 16 : index
    %306 = vector.load %arg14[%c5_235, %c16_236] : memref<10x24xf32, #tpu.memory_space<vmem>>, vector<5x8xf32>
    tpu.vector_store %arg14[%c5_235, %c16_236], %305 {strides = array<i32>} : memref<10x24xf32, #tpu.memory_space<vmem>>, vector<5x8xf32>,
    %c5_237 = arith.constant 5 : index
    %c0_238 = arith.constant 0 : index
    %307 = vector.load %arg14[%c5_237, %c0_238] : memref<10x24xf32, #tpu.memory_space<vmem>>, vector<5x24xf32>
    %cst_239 = arith.constant dense<0.000000e+00> : vector<5x4xf32>
    %308 = tpu.matmul %307, %282, %cst_239 {dimension_numbers = #tpu.dot_dimension_numbers<[1], [0], [0], [1], [0, 0, 1, 1], [], []>} : vector<5x24xf32>, vector<24x4xf32>, vector<5x4xf32> -> vector<5x4xf32>
    %c5_240 = arith.constant 5 : index
    %c0_241 = arith.constant 0 : index
    %309 = vector.load %arg15[%c5_240, %c0_241] : memref<10x4xf32, #tpu.memory_space<vmem>>, vector<5x4xf32>
    tpu.vector_store %arg15[%c5_240, %c0_241], %308 {strides = array<i32>} : memref<10x4xf32, #tpu.memory_space<vmem>>, vector<5x4xf32>,
    %cst_242 = arith.constant dense<0.000000e+00> : vector<4xf32>
    %310 = vector.multi_reduction <add>, %308, %cst_242 [0] : vector<5x4xf32> to vector<4xf32>
    %311 = vector.shape_cast %310 : vector<4xf32> to vector<1x4xf32>
    %312 = arith.addf %296, %311 : vector<1x4xf32>
    %313 = arith.mulf %308, %308 : vector<5x4xf32>
    %cst_243 = arith.constant dense<0.000000e+00> : vector<4xf32>
    %314 = vector.multi_reduction <add>, %313, %cst_243 [0] : vector<5x4xf32> to vector<4xf32>
    %315 = vector.shape_cast %314 : vector<4xf32> to vector<1x4xf32>
    %316 = arith.addf %300, %315 : vector<1x4xf32>
    %cst_244 = arith.constant 1.000000e-01 : f32
    %317 = vector.broadcast %cst_244 : f32 to vector<1x4xf32>
    %318 = arith.mulf %312, %317 : vector<1x4xf32>
    %cst_245 = arith.constant 1.000000e-01 : f32
    %319 = vector.broadcast %cst_245 : f32 to vector<1x4xf32>
    %320 = arith.mulf %316, %319 : vector<1x4xf32>
    %321 = arith.mulf %318, %318 : vector<1x4xf32>
    %322 = arith.subf %320, %321 : vector<1x4xf32>
    %cst_246 = arith.constant 0.000000e+00 : f32
    %323 = vector.broadcast %cst_246 : f32 to vector<1x4xf32>
    %324 = arith.maximumf %322, %323 : vector<1x4xf32>
    %c6 = arith.constant 6 : index
    %c0_247 = arith.constant 0 : index
    %325 = vector.load %arg3[%c6, %c0_247] : memref<16x16xf32, #tpu.memory_space<vmem>>, vector<1x4xf32>
    %c7 = arith.constant 7 : index
    %c0_248 = arith.constant 0 : index
    %326 = vector.load %arg3[%c7, %c0_248] : memref<16x16xf32, #tpu.memory_space<vmem>>, vector<1x4xf32>
    %cst_249 = arith.constant 9.99999974E-6 : f32
    %327 = vector.broadcast %cst_249 : f32 to vector<1x4xf32>
    %328 = arith.addf %324, %327 : vector<1x4xf32>
    %329 = math.rsqrt %328 : vector<1x4xf32>
    %330 = arith.mulf %325, %329 : vector<1x4xf32>
    %331 = arith.mulf %318, %330 : vector<1x4xf32>
    %332 = arith.subf %326, %331 : vector<1x4xf32>
    %cst_250 = arith.constant 0.000000e+00 : f32
    %333 = vector.broadcast %cst_250 : f32 to vector<1x4xf32>
    %c0_251 = arith.constant 0 : index
    %c0_252 = arith.constant 0 : index
    %334 = vector.load %arg16[%c0_251, %c0_252] : memref<8x4xf32, #tpu.memory_space<vmem>>, vector<1x4xf32>
    tpu.vector_store %arg16[%c0_251, %c0_252], %333 {strides = array<i32>} : memref<8x4xf32, #tpu.memory_space<vmem>>, vector<1x4xf32>,
    %c3_253 = arith.constant 3 : index
    %c0_254 = arith.constant 0 : index
    %335 = vector.load %arg16[%c3_253, %c0_254] : memref<8x4xf32, #tpu.memory_space<vmem>>, vector<1x4xf32>
    tpu.vector_store %arg16[%c3_253, %c0_254], %333 {strides = array<i32>} : memref<8x4xf32, #tpu.memory_space<vmem>>, vector<1x4xf32>,
    %c0_255 = arith.constant 0 : index
    %c0_256 = arith.constant 0 : index
    %336 = tpu.strided_load %arg15[%c0_255, %c0_256] {strides = array<i32: 2, 1>} : memref<10x4xf32, #tpu.memory_space<vmem>>, vector<2x4xf32>
    %337 = vector.broadcast %330 : vector<1x4xf32> to vector<2x4xf32>
    %338 = arith.mulf %336, %337 : vector<2x4xf32>
    %c1_257 = arith.constant 1 : index
    %c0_258 = arith.constant 0 : index
    %339 = tpu.strided_load %arg15[%c1_257, %c0_258] {strides = array<i32: 2, 1>} : memref<10x4xf32, #tpu.memory_space<vmem>>, vector<2x4xf32>
    %340 = vector.broadcast %330 : vector<1x4xf32> to vector<2x4xf32>
    %341 = arith.mulf %339, %340 : vector<2x4xf32>
    %342 = arith.maximumf %338, %341 : vector<2x4xf32>
    %c2_259 = arith.constant 2 : index
    %c0_260 = arith.constant 0 : index
    %343 = tpu.strided_load %arg15[%c2_259, %c0_260] {strides = array<i32: 2, 1>} : memref<10x4xf32, #tpu.memory_space<vmem>>, vector<2x4xf32>
    %344 = vector.broadcast %330 : vector<1x4xf32> to vector<2x4xf32>
    %345 = arith.mulf %343, %344 : vector<2x4xf32>
    %346 = arith.maximumf %342, %345 : vector<2x4xf32>
    %347 = vector.broadcast %332 : vector<1x4xf32> to vector<2x4xf32>
    %348 = arith.addf %346, %347 : vector<2x4xf32>
    %cst_261 = arith.constant 0.000000e+00 : f32
    %349 = vector.broadcast %cst_261 : f32 to vector<2x4xf32>
    %350 = arith.cmpf oge, %348, %349 : vector<2x4xf32>
    %cst_262 = arith.constant 2.000000e-01 : f32
    %351 = vector.broadcast %cst_262 : f32 to vector<2x4xf32>
    %352 = arith.mulf %351, %348 : vector<2x4xf32>
    %353 = arith.select %350, %348, %352 : vector<2x4xi1>, vector<2x4xf32>
    %c1_263 = arith.constant 1 : index
    %c0_264 = arith.constant 0 : index
    %354 = vector.load %arg16[%c1_263, %c0_264] : memref<8x4xf32, #tpu.memory_space<vmem>>, vector<2x4xf32>
    tpu.vector_store %arg16[%c1_263, %c0_264], %353 {strides = array<i32>} : memref<8x4xf32, #tpu.memory_space<vmem>>, vector<2x4xf32>,
    %c4_265 = arith.constant 4 : index
    %c0_266 = arith.constant 0 : index
    %355 = vector.load %arg16[%c4_265, %c0_266] : memref<8x4xf32, #tpu.memory_space<vmem>>, vector<1x4xf32>
    tpu.vector_store %arg16[%c4_265, %c0_266], %333 {strides = array<i32>} : memref<8x4xf32, #tpu.memory_space<vmem>>, vector<1x4xf32>,
    %c7_267 = arith.constant 7 : index
    %c0_268 = arith.constant 0 : index
    %356 = vector.load %arg16[%c7_267, %c0_268] : memref<8x4xf32, #tpu.memory_space<vmem>>, vector<1x4xf32>
    tpu.vector_store %arg16[%c7_267, %c0_268], %333 {strides = array<i32>} : memref<8x4xf32, #tpu.memory_space<vmem>>, vector<1x4xf32>,
    %c5_269 = arith.constant 5 : index
    %c0_270 = arith.constant 0 : index
    %357 = tpu.strided_load %arg15[%c5_269, %c0_270] {strides = array<i32: 2, 1>} : memref<10x4xf32, #tpu.memory_space<vmem>>, vector<2x4xf32>
    %358 = vector.broadcast %330 : vector<1x4xf32> to vector<2x4xf32>
    %359 = arith.mulf %357, %358 : vector<2x4xf32>
    %c6_271 = arith.constant 6 : index
    %c0_272 = arith.constant 0 : index
    %360 = tpu.strided_load %arg15[%c6_271, %c0_272] {strides = array<i32: 2, 1>} : memref<10x4xf32, #tpu.memory_space<vmem>>, vector<2x4xf32>
    %361 = vector.broadcast %330 : vector<1x4xf32> to vector<2x4xf32>
    %362 = arith.mulf %360, %361 : vector<2x4xf32>
    %363 = arith.maximumf %359, %362 : vector<2x4xf32>
    %c7_273 = arith.constant 7 : index
    %c0_274 = arith.constant 0 : index
    %364 = tpu.strided_load %arg15[%c7_273, %c0_274] {strides = array<i32: 2, 1>} : memref<10x4xf32, #tpu.memory_space<vmem>>, vector<2x4xf32>
    %365 = vector.broadcast %330 : vector<1x4xf32> to vector<2x4xf32>
    %366 = arith.mulf %364, %365 : vector<2x4xf32>
    %367 = arith.maximumf %363, %366 : vector<2x4xf32>
    %368 = vector.broadcast %332 : vector<1x4xf32> to vector<2x4xf32>
    %369 = arith.addf %367, %368 : vector<2x4xf32>
    %cst_275 = arith.constant 0.000000e+00 : f32
    %370 = vector.broadcast %cst_275 : f32 to vector<2x4xf32>
    %371 = arith.cmpf oge, %369, %370 : vector<2x4xf32>
    %cst_276 = arith.constant 2.000000e-01 : f32
    %372 = vector.broadcast %cst_276 : f32 to vector<2x4xf32>
    %373 = arith.mulf %372, %369 : vector<2x4xf32>
    %374 = arith.select %371, %369, %373 : vector<2x4xi1>, vector<2x4xf32>
    %c5_277 = arith.constant 5 : index
    %c0_278 = arith.constant 0 : index
    %375 = vector.load %arg16[%c5_277, %c0_278] : memref<8x4xf32, #tpu.memory_space<vmem>>, vector<2x4xf32>
    tpu.vector_store %arg16[%c5_277, %c0_278], %374 {strides = array<i32>} : memref<8x4xf32, #tpu.memory_space<vmem>>, vector<2x4xf32>,
    %c8_279 = arith.constant 8 : index
    %c0_280 = arith.constant 0 : index
    %376 = vector.load %arg3[%c8_279, %c0_280] : memref<16x16xf32, #tpu.memory_space<vmem>>, vector<4x4xf32>
    %c12_281 = arith.constant 12 : index
    %c0_282 = arith.constant 0 : index
    %377 = vector.load %arg3[%c12_281, %c0_282] : memref<16x16xf32, #tpu.memory_space<vmem>>, vector<1x1xf32>
    %c0_283 = arith.constant 0 : index
    %c0_284 = arith.constant 0 : index
    %378 = vector.load %arg16[%c0_283, %c0_284] : memref<8x4xf32, #tpu.memory_space<vmem>>, vector<4x4xf32>
    %379 = arith.mulf %378, %376 : vector<4x4xf32>
    %380 = vector.shape_cast %379 : vector<4x4xf32> to vector<1x4x4xf32>
    %cst_285 = arith.constant dense<0.000000e+00> : vector<1xf32>
    %381 = vector.multi_reduction <add>, %380, %cst_285 [1, 2] : vector<1x4x4xf32> to vector<1xf32>
    %382 = vector.shape_cast %381 : vector<1xf32> to vector<1x1x1xf32>
    %383 = vector.extract %382[0, 0, 0] : f32 from vector<1x1x1xf32>
    %384 = vector.broadcast %383 : f32 to vector<1x1xf32>
    %385 = arith.addf %384, %377 : vector<1x1xf32>
    %386 = arith.negf %385 : vector<1x1xf32>
    %387 = math.exp %386 : vector<1x1xf32>
    %cst_286 = arith.constant 1.000000e+00 : f32
    %388 = vector.broadcast %cst_286 : f32 to vector<1x1xf32>
    %389 = arith.addf %388, %387 : vector<1x1xf32>
    %390 = arith.divf %388, %389 : vector<1x1xf32>
    %c0_287 = arith.constant 0 : index
    %c0_288 = arith.constant 0 : index
    %391 = vector.load %arg4[%c0_287, %c0_288] : memref<2x1xf32, #tpu.memory_space<vmem>>, vector<1x1xf32>
    tpu.vector_store %arg4[%c0_287, %c0_288], %390 {strides = array<i32>} : memref<2x1xf32, #tpu.memory_space<vmem>>, vector<1x1xf32>,
    %c4_289 = arith.constant 4 : index
    %c0_290 = arith.constant 0 : index
    %392 = vector.load %arg16[%c4_289, %c0_290] : memref<8x4xf32, #tpu.memory_space<vmem>>, vector<4x4xf32>
    %393 = arith.mulf %392, %376 : vector<4x4xf32>
    %394 = vector.shape_cast %393 : vector<4x4xf32> to vector<1x4x4xf32>
    %cst_291 = arith.constant dense<0.000000e+00> : vector<1xf32>
    %395 = vector.multi_reduction <add>, %394, %cst_291 [1, 2] : vector<1x4x4xf32> to vector<1xf32>
    %396 = vector.shape_cast %395 : vector<1xf32> to vector<1x1x1xf32>
    %397 = vector.extract %396[0, 0, 0] : f32 from vector<1x1x1xf32>
    %398 = vector.broadcast %397 : f32 to vector<1x1xf32>
    %399 = arith.addf %398, %377 : vector<1x1xf32>
    %400 = arith.negf %399 : vector<1x1xf32>
    %401 = math.exp %400 : vector<1x1xf32>
    %cst_292 = arith.constant 1.000000e+00 : f32
    %402 = vector.broadcast %cst_292 : f32 to vector<1x1xf32>
    %403 = arith.addf %402, %401 : vector<1x1xf32>
    %404 = arith.divf %402, %403 : vector<1x1xf32>
    %c1_293 = arith.constant 1 : index
    %c0_294 = arith.constant 0 : index
    %405 = vector.load %arg4[%c1_293, %c0_294] : memref<2x1xf32, #tpu.memory_space<vmem>>, vector<1x1xf32>
    tpu.vector_store %arg4[%c1_293, %c0_294], %404 {strides = array<i32>} : memref<2x1xf32, #tpu.memory_space<vmem>>, vector<1x1xf32>,
    return
  }
  func.func @transform_0(%arg0: i32) -> (i32, i32) {
    %c0_i32 = arith.constant 0 : i32
    %c0_i32_0 = arith.constant 0 : i32
    %c0_i32_1 = arith.constant 0 : i32
    return %c0_i32, %c0_i32_0 : i32, i32
  }
  func.func @transform_1(%arg0: i32) -> (i32, i32) {
    %c0_i32 = arith.constant 0 : i32
    %c0_i32_0 = arith.constant 0 : i32
    %c0_i32_1 = arith.constant 0 : i32
    return %c0_i32, %c0_i32_0 : i32, i32
  }
  func.func @transform_2(%arg0: i32) -> (i32, i32) {
    %c0_i32 = arith.constant 0 : i32
    %c0_i32_0 = arith.constant 0 : i32
    %c0_i32_1 = arith.constant 0 : i32
    return %c0_i32, %c0_i32_0 : i32, i32
  }
  func.func @transform_3(%arg0: i32) -> (i32, i32) {
    %c0_i32 = arith.constant 0 : i32
    %c0_i32_0 = arith.constant 0 : i32
    %c0_i32_1 = arith.constant 0 : i32
    return %c0_i32, %c0_i32_0 : i32, i32
  }
}

</mosaic_0001>

<bundles_post_ra>
// kernel: _forward_impl.1
= control target key start
LH: loop header
LB: loop body
LE: loop exit
PB: predicated region body
PF: predicated region fallthrough
CT: control target
= control target key end

     0   :  { %s5771_s16 = smov 4   ;;  %s5772_s21 = smov 8   ;;  %vm91_vm0 = vcmask 31744   ;;  %vm820_vm1 = vcmask 1043456   ;;  %vm5773_vm2 = vmmov 1   ;;  %vm359_vm4 = vcmask 64544   ;;  %s8299_s0 = inlined_call_operand.vmem [shape: f32[1204,4], index: 0, kind: input, shape index: {}]   ;;  %s8300_s1 = inlined_call_operand.vmem [shape: f32[112,16], index: 1, kind: input, shape index: {}]   ;;  %s8301_s2 = inlined_call_operand.vmem [shape: f32[16,16], index: 2, kind: input, shape index: {}]   ;;  %s8302_s3 = inlined_call_operand.vmem [shape: f32[2,1], index: 3, kind: output, shape index: {}]  }
   0x1   :  { %v5046_v0 = vld [vmem:[%s8299_s0 + $0x11] ss:$2 sm:$0xff]  ;;  %v5045_v1 = vld [vmem:[%s8299_s0 + $0x1] ss:$2 sm:$0xff]  ;;  %v5083_v2 = vld [vmem:[%s8299_s0 + $0x2] ss:$2 sm:$0xff] }
   0x2   :  { %247 = vrot.lane.b32.xlu1 %v5046_v0, %s5771_s16  ;;  %245 = vrot.lane.b32.xlu0 %v5045_v1, %s5771_s16  ;;  %v5198_v3 = vld [vmem:[%s8299_s0 + $0x25b] ss:$2 sm:$0xff]  ;;  %v5236_v4 = vld [vmem:[%s8299_s0 + $0x25c] ss:$2 sm:$0xff]  ;;  %vm5700_vm3 = vmpackc.low %vm820_vm1, %vm5773_vm2  ;;  %vm627_vm5 = vcmask 97344   ;;  %vm705_vm6 = vcmask 97280  }
   0x3   :  { %v5199_v5 = vld [vmem:[%s8299_s0 + $0x26b] ss:$2 sm:$0xff]  ;;  %v5237_v6 = vld [vmem:[%s8299_s0 + $0x26c] ss:$2 sm:$0xff]  ;;  %v5200_v8 = vld [vmem:[%s8299_s0 + $0x27b] ss:$2 sm:$0xff] }
   0x4   :  { %v5084_v7 = vld [vmem:[%s8299_s0 + $0x12] ss:$2 sm:$0xff]  ;;  %v5047_v9 = vld [vmem:[%s8299_s0 + $0x21] ss:$2 sm:$0xff]  ;;  %v5085_v10 = vld [vmem:[%s8299_s0 + $0x22] ss:$2 sm:$0xff] }
   0x5   :  { %v5048_v11 = vld [vmem:[%s8299_s0 + $0x31] ss:$2 sm:$0xff]  ;;  %v5008_v12 = vld [vmem:[%s8299_s0 + $0x10] ss:$2 sm:$0xff]  ;;  %v16_v13 = vld [vmem:[%s8299_s0] ss:$2 sm:$0xff] }
   0x6   :  { %513 = vrot.lane.b32.xlu1 %v5083_v2, %s5772_s21  ;;  %1549 = vrot.lane.b32.xlu0 %v5198_v3, %s5771_s16  ;;  %v5238_v14 = vld [vmem:[%s8299_s0 + $0x27c] ss:$2 sm:$0xff]  ;;  %v5201_v15 = vld [vmem:[%s8299_s0 + $0x28b] ss:$2 sm:$0xff]  ;;  %93 = vst.msk [vmem:[#allocation2 + $0x8] sm:$0xff] %vm91_vm0, %v5008_v12  ;;  %92 = vst.msk [vmem:[#allocation2] sm:$0xff] %vm91_vm0, %v16_v13 }
   0x7   :  { %v5160_v16 = vld [vmem:[%s8299_s0 + $0x25a] ss:$2 sm:$0xff]  ;;  %v5161_v17 = vld [vmem:[%s8299_s0 + $0x26a] ss:$2 sm:$0xff]  ;;  %v5202_v27 = vld [vmem:[%s8299_s0 + $0x29b] ss:$2 sm:$0xff] }
   0x8   :  { %1397 = vst.msk [vmem:[#allocation2 + $0x12c] sm:$0xff] %vm91_vm0, %v5160_v16  ;;  %v5239_v18 = vld [vmem:[%s8299_s0 + $0x28c] ss:$2 sm:$0xff]  ;;  %1398 = vst.msk [vmem:[#allocation2 + $0x134] sm:$0xff] %vm91_vm0, %v5161_v17  ;;  %v14_v22 = vld [vmem:[%s8300_s1] sm:$0xff]  ;;  %vm129_vm7 = vcmask 27648  }
   0x9   :  { %v5086_v19 = vld [vmem:[%s8299_s0 + $0x32] ss:$2 sm:$0xff]  ;;  %v15_v23 = vld [vmem:[%s8300_s1 + $0x8] sm:$0xf]  ;;  %v5050_v34 = vld [vmem:[%s8299_s0 + $0x51] ss:$2 sm:$0xff] }
   0xa   :  { %1815 = vrot.lane.b32.xlu1 %v5236_v4, %s5772_s21  ;;  %1551 = vrot.lane.b32.xlu0 %v5199_v5, %s5771_s16  ;;  %v5162_v20 = vld [vmem:[%s8299_s0 + $0x27a] ss:$2 sm:$0xff]  ;;  %v5699_v24 = vpack.c.bf16 %v15_v23, %v14_v22  ;;  %v5163_v26 = vld [vmem:[%s8299_s0 + $0x28a] ss:$2 sm:$0xff]  ;;  %vm1079_vm8 = vcmask 64512   ;;  %vm397_vm9 = vcmask 60448  }
   0xb   :  { %1399 = vst.msk [vmem:[#allocation2 + $0x13c] sm:$0xff] %vm91_vm0, %v5162_v20  ;;  %v5009_v21 = vld [vmem:[%s8299_s0 + $0x20] ss:$2 sm:$0xff]  ;;  %v5010_v25 = vld [vmem:[%s8299_s0 + $0x30] ss:$2 sm:$0xff]  ;;  %1400 = vst.msk [vmem:[#allocation2 + $0x144] sm:$0xff] %vm91_vm0, %v5163_v26 }
   0xc   :  { %94 = vst.msk [vmem:[#allocation2 + $0x10] sm:$0xff] %vm91_vm0, %v5009_v21  ;;  %95 = vst.msk [vmem:[#allocation2 + $0x18] sm:$0xff] %vm91_vm0, %v5010_v25  ;;  %v5049_v28 = vld [vmem:[%s8299_s0 + $0x41] ss:$2 sm:$0xff]  ;;  %5701 = vmatprep.subr.msk.bf16.mxu0 %vm5700_vm3, %v5699_v24  ;;  %5707 = vmatprep.subr.msk.bf16.mxu1 %vm5700_vm3, %v5699_v24  ;;  %v5164_v29 = vld [vmem:[%s8299_s0 + $0x29a] ss:$2 sm:$0xff] }
   0xd   :  { %5704 = vmatpush3.bf16.msk.msra.mxu0 %vm5700_vm3, %v5699_v24  ;;  %5710 = vmatpush3.bf16.msk.msra.mxu1 %vm5700_vm3, %v5699_v24  ;;  %1401 = vst.msk [vmem:[#allocation2 + $0x14c] sm:$0xff] %vm91_vm0, %v5164_v29  ;;  %v5011_v30 = vld [vmem:[%s8299_s0 + $0x40] ss:$2 sm:$0xff]  ;;  %v5012_v31 = vld [vmem:[%s8299_s0 + $0x50] ss:$2 sm:$0xff]  ;;  %vm665_vm10 = vcmask 93248  }
   0xe   :  { %1817 = vrot.lane.b32.xlu1 %v5237_v6, %s5772_s21  ;;  %515 = vrot.lane.b32.xlu0 %v5084_v7, %s5772_s21  ;;  %96 = vst.msk [vmem:[#allocation2 + $0x20] sm:$0xff] %vm91_vm0, %v5011_v30  ;;  %97 = vst.msk [vmem:[#allocation2 + $0x28] sm:$0xff] %vm91_vm0, %v5012_v31  ;;  %v5165_v32 = vld [vmem:[%s8299_s0 + $0x2aa] ss:$2 sm:$0xff]  ;;  %v5166_v35 = vld [vmem:[%s8299_s0 + $0x2ba] ss:$2 sm:$0xff] }
   0xf   :  { %v5087_v33 = vld [vmem:[%s8299_s0 + $0x42] ss:$2 sm:$0xff]  ;;  %1402 = vst.msk [vmem:[#allocation2 + $0x154] sm:$0xff] %vm91_vm0, %v5165_v32  ;;  %1403 = vst.msk [vmem:[#allocation2 + $0x15c] sm:$0xff] %vm91_vm0, %v5166_v35  ;;  %v5203_v38 = vld [vmem:[%s8299_s0 + $0x2ab] ss:$2 sm:$0xff] }
  0x10   :  { %v5013_v36 = vld [vmem:[%s8299_s0 + $0x60] ss:$2 sm:$0xff]  ;;  %v5014_v39 = vld [vmem:[%s8299_s0 + $0x70] ss:$2 sm:$0xff]  ;;  %v5204_v43 = vld [vmem:[%s8299_s0 + $0x2bb] ss:$2 sm:$0xff] }
  0x11   :  { %98 = vst.msk [vmem:[#allocation2 + $0x30] sm:$0xff] %vm91_vm0, %v5013_v36  ;;  %v5240_v37 = vld [vmem:[%s8299_s0 + $0x29c] ss:$2 sm:$0xff]  ;;  %99 = vst.msk [vmem:[#allocation2 + $0x38] sm:$0xff] %vm91_vm0, %v5014_v39  ;;  %v5241_v40 = vld [vmem:[%s8299_s0 + $0x2ac] ss:$2 sm:$0xff] }
  0x12   :  { %1553 = vrot.lane.b32.xlu1 %v5200_v8, %s5771_s16  ;;  %249 = vrot.lane.b32.xlu0 %v5047_v9, %s5771_s16  ;;  %v5088_v41 = vld [vmem:[%s8299_s0 + $0x52] ss:$2 sm:$0xff]  ;;  %v5051_v44 = vld [vmem:[%s8299_s0 + $0x61] ss:$2 sm:$0xff]  ;;  %vm1117_vm11 = vcmask 60416   ;;  %vm2626_vm12 = vcmask 57344  }
  0x13   :  { %v5167_v42 = vld [vmem:[%s8299_s0 + $0x2ca] ss:$2 sm:$0xff]  ;;  %v5168_v45 = vld [vmem:[%s8299_s0 + $0x2da] ss:$2 sm:$0xff]  ;;  %v5052_v47 = vld [vmem:[%s8299_s0 + $0x71] ss:$2 sm:$0xff] }
  0x14   :  { %1404 = vst.msk [vmem:[#allocation2 + $0x164] sm:$0xff] %vm91_vm0, %v5167_v42  ;;  %v5089_v46 = vld [vmem:[%s8299_s0 + $0x62] ss:$2 sm:$0xff]  ;;  %1405 = vst.msk [vmem:[#allocation2 + $0x16c] sm:$0xff] %vm91_vm0, %v5168_v45  ;;  %v5205_v50 = vld [vmem:[%s8299_s0 + $0x2cb] ss:$2 sm:$0xff] }
  0x15   :  { %v5015_v48 = vld [vmem:[%s8299_s0 + $0x80] ss:$2 sm:$0xff]  ;;  %v5016_v51 = vld [vmem:[%s8299_s0 + $0x90] ss:$2 sm:$0xff]  ;;  %v5206_v55 = vld [vmem:[%s8299_s0 + $0x2db] ss:$2 sm:$0xff] }
  0x16   :  { %517 = vrot.lane.b32.xlu1 %v5085_v10, %s5772_s21  ;;  %251 = vrot.lane.b32.xlu0 %v5048_v11, %s5771_s16  ;;  %100 = vst.msk [vmem:[#allocation2 + $0x40] sm:$0xff] %vm91_vm0, %v5015_v48  ;;  %v5242_v49 = vld [vmem:[%s8299_s0 + $0x2bc] ss:$2 sm:$0xff]  ;;  %101 = vst.msk [vmem:[#allocation2 + $0x48] sm:$0xff] %vm91_vm0, %v5016_v51  ;;  %v5243_v52 = vld [vmem:[%s8299_s0 + $0x2cc] ss:$2 sm:$0xff] }
  0x17   :  { %v5090_v53 = vld [vmem:[%s8299_s0 + $0x72] ss:$2 sm:$0xff]  ;;  %v5053_v56 = vld [vmem:[%s8299_s0 + $0x81] ss:$2 sm:$0xff]  ;;  %v5091_v58 = vld [vmem:[%s8299_s0 + $0x82] ss:$2 sm:$0xff] }
  0x18   :  { %v5169_v54 = vld [vmem:[%s8299_s0 + $0x2ea] ss:$2 sm:$0xff]  ;;  %v5170_v57 = vld [vmem:[%s8299_s0 + $0x2fa] ss:$2 sm:$0xff]  ;;  %v5054_v59 = vld [vmem:[%s8299_s0 + $0x91] ss:$2 sm:$0xff] }
  0x19   :  { %1406 = vst.msk [vmem:[#allocation2 + $0x174] sm:$0xff] %vm91_vm0, %v5169_v54  ;;  %1407 = vst.msk [vmem:[#allocation2 + $0x17c] sm:$0xff] %vm91_vm0, %v5170_v57  ;;  %v5017_v60 = vld [vmem:[%s8299_s0 + $0xa0] ss:$2 sm:$0xff]  ;;  %v5207_v62 = vld [vmem:[%s8299_s0 + $0x2eb] ss:$2 sm:$0xff] }
  0x1a   :  { %1819 = vrot.lane.b32.xlu1 %v5238_v14, %s5772_s21  ;;  %1555 = vrot.lane.b32.xlu0 %v5201_v15, %s5771_s16  ;;  %102 = vst.msk [vmem:[#allocation2 + $0x50] sm:$0xff] %vm91_vm0, %v5017_v60  ;;  %v5244_v61 = vld [vmem:[%s8299_s0 + $0x2dc] ss:$2 sm:$0xff]  ;;  %v5245_v0 = vld [vmem:[%s8299_s0 + $0x2ec] ss:$2 sm:$0xff]  ;;  %s5775_s26 = smov 16  }
  0x1b   :  { %v5018_v63 = vld [vmem:[%s8299_s0 + $0xb0] ss:$2 sm:$0xff]  ;;  %v5208_v3 = vld [vmem:[%s8299_s0 + $0x2fb] ss:$2 sm:$0xff]  ;;  %v5019_v8 = vld [vmem:[%s8299_s0 + $0xc0] ss:$2 sm:$0xff] }
  0x1c   :  { %103 = vst.msk [vmem:[#allocation2 + $0x58] sm:$0xff] %vm91_vm0, %v5018_v63  ;;  %v5092_v1 = vld [vmem:[%s8299_s0 + $0x92] ss:$2 sm:$0xff]  ;;  %v5055_v4 = vld [vmem:[%s8299_s0 + $0xa1] ss:$2 sm:$0xff]  ;;  %104 = vst.msk [vmem:[#allocation2 + $0x60] sm:$0xff] %vm91_vm0, %v5019_v8 }
  0x1d   :  { %v5171_v2 = vld [vmem:[%s8299_s0 + $0x30a] ss:$2 sm:$0xff]  ;;  %v5172_v5 = vld [vmem:[%s8299_s0 + $0x31a] ss:$2 sm:$0xff]  ;;  %v5056_v7 = vld [vmem:[%s8299_s0 + $0xb1] ss:$2 sm:$0xff] }
  0x1e   :  { %1821 = vrot.lane.b32.xlu1 %v5239_v18, %s5772_s21  ;;  %519 = vrot.lane.b32.xlu0 %v5086_v19, %s5772_s21  ;;  %1408 = vst.msk [vmem:[#allocation2 + $0x184] sm:$0xff] %vm91_vm0, %v5171_v2  ;;  %v5093_v6 = vld [vmem:[%s8299_s0 + $0xa2] ss:$2 sm:$0xff]  ;;  %1409 = vst.msk [vmem:[#allocation2 + $0x18c] sm:$0xff] %vm91_vm0, %v5172_v5  ;;  %v5209_v10 = vld [vmem:[%s8299_s0 + $0x30b] ss:$2 sm:$0xff] }
  0x1f   :  { %v5246_v9 = vld [vmem:[%s8299_s0 + $0x2fc] ss:$2 sm:$0xff]  ;;  %v5247_v12 = vld [vmem:[%s8299_s0 + $0x30c] ss:$2 sm:$0xff]  ;;  %v5210_v15 = vld [vmem:[%s8299_s0 + $0x31b] ss:$2 sm:$0xff] }
  0x20   :  { %v5020_v11 = vld [vmem:[%s8299_s0 + $0xd0] ss:$2 sm:$0xff]  ;;  %v5057_v16 = vld [vmem:[%s8299_s0 + $0xc1] ss:$2 sm:$0xff]  ;;  %v5058_v19 = vld [vmem:[%s8299_s0 + $0xd1] ss:$2 sm:$0xff] }
  0x21   :  { %105 = vst.msk [vmem:[#allocation2 + $0x68] sm:$0xff] %vm91_vm0, %v5020_v11  ;;  %v5094_v13 = vld [vmem:[%s8299_s0 + $0xb2] ss:$2 sm:$0xff]  ;;  %v5095_v18 = vld [vmem:[%s8299_s0 + $0xc2] ss:$2 sm:$0xff] }
  0x22   :  { %1557 = vrot.lane.b32.xlu1 %v5202_v27, %s5771_s16  ;;  %253 = vrot.lane.b32.xlu0 %v5049_v28, %s5771_s16  ;;  %v5173_v14 = vld [vmem:[%s8299_s0 + $0x32a] ss:$2 sm:$0xff]  ;;  %v5174_v17 = vld [vmem:[%s8299_s0 + $0x33a] ss:$2 sm:$0xff] }
  0x23   :  { %1410 = vst.msk [vmem:[#allocation2 + $0x194] sm:$0xff] %vm91_vm0, %v5173_v14  ;;  %1411 = vst.msk [vmem:[#allocation2 + $0x19c] sm:$0xff] %vm91_vm0, %v5174_v17  ;;  %v5021_v20 = vld [vmem:[%s8299_s0 + $0xe0] ss:$2 sm:$0xff]  ;;  %v5211_v22 = vld [vmem:[%s8299_s0 + $0x32b] ss:$2 sm:$0xff] }
  0x24   :  { %106 = vst.msk [vmem:[#allocation2 + $0x70] sm:$0xff] %vm91_vm0, %v5021_v20  ;;  %v5248_v21 = vld [vmem:[%s8299_s0 + $0x31c] ss:$2 sm:$0xff]  ;;  %v5249_v24 = vld [vmem:[%s8299_s0 + $0x32c] ss:$2 sm:$0xff] }
  0x25   :  { %v5022_v23 = vld [vmem:[%s8299_s0 + $0xf0] ss:$2 sm:$0xff]  ;;  %v5212_v27 = vld [vmem:[%s8299_s0 + $0x33b] ss:$2 sm:$0xff]  ;;  %v5023_v32 = vld [vmem:[%s8299_s0 + $0x100] ss:$2 sm:$0xff] }
  0x26   :  { %521 = vrot.lane.b32.xlu1 %v5087_v33, %s5772_s21  ;;  %255 = vrot.lane.b32.xlu0 %v5050_v34, %s5771_s16  ;;  %107 = vst.msk [vmem:[#allocation2 + $0x78] sm:$0xff] %vm91_vm0, %v5022_v23  ;;  %v5096_v25 = vld [vmem:[%s8299_s0 + $0xd2] ss:$2 sm:$0xff]  ;;  %v5059_v28 = vld [vmem:[%s8299_s0 + $0xe1] ss:$2 sm:$0xff]  ;;  %108 = vst.msk [vmem:[#allocation2 + $0x80] sm:$0xff] %vm91_vm0, %v5023_v32 }
  0x27   :  { %v5175_v26 = vld [vmem:[%s8299_s0 + $0x34a] ss:$2 sm:$0xff]  ;;  %v5176_v29 = vld [vmem:[%s8299_s0 + $0x35a] ss:$2 sm:$0xff]  ;;  %v5060_v31 = vld [vmem:[%s8299_s0 + $0xf1] ss:$2 sm:$0xff] }
  0x28   :  { %1412 = vst.msk [vmem:[#allocation2 + $0x1a4] sm:$0xff] %vm91_vm0, %v5175_v26  ;;  %v5097_v30 = vld [vmem:[%s8299_s0 + $0xe2] ss:$2 sm:$0xff]  ;;  %1413 = vst.msk [vmem:[#allocation2 + $0x1ac] sm:$0xff] %vm91_vm0, %v5176_v29  ;;  %v5213_v36 = vld [vmem:[%s8299_s0 + $0x34b] ss:$2 sm:$0xff] }
  0x29   :  { %v5250_v35 = vld [vmem:[%s8299_s0 + $0x33c] ss:$2 sm:$0xff]  ;;  %v5214_v45 = vld [vmem:[%s8299_s0 + $0x35b] ss:$2 sm:$0xff] }
  0x2a   :  { %1823 = vrot.lane.b32.xlu1 %v5240_v37, %s5772_s21  ;;  %1559 = vrot.lane.b32.xlu0 %v5203_v38, %s5771_s16  ;;  %v5024_v37 = vld [vmem:[%s8299_s0 + $0x110] ss:$2 sm:$0xff]  ;;  %v5216_v5 = vld [vmem:[%s8299_s0 + $0x37b] ss:$2 sm:$0xff] }
  0x2b   :  { %109 = vst.msk [vmem:[#allocation2 + $0x88] sm:$0xff] %vm91_vm0, %v5024_v37  ;;  %v5177_v42 = vld [vmem:[%s8299_s0 + $0x36a] ss:$2 sm:$0xff]  ;;  %v5218_v29 = vld [vmem:[%s8299_s0 + $0x39b] ss:$2 sm:$0xff] }
  0x2c   :  { %1414 = vst.msk [vmem:[#allocation2 + $0x1b4] sm:$0xff] %vm91_vm0, %v5177_v42  ;;  %v5099_v51 = vld [vmem:[%s8299_s0 + $0x102] ss:$2 sm:$0xff]  ;;  %v5219_v42 = vld [vmem:[%s8299_s0 + $0x3ab] ss:$2 sm:$0xff] }
  0x2d   :  { %v5252_v57 = vld [vmem:[%s8299_s0 + $0x35c] ss:$2 sm:$0xff] }
  0x2e   :  { %1825 = vrot.lane.b32.xlu1 %v5241_v40, %s5772_s21  ;;  %523 = vrot.lane.b32.xlu0 %v5088_v41, %s5772_s21  ;;  %v5251_v40 = vld [vmem:[%s8299_s0 + $0x34c] ss:$2 sm:$0xff]  ;;  %v5254_v17 = vld [vmem:[%s8299_s0 + $0x37c] ss:$2 sm:$0xff] }
  0x2f   :  { %v5098_v41 = vld [vmem:[%s8299_s0 + $0xf2] ss:$2 sm:$0xff]  ;;  %v5101_v11 = vld [vmem:[%s8299_s0 + $0x122] ss:$2 sm:$0xff] }
  0x30   :  { %v5179_v2 = vld [vmem:[%s8299_s0 + $0x38a] ss:$2 sm:$0xff] }
  0x31   :  { %1416 = vst.msk [vmem:[#allocation2 + $0x1c4] sm:$0xff] %vm91_vm0, %v5179_v2  ;;  %v5181_v26 = vld [vmem:[%s8299_s0 + $0x3aa] ss:$2 sm:$0xff]  ;;  %v5221_v2 = vld [vmem:[%s8299_s0 + $0x3cb] ss:$2 sm:$0xff] }
  0x32   :  { %1561 = vrot.lane.b32.xlu1 %v5204_v43, %s5771_s16  ;;  %257 = vrot.lane.b32.xlu0 %v5051_v44, %s5771_s16  ;;  %1418 = vst.msk [vmem:[#allocation2 + $0x1d4] sm:$0xff] %vm91_vm0, %v5181_v26  ;;  %v5029_v37 = vld [vmem:[%s8299_s0 + $0x160] ss:$2 sm:$0xff]  ;;  %v5223_v26 = vld [vmem:[%s8299_s0 + $0x3eb] ss:$2 sm:$0xff] }
  0x33   :  { %114 = vst.msk [vmem:[#allocation2 + $0xb0] sm:$0xff] %vm91_vm0, %v5029_v37  ;;  %v5224_v37 = vld [vmem:[%s8299_s0 + $0x3fb] ss:$2 sm:$0xff] }
  0x36   :  { %525 = vrot.lane.b32.xlu1 %v5089_v46, %s5772_s21  ;;  %259 = vrot.lane.b32.xlu0 %v5052_v47, %s5771_s16  ;;  %v5061_v46 = vld [vmem:[%s8299_s0 + $0x101] ss:$2 sm:$0xff] }
  0x3a   :  { %1827 = vrot.lane.b32.xlu1 %v5242_v49, %s5772_s21  ;;  %1563 = vrot.lane.b32.xlu0 %v5205_v50, %s5771_s16  ;;  %v5178_v50 = vld [vmem:[%s8299_s0 + $0x37a] ss:$2 sm:$0xff] }
  0x3b   :  { %1415 = vst.msk [vmem:[#allocation2 + $0x1bc] sm:$0xff] %vm91_vm0, %v5178_v50  ;;  %v5183_v50 = vld [vmem:[%s8299_s0 + $0x3ca] ss:$2 sm:$0xff] }
  0x3c   :  { %1420 = vst.msk [vmem:[#allocation2 + $0x1e4] sm:$0xff] %vm91_vm0, %v5183_v50  ;;  %v5225_v50 = vld [vmem:[%s8299_s0 + $0x40b] ss:$2 sm:$0xff] }
  0x3e   :  { %1829 = vrot.lane.b32.xlu1 %v5243_v52, %s5772_s21  ;;  %527 = vrot.lane.b32.xlu0 %v5090_v53, %s5772_s21  ;;  %v5062_v52 = vld [vmem:[%s8299_s0 + $0x111] ss:$2 sm:$0xff]  ;;  %v5025_v53 = vld [vmem:[%s8299_s0 + $0x120] ss:$2 sm:$0xff] }
  0x3f   :  { %110 = vst.msk [vmem:[#allocation2 + $0x90] sm:$0xff] %vm91_vm0, %v5025_v53  ;;  %v5220_v53 = vld [vmem:[%s8299_s0 + $0x3bb] ss:$2 sm:$0xff] }
  0x42   :  { %1565 = vrot.lane.b32.xlu1 %v5206_v55, %s5771_s16  ;;  %261 = vrot.lane.b32.xlu0 %v5053_v56, %s5771_s16 }
  0x46   :  { %529 = vrot.lane.b32.xlu1 %v5091_v58, %s5772_s21  ;;  %263 = vrot.lane.b32.xlu0 %v5054_v59, %s5771_s16  ;;  %v5215_v58 = vld [vmem:[%s8299_s0 + $0x36b] ss:$2 sm:$0xff]  ;;  %v5026_v59 = vld [vmem:[%s8299_s0 + $0x130] ss:$2 sm:$0xff] }
  0x47   :  { %111 = vst.msk [vmem:[#allocation2 + $0x98] sm:$0xff] %vm91_vm0, %v5026_v59  ;;  %v5105_v59 = vld [vmem:[%s8299_s0 + $0x162] ss:$2 sm:$0xff] }
  0x4a   :  { %1831 = vrot.lane.b32.xlu1 %v5244_v61, %s5772_s21  ;;  %1567 = vrot.lane.b32.xlu0 %v5207_v62, %s5771_s16 }
  0x4e   :  { %1833 = vrot.lane.b32.xlu1 %v5245_v0, %s5772_s21  ;;  %531 = vrot.lane.b32.xlu0 %v5092_v1, %s5772_s21  ;;  %v5253_v0 = vld [vmem:[%s8299_s0 + $0x36c] ss:$2 sm:$0xff] }
  0x4f   :  { %v5100_v1 = vld [vmem:[%s8299_s0 + $0x112] ss:$2 sm:$0xff] }
  0x52   :  { %1569 = vrot.lane.b32.xlu1 %v5208_v3, %s5771_s16  ;;  %265 = vrot.lane.b32.xlu0 %v5055_v4, %s5771_s16 }
  0x56   :  { %533 = vrot.lane.b32.xlu1 %v5093_v6, %s5772_s21  ;;  %267 = vrot.lane.b32.xlu0 %v5056_v7, %s5771_s16  ;;  %v5063_v6 = vld [vmem:[%s8299_s0 + $0x121] ss:$2 sm:$0xff] }
  0x5a   :  { %1835 = vrot.lane.b32.xlu1 %v5246_v9, %s5772_s21  ;;  %1571 = vrot.lane.b32.xlu0 %v5209_v10, %s5771_s16  ;;  %v5180_v10 = vld [vmem:[%s8299_s0 + $0x39a] ss:$2 sm:$0xff] }
  0x5b   :  { %1417 = vst.msk [vmem:[#allocation2 + $0x1cc] sm:$0xff] %vm91_vm0, %v5180_v10  ;;  %v5185_v10 = vld [vmem:[%s8299_s0 + $0x3ea] ss:$2 sm:$0xff] }
  0x5c   :  { %1422 = vst.msk [vmem:[#allocation2 + $0x1f4] sm:$0xff] %vm91_vm0, %v5185_v10  ;;  %v5227_v10 = vld [vmem:[%s8299_s0 + $0x42b] ss:$2 sm:$0xff] }
  0x5e   :  { %1837 = vrot.lane.b32.xlu1 %v5247_v12, %s5772_s21  ;;  %535 = vrot.lane.b32.xlu0 %v5094_v13, %s5772_s21  ;;  %v5064_v12 = vld [vmem:[%s8299_s0 + $0x131] ss:$2 sm:$0xff]  ;;  %v5027_v13 = vld [vmem:[%s8299_s0 + $0x140] ss:$2 sm:$0xff] }
  0x5f   :  { %112 = vst.msk [vmem:[#allocation2 + $0xa0] sm:$0xff] %vm91_vm0, %v5027_v13  ;;  %v5222_v13 = vld [vmem:[%s8299_s0 + $0x3db] ss:$2 sm:$0xff] }
  0x62   :  { %1573 = vrot.lane.b32.xlu1 %v5210_v15, %s5771_s16  ;;  %269 = vrot.lane.b32.xlu0 %v5057_v16, %s5771_s16 }
  0x66   :  { %537 = vrot.lane.b32.xlu1 %v5095_v18, %s5772_s21  ;;  %271 = vrot.lane.b32.xlu0 %v5058_v19, %s5771_s16  ;;  %v5217_v18 = vld [vmem:[%s8299_s0 + $0x38b] ss:$2 sm:$0xff]  ;;  %v5028_v19 = vld [vmem:[%s8299_s0 + $0x150] ss:$2 sm:$0xff] }
  0x67   :  { %113 = vst.msk [vmem:[#allocation2 + $0xa8] sm:$0xff] %vm91_vm0, %v5028_v19  ;;  %v5107_v19 = vld [vmem:[%s8299_s0 + $0x182] ss:$2 sm:$0xff] }
  0x6a   :  { %1839 = vrot.lane.b32.xlu1 %v5248_v21, %s5772_s21  ;;  %1575 = vrot.lane.b32.xlu0 %v5211_v22, %s5771_s16 }
  0x6e   :  { %1841 = vrot.lane.b32.xlu1 %v5249_v24, %s5772_s21  ;;  %539 = vrot.lane.b32.xlu0 %v5096_v25, %s5772_s21  ;;  %v5255_v24 = vld [vmem:[%s8299_s0 + $0x38c] ss:$2 sm:$0xff] }
  0x6f   :  { %v5102_v25 = vld [vmem:[%s8299_s0 + $0x132] ss:$2 sm:$0xff] }
  0x72   :  { %1577 = vrot.lane.b32.xlu1 %v5212_v27, %s5771_s16  ;;  %273 = vrot.lane.b32.xlu0 %v5059_v28, %s5771_s16 }
  0x74   :  { %v248_v33 = vpop.permute.xlu1 %247  ;;  %v246_v34 = vpop.permute.xlu0 %245 }
  0x75   :  { %361 = vst.msk [vmem:[#allocation2 + $0x8] sm:$0xff] %vm359_vm4, %v248_v33  ;;  %360 = vst.msk [vmem:[#allocation2] sm:$0xff] %vm359_vm4, %v246_v34  ;;  %v5182_v34 = vld [vmem:[%s8299_s0 + $0x3ba] ss:$2 sm:$0xff] }
  0x76   :  { %541 = vrot.lane.b32.xlu1 %v5097_v30, %s5772_s21  ;;  %275 = vrot.lane.b32.xlu0 %v5060_v31, %s5771_s16  ;;  %v5065_v30 = vld [vmem:[%s8299_s0 + $0x141] ss:$2 sm:$0xff]  ;;  %1419 = vst.msk [vmem:[#allocation2 + $0x1dc] sm:$0xff] %vm91_vm0, %v5182_v34  ;;  %v5187_v34 = vld [vmem:[%s8299_s0 + $0x40a] ss:$2 sm:$0xff] }
  0x77   :  { %1424 = vst.msk [vmem:[#allocation2 + $0x204] sm:$0xff] %vm91_vm0, %v5187_v34  ;;  %v5229_v34 = vld [vmem:[%s8299_s0 + $0x44b] ss:$2 sm:$0xff] }
  0x78   :  { %v514_v38 = vpop.permute.xlu1 %513  ;;  %v1550_v39 = vpop.permute.xlu0 %1549 }
  0x79   :  { %628 = vst.msk [vmem:[#allocation2] sm:$0xff] %vm627_vm5, %v514_v38 }
  0x7a   :  { %1663 = vst.msk [vmem:[#allocation2 + $0x12c] sm:$0xff] %vm359_vm4, %v1550_v39  ;;  %1843 = vrot.lane.b32.xlu1 %v5250_v35, %s5772_s21  ;;  %1579 = vrot.lane.b32.xlu0 %v5213_v36, %s5771_s16  ;;  %v5103_v35 = vld [vmem:[%s8299_s0 + $0x142] ss:$2 sm:$0xff]  ;;  %v5066_v36 = vld [vmem:[%s8299_s0 + $0x151] ss:$2 sm:$0xff] }
  0x7c   :  { %v1816_v43 = vpop.permute.xlu1 %1815  ;;  %v1552_v44 = vpop.permute.xlu0 %1551 }
  0x7d   :  { %1929 = vst.msk [vmem:[#allocation2 + $0x12c] sm:$0xff] %vm627_vm5, %v1816_v43  ;;  %v5030_v43 = vld [vmem:[%s8299_s0 + $0x170] ss:$2 sm:$0xff] }
  0x7e   :  { %1664 = vst.msk [vmem:[#allocation2 + $0x134] sm:$0xff] %vm359_vm4, %v1552_v44  ;;  %1845 = vrot.lane.b32.xlu1 %v5251_v40, %s5772_s21  ;;  %543 = vrot.lane.b32.xlu0 %v5098_v41, %s5772_s21  ;;  %v5256_v41 = vld [vmem:[%s8299_s0 + $0x39c] ss:$2 sm:$0xff] }
  0x7f   :  { %115 = vst.msk [vmem:[#allocation2 + $0xb8] sm:$0xff] %vm91_vm0, %v5030_v43  ;;  %v5109_v43 = vld [vmem:[%s8299_s0 + $0x1a2] ss:$2 sm:$0xff] }
  0x80   :  { %v1818_v47 = vpop.permute.xlu1 %1817  ;;  %v516_v48 = vpop.permute.xlu0 %515  ;;  %v667_v49 = vld [vmem:[#allocation2] sm:$0xff] }
  0x81   :  { %1930 = vst.msk [vmem:[#allocation2 + $0x134] sm:$0xff] %vm627_vm5, %v1818_v47  ;;  %629 = vst.msk [vmem:[#allocation2 + $0x8] sm:$0xff] %vm627_vm5, %v516_v48  ;;  %5479 = vmatprep.mubr.msk.f32.mxu0 %vm705_vm6, %v667_v49  ;;  %v5257_v48 = vld [vmem:[%s8299_s0 + $0x3ac] ss:$2 sm:$0xff] }
  0x82   :  { %1581 = vrot.lane.b32.xlu1 %v5214_v45, %s5771_s16  ;;  %277 = vrot.lane.b32.xlu0 %v5061_v46, %s5771_s16  ;;  %v5104_v49 = vld [vmem:[%s8299_s0 + $0x152] ss:$2 sm:$0xff] }
  0x84   :  { %v1554_v54 = vpop.permute.xlu1 %1553  ;;  %v250_v55 = vpop.permute.xlu0 %249  ;;  %v1967_v56 = vld [vmem:[#allocation2 + $0x12c] sm:$0xff] }
  0x85   :  { %1665 = vst.msk [vmem:[#allocation2 + $0x13c] sm:$0xff] %vm359_vm4, %v1554_v54  ;;  %362 = vst.msk [vmem:[#allocation2 + $0x10] sm:$0xff] %vm359_vm4, %v250_v55  ;;  %5540 = vmatprep.mubr.msk.f32.mxu1 %vm705_vm6, %v1967_v56  ;;  %v5067_v54 = vld [vmem:[%s8299_s0 + $0x161] ss:$2 sm:$0xff] }
  0x86   :  { %545 = vrot.lane.b32.xlu1 %v5099_v51, %s5772_s21  ;;  %279 = vrot.lane.b32.xlu0 %v5062_v52, %s5771_s16 }
  0x88   :  { %v518_v60 = vpop.permute.xlu1 %517  ;;  %v252_v61 = vpop.permute.xlu0 %251  ;;  %v668_v62 = vld [vmem:[#allocation2 + $0x8] sm:$0xff]  ;;  %v1968_v63 = vld [vmem:[#allocation2 + $0x134] sm:$0xff] }
  0x89   :  { %630 = vst.msk [vmem:[#allocation2 + $0x10] sm:$0xff] %vm627_vm5, %v518_v60  ;;  %5480 = vmatmul.mubr.msk.f32.vlgmr.msra.gmra.mrb[0].mxu0 %vm705_vm6, %v668_v62  ;;  %5541 = vmatmul.mubr.msk.f32.vlgmr.msra.gmra.mrb[0].mxu1 %vm705_vm6, %v1968_v63  ;;  %v5068_v60 = vld [vmem:[%s8299_s0 + $0x171] ss:$2 sm:$0xff] }
  0x8a   :  { %363 = vst.msk [vmem:[#allocation2 + $0x18] sm:$0xff] %vm359_vm4, %v252_v61  ;;  %1847 = vrot.lane.b32.xlu1 %v5252_v57, %s5772_s21  ;;  %1583 = vrot.lane.b32.xlu0 %v5215_v58, %s5771_s16  ;;  %v5184_v58 = vld [vmem:[%s8299_s0 + $0x3da] ss:$2 sm:$0xff] }
  0x8b   :  { %1421 = vst.msk [vmem:[#allocation2 + $0x1ec] sm:$0xff] %vm91_vm0, %v5184_v58  ;;  %v5031_v61 = vld [vmem:[%s8299_s0 + $0x180] ss:$2 sm:$0xff] }
  0x8c   :  { %v1820_v3 = vpop.permute.xlu1 %1819  ;;  %v1556_v4 = vpop.permute.xlu0 %1555  ;;  %116 = vst.msk [vmem:[#allocation2 + $0xc0] sm:$0xff] %vm91_vm0, %v5031_v61  ;;  %v5189_v58 = vld [vmem:[%s8299_s0 + $0x42a] ss:$2 sm:$0xff]  ;;  %v5226_v61 = vld [vmem:[%s8299_s0 + $0x41b] ss:$2 sm:$0xff] }
  0x8d   :  { %1931 = vst.msk [vmem:[#allocation2 + $0x13c] sm:$0xff] %vm627_vm5, %v1820_v3  ;;  %v5032_v3 = vld [vmem:[%s8299_s0 + $0x190] ss:$2 sm:$0xff] }
  0x8e   :  { %1666 = vst.msk [vmem:[#allocation2 + $0x144] sm:$0xff] %vm359_vm4, %v1556_v4  ;;  %1849 = vrot.lane.b32.xlu1 %v5253_v0, %s5772_s21  ;;  %547 = vrot.lane.b32.xlu0 %v5100_v1, %s5772_s21  ;;  %v5258_v1 = vld [vmem:[%s8299_s0 + $0x3bc] ss:$2 sm:$0xff] }
  0x8f   :  { %117 = vst.msk [vmem:[#allocation2 + $0xc8] sm:$0xff] %vm91_vm0, %v5032_v3  ;;  %1426 = vst.msk [vmem:[#allocation2 + $0x214] sm:$0xff] %vm91_vm0, %v5189_v58  ;;  %v5074_v3 = vld [vmem:[%s8299_s0 + $0x1d1] ss:$2 sm:$0xff] }
  0x90   :  { %v1822_v7 = vpop.permute.xlu1 %1821  ;;  %v520_v8 = vpop.permute.xlu0 %519  ;;  %v669_v9 = vld [vmem:[#allocation2 + $0x10] sm:$0xff] }
  0x91   :  { %1932 = vst.msk [vmem:[#allocation2 + $0x144] sm:$0xff] %vm627_vm5, %v1822_v7  ;;  %631 = vst.msk [vmem:[#allocation2 + $0x18] sm:$0xff] %vm627_vm5, %v520_v8  ;;  %5482 = vmatprep.mubr.msk.f32.mxu0 %vm705_vm6, %v669_v9  ;;  %v5259_v8 = vld [vmem:[%s8299_s0 + $0x3cc] ss:$2 sm:$0xff]  ;;  %v5231_v58 = vld [vmem:[%s8299_s0 + $0x46b] ss:$2 sm:$0xff] }
  0x92   :  { %1585 = vrot.lane.b32.xlu1 %v5216_v5, %s5771_s16  ;;  %281 = vrot.lane.b32.xlu0 %v5063_v6, %s5771_s16  ;;  %v5106_v9 = vld [vmem:[%s8299_s0 + $0x172] ss:$2 sm:$0xff] }
  0x94   :  { %v1558_v14 = vpop.permute.xlu1 %1557  ;;  %v254_v15 = vpop.permute.xlu0 %253  ;;  %v1969_v16 = vld [vmem:[#allocation2 + $0x13c] sm:$0xff] }
  0x95   :  { %1667 = vst.msk [vmem:[#allocation2 + $0x14c] sm:$0xff] %vm359_vm4, %v1558_v14  ;;  %364 = vst.msk [vmem:[#allocation2 + $0x20] sm:$0xff] %vm359_vm4, %v254_v15  ;;  %5543 = vmatprep.mubr.msk.f32.mxu1 %vm705_vm6, %v1969_v16  ;;  %v5069_v14 = vld [vmem:[%s8299_s0 + $0x181] ss:$2 sm:$0xff] }
  0x96   :  { %549 = vrot.lane.b32.xlu1 %v5101_v11, %s5772_s21  ;;  %283 = vrot.lane.b32.xlu0 %v5064_v12, %s5771_s16 }
  0x98   :  { %v522_v20 = vpop.permute.xlu1 %521  ;;  %v256_v21 = vpop.permute.xlu0 %255  ;;  %v670_v22 = vld [vmem:[#allocation2 + $0x18] sm:$0xff]  ;;  %v1970_v23 = vld [vmem:[#allocation2 + $0x144] sm:$0xff] }
  0x99   :  { %632 = vst.msk [vmem:[#allocation2 + $0x20] sm:$0xff] %vm627_vm5, %v522_v20  ;;  %5483 = vmatmul.mubr.msk.f32.gmra.mrb[2].mxu0 %vm705_vm6, %v670_v22  ;;  %5544 = vmatmul.mubr.msk.f32.gmra.mrb[2].mxu1 %vm705_vm6, %v1970_v23  ;;  %v5070_v20 = vld [vmem:[%s8299_s0 + $0x191] ss:$2 sm:$0xff] }
  0x9a   :  { %365 = vst.msk [vmem:[#allocation2 + $0x28] sm:$0xff] %vm359_vm4, %v256_v21  ;;  %1851 = vrot.lane.b32.xlu1 %v5254_v17, %s5772_s21  ;;  %1587 = vrot.lane.b32.xlu0 %v5217_v18, %s5771_s16  ;;  %v5186_v18 = vld [vmem:[%s8299_s0 + $0x3fa] ss:$2 sm:$0xff] }
  0x9b   :  { %1423 = vst.msk [vmem:[#allocation2 + $0x1fc] sm:$0xff] %vm91_vm0, %v5186_v18  ;;  %v5033_v21 = vld [vmem:[%s8299_s0 + $0x1a0] ss:$2 sm:$0xff] }
  0x9c   :  { %v1824_v27 = vpop.permute.xlu1 %1823  ;;  %v1560_v28 = vpop.permute.xlu0 %1559  ;;  %118 = vst.msk [vmem:[#allocation2 + $0xd0] sm:$0xff] %vm91_vm0, %v5033_v21  ;;  %v5228_v21 = vld [vmem:[%s8299_s0 + $0x43b] ss:$2 sm:$0xff] }
  0x9d   :  { %1933 = vst.msk [vmem:[#allocation2 + $0x14c] sm:$0xff] %vm627_vm5, %v1824_v27  ;;  %v5034_v27 = vld [vmem:[%s8299_s0 + $0x1b0] ss:$2 sm:$0xff] }
  0x9e   :  { %1668 = vst.msk [vmem:[#allocation2 + $0x154] sm:$0xff] %vm359_vm4, %v1560_v28  ;;  %1853 = vrot.lane.b32.xlu1 %v5255_v24, %s5772_s21  ;;  %551 = vrot.lane.b32.xlu0 %v5102_v25, %s5772_s21  ;;  %v5260_v25 = vld [vmem:[%s8299_s0 + $0x3dc] ss:$2 sm:$0xff] }
  0x9f   :  { %119 = vst.msk [vmem:[#allocation2 + $0xd8] sm:$0xff] %vm91_vm0, %v5034_v27  ;;  %v5076_v27 = vld [vmem:[%s8299_s0 + $0x1f1] ss:$2 sm:$0xff] }
  0xa0   :  { %v1826_v31 = vpop.permute.xlu1 %1825  ;;  %v524_v32 = vpop.permute.xlu0 %523  ;;  %v671_v33 = vld [vmem:[#allocation2 + $0x20] sm:$0xff] }
  0xa1   :  { %1934 = vst.msk [vmem:[#allocation2 + $0x154] sm:$0xff] %vm627_vm5, %v1826_v31  ;;  %633 = vst.msk [vmem:[#allocation2 + $0x28] sm:$0xff] %vm627_vm5, %v524_v32  ;;  %5485 = vmatprep.mubr.msk.f32.mxu0 %vm705_vm6, %v671_v33  ;;  %v5261_v32 = vld [vmem:[%s8299_s0 + $0x3ec] ss:$2 sm:$0xff] }
  0xa2   :  { %1589 = vrot.lane.b32.xlu1 %v5218_v29, %s5771_s16  ;;  %285 = vrot.lane.b32.xlu0 %v5065_v30, %s5771_s16  ;;  %v5108_v33 = vld [vmem:[%s8299_s0 + $0x192] ss:$2 sm:$0xff] }
  0xa4   :  { %v1562_v38 = vpop.permute.xlu1 %1561  ;;  %v258_v39 = vpop.permute.xlu0 %257  ;;  %v1971_v40 = vld [vmem:[#allocation2 + $0x14c] sm:$0xff] }
  0xa5   :  { %1669 = vst.msk [vmem:[#allocation2 + $0x15c] sm:$0xff] %vm359_vm4, %v1562_v38  ;;  %366 = vst.msk [vmem:[#allocation2 + $0x30] sm:$0xff] %vm359_vm4, %v258_v39  ;;  %5546 = vmatprep.mubr.msk.f32.mxu1 %vm705_vm6, %v1971_v40  ;;  %v5071_v38 = vld [vmem:[%s8299_s0 + $0x1a1] ss:$2 sm:$0xff] }
  0xa6   :  { %553 = vrot.lane.b32.xlu1 %v5103_v35, %s5772_s21  ;;  %287 = vrot.lane.b32.xlu0 %v5066_v36, %s5771_s16 }
  0xa8   :  { %v526_v44 = vpop.permute.xlu1 %525  ;;  %v260_v45 = vpop.permute.xlu0 %259  ;;  %v672_v46 = vld [vmem:[#allocation2 + $0x28] sm:$0xff]  ;;  %v1972_v47 = vld [vmem:[#allocation2 + $0x154] sm:$0xff] }
  0xa9   :  { %634 = vst.msk [vmem:[#allocation2 + $0x30] sm:$0xff] %vm627_vm5, %v526_v44  ;;  %5486 = vmatmul.mubr.msk.f32.gmra.mrb[4].mxu0 %vm705_vm6, %v672_v46  ;;  %5547 = vmatmul.mubr.msk.f32.gmra.mrb[4].mxu1 %vm705_vm6, %v1972_v47  ;;  %v5072_v44 = vld [vmem:[%s8299_s0 + $0x1b1] ss:$2 sm:$0xff] }
  0xaa   :  { %367 = vst.msk [vmem:[#allocation2 + $0x38] sm:$0xff] %vm359_vm4, %v260_v45  ;;  %1855 = vrot.lane.b32.xlu1 %v5256_v41, %s5772_s21  ;;  %1591 = vrot.lane.b32.xlu0 %v5219_v42, %s5771_s16  ;;  %v5188_v42 = vld [vmem:[%s8299_s0 + $0x41a] ss:$2 sm:$0xff] }
  0xab   :  { %1425 = vst.msk [vmem:[#allocation2 + $0x20c] sm:$0xff] %vm91_vm0, %v5188_v42  ;;  %v5035_v45 = vld [vmem:[%s8299_s0 + $0x1c0] ss:$2 sm:$0xff] }
  0xac   :  { %v1828_v51 = vpop.permute.xlu1 %1827  ;;  %v1564_v52 = vpop.permute.xlu0 %1563  ;;  %120 = vst.msk [vmem:[#allocation2 + $0xe0] sm:$0xff] %vm91_vm0, %v5035_v45  ;;  %v5230_v45 = vld [vmem:[%s8299_s0 + $0x45b] ss:$2 sm:$0xff] }
  0xad   :  { %1935 = vst.msk [vmem:[#allocation2 + $0x15c] sm:$0xff] %vm627_vm5, %v1828_v51  ;;  %v5036_v51 = vld [vmem:[%s8299_s0 + $0x1d0] ss:$2 sm:$0xff] }
  0xae   :  { %1670 = vst.msk [vmem:[#allocation2 + $0x164] sm:$0xff] %vm359_vm4, %v1564_v52  ;;  %1857 = vrot.lane.b32.xlu1 %v5257_v48, %s5772_s21  ;;  %555 = vrot.lane.b32.xlu0 %v5104_v49, %s5772_s21  ;;  %v5262_v49 = vld [vmem:[%s8299_s0 + $0x3fc] ss:$2 sm:$0xff] }
  0xaf   :  { %121 = vst.msk [vmem:[#allocation2 + $0xe8] sm:$0xff] %vm91_vm0, %v5036_v51  ;;  %v5078_v51 = vld [vmem:[%s8299_s0 + $0x211] ss:$2 sm:$0xff] }
  0xb0   :  { %v1830_v55 = vpop.permute.xlu1 %1829  ;;  %v528_v56 = vpop.permute.xlu0 %527  ;;  %v673_v57 = vld [vmem:[#allocation2 + $0x30] sm:$0xff] }
  0xb1   :  { %1936 = vst.msk [vmem:[#allocation2 + $0x164] sm:$0xff] %vm627_vm5, %v1830_v55  ;;  %635 = vst.msk [vmem:[#allocation2 + $0x38] sm:$0xff] %vm627_vm5, %v528_v56  ;;  %5488 = vmatprep.mubr.msk.f32.mxu0 %vm705_vm6, %v673_v57  ;;  %v5263_v56 = vld [vmem:[%s8299_s0 + $0x40c] ss:$2 sm:$0xff] }
  0xb2   :  { %1593 = vrot.lane.b32.xlu1 %v5220_v53, %s5771_s16  ;;  %289 = vrot.lane.b32.xlu0 %v5067_v54, %s5771_s16  ;;  %v5110_v57 = vld [vmem:[%s8299_s0 + $0x1b2] ss:$2 sm:$0xff] }
  0xb4   :  { %v1566_v62 = vpop.permute.xlu1 %1565  ;;  %v262_v63 = vpop.permute.xlu0 %261  ;;  %v1973_v0 = vld [vmem:[#allocation2 + $0x15c] sm:$0xff] }
  0xb5   :  { %1671 = vst.msk [vmem:[#allocation2 + $0x16c] sm:$0xff] %vm359_vm4, %v1566_v62  ;;  %368 = vst.msk [vmem:[#allocation2 + $0x40] sm:$0xff] %vm359_vm4, %v262_v63  ;;  %5549 = vmatprep.mubr.msk.f32.mxu1 %vm705_vm6, %v1973_v0  ;;  %v5073_v62 = vld [vmem:[%s8299_s0 + $0x1c1] ss:$2 sm:$0xff] }
  0xb6   :  { %557 = vrot.lane.b32.xlu1 %v5105_v59, %s5772_s21  ;;  %291 = vrot.lane.b32.xlu0 %v5068_v60, %s5771_s16 }
  0xb8   :  { %v530_v4 = vpop.permute.xlu1 %529  ;;  %v264_v5 = vpop.permute.xlu0 %263  ;;  %v674_v6 = vld [vmem:[#allocation2 + $0x38] sm:$0xff]  ;;  %v1974_v7 = vld [vmem:[#allocation2 + $0x164] sm:$0xff] }
  0xb9   :  { %636 = vst.msk [vmem:[#allocation2 + $0x40] sm:$0xff] %vm627_vm5, %v530_v4  ;;  %5489 = vmatmul.mubr.msk.f32.gmra.mrb[6].mxu0 %vm705_vm6, %v674_v6  ;;  %5550 = vmatmul.mubr.msk.f32.gmra.mrb[6].mxu1 %vm705_vm6, %v1974_v7  ;;  %v5190_v7 = vld [vmem:[%s8299_s0 + $0x43a] ss:$2 sm:$0xff] }
  0xba   :  { %369 = vst.msk [vmem:[#allocation2 + $0x48] sm:$0xff] %vm359_vm4, %v264_v5  ;;  %1859 = vrot.lane.b32.xlu1 %v5258_v1, %s5772_s21  ;;  %1595 = vrot.lane.b32.xlu0 %v5221_v2, %s5771_s16  ;;  %v5111_v2 = vld [vmem:[%s8299_s0 + $0x1c2] ss:$2 sm:$0xff] }
  0xbb   :  { %1427 = vst.msk [vmem:[#allocation2 + $0x21c] sm:$0xff] %vm91_vm0, %v5190_v7 }
  0xbc   :  { %v1832_v11 = vpop.permute.xlu1 %1831  ;;  %v1568_v12 = vpop.permute.xlu0 %1567 }
  0xbd   :  { %1937 = vst.msk [vmem:[#allocation2 + $0x16c] sm:$0xff] %vm627_vm5, %v1832_v11 }
  0xbe   :  { %1672 = vst.msk [vmem:[#allocation2 + $0x174] sm:$0xff] %vm359_vm4, %v1568_v12  ;;  %1861 = vrot.lane.b32.xlu1 %v5259_v8, %s5772_s21  ;;  %559 = vrot.lane.b32.xlu0 %v5106_v9, %s5772_s21  ;;  %v5037_v8 = vld [vmem:[%s8299_s0 + $0x1e0] ss:$2 sm:$0xff] }
  0xbf   :  { %122 = vst.msk [vmem:[#allocation2 + $0xf0] sm:$0xff] %vm91_vm0, %v5037_v8  ;;  %v5264_v9 = vld [vmem:[%s8299_s0 + $0x41c] ss:$2 sm:$0xff] }
  0xc0   :  { %v1834_v15 = vpop.permute.xlu1 %1833  ;;  %v532_v16 = vpop.permute.xlu0 %531  ;;  %v675_v17 = vld [vmem:[#allocation2 + $0x40] sm:$0xff] }
  0xc1   :  { %1938 = vst.msk [vmem:[#allocation2 + $0x174] sm:$0xff] %vm627_vm5, %v1834_v15  ;;  %637 = vst.msk [vmem:[#allocation2 + $0x48] sm:$0xff] %vm627_vm5, %v532_v16  ;;  %5491 = vmatprep.mubr.msk.f32.mxu0 %vm705_vm6, %v675_v17  ;;  %v5038_v15 = vld [vmem:[%s8299_s0 + $0x1f0] ss:$2 sm:$0xff] }
  0xc2   :  { %1597 = vrot.lane.b32.xlu1 %v5222_v13, %s5771_s16  ;;  %293 = vrot.lane.b32.xlu0 %v5069_v14, %s5771_s16  ;;  %123 = vst.msk [vmem:[#allocation2 + $0xf8] sm:$0xff] %vm91_vm0, %v5038_v15  ;;  %v5265_v16 = vld [vmem:[%s8299_s0 + $0x42c] ss:$2 sm:$0xff] }
  0xc3   :  { %v5112_v17 = vld [vmem:[%s8299_s0 + $0x1d2] ss:$2 sm:$0xff] }
  0xc4   :  { %v1570_v22 = vpop.permute.xlu1 %1569  ;;  %v266_v23 = vpop.permute.xlu0 %265  ;;  %v1975_v24 = vld [vmem:[#allocation2 + $0x16c] sm:$0xff]  ;;  %v5196_v15 = vld [vmem:[%s8299_s0 + $0x49a] ss:$2 sm:$0xff] }
  0xc5   :  { %1673 = vst.msk [vmem:[#allocation2 + $0x17c] sm:$0xff] %vm359_vm4, %v1570_v22  ;;  %370 = vst.msk [vmem:[#allocation2 + $0x50] sm:$0xff] %vm359_vm4, %v266_v23  ;;  %5552 = vmatprep.mubr.msk.f32.mxu1 %vm705_vm6, %v1975_v24  ;;  %v5075_v22 = vld [vmem:[%s8299_s0 + $0x1e1] ss:$2 sm:$0xff] }
  0xc6   :  { %561 = vrot.lane.b32.xlu1 %v5107_v19, %s5772_s21  ;;  %295 = vrot.lane.b32.xlu0 %v5070_v20, %s5771_s16  ;;  %v5191_v20 = vld [vmem:[%s8299_s0 + $0x44a] ss:$2 sm:$0xff]  ;;  %1433 = vst.msk [vmem:[#allocation2 + $0x24c] sm:$0xff] %vm91_vm0, %v5196_v15 }
  0xc7   :  { %1428 = vst.msk [vmem:[#allocation2 + $0x224] sm:$0xff] %vm91_vm0, %v5191_v20 }
  0xc8   :  { %v534_v28 = vpop.permute.xlu1 %533  ;;  %v268_v29 = vpop.permute.xlu0 %267  ;;  %v676_v30 = vld [vmem:[#allocation2 + $0x48] sm:$0xff]  ;;  %v1976_v31 = vld [vmem:[#allocation2 + $0x174] sm:$0xff] }
  0xc9   :  { %638 = vst.msk [vmem:[#allocation2 + $0x50] sm:$0xff] %vm627_vm5, %v534_v28  ;;  %5492 = vmatmul.mubr.msk.f32.gmra.mrb[8].mxu0 %vm705_vm6, %v676_v30  ;;  %5553 = vmatmul.mubr.msk.f32.gmra.mrb[8].mxu1 %vm705_vm6, %v1976_v31  ;;  %v5192_v31 = vld [vmem:[%s8299_s0 + $0x45a] ss:$2 sm:$0xff] }
  0xca   :  { %371 = vst.msk [vmem:[#allocation2 + $0x58] sm:$0xff] %vm359_vm4, %v268_v29  ;;  %1863 = vrot.lane.b32.xlu1 %v5260_v25, %s5772_s21  ;;  %1599 = vrot.lane.b32.xlu0 %v5223_v26, %s5771_s16  ;;  %v5113_v26 = vld [vmem:[%s8299_s0 + $0x1e2] ss:$2 sm:$0xff] }
  0xcb   :  { %1429 = vst.msk [vmem:[#allocation2 + $0x22c] sm:$0xff] %vm91_vm0, %v5192_v31 }
  0xcc   :  { %v1836_v35 = vpop.permute.xlu1 %1835  ;;  %v1572_v36 = vpop.permute.xlu0 %1571 }
  0xcd   :  { %1939 = vst.msk [vmem:[#allocation2 + $0x17c] sm:$0xff] %vm627_vm5, %v1836_v35 }
  0xce   :  { %1674 = vst.msk [vmem:[#allocation2 + $0x184] sm:$0xff] %vm359_vm4, %v1572_v36  ;;  %1865 = vrot.lane.b32.xlu1 %v5261_v32, %s5772_s21  ;;  %563 = vrot.lane.b32.xlu0 %v5108_v33, %s5772_s21  ;;  %v5039_v32 = vld [vmem:[%s8299_s0 + $0x200] ss:$2 sm:$0xff] }
  0xcf   :  { %124 = vst.msk [vmem:[#allocation2 + $0x100] sm:$0xff] %vm91_vm0, %v5039_v32  ;;  %v5266_v33 = vld [vmem:[%s8299_s0 + $0x43c] ss:$2 sm:$0xff] }
  0xd0   :  { %v1838_v39 = vpop.permute.xlu1 %1837  ;;  %v536_v40 = vpop.permute.xlu0 %535  ;;  %v677_v41 = vld [vmem:[#allocation2 + $0x50] sm:$0xff] }
  0xd1   :  { %1940 = vst.msk [vmem:[#allocation2 + $0x184] sm:$0xff] %vm627_vm5, %v1838_v39  ;;  %639 = vst.msk [vmem:[#allocation2 + $0x58] sm:$0xff] %vm627_vm5, %v536_v40  ;;  %5494 = vmatprep.mubr.msk.f32.mxu0 %vm705_vm6, %v677_v41  ;;  %v5040_v39 = vld [vmem:[%s8299_s0 + $0x210] ss:$2 sm:$0xff] }
  0xd2   :  { %1601 = vrot.lane.b32.xlu1 %v5224_v37, %s5771_s16  ;;  %297 = vrot.lane.b32.xlu0 %v5071_v38, %s5771_s16  ;;  %125 = vst.msk [vmem:[#allocation2 + $0x108] sm:$0xff] %vm91_vm0, %v5040_v39  ;;  %v5267_v40 = vld [vmem:[%s8299_s0 + $0x44c] ss:$2 sm:$0xff]  ;;  %v5272_v39 = vld [vmem:[%s8299_s0 + $0x49c] ss:$2 sm:$0xff] }
  0xd3   :  { %v5114_v41 = vld [vmem:[%s8299_s0 + $0x1f2] ss:$2 sm:$0xff] }
  0xd4   :  { %v1574_v46 = vpop.permute.xlu1 %1573  ;;  %v270_v47 = vpop.permute.xlu0 %269  ;;  %v1977_v48 = vld [vmem:[#allocation2 + $0x17c] sm:$0xff] }
  0xd5   :  { %1675 = vst.msk [vmem:[#allocation2 + $0x18c] sm:$0xff] %vm359_vm4, %v1574_v46  ;;  %372 = vst.msk [vmem:[#allocation2 + $0x60] sm:$0xff] %vm359_vm4, %v270_v47  ;;  %5555 = vmatprep.mubr.msk.f32.mxu1 %vm705_vm6, %v1977_v48  ;;  %v5077_v46 = vld [vmem:[%s8299_s0 + $0x201] ss:$2 sm:$0xff] }
  0xd6   :  { %565 = vrot.lane.b32.xlu1 %v5109_v43, %s5772_s21  ;;  %299 = vrot.lane.b32.xlu0 %v5072_v44, %s5771_s16  ;;  %v5193_v44 = vld [vmem:[%s8299_s0 + $0x46a] ss:$2 sm:$0xff] }
  0xd7   :  { %1430 = vst.msk [vmem:[#allocation2 + $0x234] sm:$0xff] %vm91_vm0, %v5193_v44 }
  0xd8   :  { %v538_v52 = vpop.permute.xlu1 %537  ;;  %v272_v53 = vpop.permute.xlu0 %271  ;;  %v678_v54 = vld [vmem:[#allocation2 + $0x58] sm:$0xff]  ;;  %v1978_v55 = vld [vmem:[#allocation2 + $0x184] sm:$0xff] }
  0xd9   :  { %640 = vst.msk [vmem:[#allocation2 + $0x60] sm:$0xff] %vm627_vm5, %v538_v52  ;;  %5495 = vmatmul.mubr.msk.f32.gmra.mrb[10].mxu0 %vm705_vm6, %v678_v54  ;;  %5556 = vmatmul.mubr.msk.f32.gmra.mrb[10].mxu1 %vm705_vm6, %v1978_v55  ;;  %v5194_v55 = vld [vmem:[%s8299_s0 + $0x47a] ss:$2 sm:$0xff] }
  0xda   :  { %373 = vst.msk [vmem:[#allocation2 + $0x68] sm:$0xff] %vm359_vm4, %v272_v53  ;;  %1867 = vrot.lane.b32.xlu1 %v5262_v49, %s5772_s21  ;;  %1603 = vrot.lane.b32.xlu0 %v5225_v50, %s5771_s16  ;;  %v5115_v50 = vld [vmem:[%s8299_s0 + $0x202] ss:$2 sm:$0xff] }
  0xdb   :  { %1431 = vst.msk [vmem:[#allocation2 + $0x23c] sm:$0xff] %vm91_vm0, %v5194_v55 }
  0xdc   :  { %v1840_v59 = vpop.permute.xlu1 %1839  ;;  %v1576_v60 = vpop.permute.xlu0 %1575 }
  0xdd   :  { %1941 = vst.msk [vmem:[#allocation2 + $0x18c] sm:$0xff] %vm627_vm5, %v1840_v59 }
  0xde   :  { %1676 = vst.msk [vmem:[#allocation2 + $0x194] sm:$0xff] %vm359_vm4, %v1576_v60  ;;  %1869 = vrot.lane.b32.xlu1 %v5263_v56, %s5772_s21  ;;  %567 = vrot.lane.b32.xlu0 %v5110_v57, %s5772_s21  ;;  %v5041_v56 = vld [vmem:[%s8299_s0 + $0x220] ss:$2 sm:$0xff] }
  0xdf   :  { %126 = vst.msk [vmem:[#allocation2 + $0x110] sm:$0xff] %vm91_vm0, %v5041_v56  ;;  %v5268_v57 = vld [vmem:[%s8299_s0 + $0x45c] ss:$2 sm:$0xff] }
  0xe0   :  { %v1842_v63 = vpop.permute.xlu1 %1841  ;;  %v540_v0 = vpop.permute.xlu0 %539  ;;  %v679_v1 = vld [vmem:[#allocation2 + $0x60] sm:$0xff] }
  0xe1   :  { %1942 = vst.msk [vmem:[#allocation2 + $0x194] sm:$0xff] %vm627_vm5, %v1842_v63  ;;  %641 = vst.msk [vmem:[#allocation2 + $0x68] sm:$0xff] %vm627_vm5, %v540_v0  ;;  %5497 = vmatprep.mubr.msk.f32.mxu0 %vm705_vm6, %v679_v1  ;;  %v5042_v63 = vld [vmem:[%s8299_s0 + $0x230] ss:$2 sm:$0xff] }
  0xe2   :  { %1605 = vrot.lane.b32.xlu1 %v5226_v61, %s5771_s16  ;;  %301 = vrot.lane.b32.xlu0 %v5073_v62, %s5771_s16  ;;  %127 = vst.msk [vmem:[#allocation2 + $0x118] sm:$0xff] %vm91_vm0, %v5042_v63  ;;  %v5269_v0 = vld [vmem:[%s8299_s0 + $0x46c] ss:$2 sm:$0xff] }
  0xe3   :  { %v5116_v1 = vld [vmem:[%s8299_s0 + $0x212] ss:$2 sm:$0xff] }
  0xe4   :  { %v1578_v4 = vpop.permute.xlu1 %1577  ;;  %v274_v5 = vpop.permute.xlu0 %273  ;;  %v1979_v6 = vld [vmem:[#allocation2 + $0x18c] sm:$0xff] }
  0xe5   :  { %1677 = vst.msk [vmem:[#allocation2 + $0x19c] sm:$0xff] %vm359_vm4, %v1578_v4  ;;  %374 = vst.msk [vmem:[#allocation2 + $0x70] sm:$0xff] %vm359_vm4, %v274_v5  ;;  %5558 = vmatprep.mubr.msk.f32.mxu1 %vm705_vm6, %v1979_v6  ;;  %v5195_v4 = vld [vmem:[%s8299_s0 + $0x48a] ss:$2 sm:$0xff]  ;;  %v5232_v5 = vld [vmem:[%s8299_s0 + $0x47b] ss:$2 sm:$0xff] }
  0xe6   :  { %569 = vrot.lane.b32.xlu1 %v5111_v2, %s5772_s21  ;;  %303 = vrot.lane.b32.xlu0 %v5074_v3, %s5771_s16  ;;  %1432 = vst.msk [vmem:[#allocation2 + $0x244] sm:$0xff] %vm91_vm0, %v5195_v4  ;;  %v5079_v6 = vld [vmem:[%s8299_s0 + $0x221] ss:$2 sm:$0xff] }
  0xe8   :  { %v542_v11 = vpop.permute.xlu1 %541  ;;  %v276_v12 = vpop.permute.xlu0 %275  ;;  %v680_v13 = vld [vmem:[#allocation2 + $0x68] sm:$0xff]  ;;  %v1980_v14 = vld [vmem:[#allocation2 + $0x194] sm:$0xff] }
  0xe9   :  { %642 = vst.msk [vmem:[#allocation2 + $0x70] sm:$0xff] %vm627_vm5, %v542_v11  ;;  %5498 = vmatmul.mubr.msk.f32.gmra.mrb[12].mxu0 %vm705_vm6, %v680_v13  ;;  %5559 = vmatmul.mubr.msk.f32.gmra.mrb[12].mxu1 %vm705_vm6, %v1980_v14  ;;  %v5080_v11 = vld [vmem:[%s8299_s0 + $0x231] ss:$2 sm:$0xff] }
  0xea   :  { %375 = vst.msk [vmem:[#allocation2 + $0x78] sm:$0xff] %vm359_vm4, %v276_v12  ;;  %1871 = vrot.lane.b32.xlu1 %v5264_v9, %s5772_s21  ;;  %1607 = vrot.lane.b32.xlu0 %v5227_v10, %s5771_s16  ;;  %v5117_v10 = vld [vmem:[%s8299_s0 + $0x222] ss:$2 sm:$0xff] }
  0xec   :  { %v1844_v18 = vpop.permute.xlu1 %1843  ;;  %v1580_v19 = vpop.permute.xlu0 %1579 }
  0xed   :  { %1943 = vst.msk [vmem:[#allocation2 + $0x19c] sm:$0xff] %vm627_vm5, %v1844_v18  ;;  %v5233_v18 = vld [vmem:[%s8299_s0 + $0x48b] ss:$2 sm:$0xff] }
  0xee   :  { %1678 = vst.msk [vmem:[#allocation2 + $0x1a4] sm:$0xff] %vm359_vm4, %v1580_v19  ;;  %1873 = vrot.lane.b32.xlu1 %v5265_v16, %s5772_s21  ;;  %571 = vrot.lane.b32.xlu0 %v5112_v17, %s5772_s21  ;;  %v5043_v16 = vld [vmem:[%s8299_s0 + $0x240] ss:$2 sm:$0xff] }
  0xef   :  { %128 = vst.msk [vmem:[#allocation2 + $0x120] sm:$0xff] %vm91_vm0, %v5043_v16  ;;  %v5270_v17 = vld [vmem:[%s8299_s0 + $0x47c] ss:$2 sm:$0xff] }
  0xf0   :  { %v1846_v23 = vpop.permute.xlu1 %1845  ;;  %v544_v24 = vpop.permute.xlu0 %543  ;;  %v681_v25 = vld [vmem:[#allocation2 + $0x70] sm:$0xff] }
  0xf1   :  { %1944 = vst.msk [vmem:[#allocation2 + $0x1a4] sm:$0xff] %vm627_vm5, %v1846_v23  ;;  %643 = vst.msk [vmem:[#allocation2 + $0x78] sm:$0xff] %vm627_vm5, %v544_v24  ;;  %5500 = vmatprep.mubr.msk.f32.mxu0 %vm705_vm6, %v681_v25  ;;  %v5044_v23 = vld [vmem:[%s8299_s0 + $0x250] ss:$2 sm:$0xf] }
  0xf2   :  { %1609 = vrot.lane.b32.xlu1 %v5228_v21, %s5771_s16  ;;  %305 = vrot.lane.b32.xlu0 %v5075_v22, %s5771_s16  ;;  %130 = vst.msk [vmem:[#allocation2 + $0x128] sm:$0xf] %vm129_vm7, %v5044_v23  ;;  %v5271_v24 = vld [vmem:[%s8299_s0 + $0x48c] ss:$2 sm:$0xff] }
  0xf3   :  { %v5118_v25 = vld [vmem:[%s8299_s0 + $0x232] ss:$2 sm:$0xff] }
  0xf4   :  { %v1582_v28 = vpop.permute.xlu1 %1581  ;;  %v278_v29 = vpop.permute.xlu0 %277  ;;  %v1981_v30 = vld [vmem:[#allocation2 + $0x19c] sm:$0xff] }
  0xf5   :  { %1679 = vst.msk [vmem:[#allocation2 + $0x1ac] sm:$0xff] %vm359_vm4, %v1582_v28  ;;  %376 = vst.msk [vmem:[#allocation2 + $0x80] sm:$0xff] %vm359_vm4, %v278_v29  ;;  %5561 = vmatprep.mubr.msk.f32.mxu1 %vm705_vm6, %v1981_v30  ;;  %v5197_v28 = vld [vmem:[%s8299_s0 + $0x4aa] ss:$2 sm:$0xf] }
  0xf6   :  { %573 = vrot.lane.b32.xlu1 %v5113_v26, %s5772_s21  ;;  %307 = vrot.lane.b32.xlu0 %v5076_v27, %s5771_s16  ;;  %1434 = vst.msk [vmem:[#allocation2 + $0x254] sm:$0xf] %vm129_vm7, %v5197_v28  ;;  %v5234_v29 = vld [vmem:[%s8299_s0 + $0x49b] ss:$2 sm:$0xff] }
  0xf7   :  { %v5081_v30 = vld [vmem:[%s8299_s0 + $0x241] ss:$2 sm:$0xff] }
  0xf8   :  { %v546_v35 = vpop.permute.xlu1 %545  ;;  %v280_v36 = vpop.permute.xlu0 %279  ;;  %v682_v37 = vld [vmem:[#allocation2 + $0x78] sm:$0xff]  ;;  %v1982_v38 = vld [vmem:[#allocation2 + $0x1a4] sm:$0xff] }
  0xf9   :  { %644 = vst.msk [vmem:[#allocation2 + $0x80] sm:$0xff] %vm627_vm5, %v546_v35  ;;  %5501 = vmatmul.mubr.msk.f32.gmra.mrb[14].mxu0 %vm705_vm6, %v682_v37  ;;  %5562 = vmatmul.mubr.msk.f32.gmra.mrb[14].mxu1 %vm705_vm6, %v1982_v38  ;;  %v5082_v35 = vld [vmem:[%s8299_s0 + $0x251] ss:$2 sm:$0xf] }
  0xfa   :  { %377 = vst.msk [vmem:[#allocation2 + $0x88] sm:$0xff] %vm359_vm4, %v280_v36  ;;  %1875 = vrot.lane.b32.xlu1 %v5266_v33, %s5772_s21  ;;  %1611 = vrot.lane.b32.xlu0 %v5229_v34, %s5771_s16  ;;  %v5119_v34 = vld [vmem:[%s8299_s0 + $0x242] ss:$2 sm:$0xff] }
  0xfc   :  { %v1848_v42 = vpop.permute.xlu1 %1847  ;;  %v1584_v43 = vpop.permute.xlu0 %1583 }
  0xfd   :  { %1945 = vst.msk [vmem:[#allocation2 + $0x1ac] sm:$0xff] %vm627_vm5, %v1848_v42 }
  0xfe   :  { %1680 = vst.msk [vmem:[#allocation2 + $0x1b4] sm:$0xff] %vm359_vm4, %v1584_v43  ;;  %1877 = vrot.lane.b32.xlu1 %v5267_v40, %s5772_s21  ;;  %575 = vrot.lane.b32.xlu0 %v5114_v41, %s5772_s21  ;;  %v5235_v40 = vld [vmem:[%s8299_s0 + $0x4ab] ss:$2 sm:$0xf] }
 0x100   :  { %v1850_v47 = vpop.permute.xlu1 %1849  ;;  %v548_v48 = vpop.permute.xlu0 %547  ;;  %v683_v49 = vld [vmem:[#allocation2 + $0x80] sm:$0xff] }
 0x101   :  { %1946 = vst.msk [vmem:[#allocation2 + $0x1b4] sm:$0xff] %vm627_vm5, %v1850_v47  ;;  %645 = vst.msk [vmem:[#allocation2 + $0x88] sm:$0xff] %vm627_vm5, %v548_v48  ;;  %5503 = vmatprep.mubr.msk.f32.mxu0 %vm705_vm6, %v683_v49 }
 0x102   :  { %1613 = vrot.lane.b32.xlu1 %v5230_v45, %s5771_s16  ;;  %309 = vrot.lane.b32.xlu0 %v5077_v46, %s5771_s16  ;;  %v5273_v45 = vld [vmem:[%s8299_s0 + $0x4ac] ss:$2 sm:$0xf] }
 0x103   :  { %v5120_v46 = vld [vmem:[%s8299_s0 + $0x252] ss:$2 sm:$0xf]  ;;  %s5778_s0 = smov 32  }
 0x104   :  { %v1586_v52 = vpop.permute.xlu1 %1585  ;;  %v282_v53 = vpop.permute.xlu0 %281  ;;  %v1983_v54 = vld [vmem:[#allocation2 + $0x1ac] sm:$0xff] }
 0x105   :  { %1681 = vst.msk [vmem:[#allocation2 + $0x1bc] sm:$0xff] %vm359_vm4, %v1586_v52  ;;  %378 = vst.msk [vmem:[#allocation2 + $0x90] sm:$0xff] %vm359_vm4, %v282_v53  ;;  %5564 = vmatprep.mubr.msk.f32.mxu1 %vm705_vm6, %v1983_v54 }
 0x106   :  { %577 = vrot.lane.b32.xlu1 %v5115_v50, %s5772_s21  ;;  %311 = vrot.lane.b32.xlu0 %v5078_v51, %s5771_s16 }
 0x108   :  { %v550_v59 = vpop.permute.xlu1 %549  ;;  %v284_v60 = vpop.permute.xlu0 %283  ;;  %v684_v61 = vld [vmem:[#allocation2 + $0x88] sm:$0xff]  ;;  %v1984_v62 = vld [vmem:[#allocation2 + $0x1b4] sm:$0xff] }
 0x109   :  { %646 = vst.msk [vmem:[#allocation2 + $0x90] sm:$0xff] %vm627_vm5, %v550_v59  ;;  %5504 = vmatmul.mubr.msk.f32.gmra.mrb[16].mxu0 %vm705_vm6, %v684_v61  ;;  %5565 = vmatmul.mubr.msk.f32.gmra.mrb[16].mxu1 %vm705_vm6, %v1984_v62 }
 0x10a   :  { %379 = vst.msk [vmem:[#allocation2 + $0x98] sm:$0xff] %vm359_vm4, %v284_v60  ;;  %1879 = vrot.lane.b32.xlu1 %v5268_v57, %s5772_s21  ;;  %1615 = vrot.lane.b32.xlu0 %v5231_v58, %s5771_s16 }
 0x10c   :  { %v1852_v2 = vpop.permute.xlu1 %1851  ;;  %v1588_v3 = vpop.permute.xlu0 %1587 }
 0x10d   :  { %1947 = vst.msk [vmem:[#allocation2 + $0x1bc] sm:$0xff] %vm627_vm5, %v1852_v2 }
 0x10e   :  { %1682 = vst.msk [vmem:[#allocation2 + $0x1c4] sm:$0xff] %vm359_vm4, %v1588_v3  ;;  %1881 = vrot.lane.b32.xlu1 %v5269_v0, %s5772_s21  ;;  %579 = vrot.lane.b32.xlu0 %v5116_v1, %s5772_s21 }
 0x110   :  { %v1854_v7 = vpop.permute.xlu1 %1853  ;;  %v552_v8 = vpop.permute.xlu0 %551  ;;  %v685_v9 = vld [vmem:[#allocation2 + $0x90] sm:$0xff] }
 0x111   :  { %1948 = vst.msk [vmem:[#allocation2 + $0x1c4] sm:$0xff] %vm627_vm5, %v1854_v7  ;;  %647 = vst.msk [vmem:[#allocation2 + $0x98] sm:$0xff] %vm627_vm5, %v552_v8  ;;  %5506 = vmatprep.mubr.msk.f32.mxu0 %vm705_vm6, %v685_v9 }
 0x112   :  { %1617 = vrot.lane.b32.xlu1 %v5232_v5, %s5771_s16  ;;  %313 = vrot.lane.b32.xlu0 %v5079_v6, %s5771_s16 }
 0x114   :  { %v1590_v12 = vpop.permute.xlu1 %1589  ;;  %v286_v13 = vpop.permute.xlu0 %285  ;;  %v1985_v14 = vld [vmem:[#allocation2 + $0x1bc] sm:$0xff] }
 0x115   :  { %1683 = vst.msk [vmem:[#allocation2 + $0x1cc] sm:$0xff] %vm359_vm4, %v1590_v12  ;;  %380 = vst.msk [vmem:[#allocation2 + $0xa0] sm:$0xff] %vm359_vm4, %v286_v13  ;;  %5567 = vmatprep.mubr.msk.f32.mxu1 %vm705_vm6, %v1985_v14 }
 0x116   :  { %581 = vrot.lane.b32.xlu1 %v5117_v10, %s5772_s21  ;;  %315 = vrot.lane.b32.xlu0 %v5080_v11, %s5771_s16 }
 0x118   :  { %v554_v19 = vpop.permute.xlu1 %553  ;;  %v288_v20 = vpop.permute.xlu0 %287  ;;  %v686_v21 = vld [vmem:[#allocation2 + $0x98] sm:$0xff]  ;;  %v1986_v22 = vld [vmem:[#allocation2 + $0x1c4] sm:$0xff] }
 0x119   :  { %648 = vst.msk [vmem:[#allocation2 + $0xa0] sm:$0xff] %vm627_vm5, %v554_v19  ;;  %5507 = vmatmul.mubr.msk.f32.gmra.mrb[18].mxu0 %vm705_vm6, %v686_v21  ;;  %5568 = vmatmul.mubr.msk.f32.gmra.mrb[18].mxu1 %vm705_vm6, %v1986_v22 }
 0x11a   :  { %381 = vst.msk [vmem:[#allocation2 + $0xa8] sm:$0xff] %vm359_vm4, %v288_v20  ;;  %1883 = vrot.lane.b32.xlu1 %v5270_v17, %s5772_s21  ;;  %1619 = vrot.lane.b32.xlu0 %v5233_v18, %s5771_s16 }
 0x11c   :  { %v1856_v26 = vpop.permute.xlu1 %1855  ;;  %v1592_v27 = vpop.permute.xlu0 %1591 }
 0x11d   :  { %1949 = vst.msk [vmem:[#allocation2 + $0x1cc] sm:$0xff] %vm627_vm5, %v1856_v26 }
 0x11e   :  { %1684 = vst.msk [vmem:[#allocation2 + $0x1d4] sm:$0xff] %vm359_vm4, %v1592_v27  ;;  %1885 = vrot.lane.b32.xlu1 %v5271_v24, %s5772_s21  ;;  %583 = vrot.lane.b32.xlu0 %v5118_v25, %s5772_s21 }
 0x120   :  { %v1858_v31 = vpop.permute.xlu1 %1857  ;;  %v556_v32 = vpop.permute.xlu0 %555  ;;  %v687_v33 = vld [vmem:[#allocation2 + $0xa0] sm:$0xff] }
 0x121   :  { %1950 = vst.msk [vmem:[#allocation2 + $0x1d4] sm:$0xff] %vm627_vm5, %v1858_v31  ;;  %649 = vst.msk [vmem:[#allocation2 + $0xa8] sm:$0xff] %vm627_vm5, %v556_v32  ;;  %5509 = vmatprep.mubr.msk.f32.mxu0 %vm705_vm6, %v687_v33 }
 0x122   :  { %1621 = vrot.lane.b32.xlu1 %v5234_v29, %s5771_s16  ;;  %317 = vrot.lane.b32.xlu0 %v5081_v30, %s5771_s16 }
 0x124   :  { %v1594_v36 = vpop.permute.xlu1 %1593  ;;  %v290_v37 = vpop.permute.xlu0 %289  ;;  %v1987_v38 = vld [vmem:[#allocation2 + $0x1cc] sm:$0xff] }
 0x125   :  { %1685 = vst.msk [vmem:[#allocation2 + $0x1dc] sm:$0xff] %vm359_vm4, %v1594_v36  ;;  %382 = vst.msk [vmem:[#allocation2 + $0xb0] sm:$0xff] %vm359_vm4, %v290_v37  ;;  %5570 = vmatprep.mubr.msk.f32.mxu1 %vm705_vm6, %v1987_v38 }
 0x126   :  { %585 = vrot.lane.b32.xlu1 %v5119_v34, %s5772_s21  ;;  %319 = vrot.lane.b32.xlu0 %v5082_v35, %s5771_s16 }
 0x128   :  { %v558_v41 = vpop.permute.xlu1 %557  ;;  %v292_v42 = vpop.permute.xlu0 %291  ;;  %v688_v43 = vld [vmem:[#allocation2 + $0xa8] sm:$0xff]  ;;  %v1988_v44 = vld [vmem:[#allocation2 + $0x1d4] sm:$0xff] }
 0x129   :  { %650 = vst.msk [vmem:[#allocation2 + $0xb0] sm:$0xff] %vm627_vm5, %v558_v41  ;;  %5510 = vmatmul.mubr.msk.f32.gmra.mrb[20].mxu0 %vm705_vm6, %v688_v43  ;;  %5571 = vmatmul.mubr.msk.f32.gmra.mrb[20].mxu1 %vm705_vm6, %v1988_v44 }
 0x12a   :  { %383 = vst.msk [vmem:[#allocation2 + $0xb8] sm:$0xff] %vm359_vm4, %v292_v42  ;;  %1887 = vrot.lane.b32.xlu1 %v5272_v39, %s5772_s21  ;;  %1623 = vrot.lane.b32.xlu0 %v5235_v40, %s5771_s16 }
 0x12c   :  { %v1860_v47 = vpop.permute.xlu1 %1859  ;;  %v1596_v48 = vpop.permute.xlu0 %1595 }
 0x12d   :  { %1951 = vst.msk [vmem:[#allocation2 + $0x1dc] sm:$0xff] %vm627_vm5, %v1860_v47 }
 0x12e   :  { %1686 = vst.msk [vmem:[#allocation2 + $0x1e4] sm:$0xff] %vm359_vm4, %v1596_v48  ;;  %1889 = vrot.lane.b32.xlu1 %v5273_v45, %s5772_s21  ;;  %587 = vrot.lane.b32.xlu0 %v5120_v46, %s5772_s21 }
 0x130   :  { %v1862_v49 = vpop.permute.xlu1 %1861  ;;  %v560_v50 = vpop.permute.xlu0 %559  ;;  %v689_v51 = vld [vmem:[#allocation2 + $0xb0] sm:$0xff] }
 0x131   :  { %1952 = vst.msk [vmem:[#allocation2 + $0x1e4] sm:$0xff] %vm627_vm5, %v1862_v49  ;;  %651 = vst.msk [vmem:[#allocation2 + $0xb8] sm:$0xff] %vm627_vm5, %v560_v50  ;;  %5512 = vmatprep.mubr.msk.f32.mxu0 %vm705_vm6, %v689_v51 }
 0x134   :  { %v1598_v52 = vpop.permute.xlu1 %1597  ;;  %v294_v53 = vpop.permute.xlu0 %293  ;;  %v1989_v54 = vld [vmem:[#allocation2 + $0x1dc] sm:$0xff] }
 0x135   :  { %1687 = vst.msk [vmem:[#allocation2 + $0x1ec] sm:$0xff] %vm359_vm4, %v1598_v52  ;;  %384 = vst.msk [vmem:[#allocation2 + $0xc0] sm:$0xff] %vm359_vm4, %v294_v53  ;;  %5573 = vmatprep.mubr.msk.f32.mxu1 %vm705_vm6, %v1989_v54 }
 0x138   :  { %v562_v55 = vpop.permute.xlu1 %561  ;;  %v296_v56 = vpop.permute.xlu0 %295  ;;  %v690_v57 = vld [vmem:[#allocation2 + $0xb8] sm:$0xff]  ;;  %v1990_v58 = vld [vmem:[#allocation2 + $0x1e4] sm:$0xff] }
 0x139   :  { %652 = vst.msk [vmem:[#allocation2 + $0xc0] sm:$0xff] %vm627_vm5, %v562_v55  ;;  %5513 = vmatmul.mubr.msk.f32.gmra.mrb[22].mxu0 %vm705_vm6, %v690_v57  ;;  %5574 = vmatmul.mubr.msk.f32.gmra.mrb[22].mxu1 %vm705_vm6, %v1990_v58 }
 0x13a   :  { %385 = vst.msk [vmem:[#allocation2 + $0xc8] sm:$0xff] %vm359_vm4, %v296_v56 }
 0x13c   :  { %v1864_v59 = vpop.permute.xlu1 %1863  ;;  %v1600_v60 = vpop.permute.xlu0 %1599 }
 0x13d   :  { %1953 = vst.msk [vmem:[#allocation2 + $0x1ec] sm:$0xff] %vm627_vm5, %v1864_v59 }
 0x13e   :  { %1688 = vst.msk [vmem:[#allocation2 + $0x1f4] sm:$0xff] %vm359_vm4, %v1600_v60 }
 0x140   :  { %v1866_v61 = vpop.permute.xlu1 %1865  ;;  %v564_v62 = vpop.permute.xlu0 %563  ;;  %v691_v63 = vld [vmem:[#allocation2 + $0xc0] sm:$0xff] }
 0x141   :  { %1954 = vst.msk [vmem:[#allocation2 + $0x1f4] sm:$0xff] %vm627_vm5, %v1866_v61  ;;  %653 = vst.msk [vmem:[#allocation2 + $0xc8] sm:$0xff] %vm627_vm5, %v564_v62  ;;  %5515 = vmatprep.mubr.msk.f32.mxu0 %vm705_vm6, %v691_v63 }
 0x144   :  { %v1602_v0 = vpop.permute.xlu1 %1601  ;;  %v298_v1 = vpop.permute.xlu0 %297  ;;  %v1991_v2 = vld [vmem:[#allocation2 + $0x1ec] sm:$0xff] }
 0x145   :  { %1689 = vst.msk [vmem:[#allocation2 + $0x1fc] sm:$0xff] %vm359_vm4, %v1602_v0  ;;  %386 = vst.msk [vmem:[#allocation2 + $0xd0] sm:$0xff] %vm359_vm4, %v298_v1  ;;  %5576 = vmatprep.mubr.msk.f32.mxu1 %vm705_vm6, %v1991_v2 }
 0x148   :  { %v566_v3 = vpop.permute.xlu1 %565  ;;  %v300_v4 = vpop.permute.xlu0 %299  ;;  %v692_v5 = vld [vmem:[#allocation2 + $0xc8] sm:$0xff]  ;;  %v1992_v6 = vld [vmem:[#allocation2 + $0x1f4] sm:$0xff] }
 0x149   :  { %654 = vst.msk [vmem:[#allocation2 + $0xd0] sm:$0xff] %vm627_vm5, %v566_v3  ;;  %5516 = vmatmul.mubr.msk.f32.gmra.mrb[24].mxu0 %vm705_vm6, %v692_v5  ;;  %5577 = vmatmul.mubr.msk.f32.gmra.mrb[24].mxu1 %vm705_vm6, %v1992_v6 }
 0x14a   :  { %387 = vst.msk [vmem:[#allocation2 + $0xd8] sm:$0xff] %vm359_vm4, %v300_v4 }
 0x14c   :  { %v1868_v7 = vpop.permute.xlu1 %1867  ;;  %v1604_v8 = vpop.permute.xlu0 %1603 }
 0x14d   :  { %1955 = vst.msk [vmem:[#allocation2 + $0x1fc] sm:$0xff] %vm627_vm5, %v1868_v7 }
 0x14e   :  { %1690 = vst.msk [vmem:[#allocation2 + $0x204] sm:$0xff] %vm359_vm4, %v1604_v8 }
 0x150   :  { %v1870_v9 = vpop.permute.xlu1 %1869  ;;  %v568_v10 = vpop.permute.xlu0 %567  ;;  %v693_v11 = vld [vmem:[#allocation2 + $0xd0] sm:$0xff] }
 0x151   :  { %1956 = vst.msk [vmem:[#allocation2 + $0x204] sm:$0xff] %vm627_vm5, %v1870_v9  ;;  %655 = vst.msk [vmem:[#allocation2 + $0xd8] sm:$0xff] %vm627_vm5, %v568_v10  ;;  %5518 = vmatprep.mubr.msk.f32.mxu0 %vm705_vm6, %v693_v11 }
 0x154   :  { %v1606_v12 = vpop.permute.xlu1 %1605  ;;  %v302_v13 = vpop.permute.xlu0 %301  ;;  %v1993_v14 = vld [vmem:[#allocation2 + $0x1fc] sm:$0xff] }
 0x155   :  { %1691 = vst.msk [vmem:[#allocation2 + $0x20c] sm:$0xff] %vm359_vm4, %v1606_v12  ;;  %388 = vst.msk [vmem:[#allocation2 + $0xe0] sm:$0xff] %vm359_vm4, %v302_v13  ;;  %5579 = vmatprep.mubr.msk.f32.mxu1 %vm705_vm6, %v1993_v14 }
 0x158   :  { %v570_v15 = vpop.permute.xlu1 %569  ;;  %v304_v16 = vpop.permute.xlu0 %303  ;;  %v694_v17 = vld [vmem:[#allocation2 + $0xd8] sm:$0xff]  ;;  %v1994_v18 = vld [vmem:[#allocation2 + $0x204] sm:$0xff] }
 0x159   :  { %656 = vst.msk [vmem:[#allocation2 + $0xe0] sm:$0xff] %vm627_vm5, %v570_v15  ;;  %5519 = vmatmul.mubr.msk.f32.gmra.mrb[26].mxu0 %vm705_vm6, %v694_v17  ;;  %5580 = vmatmul.mubr.msk.f32.gmra.mrb[26].mxu1 %vm705_vm6, %v1994_v18 }
 0x15a   :  { %389 = vst.msk [vmem:[#allocation2 + $0xe8] sm:$0xff] %vm359_vm4, %v304_v16 }
 0x15c   :  { %v1872_v19 = vpop.permute.xlu1 %1871  ;;  %v5542_v20 = vpop.f32.mrb[0].mxu1 }
 0x15d   :  { %1957 = vst.msk [vmem:[#allocation2 + $0x20c] sm:$0xff] %vm627_vm5, %v1872_v19  ;;  %v2413_v21 = vsel %vm1079_vm8, %v5542_v20, 0.0  ;;  %v2495_v22 = vmul.f32 %v5542_v20, %v5542_v20  ;;  %v1608_v23 = vpop.permute.xlu0 %1607  ;;  %v5481_v24 = vpop.f32.mrb[0].mxu0 }
 0x15e   :  { %2375 = vst.msk [vmem:[#allocation3 + $0x134] sm:$0xff] %vm1079_vm8, %v5542_v20  ;;  %1081 = vst.msk [vmem:[#allocation3 + $0x8] sm:$0xff] %vm1079_vm8, %v5481_v24  ;;  %v1120_v25 = vsel %vm1079_vm8, %v5481_v24, 0.0  ;;  %v1202_v26 = vmul.f32 %v5481_v24, %v5481_v24  ;;  %v890_v27 = vpop.f32.mrb[1].mxu0  ;;  %v2185_v28 = vpop.f32.mrb[1].mxu1 }
 0x15f   :  { %1692 = vst.msk [vmem:[#allocation2 + $0x214] sm:$0xff] %vm359_vm4, %v1608_v23  ;;  %v2533_v29 = vsel %vm1079_vm8, %v2495_v22, 0.0  ;;  %v1119_v30 = vsel %vm1079_vm8, %v890_v27, 0.0  ;;  %v1201_v31 = vmul.f32 %v890_v27, %v890_v27  ;;  %v2412_v32 = vsel %vm1079_vm8, %v2185_v28, 0.0 }
 0x160   :  { %1080 = vst.msk [vmem:[#allocation3] sm:$0xff] %vm1079_vm8, %v890_v27  ;;  %2374 = vst.msk [vmem:[#allocation3 + $0x12c] sm:$0xff] %vm1079_vm8, %v2185_v28  ;;  %v1240_v33 = vsel %vm1079_vm8, %v1202_v26, 0.0  ;;  %v1121_v34 = vadd.f32 %v1120_v25, %v1119_v30  ;;  %v2414_v35 = vadd.f32 %v2413_v21, %v2412_v32  ;;  %v2494_v36 = vmul.f32 %v2185_v28, %v2185_v28  ;;  %v1874_v37 = vpop.permute.xlu1 %1873  ;;  %v695_v38 = vld [vmem:[#allocation2 + $0xe0] sm:$0xff] }
 0x161   :  { %v1239_v39 = vsel %vm1079_vm8, %v1201_v31, 0.0  ;;  %1958 = vst.msk [vmem:[#allocation2 + $0x214] sm:$0xff] %vm627_vm5, %v1874_v37  ;;  %v572_v40 = vpop.permute.xlu0 %571  ;;  %5521 = vmatprep.mubr.msk.f32.mxu0 %vm705_vm6, %v695_v38 }
 0x162   :  { %v1241_v41 = vadd.f32 %v1240_v33, %v1239_v39  ;;  %v2532_v42 = vsel %vm1079_vm8, %v2494_v36, 0.0  ;;  %657 = vst.msk [vmem:[#allocation2 + $0xe8] sm:$0xff] %vm627_vm5, %v572_v40 }
 0x163   :  { %v2534_v43 = vadd.f32 %v2533_v29, %v2532_v42 }
 0x164   :  { %v1610_v44 = vpop.permute.xlu1 %1609  ;;  %v1995_v45 = vld [vmem:[#allocation2 + $0x20c] sm:$0xff] }
 0x165   :  { %1693 = vst.msk [vmem:[#allocation2 + $0x21c] sm:$0xff] %vm359_vm4, %v1610_v44  ;;  %v306_v46 = vpop.permute.xlu0 %305  ;;  %5582 = vmatprep.mubr.msk.f32.mxu1 %vm705_vm6, %v1995_v45 }
 0x166   :  { %390 = vst.msk [vmem:[#allocation2 + $0xf0] sm:$0xff] %vm359_vm4, %v306_v46 }
 0x168   :  { %v574_v47 = vpop.permute.xlu1 %573  ;;  %v1996_v48 = vld [vmem:[#allocation2 + $0x214] sm:$0xff] }
 0x169   :  { %658 = vst.msk [vmem:[#allocation2 + $0xf0] sm:$0xff] %vm627_vm5, %v574_v47  ;;  %v308_v49 = vpop.permute.xlu0 %307  ;;  %v696_v50 = vld [vmem:[#allocation2 + $0xe8] sm:$0xff]  ;;  %5583 = vmatmul.mubr.msk.f32.gmra.mrb[28].mxu1 %vm705_vm6, %v1996_v48 }
 0x16a   :  { %391 = vst.msk [vmem:[#allocation2 + $0xf8] sm:$0xff] %vm359_vm4, %v308_v49  ;;  %5522 = vmatmul.mubr.msk.f32.gmra.mrb[28].mxu0 %vm705_vm6, %v696_v50 }
 0x16c   :  { %v1876_v51 = vpop.permute.xlu1 %1875  ;;  %v5545_v52 = vpop.f32.mrb[2].mxu1 }
 0x16d   :  { %1959 = vst.msk [vmem:[#allocation2 + $0x21c] sm:$0xff] %vm627_vm5, %v1876_v51  ;;  %v1612_v53 = vpop.permute.xlu0 %1611  ;;  %v5484_v54 = vpop.f32.mrb[2].mxu0  ;;  %v2497_v61 = vmul.f32 %v5545_v52, %v5545_v52  ;;  %v2417_v3 = vsel %vm1079_vm8, %v5545_v52, 0.0 }
 0x16e   :  { %2377 = vst.msk [vmem:[#allocation3 + $0x144] sm:$0xff] %vm1079_vm8, %v5545_v52  ;;  %1083 = vst.msk [vmem:[#allocation3 + $0x18] sm:$0xff] %vm1079_vm8, %v5484_v54  ;;  %v900_v55 = vpop.f32.mrb[3].mxu0  ;;  %v2195_v56 = vpop.f32.mrb[3].mxu1  ;;  %v1204_v57 = vmul.f32 %v5484_v54, %v5484_v54  ;;  %v1124_v4 = vsel %vm1079_vm8, %v5484_v54, 0.0 }
 0x16f   :  { %1694 = vst.msk [vmem:[#allocation2 + $0x224] sm:$0xff] %vm359_vm4, %v1612_v53  ;;  %v1122_v58 = vsel %vm1079_vm8, %v900_v55, 0.0  ;;  %v1203_v59 = vmul.f32 %v900_v55, %v900_v55  ;;  %v2415_v60 = vsel %vm1079_vm8, %v2195_v56, 0.0  ;;  %v2496_v0 = vmul.f32 %v2195_v56, %v2195_v56 }
 0x170   :  { %1082 = vst.msk [vmem:[#allocation3 + $0x10] sm:$0xff] %vm1079_vm8, %v900_v55  ;;  %2376 = vst.msk [vmem:[#allocation3 + $0x13c] sm:$0xff] %vm1079_vm8, %v2195_v56  ;;  %v1123_v62 = vadd.f32 %v1122_v58, %v1121_v34  ;;  %v2416_v63 = vadd.f32 %v2415_v60, %v2414_v35  ;;  %v1878_v1 = vpop.permute.xlu1 %1877  ;;  %v697_v2 = vld [vmem:[#allocation2 + $0xf0] sm:$0xff]  ;;  %v1244_v11 = vsel %vm1079_vm8, %v1204_v57, 0.0  ;;  %v2537_v13 = vsel %vm1079_vm8, %v2497_v61, 0.0 }
 0x171   :  { %v1242_v5 = vsel %vm1079_vm8, %v1203_v59, 0.0  ;;  %1960 = vst.msk [vmem:[#allocation2 + $0x224] sm:$0xff] %vm627_vm5, %v1878_v1  ;;  %v576_v6 = vpop.permute.xlu0 %575  ;;  %5524 = vmatprep.mubr.msk.f32.mxu0 %vm705_vm6, %v697_v2  ;;  %v2535_v8 = vsel %vm1079_vm8, %v2496_v0, 0.0 }
 0x172   :  { %v1243_v7 = vadd.f32 %v1242_v5, %v1241_v41  ;;  %659 = vst.msk [vmem:[#allocation2 + $0xf8] sm:$0xff] %vm627_vm5, %v576_v6  ;;  %v1125_v9 = vadd.f32 %v1124_v4, %v1123_v62  ;;  %v2418_v10 = vadd.f32 %v2417_v3, %v2416_v63  ;;  %v2536_v12 = vadd.f32 %v2535_v8, %v2534_v43 }
 0x174   :  { %v1614_v14 = vpop.permute.xlu1 %1613  ;;  %v1997_v15 = vld [vmem:[#allocation2 + $0x21c] sm:$0xff]  ;;  %v1245_v16 = vadd.f32 %v1244_v11, %v1243_v7  ;;  %v2538_v18 = vadd.f32 %v2537_v13, %v2536_v12 }
 0x175   :  { %1695 = vst.msk [vmem:[#allocation2 + $0x22c] sm:$0xff] %vm359_vm4, %v1614_v14  ;;  %v310_v17 = vpop.permute.xlu0 %309  ;;  %5585 = vmatprep.mubr.msk.f32.mxu1 %vm705_vm6, %v1997_v15 }
 0x176   :  { %392 = vst.msk [vmem:[#allocation2 + $0x100] sm:$0xff] %vm359_vm4, %v310_v17 }
 0x178   :  { %v578_v19 = vpop.permute.xlu1 %577  ;;  %v1998_v20 = vld [vmem:[#allocation2 + $0x224] sm:$0xff] }
 0x179   :  { %660 = vst.msk [vmem:[#allocation2 + $0x100] sm:$0xff] %vm627_vm5, %v578_v19  ;;  %v312_v21 = vpop.permute.xlu0 %311  ;;  %v698_v22 = vld [vmem:[#allocation2 + $0xf8] sm:$0xff]  ;;  %5586 = vmatmul.mubr.msk.f32.gmra.mrb[30].mxu1 %vm705_vm6, %v1998_v20 }
 0x17a   :  { %393 = vst.msk [vmem:[#allocation2 + $0x108] sm:$0xff] %vm359_vm4, %v312_v21  ;;  %5525 = vmatmul.mubr.msk.f32.gmra.mrb[30].mxu0 %vm705_vm6, %v698_v22 }
 0x17c   :  { %v1880_v23 = vpop.permute.xlu1 %1879  ;;  %v5548_v24 = vpop.f32.mrb[4].mxu1 }
 0x17d   :  { %1961 = vst.msk [vmem:[#allocation2 + $0x22c] sm:$0xff] %vm627_vm5, %v1880_v23  ;;  %v1616_v25 = vpop.permute.xlu0 %1615  ;;  %v5487_v26 = vpop.f32.mrb[4].mxu0  ;;  %v2499_v33 = vmul.f32 %v5548_v24, %v5548_v24  ;;  %v2421_v39 = vsel %vm1079_vm8, %v5548_v24, 0.0 }
 0x17e   :  { %2379 = vst.msk [vmem:[#allocation3 + $0x154] sm:$0xff] %vm1079_vm8, %v5548_v24  ;;  %1085 = vst.msk [vmem:[#allocation3 + $0x28] sm:$0xff] %vm1079_vm8, %v5487_v26  ;;  %v910_v27 = vpop.f32.mrb[5].mxu0  ;;  %v2205_v28 = vpop.f32.mrb[5].mxu1  ;;  %v1206_v29 = vmul.f32 %v5487_v26, %v5487_v26  ;;  %v1128_v40 = vsel %vm1079_vm8, %v5487_v26, 0.0 }
 0x17f   :  { %1696 = vst.msk [vmem:[#allocation2 + $0x234] sm:$0xff] %vm359_vm4, %v1616_v25  ;;  %v1126_v30 = vsel %vm1079_vm8, %v910_v27, 0.0  ;;  %v1205_v31 = vmul.f32 %v910_v27, %v910_v27  ;;  %v2419_v32 = vsel %vm1079_vm8, %v2205_v28, 0.0  ;;  %v2498_v36 = vmul.f32 %v2205_v28, %v2205_v28 }
 0x180   :  { %1084 = vst.msk [vmem:[#allocation3 + $0x20] sm:$0xff] %vm1079_vm8, %v910_v27  ;;  %2378 = vst.msk [vmem:[#allocation3 + $0x14c] sm:$0xff] %vm1079_vm8, %v2205_v28  ;;  %v1127_v34 = vadd.f32 %v1126_v30, %v1125_v9  ;;  %v2420_v35 = vadd.f32 %v2419_v32, %v2418_v10  ;;  %v1882_v37 = vpop.permute.xlu1 %1881  ;;  %v699_v38 = vld [vmem:[#allocation2 + $0x100] sm:$0xff]  ;;  %v1248_v47 = vsel %vm1079_vm8, %v1206_v29, 0.0  ;;  %v2541_v49 = vsel %vm1079_vm8, %v2499_v33, 0.0 }
 0x181   :  { %v1246_v41 = vsel %vm1079_vm8, %v1205_v31, 0.0  ;;  %1962 = vst.msk [vmem:[#allocation2 + $0x234] sm:$0xff] %vm627_vm5, %v1882_v37  ;;  %v580_v42 = vpop.permute.xlu0 %579  ;;  %5527 = vmatprep.mubr.msk.f32.mxu0 %vm705_vm6, %v699_v38  ;;  %v2539_v44 = vsel %vm1079_vm8, %v2498_v36, 0.0 }
 0x182   :  { %v1247_v43 = vadd.f32 %v1246_v41, %v1245_v16  ;;  %661 = vst.msk [vmem:[#allocation2 + $0x108] sm:$0xff] %vm627_vm5, %v580_v42  ;;  %v1129_v45 = vadd.f32 %v1128_v40, %v1127_v34  ;;  %v2422_v46 = vadd.f32 %v2421_v39, %v2420_v35  ;;  %v2540_v48 = vadd.f32 %v2539_v44, %v2538_v18 }
 0x184   :  { %v1618_v50 = vpop.permute.xlu1 %1617  ;;  %v1999_v51 = vld [vmem:[#allocation2 + $0x22c] sm:$0xff]  ;;  %v1249_v52 = vadd.f32 %v1248_v47, %v1247_v43  ;;  %v2542_v54 = vadd.f32 %v2541_v49, %v2540_v48 }
 0x185   :  { %1697 = vst.msk [vmem:[#allocation2 + $0x23c] sm:$0xff] %vm359_vm4, %v1618_v50  ;;  %v314_v53 = vpop.permute.xlu0 %313  ;;  %5588 = vmatprep.mubr.msk.f32.mxu1 %vm705_vm6, %v1999_v51 }
 0x186   :  { %394 = vst.msk [vmem:[#allocation2 + $0x110] sm:$0xff] %vm359_vm4, %v314_v53 }
 0x188   :  { %v582_v55 = vpop.permute.xlu1 %581  ;;  %v2000_v56 = vld [vmem:[#allocation2 + $0x234] sm:$0xff] }
 0x189   :  { %662 = vst.msk [vmem:[#allocation2 + $0x110] sm:$0xff] %vm627_vm5, %v582_v55  ;;  %v316_v57 = vpop.permute.xlu0 %315  ;;  %v700_v58 = vld [vmem:[#allocation2 + $0x108] sm:$0xff]  ;;  %5589 = vmatmul.mubr.msk.f32.gmra.mrb[32].mxu1 %vm705_vm6, %v2000_v56 }
 0x18a   :  { %395 = vst.msk [vmem:[#allocation2 + $0x118] sm:$0xff] %vm359_vm4, %v316_v57  ;;  %5528 = vmatmul.mubr.msk.f32.gmra.mrb[32].mxu0 %vm705_vm6, %v700_v58 }
 0x18c   :  { %v1884_v59 = vpop.permute.xlu1 %1883  ;;  %v5551_v60 = vpop.f32.mrb[6].mxu1 }
 0x18d   :  { %1963 = vst.msk [vmem:[#allocation2 + $0x23c] sm:$0xff] %vm627_vm5, %v1884_v59  ;;  %v1620_v61 = vpop.permute.xlu0 %1619  ;;  %v5490_v62 = vpop.f32.mrb[6].mxu0  ;;  %v2501_v5 = vmul.f32 %v5551_v60, %v5551_v60  ;;  %v2425_v11 = vsel %vm1079_vm8, %v5551_v60, 0.0 }
 0x18e   :  { %2381 = vst.msk [vmem:[#allocation3 + $0x164] sm:$0xff] %vm1079_vm8, %v5551_v60  ;;  %1087 = vst.msk [vmem:[#allocation3 + $0x38] sm:$0xff] %vm1079_vm8, %v5490_v62  ;;  %v920_v63 = vpop.f32.mrb[7].mxu0  ;;  %v2215_v0 = vpop.f32.mrb[7].mxu1  ;;  %v1208_v1 = vmul.f32 %v5490_v62, %v5490_v62  ;;  %v1132_v12 = vsel %vm1079_vm8, %v5490_v62, 0.0 }
 0x18f   :  { %1698 = vst.msk [vmem:[#allocation2 + $0x244] sm:$0xff] %vm359_vm4, %v1620_v61  ;;  %v1130_v2 = vsel %vm1079_vm8, %v920_v63, 0.0  ;;  %v1207_v3 = vmul.f32 %v920_v63, %v920_v63  ;;  %v2423_v4 = vsel %vm1079_vm8, %v2215_v0, 0.0  ;;  %v2500_v8 = vmul.f32 %v2215_v0, %v2215_v0 }
 0x190   :  { %1086 = vst.msk [vmem:[#allocation3 + $0x30] sm:$0xff] %vm1079_vm8, %v920_v63  ;;  %2380 = vst.msk [vmem:[#allocation3 + $0x15c] sm:$0xff] %vm1079_vm8, %v2215_v0  ;;  %v1131_v6 = vadd.f32 %v1130_v2, %v1129_v45  ;;  %v2424_v7 = vadd.f32 %v2423_v4, %v2422_v46  ;;  %v1886_v9 = vpop.permute.xlu1 %1885  ;;  %v701_v10 = vld [vmem:[#allocation2 + $0x110] sm:$0xff]  ;;  %v1252_v19 = vsel %vm1079_vm8, %v1208_v1, 0.0  ;;  %v2545_v21 = vsel %vm1079_vm8, %v2501_v5, 0.0 }
 0x191   :  { %v1250_v13 = vsel %vm1079_vm8, %v1207_v3, 0.0  ;;  %1964 = vst.msk [vmem:[#allocation2 + $0x244] sm:$0xff] %vm627_vm5, %v1886_v9  ;;  %v584_v14 = vpop.permute.xlu0 %583  ;;  %5530 = vmatprep.mubr.msk.f32.mxu0 %vm705_vm6, %v701_v10  ;;  %v2543_v16 = vsel %vm1079_vm8, %v2500_v8, 0.0 }
 0x192   :  { %v1251_v15 = vadd.f32 %v1250_v13, %v1249_v52  ;;  %663 = vst.msk [vmem:[#allocation2 + $0x118] sm:$0xff] %vm627_vm5, %v584_v14  ;;  %v1133_v17 = vadd.f32 %v1132_v12, %v1131_v6  ;;  %v2426_v18 = vadd.f32 %v2425_v11, %v2424_v7  ;;  %v2544_v20 = vadd.f32 %v2543_v16, %v2542_v54 }
 0x194   :  { %v1622_v22 = vpop.permute.xlu1 %1621  ;;  %v2001_v23 = vld [vmem:[#allocation2 + $0x23c] sm:$0xff]  ;;  %v1253_v24 = vadd.f32 %v1252_v19, %v1251_v15  ;;  %v2546_v26 = vadd.f32 %v2545_v21, %v2544_v20 }
 0x195   :  { %1699 = vst.msk [vmem:[#allocation2 + $0x24c] sm:$0xff] %vm359_vm4, %v1622_v22  ;;  %v318_v25 = vpop.permute.xlu0 %317  ;;  %5591 = vmatprep.mubr.msk.f32.mxu1 %vm705_vm6, %v2001_v23 }
 0x196   :  { %396 = vst.msk [vmem:[#allocation2 + $0x120] sm:$0xff] %vm359_vm4, %v318_v25 }
 0x198   :  { %v586_v27 = vpop.permute.xlu1 %585  ;;  %v2002_v28 = vld [vmem:[#allocation2 + $0x244] sm:$0xff] }
 0x199   :  { %664 = vst.msk [vmem:[#allocation2 + $0x120] sm:$0xff] %vm627_vm5, %v586_v27  ;;  %v320_v29 = vpop.permute.xlu0 %319  ;;  %v702_v30 = vld [vmem:[#allocation2 + $0x118] sm:$0xff]  ;;  %5592 = vmatmul.mubr.msk.f32.gmra.mrb[34].mxu1 %vm705_vm6, %v2002_v28 }
 0x19a   :  { %398 = vst.msk [vmem:[#allocation2 + $0x128] sm:$0xf] %vm397_vm9, %v320_v29  ;;  %5531 = vmatmul.mubr.msk.f32.gmra.mrb[34].mxu0 %vm705_vm6, %v702_v30 }
 0x19c   :  { %v1888_v31 = vpop.permute.xlu1 %1887  ;;  %v5554_v32 = vpop.f32.mrb[8].mxu1 }
 0x19d   :  { %1965 = vst.msk [vmem:[#allocation2 + $0x24c] sm:$0xff] %vm627_vm5, %v1888_v31  ;;  %v1624_v33 = vpop.permute.xlu0 %1623  ;;  %v5493_v34 = vpop.f32.mrb[8].mxu0  ;;  %v2503_v41 = vmul.f32 %v5554_v32, %v5554_v32  ;;  %v2429_v47 = vsel %vm1079_vm8, %v5554_v32, 0.0 }
 0x19e   :  { %2383 = vst.msk [vmem:[#allocation3 + $0x174] sm:$0xff] %vm1079_vm8, %v5554_v32  ;;  %1089 = vst.msk [vmem:[#allocation3 + $0x48] sm:$0xff] %vm1079_vm8, %v5493_v34  ;;  %v930_v35 = vpop.f32.mrb[9].mxu0  ;;  %v2225_v36 = vpop.f32.mrb[9].mxu1  ;;  %v1210_v37 = vmul.f32 %v5493_v34, %v5493_v34  ;;  %v1136_v48 = vsel %vm1079_vm8, %v5493_v34, 0.0 }
 0x19f   :  { %1700 = vst.msk [vmem:[#allocation2 + $0x254] sm:$0xf] %vm397_vm9, %v1624_v33  ;;  %v1134_v38 = vsel %vm1079_vm8, %v930_v35, 0.0  ;;  %v1209_v39 = vmul.f32 %v930_v35, %v930_v35  ;;  %v2427_v40 = vsel %vm1079_vm8, %v2225_v36, 0.0  ;;  %v2502_v44 = vmul.f32 %v2225_v36, %v2225_v36 }
 0x1a0   :  { %1088 = vst.msk [vmem:[#allocation3 + $0x40] sm:$0xff] %vm1079_vm8, %v930_v35  ;;  %2382 = vst.msk [vmem:[#allocation3 + $0x16c] sm:$0xff] %vm1079_vm8, %v2225_v36  ;;  %v1135_v42 = vadd.f32 %v1134_v38, %v1133_v17  ;;  %v2428_v43 = vadd.f32 %v2427_v40, %v2426_v18  ;;  %v1890_v45 = vpop.permute.xlu1 %1889  ;;  %v703_v46 = vld [vmem:[#allocation2 + $0x120] sm:$0xff]  ;;  %v1256_v55 = vsel %vm1079_vm8, %v1210_v37, 0.0  ;;  %v2549_v57 = vsel %vm1079_vm8, %v2503_v41, 0.0 }
 0x1a1   :  { %v1254_v49 = vsel %vm1079_vm8, %v1209_v39, 0.0  ;;  %1966 = vst.msk [vmem:[#allocation2 + $0x254] sm:$0xf] %vm665_vm10, %v1890_v45  ;;  %v588_v50 = vpop.permute.xlu0 %587  ;;  %5533 = vmatprep.mubr.msk.f32.mxu0 %vm705_vm6, %v703_v46  ;;  %v2547_v52 = vsel %vm1079_vm8, %v2502_v44, 0.0 }
 0x1a2   :  { %v1255_v51 = vadd.f32 %v1254_v49, %v1253_v24  ;;  %666 = vst.msk [vmem:[#allocation2 + $0x128] sm:$0xf] %vm665_vm10, %v588_v50  ;;  %v1137_v53 = vadd.f32 %v1136_v48, %v1135_v42  ;;  %v2430_v54 = vadd.f32 %v2429_v47, %v2428_v43  ;;  %v2548_v56 = vadd.f32 %v2547_v52, %v2546_v26 }
 0x1a4   :  { %v2003_v58 = vld [vmem:[#allocation2 + $0x24c] sm:$0xff]  ;;  %v1257_v59 = vadd.f32 %v1256_v55, %v1255_v51  ;;  %v2550_v60 = vadd.f32 %v2549_v57, %v2548_v56 }
 0x1a5   :  { %5594 = vmatprep.mubr.msk.f32.mxu1 %vm705_vm6, %v2003_v58 }
 0x1a8   :  { %v2004_v61 = vld [vmem:[#allocation2 + $0x254] sm:$0xf] }
 0x1a9   :  { %v704_v62 = vld [vmem:[#allocation2 + $0x128] sm:$0xf]  ;;  %5595 = vmatmul.mubr.msk.f32.gmra.mrb[36].mxu1 %vm705_vm6, %v2004_v61 }
 0x1aa   :  { %5534 = vmatmul.mubr.msk.f32.gmra.mrb[36].mxu0 %vm705_vm6, %v704_v62 }
 0x1ac   :  { %v5496_v63 = vpop.f32.mrb[10].mxu0  ;;  %v5557_v0 = vpop.f32.mrb[10].mxu1 }
 0x1ad   :  { %1091 = vst.msk [vmem:[#allocation3 + $0x58] sm:$0xff] %vm1079_vm8, %v5496_v63  ;;  %v1212_v1 = vmul.f32 %v5496_v63, %v5496_v63  ;;  %2385 = vst.msk [vmem:[#allocation3 + $0x184] sm:$0xff] %vm1079_vm8, %v5557_v0  ;;  %v2505_v2 = vmul.f32 %v5557_v0, %v5557_v0  ;;  %v940_v3 = vpop.f32.mrb[11].mxu0  ;;  %v2235_v4 = vpop.f32.mrb[11].mxu1  ;;  %v1140_v11 = vsel %vm1079_vm8, %v5496_v63, 0.0  ;;  %v2433_v12 = vsel %vm1079_vm8, %v5557_v0, 0.0 }
 0x1ae   :  { %1090 = vst.msk [vmem:[#allocation3 + $0x50] sm:$0xff] %vm1079_vm8, %v940_v3  ;;  %v1138_v5 = vsel %vm1079_vm8, %v940_v3, 0.0  ;;  %v1211_v6 = vmul.f32 %v940_v3, %v940_v3  ;;  %2384 = vst.msk [vmem:[#allocation3 + $0x17c] sm:$0xff] %vm1079_vm8, %v2235_v4  ;;  %v2431_v7 = vsel %vm1079_vm8, %v2235_v4, 0.0  ;;  %v2504_v8 = vmul.f32 %v2235_v4, %v2235_v4 }
 0x1af   :  { %v1139_v9 = vadd.f32 %v1138_v5, %v1137_v53  ;;  %v2432_v10 = vadd.f32 %v2431_v7, %v2430_v54  ;;  %v1260_v19 = vsel %vm1079_vm8, %v1212_v1, 0.0  ;;  %v2553_v20 = vsel %vm1079_vm8, %v2505_v2, 0.0 }
 0x1b0   :  { %v1258_v13 = vsel %vm1079_vm8, %v1211_v6, 0.0  ;;  %v2551_v14 = vsel %vm1079_vm8, %v2504_v8, 0.0 }
 0x1b1   :  { %v1259_v15 = vadd.f32 %v1258_v13, %v1257_v59  ;;  %v2552_v16 = vadd.f32 %v2551_v14, %v2550_v60  ;;  %v1141_v17 = vadd.f32 %v1140_v11, %v1139_v9  ;;  %v2434_v18 = vadd.f32 %v2433_v12, %v2432_v10 }
 0x1b3   :  { %v1261_v21 = vadd.f32 %v1260_v19, %v1259_v15  ;;  %v2554_v22 = vadd.f32 %v2553_v20, %v2552_v16 }
 0x1bc   :  { %v5499_v23 = vpop.f32.mrb[12].mxu0  ;;  %v5560_v24 = vpop.f32.mrb[12].mxu1 }
 0x1bd   :  { %1093 = vst.msk [vmem:[#allocation3 + $0x68] sm:$0xff] %vm1079_vm8, %v5499_v23  ;;  %v1214_v25 = vmul.f32 %v5499_v23, %v5499_v23  ;;  %2387 = vst.msk [vmem:[#allocation3 + $0x194] sm:$0xff] %vm1079_vm8, %v5560_v24  ;;  %v2507_v26 = vmul.f32 %v5560_v24, %v5560_v24  ;;  %v950_v27 = vpop.f32.mrb[13].mxu0  ;;  %v2245_v28 = vpop.f32.mrb[13].mxu1  ;;  %v1144_v35 = vsel %vm1079_vm8, %v5499_v23, 0.0  ;;  %v2437_v36 = vsel %vm1079_vm8, %v5560_v24, 0.0 }
 0x1be   :  { %1092 = vst.msk [vmem:[#allocation3 + $0x60] sm:$0xff] %vm1079_vm8, %v950_v27  ;;  %v1142_v29 = vsel %vm1079_vm8, %v950_v27, 0.0  ;;  %v1213_v30 = vmul.f32 %v950_v27, %v950_v27  ;;  %2386 = vst.msk [vmem:[#allocation3 + $0x18c] sm:$0xff] %vm1079_vm8, %v2245_v28  ;;  %v2435_v31 = vsel %vm1079_vm8, %v2245_v28, 0.0  ;;  %v2506_v32 = vmul.f32 %v2245_v28, %v2245_v28 }
 0x1bf   :  { %v1143_v33 = vadd.f32 %v1142_v29, %v1141_v17  ;;  %v2436_v34 = vadd.f32 %v2435_v31, %v2434_v18  ;;  %v1264_v43 = vsel %vm1079_vm8, %v1214_v25, 0.0  ;;  %v2557_v44 = vsel %vm1079_vm8, %v2507_v26, 0.0 }
 0x1c0   :  { %v1262_v37 = vsel %vm1079_vm8, %v1213_v30, 0.0  ;;  %v2555_v38 = vsel %vm1079_vm8, %v2506_v32, 0.0 }
 0x1c1   :  { %v1263_v39 = vadd.f32 %v1262_v37, %v1261_v21  ;;  %v2556_v40 = vadd.f32 %v2555_v38, %v2554_v22  ;;  %v1145_v41 = vadd.f32 %v1144_v35, %v1143_v33  ;;  %v2438_v42 = vadd.f32 %v2437_v36, %v2436_v34 }
 0x1c3   :  { %v1265_v45 = vadd.f32 %v1264_v43, %v1263_v39  ;;  %v2558_v46 = vadd.f32 %v2557_v44, %v2556_v40 }
 0x1cc   :  { %v5502_v47 = vpop.f32.mrb[14].mxu0  ;;  %v5563_v48 = vpop.f32.mrb[14].mxu1 }
 0x1cd   :  { %1095 = vst.msk [vmem:[#allocation3 + $0x78] sm:$0xff] %vm1079_vm8, %v5502_v47  ;;  %v1216_v49 = vmul.f32 %v5502_v47, %v5502_v47  ;;  %2389 = vst.msk [vmem:[#allocation3 + $0x1a4] sm:$0xff] %vm1079_vm8, %v5563_v48  ;;  %v2509_v50 = vmul.f32 %v5563_v48, %v5563_v48  ;;  %v960_v51 = vpop.f32.mrb[15].mxu0  ;;  %v2255_v52 = vpop.f32.mrb[15].mxu1  ;;  %v1148_v59 = vsel %vm1079_vm8, %v5502_v47, 0.0  ;;  %v2441_v60 = vsel %vm1079_vm8, %v5563_v48, 0.0 }
 0x1ce   :  { %1094 = vst.msk [vmem:[#allocation3 + $0x70] sm:$0xff] %vm1079_vm8, %v960_v51  ;;  %v1146_v53 = vsel %vm1079_vm8, %v960_v51, 0.0  ;;  %v1215_v54 = vmul.f32 %v960_v51, %v960_v51  ;;  %2388 = vst.msk [vmem:[#allocation3 + $0x19c] sm:$0xff] %vm1079_vm8, %v2255_v52  ;;  %v2439_v55 = vsel %vm1079_vm8, %v2255_v52, 0.0  ;;  %v2508_v56 = vmul.f32 %v2255_v52, %v2255_v52 }
 0x1cf   :  { %v1147_v57 = vadd.f32 %v1146_v53, %v1145_v41  ;;  %v2440_v58 = vadd.f32 %v2439_v55, %v2438_v42  ;;  %v1268_v3 = vsel %vm1079_vm8, %v1216_v49, 0.0  ;;  %v2561_v4 = vsel %vm1079_vm8, %v2509_v50, 0.0 }
 0x1d0   :  { %v1266_v61 = vsel %vm1079_vm8, %v1215_v54, 0.0  ;;  %v2559_v62 = vsel %vm1079_vm8, %v2508_v56, 0.0 }
 0x1d1   :  { %v1267_v63 = vadd.f32 %v1266_v61, %v1265_v45  ;;  %v2560_v0 = vadd.f32 %v2559_v62, %v2558_v46  ;;  %v1149_v1 = vadd.f32 %v1148_v59, %v1147_v57  ;;  %v2442_v2 = vadd.f32 %v2441_v60, %v2440_v58 }
 0x1d3   :  { %v1269_v5 = vadd.f32 %v1268_v3, %v1267_v63  ;;  %v2562_v6 = vadd.f32 %v2561_v4, %v2560_v0 }
 0x1dc   :  { %v5505_v7 = vpop.f32.mrb[16].mxu0  ;;  %v5566_v8 = vpop.f32.mrb[16].mxu1 }
 0x1dd   :  { %1097 = vst.msk [vmem:[#allocation3 + $0x88] sm:$0xff] %vm1079_vm8, %v5505_v7  ;;  %v1218_v9 = vmul.f32 %v5505_v7, %v5505_v7  ;;  %2391 = vst.msk [vmem:[#allocation3 + $0x1b4] sm:$0xff] %vm1079_vm8, %v5566_v8  ;;  %v2511_v10 = vmul.f32 %v5566_v8, %v5566_v8  ;;  %v970_v11 = vpop.f32.mrb[17].mxu0  ;;  %v2265_v12 = vpop.f32.mrb[17].mxu1  ;;  %v1152_v19 = vsel %vm1079_vm8, %v5505_v7, 0.0  ;;  %v2445_v20 = vsel %vm1079_vm8, %v5566_v8, 0.0 }
 0x1de   :  { %1096 = vst.msk [vmem:[#allocation3 + $0x80] sm:$0xff] %vm1079_vm8, %v970_v11  ;;  %v1150_v13 = vsel %vm1079_vm8, %v970_v11, 0.0  ;;  %v1217_v14 = vmul.f32 %v970_v11, %v970_v11  ;;  %2390 = vst.msk [vmem:[#allocation3 + $0x1ac] sm:$0xff] %vm1079_vm8, %v2265_v12  ;;  %v2443_v15 = vsel %vm1079_vm8, %v2265_v12, 0.0  ;;  %v2510_v16 = vmul.f32 %v2265_v12, %v2265_v12 }
 0x1df   :  { %v1151_v17 = vadd.f32 %v1150_v13, %v1149_v1  ;;  %v2444_v18 = vadd.f32 %v2443_v15, %v2442_v2  ;;  %v1272_v27 = vsel %vm1079_vm8, %v1218_v9, 0.0  ;;  %v2565_v28 = vsel %vm1079_vm8, %v2511_v10, 0.0 }
 0x1e0   :  { %v1270_v21 = vsel %vm1079_vm8, %v1217_v14, 0.0  ;;  %v2563_v22 = vsel %vm1079_vm8, %v2510_v16, 0.0 }
 0x1e1   :  { %v1271_v23 = vadd.f32 %v1270_v21, %v1269_v5  ;;  %v2564_v24 = vadd.f32 %v2563_v22, %v2562_v6  ;;  %v1153_v25 = vadd.f32 %v1152_v19, %v1151_v17  ;;  %v2446_v26 = vadd.f32 %v2445_v20, %v2444_v18 }
 0x1e3   :  { %v1273_v29 = vadd.f32 %v1272_v27, %v1271_v23  ;;  %v2566_v30 = vadd.f32 %v2565_v28, %v2564_v24 }
 0x1ec   :  { %v5508_v31 = vpop.f32.mrb[18].mxu0  ;;  %v5569_v32 = vpop.f32.mrb[18].mxu1 }
 0x1ed   :  { %1099 = vst.msk [vmem:[#allocation3 + $0x98] sm:$0xff] %vm1079_vm8, %v5508_v31  ;;  %v1220_v33 = vmul.f32 %v5508_v31, %v5508_v31  ;;  %2393 = vst.msk [vmem:[#allocation3 + $0x1c4] sm:$0xff] %vm1079_vm8, %v5569_v32  ;;  %v2513_v34 = vmul.f32 %v5569_v32, %v5569_v32  ;;  %v980_v35 = vpop.f32.mrb[19].mxu0  ;;  %v2275_v36 = vpop.f32.mrb[19].mxu1  ;;  %v1156_v43 = vsel %vm1079_vm8, %v5508_v31, 0.0  ;;  %v2449_v44 = vsel %vm1079_vm8, %v5569_v32, 0.0 }
 0x1ee   :  { %1098 = vst.msk [vmem:[#allocation3 + $0x90] sm:$0xff] %vm1079_vm8, %v980_v35  ;;  %v1154_v37 = vsel %vm1079_vm8, %v980_v35, 0.0  ;;  %v1219_v38 = vmul.f32 %v980_v35, %v980_v35  ;;  %2392 = vst.msk [vmem:[#allocation3 + $0x1bc] sm:$0xff] %vm1079_vm8, %v2275_v36  ;;  %v2447_v39 = vsel %vm1079_vm8, %v2275_v36, 0.0  ;;  %v2512_v40 = vmul.f32 %v2275_v36, %v2275_v36 }
 0x1ef   :  { %v1155_v41 = vadd.f32 %v1154_v37, %v1153_v25  ;;  %v2448_v42 = vadd.f32 %v2447_v39, %v2446_v26  ;;  %v1276_v51 = vsel %vm1079_vm8, %v1220_v33, 0.0  ;;  %v2569_v52 = vsel %vm1079_vm8, %v2513_v34, 0.0 }
 0x1f0   :  { %v1274_v45 = vsel %vm1079_vm8, %v1219_v38, 0.0  ;;  %v2567_v46 = vsel %vm1079_vm8, %v2512_v40, 0.0 }
 0x1f1   :  { %v1275_v47 = vadd.f32 %v1274_v45, %v1273_v29  ;;  %v2568_v48 = vadd.f32 %v2567_v46, %v2566_v30  ;;  %v1157_v49 = vadd.f32 %v1156_v43, %v1155_v41  ;;  %v2450_v50 = vadd.f32 %v2449_v44, %v2448_v42 }
 0x1f3   :  { %v1277_v53 = vadd.f32 %v1276_v51, %v1275_v47  ;;  %v2570_v54 = vadd.f32 %v2569_v52, %v2568_v48 }
 0x1fc   :  { %v5511_v55 = vpop.f32.mrb[20].mxu0  ;;  %v5572_v56 = vpop.f32.mrb[20].mxu1 }
 0x1fd   :  { %1101 = vst.msk [vmem:[#allocation3 + $0xa8] sm:$0xff] %vm1079_vm8, %v5511_v55  ;;  %v1222_v57 = vmul.f32 %v5511_v55, %v5511_v55  ;;  %2395 = vst.msk [vmem:[#allocation3 + $0x1d4] sm:$0xff] %vm1079_vm8, %v5572_v56  ;;  %v2515_v58 = vmul.f32 %v5572_v56, %v5572_v56  ;;  %v990_v59 = vpop.f32.mrb[21].mxu0  ;;  %v2285_v60 = vpop.f32.mrb[21].mxu1  ;;  %v1160_v3 = vsel %vm1079_vm8, %v5511_v55, 0.0  ;;  %v2453_v4 = vsel %vm1079_vm8, %v5572_v56, 0.0 }
 0x1fe   :  { %1100 = vst.msk [vmem:[#allocation3 + $0xa0] sm:$0xff] %vm1079_vm8, %v990_v59  ;;  %v1158_v61 = vsel %vm1079_vm8, %v990_v59, 0.0  ;;  %v1221_v62 = vmul.f32 %v990_v59, %v990_v59  ;;  %2394 = vst.msk [vmem:[#allocation3 + $0x1cc] sm:$0xff] %vm1079_vm8, %v2285_v60  ;;  %v2451_v63 = vsel %vm1079_vm8, %v2285_v60, 0.0  ;;  %v2514_v0 = vmul.f32 %v2285_v60, %v2285_v60 }
 0x1ff   :  { %v1159_v1 = vadd.f32 %v1158_v61, %v1157_v49  ;;  %v2452_v2 = vadd.f32 %v2451_v63, %v2450_v50  ;;  %v1280_v11 = vsel %vm1079_vm8, %v1222_v57, 0.0  ;;  %v2573_v12 = vsel %vm1079_vm8, %v2515_v58, 0.0 }
 0x200   :  { %v1278_v5 = vsel %vm1079_vm8, %v1221_v62, 0.0  ;;  %v2571_v6 = vsel %vm1079_vm8, %v2514_v0, 0.0 }
 0x201   :  { %v1279_v7 = vadd.f32 %v1278_v5, %v1277_v53  ;;  %v2572_v8 = vadd.f32 %v2571_v6, %v2570_v54  ;;  %v1161_v9 = vadd.f32 %v1160_v3, %v1159_v1  ;;  %v2454_v10 = vadd.f32 %v2453_v4, %v2452_v2 }
 0x203   :  { %v1281_v13 = vadd.f32 %v1280_v11, %v1279_v7  ;;  %v2574_v14 = vadd.f32 %v2573_v12, %v2572_v8 }
 0x20c   :  { %v5514_v15 = vpop.f32.mrb[22].mxu0  ;;  %v5575_v16 = vpop.f32.mrb[22].mxu1 }
 0x20d   :  { %1103 = vst.msk [vmem:[#allocation3 + $0xb8] sm:$0xff] %vm1079_vm8, %v5514_v15  ;;  %v1224_v17 = vmul.f32 %v5514_v15, %v5514_v15  ;;  %2397 = vst.msk [vmem:[#allocation3 + $0x1e4] sm:$0xff] %vm1079_vm8, %v5575_v16  ;;  %v2517_v18 = vmul.f32 %v5575_v16, %v5575_v16  ;;  %v1000_v19 = vpop.f32.mrb[23].mxu0  ;;  %v2295_v20 = vpop.f32.mrb[23].mxu1  ;;  %v1164_v27 = vsel %vm1079_vm8, %v5514_v15, 0.0  ;;  %v2457_v28 = vsel %vm1079_vm8, %v5575_v16, 0.0 }
 0x20e   :  { %1102 = vst.msk [vmem:[#allocation3 + $0xb0] sm:$0xff] %vm1079_vm8, %v1000_v19  ;;  %v1162_v21 = vsel %vm1079_vm8, %v1000_v19, 0.0  ;;  %v1223_v22 = vmul.f32 %v1000_v19, %v1000_v19  ;;  %2396 = vst.msk [vmem:[#allocation3 + $0x1dc] sm:$0xff] %vm1079_vm8, %v2295_v20  ;;  %v2455_v23 = vsel %vm1079_vm8, %v2295_v20, 0.0  ;;  %v2516_v24 = vmul.f32 %v2295_v20, %v2295_v20 }
 0x20f   :  { %v1163_v25 = vadd.f32 %v1162_v21, %v1161_v9  ;;  %v2456_v26 = vadd.f32 %v2455_v23, %v2454_v10  ;;  %v1284_v35 = vsel %vm1079_vm8, %v1224_v17, 0.0  ;;  %v2577_v36 = vsel %vm1079_vm8, %v2517_v18, 0.0 }
 0x210   :  { %v1282_v29 = vsel %vm1079_vm8, %v1223_v22, 0.0  ;;  %v2575_v30 = vsel %vm1079_vm8, %v2516_v24, 0.0 }
 0x211   :  { %v1283_v31 = vadd.f32 %v1282_v29, %v1281_v13  ;;  %v2576_v32 = vadd.f32 %v2575_v30, %v2574_v14  ;;  %v1165_v33 = vadd.f32 %v1164_v27, %v1163_v25  ;;  %v2458_v34 = vadd.f32 %v2457_v28, %v2456_v26 }
 0x213   :  { %v1285_v37 = vadd.f32 %v1284_v35, %v1283_v31  ;;  %v2578_v38 = vadd.f32 %v2577_v36, %v2576_v32 }
 0x21c   :  { %v5517_v39 = vpop.f32.mrb[24].mxu0  ;;  %v5578_v40 = vpop.f32.mrb[24].mxu1 }
 0x21d   :  { %1105 = vst.msk [vmem:[#allocation3 + $0xc8] sm:$0xff] %vm1079_vm8, %v5517_v39  ;;  %v1226_v41 = vmul.f32 %v5517_v39, %v5517_v39  ;;  %2399 = vst.msk [vmem:[#allocation3 + $0x1f4] sm:$0xff] %vm1079_vm8, %v5578_v40  ;;  %v2519_v42 = vmul.f32 %v5578_v40, %v5578_v40  ;;  %v1010_v43 = vpop.f32.mrb[25].mxu0  ;;  %v2305_v44 = vpop.f32.mrb[25].mxu1  ;;  %v1168_v51 = vsel %vm1079_vm8, %v5517_v39, 0.0  ;;  %v2461_v52 = vsel %vm1079_vm8, %v5578_v40, 0.0 }
 0x21e   :  { %1104 = vst.msk [vmem:[#allocation3 + $0xc0] sm:$0xff] %vm1079_vm8, %v1010_v43  ;;  %v1166_v45 = vsel %vm1079_vm8, %v1010_v43, 0.0  ;;  %v1225_v46 = vmul.f32 %v1010_v43, %v1010_v43  ;;  %2398 = vst.msk [vmem:[#allocation3 + $0x1ec] sm:$0xff] %vm1079_vm8, %v2305_v44  ;;  %v2459_v47 = vsel %vm1079_vm8, %v2305_v44, 0.0  ;;  %v2518_v48 = vmul.f32 %v2305_v44, %v2305_v44 }
 0x21f   :  { %v1167_v49 = vadd.f32 %v1166_v45, %v1165_v33  ;;  %v2460_v50 = vadd.f32 %v2459_v47, %v2458_v34  ;;  %v1288_v59 = vsel %vm1079_vm8, %v1226_v41, 0.0  ;;  %v2581_v60 = vsel %vm1079_vm8, %v2519_v42, 0.0 }
 0x220   :  { %v1286_v53 = vsel %vm1079_vm8, %v1225_v46, 0.0  ;;  %v2579_v54 = vsel %vm1079_vm8, %v2518_v48, 0.0 }
 0x221   :  { %v1287_v55 = vadd.f32 %v1286_v53, %v1285_v37  ;;  %v2580_v56 = vadd.f32 %v2579_v54, %v2578_v38  ;;  %v1169_v57 = vadd.f32 %v1168_v51, %v1167_v49  ;;  %v2462_v58 = vadd.f32 %v2461_v52, %v2460_v50 }
 0x223   :  { %v1289_v61 = vadd.f32 %v1288_v59, %v1287_v55  ;;  %v2582_v62 = vadd.f32 %v2581_v60, %v2580_v56 }
 0x22c   :  { %v5520_v63 = vpop.f32.mrb[26].mxu0  ;;  %v5581_v0 = vpop.f32.mrb[26].mxu1 }
 0x22d   :  { %1107 = vst.msk [vmem:[#allocation3 + $0xd8] sm:$0xff] %vm1079_vm8, %v5520_v63  ;;  %v1228_v1 = vmul.f32 %v5520_v63, %v5520_v63  ;;  %2401 = vst.msk [vmem:[#allocation3 + $0x204] sm:$0xff] %vm1079_vm8, %v5581_v0  ;;  %v2521_v2 = vmul.f32 %v5581_v0, %v5581_v0  ;;  %v1020_v3 = vpop.f32.mrb[27].mxu0  ;;  %v2315_v4 = vpop.f32.mrb[27].mxu1  ;;  %v1172_v11 = vsel %vm1079_vm8, %v5520_v63, 0.0  ;;  %v2465_v12 = vsel %vm1079_vm8, %v5581_v0, 0.0 }
 0x22e   :  { %1106 = vst.msk [vmem:[#allocation3 + $0xd0] sm:$0xff] %vm1079_vm8, %v1020_v3  ;;  %v1170_v5 = vsel %vm1079_vm8, %v1020_v3, 0.0  ;;  %v1227_v6 = vmul.f32 %v1020_v3, %v1020_v3  ;;  %2400 = vst.msk [vmem:[#allocation3 + $0x1fc] sm:$0xff] %vm1079_vm8, %v2315_v4  ;;  %v2463_v7 = vsel %vm1079_vm8, %v2315_v4, 0.0  ;;  %v2520_v8 = vmul.f32 %v2315_v4, %v2315_v4 }
 0x22f   :  { %v1171_v9 = vadd.f32 %v1170_v5, %v1169_v57  ;;  %v2464_v10 = vadd.f32 %v2463_v7, %v2462_v58  ;;  %v1292_v19 = vsel %vm1079_vm8, %v1228_v1, 0.0  ;;  %v2585_v20 = vsel %vm1079_vm8, %v2521_v2, 0.0 }
 0x230   :  { %v1290_v13 = vsel %vm1079_vm8, %v1227_v6, 0.0  ;;  %v2583_v14 = vsel %vm1079_vm8, %v2520_v8, 0.0 }
 0x231   :  { %v1291_v15 = vadd.f32 %v1290_v13, %v1289_v61  ;;  %v2584_v16 = vadd.f32 %v2583_v14, %v2582_v62  ;;  %v1173_v17 = vadd.f32 %v1172_v11, %v1171_v9  ;;  %v2466_v18 = vadd.f32 %v2465_v12, %v2464_v10 }
 0x233   :  { %v1293_v21 = vadd.f32 %v1292_v19, %v1291_v15  ;;  %v2586_v22 = vadd.f32 %v2585_v20, %v2584_v16 }
 0x23c   :  { %v5584_v23 = vpop.f32.mrb[28].mxu1 }
 0x23d   :  { %v5523_v24 = vpop.f32.mrb[28].mxu0  ;;  %2403 = vst.msk [vmem:[#allocation3 + $0x214] sm:$0xff] %vm1079_vm8, %v5584_v23  ;;  %v2325_v25 = vpop.f32.mrb[29].mxu1  ;;  %v2523_v26 = vmul.f32 %v5584_v23, %v5584_v23  ;;  %v2469_v34 = vsel %vm1079_vm8, %v5584_v23, 0.0 }
 0x23e   :  { %1109 = vst.msk [vmem:[#allocation3 + $0xe8] sm:$0xff] %vm1079_vm8, %v5523_v24  ;;  %v1030_v27 = vpop.f32.mrb[29].mxu0  ;;  %2402 = vst.msk [vmem:[#allocation3 + $0x20c] sm:$0xff] %vm1079_vm8, %v2325_v25  ;;  %v2467_v28 = vsel %vm1079_vm8, %v2325_v25, 0.0  ;;  %v2522_v29 = vmul.f32 %v2325_v25, %v2325_v25  ;;  %v1230_v30 = vmul.f32 %v5523_v24, %v5523_v24  ;;  %v1176_v37 = vsel %vm1079_vm8, %v5523_v24, 0.0 }
 0x23f   :  { %1108 = vst.msk [vmem:[#allocation3 + $0xe0] sm:$0xff] %vm1079_vm8, %v1030_v27  ;;  %v1174_v31 = vsel %vm1079_vm8, %v1030_v27, 0.0  ;;  %v1229_v32 = vmul.f32 %v1030_v27, %v1030_v27  ;;  %v2468_v33 = vadd.f32 %v2467_v28, %v2466_v18  ;;  %v2589_v41 = vsel %vm1079_vm8, %v2523_v26, 0.0 }
 0x240   :  { %v1175_v35 = vadd.f32 %v1174_v31, %v1173_v17  ;;  %v2587_v36 = vsel %vm1079_vm8, %v2522_v29, 0.0  ;;  %v1296_v44 = vsel %vm1079_vm8, %v1230_v30, 0.0 }
 0x241   :  { %v1294_v38 = vsel %vm1079_vm8, %v1229_v32, 0.0  ;;  %v2588_v39 = vadd.f32 %v2587_v36, %v2586_v22  ;;  %v2470_v40 = vadd.f32 %v2469_v34, %v2468_v33 }
 0x242   :  { %v1295_v42 = vadd.f32 %v1294_v38, %v1293_v21  ;;  %v1177_v43 = vadd.f32 %v1176_v37, %v1175_v35 }
 0x243   :  { %v2590_v45 = vadd.f32 %v2589_v41, %v2588_v39 }
 0x244   :  { %v1297_v46 = vadd.f32 %v1296_v44, %v1295_v42 }
 0x24c   :  { %v5587_v47 = vpop.f32.mrb[30].mxu1 }
 0x24d   :  { %v5526_v48 = vpop.f32.mrb[30].mxu0  ;;  %2405 = vst.msk [vmem:[#allocation3 + $0x224] sm:$0xff] %vm1079_vm8, %v5587_v47  ;;  %v2335_v49 = vpop.f32.mrb[31].mxu1  ;;  %v2525_v50 = vmul.f32 %v5587_v47, %v5587_v47  ;;  %v2473_v58 = vsel %vm1079_vm8, %v5587_v47, 0.0 }
 0x24e   :  { %1111 = vst.msk [vmem:[#allocation3 + $0xf8] sm:$0xff] %vm1079_vm8, %v5526_v48  ;;  %v1040_v51 = vpop.f32.mrb[31].mxu0  ;;  %2404 = vst.msk [vmem:[#allocation3 + $0x21c] sm:$0xff] %vm1079_vm8, %v2335_v49  ;;  %v2471_v52 = vsel %vm1079_vm8, %v2335_v49, 0.0  ;;  %v2524_v53 = vmul.f32 %v2335_v49, %v2335_v49  ;;  %v1232_v54 = vmul.f32 %v5526_v48, %v5526_v48  ;;  %v1180_v61 = vsel %vm1079_vm8, %v5526_v48, 0.0 }
 0x24f   :  { %1110 = vst.msk [vmem:[#allocation3 + $0xf0] sm:$0xff] %vm1079_vm8, %v1040_v51  ;;  %v1178_v55 = vsel %vm1079_vm8, %v1040_v51, 0.0  ;;  %v1231_v56 = vmul.f32 %v1040_v51, %v1040_v51  ;;  %v2472_v57 = vadd.f32 %v2471_v52, %v2470_v40  ;;  %v2593_v1 = vsel %vm1079_vm8, %v2525_v50, 0.0 }
 0x250   :  { %v1179_v59 = vadd.f32 %v1178_v55, %v1177_v43  ;;  %v2591_v60 = vsel %vm1079_vm8, %v2524_v53, 0.0  ;;  %v1300_v4 = vsel %vm1079_vm8, %v1232_v54, 0.0 }
 0x251   :  { %v1298_v62 = vsel %vm1079_vm8, %v1231_v56, 0.0  ;;  %v2592_v63 = vadd.f32 %v2591_v60, %v2590_v45  ;;  %v2474_v0 = vadd.f32 %v2473_v58, %v2472_v57 }
 0x252   :  { %v1299_v2 = vadd.f32 %v1298_v62, %v1297_v46  ;;  %v1181_v3 = vadd.f32 %v1180_v61, %v1179_v59 }
 0x253   :  { %v2594_v5 = vadd.f32 %v2593_v1, %v2592_v63 }
 0x254   :  { %v1301_v6 = vadd.f32 %v1300_v4, %v1299_v2 }
 0x25c   :  { %v5590_v7 = vpop.f32.mrb[32].mxu1 }
 0x25d   :  { %v5529_v8 = vpop.f32.mrb[32].mxu0  ;;  %2407 = vst.msk [vmem:[#allocation3 + $0x234] sm:$0xff] %vm1079_vm8, %v5590_v7  ;;  %v2345_v9 = vpop.f32.mrb[33].mxu1  ;;  %v2527_v10 = vmul.f32 %v5590_v7, %v5590_v7  ;;  %v2477_v18 = vsel %vm1079_vm8, %v5590_v7, 0.0 }
 0x25e   :  { %1113 = vst.msk [vmem:[#allocation3 + $0x108] sm:$0xff] %vm1079_vm8, %v5529_v8  ;;  %v1050_v11 = vpop.f32.mrb[33].mxu0  ;;  %2406 = vst.msk [vmem:[#allocation3 + $0x22c] sm:$0xff] %vm1079_vm8, %v2345_v9  ;;  %v2475_v12 = vsel %vm1079_vm8, %v2345_v9, 0.0  ;;  %v2526_v13 = vmul.f32 %v2345_v9, %v2345_v9  ;;  %v1234_v14 = vmul.f32 %v5529_v8, %v5529_v8  ;;  %v1184_v21 = vsel %vm1079_vm8, %v5529_v8, 0.0 }
 0x25f   :  { %1112 = vst.msk [vmem:[#allocation3 + $0x100] sm:$0xff] %vm1079_vm8, %v1050_v11  ;;  %v1182_v15 = vsel %vm1079_vm8, %v1050_v11, 0.0  ;;  %v1233_v16 = vmul.f32 %v1050_v11, %v1050_v11  ;;  %v2476_v17 = vadd.f32 %v2475_v12, %v2474_v0  ;;  %v2597_v25 = vsel %vm1079_vm8, %v2527_v10, 0.0 }
 0x260   :  { %v1183_v19 = vadd.f32 %v1182_v15, %v1181_v3  ;;  %v2595_v20 = vsel %vm1079_vm8, %v2526_v13, 0.0  ;;  %v1304_v28 = vsel %vm1079_vm8, %v1234_v14, 0.0 }
 0x261   :  { %v1302_v22 = vsel %vm1079_vm8, %v1233_v16, 0.0  ;;  %v2596_v23 = vadd.f32 %v2595_v20, %v2594_v5  ;;  %v2478_v24 = vadd.f32 %v2477_v18, %v2476_v17 }
 0x262   :  { %v1303_v26 = vadd.f32 %v1302_v22, %v1301_v6  ;;  %v1185_v27 = vadd.f32 %v1184_v21, %v1183_v19 }
 0x263   :  { %v2598_v29 = vadd.f32 %v2597_v25, %v2596_v23 }
 0x264   :  { %v1305_v30 = vadd.f32 %v1304_v28, %v1303_v26 }
 0x26c   :  { %v5593_v31 = vpop.f32.mrb[34].mxu1 }
 0x26d   :  { %v5532_v32 = vpop.f32.mrb[34].mxu0  ;;  %2409 = vst.msk [vmem:[#allocation3 + $0x244] sm:$0xff] %vm1079_vm8, %v5593_v31  ;;  %v2355_v33 = vpop.f32.mrb[35].mxu1  ;;  %v2529_v34 = vmul.f32 %v5593_v31, %v5593_v31  ;;  %v2481_v42 = vsel %vm1079_vm8, %v5593_v31, 0.0 }
 0x26e   :  { %1115 = vst.msk [vmem:[#allocation3 + $0x118] sm:$0xff] %vm1079_vm8, %v5532_v32  ;;  %v1060_v35 = vpop.f32.mrb[35].mxu0  ;;  %2408 = vst.msk [vmem:[#allocation3 + $0x23c] sm:$0xff] %vm1079_vm8, %v2355_v33  ;;  %v2479_v36 = vsel %vm1079_vm8, %v2355_v33, 0.0  ;;  %v2528_v37 = vmul.f32 %v2355_v33, %v2355_v33  ;;  %v1236_v38 = vmul.f32 %v5532_v32, %v5532_v32  ;;  %v1188_v45 = vsel %vm1079_vm8, %v5532_v32, 0.0 }
 0x26f   :  { %1114 = vst.msk [vmem:[#allocation3 + $0x110] sm:$0xff] %vm1079_vm8, %v1060_v35  ;;  %v1186_v39 = vsel %vm1079_vm8, %v1060_v35, 0.0  ;;  %v1235_v40 = vmul.f32 %v1060_v35, %v1060_v35  ;;  %v2480_v41 = vadd.f32 %v2479_v36, %v2478_v24  ;;  %v2601_v49 = vsel %vm1079_vm8, %v2529_v34, 0.0 }
 0x270   :  { %v1187_v43 = vadd.f32 %v1186_v39, %v1185_v27  ;;  %v2599_v44 = vsel %vm1079_vm8, %v2528_v37, 0.0  ;;  %v1308_v52 = vsel %vm1079_vm8, %v1236_v38, 0.0 }
 0x271   :  { %v1306_v46 = vsel %vm1079_vm8, %v1235_v40, 0.0  ;;  %v2600_v47 = vadd.f32 %v2599_v44, %v2598_v29  ;;  %v2482_v48 = vadd.f32 %v2481_v42, %v2480_v41  ;;  %v8303_v29 = vmov 0.0  }
 0x272   :  { %v1307_v50 = vadd.f32 %v1306_v46, %v1305_v30  ;;  %v1189_v51 = vadd.f32 %v1188_v45, %v1187_v43  ;;  %2942 = vst.msk [vmem:[#allocation4 + $0x12d] sm:$0x1] %vm2626_vm12, %v8303_v29  ;;  %2627 = vst.msk [vmem:[#allocation4] sm:$0x1] %vm2626_vm12, %v8303_v29 }
 0x273   :  { %v2602_v53 = vadd.f32 %v2601_v49, %v2600_v47  ;;  %2628 = vst.msk [vmem:[#allocation4 + $0x96] sm:$0x1] %vm2626_vm12, %v8303_v29  ;;  %2941 = vst.msk [vmem:[#allocation4 + $0x97] sm:$0x1] %vm2626_vm12, %v8303_v29 }
 0x274   :  { %v1309_v54 = vadd.f32 %v1308_v52, %v1307_v50  ;;  %4604 = vst.msk [vmem:[#allocation10] sm:$0x1] %vm2626_vm12, %v8303_v29  ;;  %4605 = vst.msk [vmem:[#allocation10 + $0xa] sm:$0x1] %vm2626_vm12, %v8303_v29  ;;  %v2619_v50 = vld [vmem:[%s8301_s2] sm:$0x1] }
 0x275   :  { %4645 = vst.msk [vmem:[#allocation10 + $0xb] sm:$0x1] %vm2626_vm12, %v8303_v29  ;;  %4646 = vst.msk [vmem:[#allocation10 + $0x15] sm:$0x1] %vm2626_vm12, %v8303_v29 }
 0x27c   :  { %v5596_v55 = vpop.f32.mrb[36].mxu1 }
 0x27d   :  { %v5535_v56 = vpop.f32.mrb[36].mxu0  ;;  %2411 = vst.msk [vmem:[#allocation3 + $0x254] sm:$0xf] %vm1117_vm11, %v5596_v55  ;;  %v2365_v57 = vpop.f32.mrb[37].mxu1  ;;  %v2531_v58 = vmul.f32 %v5596_v55, %v5596_v55  ;;  %v2485_v2 = vsel %vm1117_vm11, %v5596_v55, 0.0 }
 0x27e   :  { %1118 = vst.msk [vmem:[#allocation3 + $0x128] sm:$0xf] %vm1117_vm11, %v5535_v56  ;;  %v1070_v59 = vpop.f32.mrb[37].mxu0  ;;  %v2483_v60 = vsel %vm1079_vm8, %v2365_v57, 0.0  ;;  %v2530_v61 = vmul.f32 %v2365_v57, %v2365_v57  ;;  %v1238_v62 = vmul.f32 %v5535_v56, %v5535_v56  ;;  %v1192_v5 = vsel %vm1117_vm11, %v5535_v56, 0.0 }
 0x27f   :  { %2410 = vst.msk [vmem:[#allocation3 + $0x24c] sm:$0xff] %vm1079_vm8, %v2365_v57  ;;  %1116 = vst.msk [vmem:[#allocation3 + $0x120] sm:$0xff] %vm1079_vm8, %v1070_v59  ;;  %v1190_v63 = vsel %vm1079_vm8, %v1070_v59, 0.0  ;;  %v1237_v0 = vmul.f32 %v1070_v59, %v1070_v59  ;;  %v2484_v1 = vadd.f32 %v2483_v60, %v2482_v48  ;;  %v2605_v9 = vsel %vm1117_vm11, %v2531_v58, 0.0  ;;  %v2629_v55 = vld [vmem:[#allocation3] ss:$2 sm:$0xff] }
 0x280   :  { %v1191_v3 = vadd.f32 %v1190_v63, %v1189_v51  ;;  %v2603_v4 = vsel %vm1079_vm8, %v2530_v61, 0.0  ;;  %v1312_v12 = vsel %vm1117_vm11, %v1238_v62, 0.0  ;;  %v2666_v48 = vlaneseq  ;;  %v2978_v56 = vld [vmem:[#allocation3 + $0x23c] ss:$2 sm:$0xff]  ;;  %v3035_v57 = vld [vmem:[#allocation3 + $0x23d] ss:$2 sm:$0xff] }
 0x281   :  { %v1310_v6 = vsel %vm1079_vm8, %v1237_v0, 0.0  ;;  %v2486_v7 = vadd.f32 %v2485_v2, %v2484_v1  ;;  %v2604_v8 = vadd.f32 %v2603_v4, %v2602_v53  ;;  %v2631_v4 = vld [vmem:[#allocation3 + $0x10] ss:$2 sm:$0xff] }
 0x282   :  { %v1193_v10 = vadd.f32 %v1192_v5, %v1191_v3  ;;  %v1311_v11 = vadd.f32 %v1310_v6, %v1309_v54  ;;  %v2667_v49 = vshrl.u32 %v2666_v48, 7  ;;  %v2620_v54 = vld [vmem:[%s8301_s2 + $0x1] sm:$0x1]  ;;  %v2633_v5 = vld [vmem:[#allocation3 + $0x20] ss:$2 sm:$0xff] }
 0x283   :  { %v2487_v13 = vrot.slane %v2486_v7, 4  ;;  %v2606_v14 = vadd.f32 %v2605_v9, %v2604_v8  ;;  %v2663_v48 = vld [vmem:[#allocation3 + $0x110] ss:$2 sm:$0xff] }
 0x284   :  { %v1194_v15 = vrot.slane %v1193_v10, 4  ;;  %v1313_v16 = vadd.f32 %v1312_v12, %v1311_v11  ;;  %v7190_v51 = vsub.s32 0, %v2667_v49  ;;  %v2637_v11 = vld [vmem:[#allocation3 + $0x40] ss:$2 sm:$0xff]  ;;  %v2639_v12 = vld [vmem:[#allocation3 + $0x50] ss:$2 sm:$0xff] }
 0x285   :  { %v2488_v17 = vadd.f32 %v2487_v13, %v2486_v7  ;;  %v2607_v18 = vrot.slane %v2606_v14, 4 }
 0x286   :  { %v1195_v19 = vadd.f32 %v1194_v15, %v1193_v10  ;;  %v1314_v20 = vrot.slane %v1313_v16, 4  ;;  %8309 = vst [vmem:[#allocation14_spill] sm:$0xff] %v7190_v51  ;;  %v2980_v60 = vld [vmem:[#allocation3 + $0x24c] ss:$2 sm:$0x1f] }
 0x287   :  { %v2608_v21 = vadd.f32 %v2607_v18, %v2606_v14  ;;  %v2489_v24 = vrot.slane %v2488_v17, 2  ;;  %v3111_v61 = vld [vmem:[#allocation3 + $0x23e] ss:$2 sm:$0xff]  ;;  %v3037_v1 = vld [vmem:[#allocation3 + $0x24d] ss:$2 sm:$0x1f] }
 0x288   :  { %v1196_v22 = vrot.slane %v1195_v19, 2  ;;  %v1315_v23 = vadd.f32 %v1314_v20, %v1313_v16  ;;  %v3113_v3 = vld [vmem:[#allocation3 + $0x24e] ss:$2 sm:$0x1f] }
 0x289   :  { %v2609_v25 = vrot.slane %v2608_v21, 2  ;;  %v2490_v28 = vadd.f32 %v2489_v24, %v2488_v17  ;;  %v2635_v10 = vld [vmem:[#allocation3 + $0x30] ss:$2 sm:$0xff]  ;;  %v2641_v17 = vld [vmem:[#allocation3 + $0x60] ss:$2 sm:$0xff] }
 0x28a   :  { %v1197_v26 = vadd.f32 %v1196_v22, %v1195_v19  ;;  %v1316_v27 = vrot.slane %v1315_v23, 2  ;;  %v2643_v18 = vld [vmem:[#allocation3 + $0x70] ss:$2 sm:$0xff]  ;;  %v2645_v19 = vld [vmem:[#allocation3 + $0x80] ss:$2 sm:$0xff] }
 0x28b   :  { %v2610_v30 = vadd.f32 %v2609_v25, %v2608_v21  ;;  %v2491_v33 = vrot.slane %v2490_v28, 1  ;;  %v2647_v24 = vld [vmem:[#allocation3 + $0x90] ss:$2 sm:$0xff]  ;;  %v2649_v25 = vld [vmem:[#allocation3 + $0xa0] ss:$2 sm:$0xff] }
 0x28c   :  { %v1198_v31 = vrot.slane %v1197_v26, 1  ;;  %v1317_v32 = vadd.f32 %v1316_v27, %v1315_v23 }
 0x28d   :  { %v2611_v34 = vrot.slane %v2610_v30, 1  ;;  %v2492_v37 = vadd.f32 %v2491_v33, %v2490_v28  ;;  %v2692_v33 = vld [vmem:[#allocation3 + $0x11] ss:$2 sm:$0xff] }
 0x28e   :  { %v1199_v35 = vadd.f32 %v1198_v31, %v1197_v26  ;;  %v1318_v36 = vrot.slane %v1317_v32, 1  ;;  %v2651_v26 = vld [vmem:[#allocation3 + $0xb0] ss:$2 sm:$0xff] }
 0x28f   :  { %v2612_v38 = vadd.f32 %v2611_v34, %v2610_v30  ;;  %v2694_v34 = vld [vmem:[#allocation3 + $0x21] ss:$2 sm:$0xff] }
 0x290   :  { %v1319_v39 = vadd.f32 %v1318_v36, %v1317_v32  ;;  %v2493_v40 = vadd.f32 %v2492_v37, %v1199_v35  ;;  %v2690_v32 = vld [vmem:[#allocation3 + $0x1] ss:$2 sm:$0xff]  ;;  %v2653_v35 = vld [vmem:[#allocation3 + $0xc0] ss:$2 sm:$0xff]  ;;  %v2655_v36 = vld [vmem:[#allocation3 + $0xd0] ss:$2 sm:$0xff] }
 0x291   :  { %v2657_v37 = vld [vmem:[#allocation3 + $0xe0] ss:$2 sm:$0xff] }
 0x292   :  { %v2613_v41 = vadd.f32 %v2612_v38, %v1319_v39  ;;  %v2614_v42 = vmul.f32 0.0016666667, %v2493_v40 }
 0x294   :  { %v2615_v43 = vmul.f32 0.0016666667, %v2613_v41  ;;  %v2616_v44 = vmul.f32 %v2614_v42, %v2614_v42 }
 0x296   :  { %v2617_v45 = vsub.f32 %v2615_v43, %v2616_v44  ;;  %v2698_v43 = vld [vmem:[#allocation3 + $0x41] ss:$2 sm:$0xff]  ;;  %v2700_v44 = vld [vmem:[#allocation3 + $0x51] ss:$2 sm:$0xff] }
 0x298   :  { %v2618_v46 = vmax.f32 %v2617_v45, 0.0  ;;  %v2702_v45 = vld [vmem:[#allocation3 + $0x61] ss:$2 sm:$0xff] }
 0x29a   :  { %v2621_v47 = vadd.f32 1e-05, %v2618_v46  ;;  %v2659_v46 = vld [vmem:[#allocation3 + $0xf0] ss:$2 sm:$0xff] }
 0x29c   :  { %5755 = vrsqrt.f32 %v2621_v47  ;;  %v2661_v47 = vld [vmem:[#allocation3 + $0x100] ss:$2 sm:$0xff] }
 0x2a6   :  { %v5756_v52 = vpop.eup %5755 }
 0x2a7   :  { %v2623_v53 = vmul.f32 %v5756_v52, %v2619_v50 }
 0x2a9   :  { %v2624_v58 = vmul.f32 %v2623_v53, %v2614_v42  ;;  %v7196_v59 = vrot.slane %v2623_v53, %v7190_v51  ;;  %v2696_v42 = vld [vmem:[#allocation3 + $0x31] ss:$2 sm:$0xff] }
 0x2ab   :  { %v2625_v62 = vsub.f32 %v2620_v54, %v2624_v58  ;;  %v2998_v63 = vmul.f32 %v2978_v56, %v7196_v59  ;;  %v2999_v0 = vmul.f32 %v2980_v60, %v7196_v59  ;;  %v3055_v2 = vmul.f32 %v3035_v57, %v7196_v59  ;;  %v2704_v54 = vld [vmem:[#allocation3 + $0x71] ss:$2 sm:$0xff] }
 0x2ac   :  { %v3056_v6 = vmul.f32 %v3037_v1, %v7196_v59  ;;  %v3131_v7 = vmul.f32 %v3111_v61, %v7196_v59  ;;  %v3132_v8 = vmul.f32 %v3113_v3, %v7196_v59  ;;  %v7205_v9 = vmul.f32 %v7196_v59, %v2629_v55  ;;  %v2665_v55 = vld [vmem:[#allocation3 + $0x120] ss:$2 sm:$0x1f]  ;;  %v2706_v61 = vld [vmem:[#allocation3 + $0x81] ss:$2 sm:$0xff] }
 0x2ad   :  { %v7208_v13 = vrot.slane %v2625_v62, %v7190_v51  ;;  %v3074_v14 = vmax.f32 %v2998_v63, %v3055_v2  ;;  %v7211_v15 = vmul.f32 %v7196_v59, %v2631_v4  ;;  %v7214_v16 = vmul.f32 %v7196_v59, %v2633_v5  ;;  %v2708_v62 = vld [vmem:[#allocation3 + $0x91] ss:$2 sm:$0xff]  ;;  %v2710_v63 = vld [vmem:[#allocation3 + $0xa1] ss:$2 sm:$0xff]  ;;  %v2948_v51 = vld [vmem:[#allocation3 + $0x14c] ss:$2 sm:$0xff] }
 0x2ae   :  { %v3075_v20 = vmax.f32 %v2999_v0, %v3056_v6  ;;  %v7217_v21 = vmul.f32 %v7196_v59, %v2635_v10  ;;  %v7220_v22 = vmul.f32 %v7196_v59, %v2637_v11  ;;  %v7223_v23 = vmul.f32 %v7196_v59, %v2639_v12  ;;  %v2712_v4 = vld [vmem:[#allocation3 + $0xb1] ss:$2 sm:$0xff]  ;;  %v2714_v5 = vld [vmem:[#allocation3 + $0xc1] ss:$2 sm:$0xff]  ;;  %v2766_v12 = vld [vmem:[#allocation3 + $0x2] ss:$2 sm:$0xff] }
 0x2af   :  { %v3150_v27 = vmax.f32 %v3074_v14, %v3131_v7  ;;  %v7226_v28 = vmul.f32 %v7196_v59, %v2641_v17  ;;  %v7229_v30 = vmul.f32 %v7196_v59, %v2643_v18  ;;  %v7232_v31 = vmul.f32 %v7196_v59, %v2645_v19  ;;  %v2716_v6 = vld [vmem:[#allocation3 + $0xd1] ss:$2 sm:$0xff]  ;;  %v2768_v14 = vld [vmem:[#allocation3 + $0x12] ss:$2 sm:$0xff]  ;;  %v2770_v17 = vld [vmem:[#allocation3 + $0x22] ss:$2 sm:$0xff] }
 0x2b0   :  { %v3151_v38 = vmax.f32 %v3075_v20, %v3132_v8  ;;  %v7235_v39 = vmul.f32 %v7196_v59, %v2647_v24  ;;  %v7238_v40 = vmul.f32 %v7196_v59, %v2649_v25  ;;  %v7241_v41 = vmul.f32 %v7196_v59, %v2651_v26  ;;  %v2772_v18 = vld [vmem:[#allocation3 + $0x32] ss:$2 sm:$0xff]  ;;  %v2718_v19 = vld [vmem:[#allocation3 + $0xe1] ss:$2 sm:$0xff]  ;;  %v2720_v20 = vld [vmem:[#allocation3 + $0xf1] ss:$2 sm:$0xff] }
 0x2b1   :  { %v7244_v49 = vadd.f32 %v3150_v27, %v7208_v13  ;;  %v7247_v50 = vmul.f32 %v7196_v59, %v2653_v35  ;;  %v7250_v52 = vmul.f32 %v7196_v59, %v2655_v36  ;;  %v7253_v53 = vmul.f32 %v7196_v59, %v2657_v37  ;;  %v2722_v24 = vld [vmem:[#allocation3 + $0x101] ss:$2 sm:$0xff] }
 0x2b2   :  { %v7256_v56 = vadd.f32 %v3151_v38, %v7208_v13  ;;  %v7259_v57 = vmul.f32 %v7196_v59, %v2659_v46  ;;  %v7262_v58 = vmul.f32 %v7196_v59, %v2661_v47  ;;  %v7265_v60 = vmul.f32 %v7196_v59, %v2663_v48  ;;  %v2726_v35 = vld [vmem:[#allocation3 + $0x121] ss:$2 sm:$0x1f] }
 0x2b3   :  { %8310 = vst [vmem:[#allocation15_spill] sm:$0xff] %v7244_v49  ;;  %v7268_v0 = vmul.f32 %v7196_v59, %v2665_v55  ;;  %v7271_v1 = vmul.f32 %v2690_v32, %v7196_v59  ;;  %v7274_v2 = vmul.f32 %v2692_v33, %v7196_v59  ;;  %v7277_v3 = vmul.f32 %v2694_v34, %v7196_v59  ;;  %v2774_v33 = vld [vmem:[#allocation3 + $0x42] ss:$2 sm:$0xff]  ;;  %v2724_v34 = vld [vmem:[#allocation3 + $0x111] ss:$2 sm:$0xff] }
 0x2b4   :  { %8311 = vst [vmem:[#allocation16_spill] sm:$0xff] %v7256_v56  ;;  %v7280_v7 = vmul.f32 %v2696_v42, %v7196_v59  ;;  %v7283_v8 = vmul.f32 %v2698_v43, %v7196_v59  ;;  %v7286_v10 = vmul.f32 %v2700_v44, %v7196_v59  ;;  %v7289_v11 = vmul.f32 %v2702_v45, %v7196_v59  ;;  %v2776_v43 = vld [vmem:[#allocation3 + $0x52] ss:$2 sm:$0xff]  ;;  %v2778_v44 = vld [vmem:[#allocation3 + $0x62] ss:$2 sm:$0xff] }
 0x2b5   :  { %8312 = vst [vmem:[#allocation17_spill] sm:$0xff] %v7268_v0  ;;  %v7292_v25 = vmul.f32 %v2704_v54, %v7196_v59  ;;  %v7295_v26 = vmul.f32 %v2706_v61, %v7196_v59  ;;  %v7298_v27 = vmul.f32 %v2708_v62, %v7196_v59  ;;  %v7301_v32 = vmul.f32 %v2710_v63, %v7196_v59  ;;  %v2780_v45 = vld [vmem:[#allocation3 + $0x72] ss:$2 sm:$0xff]  ;;  %v2782_v55 = vld [vmem:[#allocation3 + $0x82] ss:$2 sm:$0xff] }
 0x2b6   :  { %v7304_v36 = vmul.f32 %v2712_v4, %v7196_v59  ;;  %v7307_v37 = vmul.f32 %v2714_v5, %v7196_v59  ;;  %v7310_v38 = vmul.f32 %v2716_v6, %v7196_v59  ;;  %v7313_v42 = vmul.f32 %v2718_v19, %v7196_v59  ;;  %v2784_v61 = vld [vmem:[#allocation3 + $0x92] ss:$2 sm:$0xff]  ;;  %v2786_v62 = vld [vmem:[#allocation3 + $0xa2] ss:$2 sm:$0xff] }
 0x2b7   :  { %v7316_v46 = vmul.f32 %v2720_v20, %v7196_v59  ;;  %v7319_v47 = vmul.f32 %v2722_v24, %v7196_v59  ;;  %v7322_v48 = vmul.f32 %v2724_v34, %v7196_v59  ;;  %v7325_v54 = vmul.f32 %v2726_v35, %v7196_v59  ;;  %v2944_v19 = vld [vmem:[#allocation3 + $0x12c] ss:$2 sm:$0xff] }
 0x2b8   :  { %v7328_v63 = vmul.f32 %v2766_v12, %v7196_v59  ;;  %v7331_v4 = vmul.f32 %v2768_v14, %v7196_v59  ;;  %v7334_v5 = vmul.f32 %v2770_v17, %v7196_v59  ;;  %v7337_v6 = vmul.f32 %v2772_v18, %v7196_v59  ;;  %v2788_v20 = vld [vmem:[#allocation3 + $0xb2] ss:$2 sm:$0xff]  ;;  %v2790_v24 = vld [vmem:[#allocation3 + $0xc2] ss:$2 sm:$0xff] }
 0x2b9   :  { %8313 = vst [vmem:[#allocation18_spill] sm:$0xff] %v7325_v54  ;;  %v2792_v34 = vld [vmem:[#allocation3 + $0xd2] ss:$2 sm:$0xff]  ;;  %v7340_v35 = vmul.f32 %v2774_v33, %v7196_v59  ;;  %v7343_v29 = vmul.f32 %v2776_v43, %v7196_v59  ;;  %v7346_v12 = vmul.f32 %v2778_v44, %v7196_v59  ;;  %v7349_v14 = vmul.f32 %v2780_v45, %v7196_v59  ;;  %v2794_v49 = vld [vmem:[#allocation3 + $0xe2] ss:$2 sm:$0xff] }
 0x2ba   :  { %8314 = vst [vmem:[#allocation19_spill] sm:$0xff] %v7328_v63  ;;  %8315 = vst [vmem:[#allocation20_spill] sm:$0xff] %v7331_v4  ;;  %v2946_v17 = vld [vmem:[#allocation3 + $0x13c] ss:$2 sm:$0xff]  ;;  %v2952_v56 = vld [vmem:[#allocation3 + $0x16c] ss:$2 sm:$0xff]  ;;  %v7352_v4 = vmul.f32 %v2782_v55, %v7196_v59  ;;  %v7355_v33 = vmul.f32 %v2784_v61, %v7196_v59  ;;  %v7358_v43 = vmul.f32 %v2786_v62, %v7196_v59 }
 0x2bb   :  { %8316 = vst [vmem:[#allocation21_spill] sm:$0xff] %v7334_v5  ;;  %8317 = vst [vmem:[#allocation22_spill] sm:$0xff] %v7337_v6  ;;  %v2950_v18 = vld [vmem:[#allocation3 + $0x15c] ss:$2 sm:$0xff]  ;;  %v7361_v44 = vmul.f32 %v2788_v20, %v7196_v59  ;;  %v7370_v55 = vmul.f32 %v2794_v49, %v7196_v59  ;;  %v2956_v62 = vld [vmem:[#allocation3 + $0x18c] ss:$2 sm:$0xff] }
 0x2bc   :  { %8318 = vst [vmem:[#allocation23_spill] sm:$0xff] %v7340_v35  ;;  %8319 = vst [vmem:[#allocation24_spill] sm:$0xff] %v7343_v29  ;;  %v2796_v6 = vld [vmem:[#allocation3 + $0xf2] ss:$2 sm:$0xff]  ;;  %v2798_v5 = vld [vmem:[#allocation3 + $0x102] ss:$2 sm:$0xff]  ;;  %v7367_v29 = vmul.f32 %v2792_v34, %v7196_v59  ;;  %v7385_v34 = vmul.f32 %v2944_v19, %v7196_v59 }
 0x2bd   :  { %8320 = vst [vmem:[#allocation25_spill] sm:$0xff] %v7346_v12  ;;  %8321 = vst [vmem:[#allocation26_spill] sm:$0xff] %v7349_v14  ;;  %v2800_v45 = vld [vmem:[#allocation3 + $0x112] ss:$2 sm:$0xff]  ;;  %v7364_v12 = vmul.f32 %v2790_v24, %v7196_v59  ;;  %v7373_v61 = vmul.f32 %v2796_v6, %v7196_v59  ;;  %v7376_v20 = vmul.f32 %v2798_v5, %v7196_v59  ;;  %v3007_v19 = vld [vmem:[#allocation3 + $0x15d] ss:$2 sm:$0xff] }
 0x2be   :  { %8322 = vst [vmem:[#allocation27_spill] sm:$0xff] %v7352_v4  ;;  %8323 = vst [vmem:[#allocation28_spill] sm:$0xff] %v7355_v33  ;;  %v2802_v14 = vld [vmem:[#allocation3 + $0x122] ss:$2 sm:$0x1f]  ;;  %v7388_v6 = vmul.f32 %v2946_v17, %v7196_v59  ;;  %v7394_v5 = vmul.f32 %v2950_v18, %v7196_v59  ;;  %v7403_v17 = vmul.f32 %v2956_v62, %v7196_v59 }
 0x2bf   :  { %8324 = vst [vmem:[#allocation29_spill] sm:$0xff] %v7358_v43  ;;  %8325 = vst [vmem:[#allocation30_spill] sm:$0xff] %v7361_v44  ;;  %v2954_v33 = vld [vmem:[#allocation3 + $0x17c] ss:$2 sm:$0xff]  ;;  %v7379_v44 = vmul.f32 %v2800_v45, %v7196_v59  ;;  %v7382_v24 = vmul.f32 %v2802_v14, %v7196_v59  ;;  %v2960_v49 = vld [vmem:[#allocation3 + $0x1ac] ss:$2 sm:$0xff]  ;;  %v7397_v45 = vmul.f32 %v2952_v56, %v7196_v59 }
 0x2c0   :  { %8326 = vst [vmem:[#allocation31_spill] sm:$0xff] %v7364_v12  ;;  %8327 = vst [vmem:[#allocation32_spill] sm:$0xff] %v7367_v29  ;;  %v2958_v43 = vld [vmem:[#allocation3 + $0x19c] ss:$2 sm:$0xff]  ;;  %v2964_v29 = vld [vmem:[#allocation3 + $0x1cc] ss:$2 sm:$0xff]  ;;  %v7400_v35 = vmul.f32 %v2954_v33, %v7196_v59  ;;  %v7409_v18 = vmul.f32 %v2960_v49, %v7196_v59 }
 0x2c1   :  { %8328 = vst [vmem:[#allocation33_spill] sm:$0xff] %v7370_v55  ;;  %8329 = vst [vmem:[#allocation34_spill] sm:$0xff] %v7373_v61  ;;  %v2962_v55 = vld [vmem:[#allocation3 + $0x1bc] ss:$2 sm:$0xff]  ;;  %v7391_v61 = vmul.f32 %v2948_v51, %v7196_v59  ;;  %v3001_v14 = vld [vmem:[#allocation3 + $0x12d] ss:$2 sm:$0xff]  ;;  %v7406_v51 = vmul.f32 %v2958_v43, %v7196_v59 }
 0x2c2   :  { %8330 = vst [vmem:[#allocation35_spill] sm:$0xff] %v7376_v20  ;;  %8331 = vst [vmem:[#allocation36_spill] sm:$0xff] %v7379_v44  ;;  %v3005_v44 = vld [vmem:[#allocation3 + $0x14d] ss:$2 sm:$0xff]  ;;  %v2966_v20 = vld [vmem:[#allocation3 + $0x1dc] ss:$2 sm:$0xff] }
 0x2c3   :  { %8332 = vst [vmem:[#allocation37_spill] sm:$0xff] %v7382_v24  ;;  %8333 = vst [vmem:[#allocation38_spill] sm:$0xff] %v7391_v61  ;;  %v3003_v24 = vld [vmem:[#allocation3 + $0x13d] ss:$2 sm:$0xff]  ;;  %v2968_v12 = vld [vmem:[#allocation3 + $0x1ec] ss:$2 sm:$0xff]  ;;  %v7415_v61 = vmul.f32 %v2964_v29, %v7196_v59  ;;  %v7418_v33 = vmul.f32 %v2966_v20, %v7196_v59 }
 0x2c4   :  { %8334 = vst [vmem:[#allocation39_spill] sm:$0xff] %v7394_v5  ;;  %8335 = vst [vmem:[#allocation40_spill] sm:$0xff] %v7397_v45  ;;  %v2970_v4 = vld [vmem:[#allocation3 + $0x1fc] ss:$2 sm:$0xff]  ;;  %v2972_v56 = vld [vmem:[#allocation3 + $0x20c] ss:$2 sm:$0xff]  ;;  %v7412_v5 = vmul.f32 %v2962_v55, %v7196_v59  ;;  %v7421_v62 = vmul.f32 %v2968_v12, %v7196_v59  ;;  %v7436_v12 = vmul.f32 %v3001_v14, %v7196_v59 }
 0x2c5   :  { %8336 = vst [vmem:[#allocation41_spill] sm:$0xff] %v7400_v35  ;;  %8337 = vst [vmem:[#allocation42_spill] sm:$0xff] %v7403_v17  ;;  %v2974_v63 = vld [vmem:[#allocation3 + $0x21c] ss:$2 sm:$0xff]  ;;  %v2976_v45 = vld [vmem:[#allocation3 + $0x22c] ss:$2 sm:$0xff]  ;;  %v7424_v49 = vmul.f32 %v2970_v4, %v7196_v59  ;;  %v7442_v4 = vmul.f32 %v3005_v44, %v7196_v59 }
 0x2c6   :  { %8338 = vst [vmem:[#allocation43_spill] sm:$0xff] %v7406_v51  ;;  %8339 = vst [vmem:[#allocation44_spill] sm:$0xff] %v7409_v18  ;;  %v3009_v43 = vld [vmem:[#allocation3 + $0x16d] ss:$2 sm:$0xff]  ;;  %v3011_v51 = vld [vmem:[#allocation3 + $0x17d] ss:$2 sm:$0xff]  ;;  %v7427_v18 = vmul.f32 %v2972_v56, %v7196_v59  ;;  %v7430_v55 = vmul.f32 %v2974_v63, %v7196_v59  ;;  %v7433_v29 = vmul.f32 %v2976_v45, %v7196_v59 }
 0x2c7   :  { %8340 = vst [vmem:[#allocation45_spill] sm:$0xff] %v7412_v5  ;;  %8341 = vst [vmem:[#allocation46_spill] sm:$0xff] %v7415_v61  ;;  %v3013_v17 = vld [vmem:[#allocation3 + $0x18d] ss:$2 sm:$0xff]  ;;  %v3015_v20 = vld [vmem:[#allocation3 + $0x19d] ss:$2 sm:$0xff]  ;;  %v7445_v56 = vmul.f32 %v3007_v19, %v7196_v59  ;;  %v7448_v5 = vmul.f32 %v3009_v43, %v7196_v59  ;;  %v7451_v14 = vmul.f32 %v3011_v51, %v7196_v59 }
 0x2c8   :  { %8342 = vst [vmem:[#allocation47_spill] sm:$0xff] %v7418_v33  ;;  %8343 = vst [vmem:[#allocation48_spill] sm:$0xff] %v7421_v62  ;;  %v3017_v33 = vld [vmem:[#allocation3 + $0x1ad] ss:$2 sm:$0xff]  ;;  %v3019_v61 = vld [vmem:[#allocation3 + $0x1bd] ss:$2 sm:$0xff]  ;;  %v7439_v62 = vmul.f32 %v3003_v24, %v7196_v59  ;;  %v7454_v24 = vmul.f32 %v3013_v17, %v7196_v59  ;;  %v7457_v44 = vmul.f32 %v3015_v20, %v7196_v59 }
 0x2c9   :  { %8344 = vst [vmem:[#allocation49_spill] sm:$0xff] %v7424_v49  ;;  %8345 = vst [vmem:[#allocation50_spill] sm:$0xff] %v7427_v18  ;;  %v3077_v63 = vld [vmem:[#allocation3 + $0x12e] ss:$2 sm:$0xff]  ;;  %v3021_v45 = vld [vmem:[#allocation3 + $0x1cd] ss:$2 sm:$0xff]  ;;  %v7460_v0 = vmul.f32 %v3017_v33, %v7196_v59  ;;  %v7463_v54 = vmul.f32 %v3019_v61, %v7196_v59 }
 0x2ca   :  { %8346 = vst [vmem:[#allocation51_spill] sm:$0xff] %v7430_v55  ;;  %8347 = vst [vmem:[#allocation52_spill] sm:$0xff] %v7433_v29  ;;  %v3079_v55 = vld [vmem:[#allocation3 + $0x13e] ss:$2 sm:$0xff]  ;;  %v3081_v18 = vld [vmem:[#allocation3 + $0x14e] ss:$2 sm:$0xff]  ;;  %v7466_v43 = vmul.f32 %v3021_v45, %v7196_v59 }
 0x2cb   :  { %8348 = vst [vmem:[#allocation53_spill] sm:$0xff] %v7442_v4  ;;  %8349 = vst [vmem:[#allocation54_spill] sm:$0xff] %v7445_v56  ;;  %v3023_v29 = vld [vmem:[#allocation3 + $0x1dd] ss:$2 sm:$0xff]  ;;  %v3025_v49 = vld [vmem:[#allocation3 + $0x1ed] ss:$2 sm:$0xff] }
 0x2cc   :  { %8350 = vst [vmem:[#allocation55_spill] sm:$0xff] %v7451_v14  ;;  %8351 = vst [vmem:[#allocation56_spill] sm:$0xff] %v7454_v24  ;;  %v3083_v19 = vld [vmem:[#allocation3 + $0x15e] ss:$2 sm:$0xff]  ;;  %v3027_v35 = vld [vmem:[#allocation3 + $0x1fd] ss:$2 sm:$0xff]  ;;  %v7469_v51 = vmul.f32 %v3023_v29, %v7196_v59 }
 0x2cd   :  { %8352 = vst [vmem:[#allocation57_spill] sm:$0xff] %v7457_v44  ;;  %v3029_v56 = vld [vmem:[#allocation3 + $0x20d] ss:$2 sm:$0xff]  ;;  %v3031_v4 = vld [vmem:[#allocation3 + $0x21d] ss:$2 sm:$0xff]  ;;  %8353 = vst [vmem:[#allocation58_spill] sm:$0xff] %v7463_v54  ;;  %v7472_v44 = vmul.f32 %v3025_v49, %v7196_v59  ;;  %v7475_v14 = vmul.f32 %v3027_v35, %v7196_v59  ;;  %v3115_v49 = vmul.f32 %v3079_v55, %v7196_v59 }
 0x2ce   :  { %8354 = vst [vmem:[#allocation59_spill] sm:$0xff] %v7466_v43  ;;  %8355 = vst [vmem:[#allocation60_spill] sm:$0xff] %v7469_v51  ;;  %v3085_v17 = vld [vmem:[#allocation3 + $0x16e] ss:$2 sm:$0xff]  ;;  %v3087_v24 = vld [vmem:[#allocation3 + $0x17e] ss:$2 sm:$0xff]  ;;  %v7478_v33 = vmul.f32 %v3029_v56, %v7196_v59  ;;  %v7481_v61 = vmul.f32 %v3031_v4, %v7196_v59  ;;  %v3114_v51 = vmul.f32 %v3077_v63, %v7196_v59 }
 0x2cf   :  { %v3033_v20 = vld [vmem:[#allocation3 + $0x22d] ss:$2 sm:$0xff]  ;;  %8356 = vst [vmem:[#allocation61_spill] sm:$0xff] %v7472_v44  ;;  %8357 = vst [vmem:[#allocation62_spill] sm:$0xff] %v7475_v14  ;;  %v3089_v45 = vld [vmem:[#allocation3 + $0x18e] ss:$2 sm:$0xff]  ;;  %v7489_v44 = vmul.f32 %v3081_v18, %v7196_v59  ;;  %v7495_v4 = vmul.f32 %v3085_v17, %v7196_v59 }
 0x2d0   :  { %8358 = vst [vmem:[#allocation63_spill] sm:$0xff] %v7478_v33  ;;  %8359 = vst [vmem:[#allocation64_spill] sm:$0xff] %v7481_v61  ;;  %v3091_v43 = vld [vmem:[#allocation3 + $0x19e] ss:$2 sm:$0xff]  ;;  %v3093_v54 = vld [vmem:[#allocation3 + $0x1ae] ss:$2 sm:$0xff]  ;;  %v7484_v29 = vmul.f32 %v3033_v20, %v7196_v59  ;;  %v7492_v33 = vmul.f32 %v3083_v19, %v7196_v59  ;;  %v7498_v61 = vmul.f32 %v3087_v24, %v7196_v59 }
 0x2d1   :  { %8361 = vst [vmem:[#allocation66_spill] sm:$0xff] %v7489_v44  ;;  %v3095_v35 = vld [vmem:[#allocation3 + $0x1be] ss:$2 sm:$0xff]  ;;  %v3097_v14 = vld [vmem:[#allocation3 + $0x1ce] ss:$2 sm:$0xff]  ;;  %v7501_v20 = vmul.f32 %v3089_v45, %v7196_v59  ;;  %v7504_v18 = vmul.f32 %v3091_v43, %v7196_v59  ;;  %v7507_v44 = vmul.f32 %v3093_v54, %v7196_v59 }
 0x2d2   :  { %8360 = vst [vmem:[#allocation65_spill] sm:$0xff] %v7484_v29  ;;  %v3099_v56 = vld [vmem:[#allocation3 + $0x1de] ss:$2 sm:$0xff]  ;;  %8362 = vst [vmem:[#allocation67_spill] sm:$0xff] %v7498_v61  ;;  %v3101_v63 = vld [vmem:[#allocation3 + $0x1ee] ss:$2 sm:$0xff]  ;;  %v7510_v19 = vmul.f32 %v3095_v35, %v7196_v59  ;;  %v7513_v17 = vmul.f32 %v3097_v14, %v7196_v59 }
 0x2d3   :  { %8363 = vst [vmem:[#allocation68_spill] sm:$0xff] %v7501_v20  ;;  %v3103_v55 = vld [vmem:[#allocation3 + $0x1fe] ss:$2 sm:$0xff]  ;;  %v3105_v29 = vld [vmem:[#allocation3 + $0x20e] ss:$2 sm:$0xff]  ;;  %v7516_v45 = vmul.f32 %v3099_v56, %v7196_v59  ;;  %v7519_v20 = vmul.f32 %v3101_v63, %v7196_v59  ;;  %v3058_v56 = vmax.f32 %v7388_v6, %v7439_v62  ;;  %v2746_v63 = vmax.f32 %v7205_v9, %v7271_v1 }
 0x2d4   :  { %8364 = vst [vmem:[#allocation69_spill] sm:$0xff] %v7513_v17  ;;  %v3107_v24 = vld [vmem:[#allocation3 + $0x21e] ss:$2 sm:$0xff]  ;;  %v3109_v61 = vld [vmem:[#allocation3 + $0x22e] ss:$2 sm:$0xff]  ;;  %v7522_v43 = vmul.f32 %v3103_v55, %v7196_v59  ;;  %v7525_v54 = vmul.f32 %v3105_v29, %v7196_v59  ;;  %v3057_v17 = vmax.f32 %v7385_v34, %v7436_v12  ;;  %v2747_v55 = vmax.f32 %v7211_v15, %v7274_v2 }
 0x2d5   :  { %v7528_v35 = vmul.f32 %v3107_v24, %v7196_v59  ;;  %v7531_v14 = vmul.f32 %v3109_v61, %v7196_v59  ;;  %v2748_v29 = vmax.f32 %v7214_v16, %v7277_v3  ;;  %v2749_v24 = vmax.f32 %v7217_v21, %v7280_v7  ;;  %v8379_v62 = vld [vmem:[#allocation43_spill] sm:$0xff] }
 0x2d6   :  { %v3133_v59 = vmax.f32 %v3057_v17, %v3114_v51  ;;  %v3134_v61 = vmax.f32 %v3058_v56, %v3115_v49  ;;  %v2750_v34 = vmax.f32 %v7220_v22, %v7283_v8  ;;  %v2751_v6 = vmax.f32 %v7223_v23, %v7286_v10  ;;  %v8368_v8 = vld [vmem:[#allocation17_spill] sm:$0xff]  ;;  %v8380_v51 = vld [vmem:[#allocation44_spill] sm:$0xff]  ;;  %v8381_v17 = vld [vmem:[#allocation58_spill] sm:$0xff] }
 0x2d7   :  { %8365 = vst [vmem:[#allocation70_spill] sm:$0xff] %v7528_v35  ;;  %8366 = vst [vmem:[#allocation71_spill] sm:$0xff] %v7531_v14  ;;  %v2752_v9 = vmax.f32 %v7226_v28, %v7289_v11  ;;  %v2753_v15 = vmax.f32 %v7229_v30, %v7292_v25  ;;  %v2754_v16 = vmax.f32 %v7232_v31, %v7295_v26  ;;  %v8370_v11 = vld [vmem:[#allocation38_spill] sm:$0xff]  ;;  %v8382_v56 = vld [vmem:[#allocation45_spill] sm:$0xff] }
 0x2d8   :  { %v2755_v21 = vmax.f32 %v7235_v39, %v7298_v27  ;;  %v3152_v1 = vadd.f32 %v3133_v59, %v7208_v13  ;;  %v3153_v2 = vadd.f32 %v3134_v61, %v7208_v13  ;;  %v2756_v22 = vmax.f32 %v7238_v40, %v7301_v32  ;;  %v8371_v27 = vld [vmem:[#allocation54_spill] sm:$0xff]  ;;  %v8403_v14 = vld [vmem:[#allocation25_spill] sm:$0xff] }
 0x2d9   :  { %v2757_v23 = vmax.f32 %v7241_v41, %v7304_v36  ;;  %v2758_v28 = vmax.f32 %v7247_v50, %v7307_v37  ;;  %v2759_v30 = vmax.f32 %v7250_v52, %v7310_v38  ;;  %v2760_v31 = vmax.f32 %v7253_v53, %v7313_v42  ;;  %v8367_v50 = vld [vmem:[#allocation18_spill] sm:$0xff]  ;;  %v8369_v52 = vld [vmem:[#allocation53_spill] sm:$0xff]  ;;  %v8373_v36 = vld [vmem:[#allocation40_spill] sm:$0xff] }
 0x2da   :  { %v2761_v39 = vmax.f32 %v7259_v57, %v7316_v46  ;;  %vm3171_vm13 = vcmp.ge.f32.partialorder %v3152_v1, 0.0  ;;  %vm3172_vm14 = vcmp.ge.f32.partialorder %v3153_v2, 0.0  ;;  %v3190_v3 = vmul.f32 0.2, %v3152_v1  ;;  %v8372_v57 = vld [vmem:[#allocation39_spill] sm:$0xff]  ;;  %v8376_v42 = vld [vmem:[#allocation56_spill] sm:$0xff] }
 0x2db   :  { %v3191_v7 = vmul.f32 0.2, %v3153_v2  ;;  %v2762_v40 = vmax.f32 %v7262_v58, %v7319_v47  ;;  %v2763_v41 = vmax.f32 %v7265_v60, %v7322_v48  ;;  %v2764_v10 = vmax.f32 %v8368_v8, %v8367_v50  ;;  %v8374_v58 = vld [vmem:[#allocation55_spill] sm:$0xff]  ;;  %v8375_v60 = vld [vmem:[#allocation41_spill] sm:$0xff]  ;;  %v8377_v46 = vld [vmem:[#allocation42_spill] sm:$0xff] }
 0x2dc   :  { %v3059_v25 = vmax.f32 %v8370_v11, %v8369_v52  ;;  %v3209_v53 = vsel %vm3171_vm13, %v3152_v1, %v3190_v3  ;;  %v3060_v32 = vmax.f32 %v8372_v57, %v8371_v27  ;;  %v3061_v37 = vmax.f32 %v8373_v36, %v7448_v5  ;;  %v8378_v48 = vld [vmem:[#allocation57_spill] sm:$0xff]  ;;  %v8383_v5 = vld [vmem:[#allocation59_spill] sm:$0xff]  ;;  %v8384_v61 = vld [vmem:[#allocation46_spill] sm:$0xff] }
 0x2dd   :  { %v3210_v26 = vsel %vm3172_vm14, %v3153_v2, %v3191_v7  ;;  %3228 = vst.msk [vmem:[#allocation4 + $0x98] sm:$0xff] %vm1079_vm8, %v3209_v53  ;;  %v3062_v38 = vmax.f32 %v8375_v60, %v8374_v58  ;;  %v3063_v47 = vmax.f32 %v8377_v46, %v8376_v42  ;;  %v3064_v12 = vmax.f32 %v8379_v62, %v8378_v48  ;;  %v8385_v2 = vld [vmem:[#allocation60_spill] sm:$0xff]  ;;  %v8386_v3 = vld [vmem:[#allocation47_spill] sm:$0xff]  ;;  %v8387_v50 = vld [vmem:[#allocation61_spill] sm:$0xff] }
 0x2de   :  { %3229 = vst.msk [vmem:[#allocation4 + $0xa0] sm:$0xff] %vm1079_vm8, %v3210_v26  ;;  %v3065_v49 = vmax.f32 %v8380_v51, %v7460_v0  ;;  %v3066_v59 = vmax.f32 %v8382_v56, %v8381_v17  ;;  %v3067_v1 = vmax.f32 %v8384_v61, %v8383_v5  ;;  %v3068_v7 = vmax.f32 %v8386_v3, %v8385_v2  ;;  %v8388_v8 = vld [vmem:[#allocation48_spill] sm:$0xff]  ;;  %v8389_v11 = vld [vmem:[#allocation62_spill] sm:$0xff]  ;;  %v8390_v53 = vld [vmem:[#allocation49_spill] sm:$0xff] }
 0x2df   :  { %v3069_v52 = vmax.f32 %v8388_v8, %v8387_v50  ;;  %v3070_v26 = vmax.f32 %v8390_v53, %v8389_v11  ;;  %v8391_v27 = vld [vmem:[#allocation63_spill] sm:$0xff]  ;;  %v8392_v57 = vld [vmem:[#allocation50_spill] sm:$0xff]  ;;  %v8393_v58 = vld [vmem:[#allocation64_spill] sm:$0xff] }
 0x2e0   :  { %v3071_v36 = vmax.f32 %v8392_v57, %v8391_v27  ;;  %v8394_v0 = vld [vmem:[#allocation51_spill] sm:$0xff]  ;;  %v8395_v42 = vld [vmem:[#allocation65_spill] sm:$0xff]  ;;  %v8396_v46 = vld [vmem:[#allocation52_spill] sm:$0xff]  ;;  %v2828_v27 = vmax.f32 %v2752_v9, %v8403_v14 }
 0x2e1   :  { %v3072_v60 = vmax.f32 %v8394_v0, %v8393_v58  ;;  %v3073_v48 = vmax.f32 %v8396_v46, %v8395_v42  ;;  %v8397_v62 = vld [vmem:[#allocation19_spill] sm:$0xff]  ;;  %v8398_v17 = vld [vmem:[#allocation20_spill] sm:$0xff]  ;;  %v8399_v5 = vld [vmem:[#allocation21_spill] sm:$0xff] }
 0x2e2   :  { %v2822_v51 = vmax.f32 %v2746_v63, %v8397_v62  ;;  %v2823_v56 = vmax.f32 %v2747_v55, %v8398_v17  ;;  %v2824_v61 = vmax.f32 %v2748_v29, %v8399_v5  ;;  %v8400_v2 = vld [vmem:[#allocation22_spill] sm:$0xff]  ;;  %v8401_v50 = vld [vmem:[#allocation23_spill] sm:$0xff]  ;;  %v8402_v11 = vld [vmem:[#allocation24_spill] sm:$0xff] }
 0x2e3   :  { %v2825_v3 = vmax.f32 %v2749_v24, %v8400_v2  ;;  %v2826_v8 = vmax.f32 %v2750_v34, %v8401_v50  ;;  %v2827_v53 = vmax.f32 %v2751_v6, %v8402_v11  ;;  %v8404_v57 = vld [vmem:[#allocation26_spill] sm:$0xff]  ;;  %v8405_v42 = vld [vmem:[#allocation27_spill] sm:$0xff]  ;;  %v8406_v46 = vld [vmem:[#allocation28_spill] sm:$0xff] }
 0x2e4   :  { %v2829_v35 = vmax.f32 %v2753_v15, %v8404_v57  ;;  %v2845_v58 = vadd.f32 %v7208_v13, %v2822_v51  ;;  %v2846_v0 = vadd.f32 %v7208_v13, %v2823_v56  ;;  %v2830_v63 = vmax.f32 %v2754_v16, %v8405_v42  ;;  %v8407_v62 = vld [vmem:[#allocation29_spill] sm:$0xff]  ;;  %v8408_v17 = vld [vmem:[#allocation30_spill] sm:$0xff]  ;;  %v8409_v5 = vld [vmem:[#allocation31_spill] sm:$0xff] }
 0x2e5   :  { %v2831_v55 = vmax.f32 %v2755_v21, %v8406_v46  ;;  %v2832_v29 = vmax.f32 %v2756_v22, %v8407_v62  ;;  %v2833_v24 = vmax.f32 %v2757_v23, %v8408_v17  ;;  %v2834_v34 = vmax.f32 %v2758_v28, %v8409_v5  ;;  %v8410_v2 = vld [vmem:[#allocation32_spill] sm:$0xff]  ;;  %v3685_v50 = vld [vmem:[#allocation4 + $0x98] ss:$2 sm:$0xff]  ;;  %v8413_v21 = vld [vmem:[#allocation35_spill] sm:$0xff] }
 0x2e6   :  { %v2835_v6 = vmax.f32 %v2759_v30, %v8410_v2  ;;  %vm2864_vm15 = vcmp.ge.f32.partialorder %v2845_v58, 0.0  ;;  %vm2865_vm0 = vcmp.ge.f32.partialorder %v2846_v0, 0.0  ;;  %v2883_v14 = vmul.f32 0.2, %v2845_v58  ;;  %v8411_v9 = vld [vmem:[#allocation33_spill] sm:$0xff]  ;;  %3714 = vrot.lane.b32.xlu1 %v3685_v50, %s5772_s21  ;;  %v8412_v16 = vld [vmem:[#allocation34_spill] sm:$0xff] }
 0x2e7   :  { %v2836_v15 = vmax.f32 %v2760_v31, %v8411_v9  ;;  %v2884_v51 = vmul.f32 0.2, %v2846_v0  ;;  %v2837_v56 = vmax.f32 %v2761_v39, %v8412_v16  ;;  %v2838_v11 = vmax.f32 %v2762_v40, %v8413_v21  ;;  %v8414_v22 = vld [vmem:[#allocation36_spill] sm:$0xff]  ;;  %v8415_v28 = vld [vmem:[#allocation37_spill] sm:$0xff]  ;;  %v8416_v30 = vld [vmem:[#allocation66_spill] sm:$0xff] }
 0x2e8   :  { %v2839_v57 = vmax.f32 %v2763_v41, %v8414_v22  ;;  %v3655_v23 = vld [vmem:[#allocation4 + $0x97] ss:$2 sm:$0xff]  ;;  %v2902_v42 = vsel %vm2864_vm15, %v2845_v58, %v2883_v14  ;;  %v2840_v46 = vmax.f32 %v2764_v10, %v8415_v28  ;;  %v3135_v62 = vmax.f32 %v3059_v25, %v8416_v30  ;;  %v8417_v39 = vld [vmem:[#allocation67_spill] sm:$0xff] }
 0x2e9   :  { %v3136_v17 = vmax.f32 %v3060_v32, %v7492_v33  ;;  %3674 = vst.msk [vmem:[#allocation5 + $0x4b] sm:$0xff] %vm1079_vm8, %v3655_v23  ;;  %v2903_v31 = vsel %vm2865_vm0, %v2846_v0, %v2884_v51  ;;  %2921 = vst.msk [vmem:[#allocation4 + $0x1] sm:$0xff] %vm1079_vm8, %v2902_v42  ;;  %v3137_v5 = vmax.f32 %v3061_v37, %v7495_v4  ;;  %v8418_v40 = vld [vmem:[#allocation68_spill] sm:$0xff]  ;;  %v8419_v33 = vld [vmem:[#allocation69_spill] sm:$0xff] }
 0x2ea   :  { %v3138_v2 = vmax.f32 %v3062_v38, %v8417_v39  ;;  %v3139_v50 = vmax.f32 %v3063_v47, %v8418_v40  ;;  %2922 = vst.msk [vmem:[#allocation4 + $0x9] sm:$0xff] %vm1079_vm8, %v2903_v31  ;;  %v3140_v41 = vmax.f32 %v3064_v12, %v7504_v18  ;;  %v3141_v10 = vmax.f32 %v3065_v49, %v7507_v44  ;;  %v8420_v38 = vld [vmem:[#allocation70_spill] sm:$0xff]  ;;  %v8421_v14 = vld [vmem:[#allocation71_spill] sm:$0xff] }
 0x2eb   :  { %v3142_v25 = vmax.f32 %v3066_v59, %v7510_v19  ;;  %v3143_v32 = vmax.f32 %v3067_v1, %v8419_v33  ;;  %v3144_v58 = vmax.f32 %v3068_v7, %v7516_v45  ;;  %v3145_v0 = vmax.f32 %v3069_v52, %v7519_v20  ;;  %v3755_v22 = vld [vmem:[#allocation4 + $0x99] ss:$2 sm:$0xff] }
 0x2ec   :  { %v3146_v4 = vmax.f32 %v3070_v26, %v7522_v43  ;;  %v3147_v37 = vmax.f32 %v3071_v36, %v7525_v54  ;;  %v3148_v47 = vmax.f32 %v3072_v60, %v8420_v38  ;;  %v3149_v9 = vmax.f32 %v3073_v48, %v8421_v14 }
 0x2ed   :  { %v2847_v18 = vadd.f32 %v7208_v13, %v2824_v61  ;;  %v2848_v44 = vadd.f32 %v7208_v13, %v2825_v3  ;;  %v7652_v19 = vadd.f32 %v7208_v13, %v2826_v8  ;;  %v7655_v12 = vadd.f32 %v7208_v13, %v2827_v53 }
 0x2ee   :  { %v7658_v20 = vadd.f32 %v7208_v13, %v2828_v27  ;;  %v7661_v45 = vadd.f32 %v7208_v13, %v2829_v35  ;;  %v7664_v43 = vadd.f32 %v7208_v13, %v2830_v63  ;;  %v7667_v54 = vadd.f32 %v7208_v13, %v2831_v55 }
 0x2ef   :  { %v7670_v49 = vadd.f32 %v7208_v13, %v2832_v29  ;;  %v7673_v59 = vadd.f32 %v7208_v13, %v2833_v24  ;;  %v7676_v1 = vadd.f32 %v7208_v13, %v2834_v34  ;;  %v7679_v7 = vadd.f32 %v7208_v13, %v2835_v6 }
 0x2f0   :  { %v7682_v35 = vadd.f32 %v7208_v13, %v2836_v15  ;;  %v7685_v52 = vadd.f32 %v7208_v13, %v2837_v56  ;;  %v7688_v26 = vadd.f32 %v7208_v13, %v2838_v11  ;;  %v7691_v36 = vadd.f32 %v7208_v13, %v2839_v57 }
 0x2f1   :  { %v7694_v60 = vadd.f32 %v7208_v13, %v2840_v46  ;;  %v3154_v48 = vadd.f32 %v3135_v62, %v7208_v13  ;;  %v3281_v61 = vld [vmem:[#allocation4 + $0x1] ss:$2 sm:$0xff]  ;;  %v3353_v3 = vld [vmem:[#allocation4 + $0x2] ss:$2 sm:$0xff]  ;;  %v3155_v8 = vadd.f32 %v3136_v17, %v7208_v13  ;;  %v3156_v53 = vadd.f32 %v3137_v5, %v7208_v13 }
 0x2f2   :  { %v3157_v27 = vadd.f32 %v3138_v2, %v7208_v13  ;;  %v7701_v63 = vadd.f32 %v3139_v50, %v7208_v13  ;;  %v3250_v55 = vld [vmem:[#allocation4] ss:$2 sm:$0xff]  ;;  %3310 = vrot.lane.b32.xlu0 %v3281_v61, %s5772_s21  ;;  %3382 = vrot.lane.b32.xlu1 %v3353_v3, %s5775_s26  ;;  %v7706_v29 = vadd.f32 %v3140_v41, %v7208_v13  ;;  %vm2866_vm1 = vcmp.ge.f32.partialorder %v2847_v18, 0.0 }
 0x2f3   :  { %v7709_v24 = vadd.f32 %v3141_v10, %v7208_v13  ;;  %v7712_v34 = vadd.f32 %v3142_v25, %v7208_v13  ;;  %3269 = vst.msk [vmem:[#allocation5] sm:$0xff] %vm1079_vm8, %v3250_v55  ;;  %v7716_v6 = vadd.f32 %v3143_v32, %v7208_v13  ;;  %v7719_v15 = vadd.f32 %v3144_v58, %v7208_v13 }
 0x2f4   :  { %v7722_v51 = vadd.f32 %v3145_v0, %v7208_v13  ;;  %v7725_v16 = vadd.f32 %v3146_v4, %v7208_v13  ;;  %v7728_v56 = vadd.f32 %v3147_v37, %v7208_v13  ;;  %v7731_v21 = vadd.f32 %v3148_v47, %v7208_v13  ;;  %v3247_v4 = vld [vmem:[%s8300_s1 + $0x10] sm:$0xff]  ;;  %v3248_v37 = vld [vmem:[%s8300_s1 + $0x18] sm:$0xff] }
 0x2f5   :  { %v7734_v11 = vadd.f32 %v3149_v9, %v7208_v13  ;;  %vm2867_vm2 = vcmp.ge.f32.partialorder %v2848_v44, 0.0  ;;  %v2885_v57 = vmul.f32 0.2, %v2847_v18  ;;  %v2886_v23 = vmul.f32 0.2, %v2848_v44 }
 0x2f6   :  { %vm3173_vm3 = vcmp.ge.f32.partialorder %v3154_v48, 0.0  ;;  %vm3174_vm4 = vcmp.ge.f32.partialorder %v3155_v8, 0.0  ;;  %3784 = vrot.lane.b32.xlu1 %v3755_v22, %s5775_s26  ;;  %v3192_v42 = vmul.f32 0.2, %v3154_v48  ;;  %v3193_v28 = vmul.f32 0.2, %v3155_v8 }
 0x2f7   :  { %vm3175_vm5 = vcmp.ge.f32.partialorder %v3156_v53, 0.0  ;;  %vm3176_vm6 = vcmp.ge.f32.partialorder %v3157_v27, 0.0  ;;  %v2904_v46 = vsel %vm2866_vm1, %v2847_v18, %v2885_v57  ;;  %v2905_v30 = vsel %vm2867_vm2, %v2848_v44, %v2886_v23 }
 0x2f8   :  { %v3194_v62 = vmul.f32 0.2, %v3156_v53  ;;  %v3195_v17 = vmul.f32 0.2, %v3157_v27  ;;  %2923 = vst.msk [vmem:[#allocation4 + $0x11] sm:$0xff] %vm1079_vm8, %v2904_v46  ;;  %2924 = vst.msk [vmem:[#allocation4 + $0x19] sm:$0xff] %vm1079_vm8, %v2905_v30  ;;  %v3211_v13 = vsel %vm3173_vm3, %v3154_v48, %v3192_v42  ;;  %v3212_v31 = vsel %vm3174_vm4, %v3155_v8, %v3193_v28 }
 0x2f9   :  { %vm2868_vm9 = vcmp.ge.f32.partialorder %v7652_v19, 0.0  ;;  %vm2869_vm10 = vcmp.ge.f32.partialorder %v7655_v12, 0.0  ;;  %3230 = vst.msk [vmem:[#allocation4 + $0xa8] sm:$0xff] %vm1079_vm8, %v3211_v13  ;;  %3231 = vst.msk [vmem:[#allocation4 + $0xb0] sm:$0xff] %vm1079_vm8, %v3212_v31  ;;  %v2887_v2 = vmul.f32 0.2, %v7652_v19 }
 0x2fa   :  { %v3213_v5 = vsel %vm3175_vm5, %v3156_v53, %v3194_v62  ;;  %v3214_v39 = vsel %vm3176_vm6, %v3157_v27, %v3195_v17  ;;  %v2888_v40 = vmul.f32 0.2, %v7655_v12  ;;  %vm2870_vm11 = vcmp.ge.f32.partialorder %v7658_v20, 0.0 }
 0x2fb   :  { %3232 = vst.msk [vmem:[#allocation4 + $0xb8] sm:$0xff] %vm1079_vm8, %v3213_v5  ;;  %3233 = vst.msk [vmem:[#allocation4 + $0xc0] sm:$0xff] %vm1079_vm8, %v3214_v39  ;;  %vm2871_vm13 = vcmp.ge.f32.partialorder %v7661_v45, 0.0  ;;  %v2889_v50 = vmul.f32 0.2, %v7658_v20  ;;  %v2906_v10 = vsel %vm2868_vm9, %v7652_v19, %v2887_v2  ;;  %vm3177_vm14 = vcmp.ge.f32.partialorder %v7701_v63, 0.0 }
 0x2fc   :  { %v2890_v41 = vmul.f32 0.2, %v7661_v45  ;;  %v2907_v25 = vsel %vm2869_vm10, %v7655_v12, %v2888_v40  ;;  %vm3178_vm15 = vcmp.ge.f32.partialorder %v7706_v29, 0.0  ;;  %2925 = vst.msk [vmem:[#allocation4 + $0x21] sm:$0xff] %vm1079_vm8, %v2906_v10  ;;  %v3196_v58 = vmul.f32 0.2, %v7701_v63 }
 0x2fd   :  { %2926 = vst.msk [vmem:[#allocation4 + $0x29] sm:$0xff] %vm1079_vm8, %v2907_v25  ;;  %v2908_v33 = vsel %vm2870_vm11, %v7658_v20, %v2889_v50  ;;  %v3197_v0 = vmul.f32 0.2, %v7706_v29  ;;  %vm3179_vm0 = vcmp.ge.f32.partialorder %v7709_v24, 0.0  ;;  %vm3180_vm1 = vcmp.ge.f32.partialorder %v7712_v34, 0.0  ;;  %v8422_v2 = vld [vmem:[#allocation15_spill] sm:$0xff] }
 0x2fe   :  { %v2909_v32 = vsel %vm2871_vm13, %v7661_v45, %v2890_v41  ;;  %2927 = vst.msk [vmem:[#allocation4 + $0x31] sm:$0xff] %vm1079_vm8, %v2908_v33  ;;  %v3198_v38 = vmul.f32 0.2, %v7709_v24  ;;  %v3199_v47 = vmul.f32 0.2, %v7712_v34  ;;  %v3215_v14 = vsel %vm3177_vm14, %v7701_v63, %v3196_v58  ;;  %v8423_v33 = vld [vmem:[#allocation16_spill] sm:$0xff] }
 0x2ff   :  { %2928 = vst.msk [vmem:[#allocation4 + $0x39] sm:$0xff] %vm1079_vm8, %v2909_v32  ;;  %v3216_v9 = vsel %vm3178_vm15, %v7706_v29, %v3197_v0  ;;  %vm2872_vm2 = vcmp.ge.f32.partialorder %v7664_v43, 0.0  ;;  %vm2873_vm3 = vcmp.ge.f32.partialorder %v7667_v54, 0.0  ;;  %v3283_v18 = vld [vmem:[#allocation4 + $0x11] ss:$2 sm:$0xff]  ;;  %3234 = vst.msk [vmem:[#allocation4 + $0xc8] sm:$0xff] %vm1079_vm8, %v3215_v14  ;;  %v5711_v20 = vpack.c.bf16 %v3248_v37, %v3247_v4 }
 0x300   :  { %3235 = vst.msk [vmem:[#allocation4 + $0xd0] sm:$0xff] %vm1079_vm8, %v3216_v9  ;;  %v3217_v44 = vsel %vm3179_vm0, %v7709_v24, %v3198_v38  ;;  %v3218_v19 = vsel %vm3180_vm1, %v7712_v34, %v3199_v47  ;;  %v2891_v12 = vmul.f32 0.2, %v7664_v43  ;;  %3312 = vrot.lane.b32.xlu0 %v3283_v18, %s5772_s21  ;;  %v3757_v45 = vld [vmem:[#allocation4 + $0xa9] ss:$2 sm:$0xff]  ;;  %vm2874_vm4 = vcmp.ge.f32.partialorder %v7670_v49, 0.0 }
 0x301   :  { %3236 = vst.msk [vmem:[#allocation4 + $0xd8] sm:$0xff] %vm1079_vm8, %v3217_v44  ;;  %3237 = vst.msk [vmem:[#allocation4 + $0xe0] sm:$0xff] %vm1079_vm8, %v3218_v19  ;;  %v2892_v48 = vmul.f32 0.2, %v7667_v54  ;;  %3786 = vrot.lane.b32.xlu1 %v3757_v45, %s5775_s26  ;;  %vm2875_vm5 = vcmp.ge.f32.partialorder %v7673_v59, 0.0  ;;  %5712 = vmatprep.subr.bf16.mxu0 %v5711_v20  ;;  %vm3181_vm6 = vcmp.ge.f32.partialorder %v7716_v6, 0.0 }
 0x302   :  { %v2910_v61 = vsel %vm2872_vm2, %v7664_v43, %v2891_v12  ;;  %v2893_v8 = vmul.f32 0.2, %v7670_v49  ;;  %v2894_v53 = vmul.f32 0.2, %v7673_v59  ;;  %5716 = vmatprep.subr.bf16.mxu1 %v5711_v20  ;;  %5714 = vmatpush3.bf16.msra.mxu0 %v5711_v20  ;;  %v3249_v43 = vld [vmem:[%s8300_s1 + $0x20] sm:$0xff]  ;;  %vm3182_vm9 = vcmp.ge.f32.partialorder %v7719_v15, 0.0 }
 0x303   :  { %v2911_v3 = vsel %vm2873_vm3, %v7667_v54, %v2892_v48  ;;  %2929 = vst.msk [vmem:[#allocation4 + $0x41] sm:$0xff] %vm1079_vm8, %v2910_v61  ;;  %v3687_v27 = vld [vmem:[#allocation4 + $0xa8] ss:$2 sm:$0xff]  ;;  %5718 = vmatpush3.bf16.msra.mxu1 %v5711_v20  ;;  %5601 = vmatprep.subr.mxu0 %v3249_v43  ;;  %v3689_v54 = vld [vmem:[#allocation4 + $0xb8] ss:$2 sm:$0xff]  ;;  %vm3183_vm10 = vcmp.ge.f32.partialorder %v7722_v51, 0.0 }
 0x304   :  { %2930 = vst.msk [vmem:[#allocation4 + $0x49] sm:$0xff] %vm1079_vm8, %v2911_v3  ;;  %3716 = vrot.lane.b32.xlu0 %v3687_v27, %s5772_s21  ;;  %v2912_v63 = vsel %vm2874_vm4, %v7670_v49, %v2893_v8  ;;  %v2913_v55 = vsel %vm2875_vm5, %v7673_v59, %v2894_v53  ;;  %v3200_v29 = vmul.f32 0.2, %v7716_v6  ;;  %5622 = vmatprep.subr.mxu1 %v3249_v43  ;;  %v3201_v24 = vmul.f32 0.2, %v7719_v15 }
 0x305   :  { %3718 = vrot.lane.b32.xlu1 %v3689_v54, %s5772_s21  ;;  %2931 = vst.msk [vmem:[#allocation4 + $0x51] sm:$0xff] %vm1079_vm8, %v2912_v63  ;;  %2932 = vst.msk [vmem:[#allocation4 + $0x59] sm:$0xff] %vm1079_vm8, %v2913_v55  ;;  %vm3184_vm11 = vcmp.ge.f32.partialorder %v7725_v16, 0.0  ;;  %v3202_v49 = vmul.f32 0.2, %v7722_v51  ;;  %vm2876_vm13 = vcmp.ge.f32.partialorder %v7676_v1, 0.0 }
 0x306   :  { %v3219_v59 = vsel %vm3181_vm6, %v7716_v6, %v3200_v29  ;;  %v3203_v34 = vmul.f32 0.2, %v7725_v16  ;;  %5602 = vmatpush3.msra.mxu0 %v3249_v43  ;;  %v3355_v22 = vld [vmem:[#allocation4 + $0x12] ss:$2 sm:$0xff]  ;;  %v3357_v57 = vld [vmem:[#allocation4 + $0x22] ss:$2 sm:$0xff]  ;;  %v3220_v23 = vsel %vm3182_vm9, %v7719_v15, %v3201_v24 }
 0x307   :  { %3238 = vst.msk [vmem:[#allocation4 + $0xe8] sm:$0xff] %vm1079_vm8, %v3219_v59  ;;  %v3221_v42 = vsel %vm3183_vm10, %v7722_v51, %v3202_v49  ;;  %vm2877_vm14 = vcmp.ge.f32.partialorder %v7679_v7, 0.0  ;;  %vm2878_vm15 = vcmp.ge.f32.partialorder %v7682_v35, 0.0  ;;  %5623 = vmatpush3.msra.mxu1 %v3249_v43  ;;  %3239 = vst.msk [vmem:[#allocation4 + $0xf0] sm:$0xff] %vm1079_vm8, %v3220_v23  ;;  %v2895_v15 = vmul.f32 0.2, %v7676_v1 }
 0x308   :  { %3384 = vrot.lane.b32.xlu0 %v3355_v22, %s5775_s26  ;;  %v3222_v6 = vsel %vm3184_vm11, %v7725_v16, %v3203_v34  ;;  %3240 = vst.msk [vmem:[#allocation4 + $0xf8] sm:$0xff] %vm1079_vm8, %v3221_v42  ;;  %v2896_v28 = vmul.f32 0.2, %v7679_v7  ;;  %vm2879_vm0 = vcmp.ge.f32.partialorder %v7685_v52, 0.0  ;;  %v2897_v51 = vmul.f32 0.2, %v7682_v35 }
 0x309   :  { %3386 = vrot.lane.b32.xlu1 %v3357_v57, %s5775_s26  ;;  %3241 = vst.msk [vmem:[#allocation4 + $0x100] sm:$0xff] %vm1079_vm8, %v3222_v6  ;;  %v2898_v46 = vmul.f32 0.2, %v7685_v52  ;;  %vm3185_vm1 = vcmp.ge.f32.partialorder %v7728_v56, 0.0  ;;  %v2914_v16 = vsel %vm2876_vm13, %v7676_v1, %v2895_v15  ;;  %vm3186_vm2 = vcmp.ge.f32.partialorder %v7731_v21, 0.0 }
 0x30a   :  { %v2915_v30 = vsel %vm2877_vm14, %v7679_v7, %v2896_v28  ;;  %v3204_v62 = vmul.f32 0.2, %v7728_v56  ;;  %v3285_v17 = vld [vmem:[#allocation4 + $0x21] ss:$2 sm:$0xff]  ;;  %2933 = vst.msk [vmem:[#allocation4 + $0x61] sm:$0xff] %vm1079_vm8, %v2914_v16  ;;  %v2916_v13 = vsel %vm2878_vm15, %v7682_v35, %v2897_v51  ;;  %vm3187_vm3 = vcmp.ge.f32.partialorder %v7734_v11, 0.0 }
 0x30b   :  { %2934 = vst.msk [vmem:[#allocation4 + $0x69] sm:$0xff] %vm1079_vm8, %v2915_v30  ;;  %v2917_v31 = vsel %vm2879_vm0, %v7685_v52, %v2898_v46  ;;  %v3205_v1 = vmul.f32 0.2, %v7731_v21  ;;  %v3252_v5 = vld [vmem:[#allocation4 + $0x10] ss:$2 sm:$0xff]  ;;  %2935 = vst.msk [vmem:[#allocation4 + $0x71] sm:$0xff] %vm1079_vm8, %v2916_v13 }
 0x30c   :  { %3314 = vrot.lane.b32.xlu0 %v3285_v17, %s5772_s21  ;;  %v3759_v7 = vld [vmem:[#allocation4 + $0xb9] ss:$2 sm:$0xff]  ;;  %2936 = vst.msk [vmem:[#allocation4 + $0x79] sm:$0xff] %vm1079_vm8, %v2917_v31  ;;  %v3223_v39 = vsel %vm3185_vm1, %v7728_v56, %v3204_v62  ;;  %vm3188_vm4 = vcmp.ge.f32.partialorder %v8422_v2, 0.0  ;;  %vm2880_vm5 = vcmp.ge.f32.partialorder %v7688_v26, 0.0  ;;  %3270 = vst.msk [vmem:[#allocation5 + $0x8] sm:$0xff] %vm1079_vm8, %v3252_v5 }
 0x30d   :  { %3788 = vrot.lane.b32.xlu1 %v3759_v7, %s5775_s26  ;;  %v3224_v35 = vsel %vm3186_vm2, %v7731_v21, %v3205_v1  ;;  %3242 = vst.msk [vmem:[#allocation4 + $0x108] sm:$0xff] %vm1079_vm8, %v3223_v39  ;;  %v3206_v52 = vmul.f32 0.2, %v7734_v11  ;;  %v3207_v56 = vmul.f32 0.2, %v8422_v2  ;;  %vm2881_vm6 = vcmp.ge.f32.partialorder %v7691_v36, 0.0 }
 0x30e   :  { %3243 = vst.msk [vmem:[#allocation4 + $0x110] sm:$0xff] %vm1079_vm8, %v3224_v35  ;;  %v2899_v40 = vmul.f32 0.2, %v7688_v26  ;;  %v2900_v50 = vmul.f32 0.2, %v7691_v36  ;;  %vm2882_vm9 = vcmp.ge.f32.partialorder %v7694_v60, 0.0 }
 0x30f   :  { %vm2939_vm10 = vcmask 61440   ;;  %v3287_v41 = vld [vmem:[#allocation4 + $0x31] ss:$2 sm:$0xff]  ;;  %v3225_v21 = vsel %vm3187_vm3, %v7734_v11, %v3206_v52  ;;  %v3226_v10 = vsel %vm3188_vm4, %v8422_v2, %v3207_v56  ;;  %v2901_v25 = vmul.f32 0.2, %v7694_v60 }
 0x310   :  { %vm3189_vm11 = vcmp.ge.f32.partialorder %v8423_v33, 0.0  ;;  %3316 = vrot.lane.b32.xlu0 %v3287_v41, %s5772_s21  ;;  %v3761_v32 = vld [vmem:[#allocation4 + $0xc9] ss:$2 sm:$0xff]  ;;  %3244 = vst.msk [vmem:[#allocation4 + $0x118] sm:$0xff] %vm1079_vm8, %v3225_v21  ;;  %3245 = vst.msk [vmem:[#allocation4 + $0x120] sm:$0xff] %vm1079_vm8, %v3226_v10  ;;  %v2918_v58 = vsel %vm2880_vm5, %v7688_v26, %v2899_v40  ;;  %v2919_v11 = vsel %vm2881_vm6, %v7691_v36, %v2900_v50  ;;  %vm3278_vm13 = vcmask 59392  }
 0x311   :  { %v3208_v0 = vmul.f32 0.2, %v8423_v33  ;;  %3790 = vrot.lane.b32.xlu1 %v3761_v32, %s5775_s26  ;;  %2937 = vst.msk [vmem:[#allocation4 + $0x81] sm:$0xff] %vm1079_vm8, %v2918_v58  ;;  %2938 = vst.msk [vmem:[#allocation4 + $0x89] sm:$0xff] %vm1079_vm8, %v2919_v11  ;;  %v2920_v4 = vsel %vm2882_vm9, %v7694_v60, %v2901_v25  ;;  %v3657_v37 = vld [vmem:[#allocation4 + $0xa7] ss:$2 sm:$0xff] }
 0x312   :  { %2940 = vst.msk [vmem:[#allocation4 + $0x91] sm:$0x1f] %vm2939_vm10, %v2920_v4  ;;  %v3659_v36 = vld [vmem:[#allocation4 + $0xb7] ss:$2 sm:$0xff]  ;;  %v3691_v38 = vld [vmem:[#allocation4 + $0xc8] ss:$2 sm:$0xff] }
 0x313   :  { %v3227_v26 = vsel %vm3189_vm11, %v8423_v33, %v3208_v0  ;;  %3675 = vst.msk [vmem:[#allocation5 + $0x53] sm:$0xff] %vm1079_vm8, %v3657_v37  ;;  %v3693_v47 = vld [vmem:[#allocation4 + $0xd8] ss:$2 sm:$0xff]  ;;  %3676 = vst.msk [vmem:[#allocation5 + $0x5b] sm:$0xff] %vm1079_vm8, %v3659_v36  ;;  %v3661_v9 = vld [vmem:[#allocation4 + $0xc7] ss:$2 sm:$0xff] }
 0x314   :  { %3246 = vst.msk [vmem:[#allocation4 + $0x128] sm:$0x1f] %vm2939_vm10, %v3227_v26  ;;  %v3254_v14 = vld [vmem:[#allocation4 + $0x20] ss:$2 sm:$0xff]  ;;  %3720 = vrot.lane.b32.xlu0 %v3691_v38, %s5772_s21  ;;  %v3256_v60 = vld [vmem:[#allocation4 + $0x30] ss:$2 sm:$0xff] }
 0x315   :  { %3271 = vst.msk [vmem:[#allocation5 + $0x10] sm:$0xff] %vm1079_vm8, %v3254_v14  ;;  %v3663_v18 = vld [vmem:[#allocation4 + $0xd7] ss:$2 sm:$0xff]  ;;  %3722 = vrot.lane.b32.xlu1 %v3693_v47, %s5772_s21  ;;  %3272 = vst.msk [vmem:[#allocation5 + $0x18] sm:$0xff] %vm1079_vm8, %v3256_v60  ;;  %v3258_v44 = vld [vmem:[#allocation4 + $0x40] ss:$2 sm:$0xff] }
 0x316   :  { %3677 = vst.msk [vmem:[#allocation5 + $0x63] sm:$0xff] %vm1079_vm8, %v3661_v9  ;;  %3678 = vst.msk [vmem:[#allocation5 + $0x6b] sm:$0xff] %vm1079_vm8, %v3663_v18  ;;  %v3260_v19 = vld [vmem:[#allocation4 + $0x50] ss:$2 sm:$0xff]  ;;  %v3665_v12 = vld [vmem:[#allocation4 + $0xe7] ss:$2 sm:$0xff] }
 0x317   :  { %3273 = vst.msk [vmem:[#allocation5 + $0x20] sm:$0xff] %vm1079_vm8, %v3258_v44  ;;  %v3667_v20 = vld [vmem:[#allocation4 + $0xf7] ss:$2 sm:$0xff]  ;;  %v3359_v45 = vld [vmem:[#allocation4 + $0x32] ss:$2 sm:$0xff]  ;;  %3274 = vst.msk [vmem:[#allocation5 + $0x28] sm:$0xff] %vm1079_vm8, %v3260_v19 }
 0x318   :  { %3679 = vst.msk [vmem:[#allocation5 + $0x73] sm:$0xff] %vm1079_vm8, %v3665_v12  ;;  %3680 = vst.msk [vmem:[#allocation5 + $0x7b] sm:$0xff] %vm1079_vm8, %v3667_v20  ;;  %v3262_v48 = vld [vmem:[#allocation4 + $0x60] ss:$2 sm:$0xff]  ;;  %3388 = vrot.lane.b32.xlu0 %v3359_v45, %s5775_s26  ;;  %v3264_v3 = vld [vmem:[#allocation4 + $0x70] ss:$2 sm:$0xff] }
 0x319   :  { %v3361_v61 = vld [vmem:[#allocation4 + $0x42] ss:$2 sm:$0xff]  ;;  %3275 = vst.msk [vmem:[#allocation5 + $0x30] sm:$0xff] %vm1079_vm8, %v3262_v48  ;;  %3276 = vst.msk [vmem:[#allocation5 + $0x38] sm:$0xff] %vm1079_vm8, %v3264_v3  ;;  %v3289_v8 = vld [vmem:[#allocation4 + $0x41] ss:$2 sm:$0xff] }
 0x31a   :  { %3390 = vrot.lane.b32.xlu1 %v3361_v61, %s5775_s26  ;;  %v3763_v53 = vld [vmem:[#allocation4 + $0xd9] ss:$2 sm:$0xff]  ;;  %v3266_v54 = vld [vmem:[#allocation4 + $0x80] ss:$2 sm:$0xff]  ;;  %v3765_v24 = vld [vmem:[#allocation4 + $0xe9] ss:$2 sm:$0xff] }
 0x31b   :  { %v3669_v43 = vld [vmem:[#allocation4 + $0x107] ss:$2 sm:$0xff]  ;;  %v3671_v27 = vld [vmem:[#allocation4 + $0x117] ss:$2 sm:$0xff]  ;;  %3277 = vst.msk [vmem:[#allocation5 + $0x40] sm:$0xff] %vm1079_vm8, %v3266_v54  ;;  %vm3340_vm14 = vcmask 130112  }
 0x31c   :  { %3318 = vrot.lane.b32.xlu0 %v3289_v8, %s5772_s21  ;;  %3681 = vst.msk [vmem:[#allocation5 + $0x83] sm:$0xff] %vm1079_vm8, %v3669_v43  ;;  %3682 = vst.msk [vmem:[#allocation5 + $0x8b] sm:$0xff] %vm1079_vm8, %v3671_v27  ;;  %v3268_v63 = vld [vmem:[#allocation4 + $0x90] ss:$2 sm:$0x7]  ;;  %vm3412_vm15 = vcmask 195712  }
 0x31d   :  { %v3673_v55 = vld [vmem:[#allocation4 + $0x127] ss:$2 sm:$0x7]  ;;  %3279 = vst.msk [vmem:[#allocation5 + $0x48] sm:$0x7] %vm3278_vm13, %v3268_v63  ;;  %vm3434_vm0 = vcmask 195584  }
 0x31e   :  { %3792 = vrot.lane.b32.xlu1 %v3763_v53, %s5775_s26  ;;  %3683 = vst.msk [vmem:[#allocation5 + $0x93] sm:$0x7] %vm3278_vm13, %v3673_v55  ;;  %v3291_v29 = vld [vmem:[#allocation4 + $0x51] ss:$2 sm:$0xff]  ;;  %v3695_v49 = vld [vmem:[#allocation4 + $0xe8] ss:$2 sm:$0xff] }
 0x31f   :  { %v3697_v59 = vld [vmem:[#allocation4 + $0xf8] ss:$2 sm:$0xff]  ;;  %v3293_v57 = vld [vmem:[#allocation4 + $0x61] ss:$2 sm:$0xff]  ;;  %v3295_v42 = vld [vmem:[#allocation4 + $0x71] ss:$2 sm:$0xff] }
 0x320   :  { %3320 = vrot.lane.b32.xlu0 %v3291_v29, %s5772_s21  ;;  %v3363_v34 = vld [vmem:[#allocation4 + $0x52] ss:$2 sm:$0xff]  ;;  %v3365_v22 = vld [vmem:[#allocation4 + $0x62] ss:$2 sm:$0xff]  ;;  %v3767_v23 = vld [vmem:[#allocation4 + $0xf9] ss:$2 sm:$0xff] }
 0x321   :  { %v3769_v6 = vld [vmem:[#allocation4 + $0x109] ss:$2 sm:$0xff]  ;;  %v3699_v15 = vld [vmem:[#allocation4 + $0x108] ss:$2 sm:$0xff]  ;;  %v3701_v28 = vld [vmem:[#allocation4 + $0x118] ss:$2 sm:$0xff] }
 0x322   :  { %3794 = vrot.lane.b32.xlu1 %v3765_v24, %s5775_s26  ;;  %v3367_v51 = vld [vmem:[#allocation4 + $0x72] ss:$2 sm:$0xff]  ;;  %v3369_v46 = vld [vmem:[#allocation4 + $0x82] ss:$2 sm:$0xff]  ;;  %v3297_v16 = vld [vmem:[#allocation4 + $0x81] ss:$2 sm:$0xff] }
 0x323   :  { %v3771_v30 = vld [vmem:[#allocation4 + $0x119] ss:$2 sm:$0xff]  ;;  %v3299_v62 = vld [vmem:[#allocation4 + $0x91] ss:$2 sm:$0x7]  ;;  %vm3350_vm1 = vcmask 124992  }
 0x324   :  { %3724 = vrot.lane.b32.xlu0 %v3695_v49, %s5772_s21  ;;  %v3773_v17 = vld [vmem:[#allocation4 + $0x129] ss:$2 sm:$0x7]  ;;  %v3703_v13 = vld [vmem:[#allocation4 + $0x128] ss:$2 sm:$0x7] }
 0x325   :  { %v3371_v31 = vld [vmem:[#allocation4 + $0x92] ss:$2 sm:$0x7]  ;;  %vm3422_vm2 = vcmask 190592   ;;  %vm3580_vm3 = vcmask 130048   ;;  %vm4063_vm4 = vcmask 122880  }
 0x326   :  { %3726 = vrot.lane.b32.xlu1 %v3697_v59, %s5772_s21  ;;  %vm3590_vm5 = vcmask 124928   ;;  %vm4152_vm9 = vcmask 126976  }
 0x328   :  { %3392 = vrot.lane.b32.xlu0 %v3363_v34, %s5775_s26 }
 0x32a   :  { %3394 = vrot.lane.b32.xlu1 %v3365_v22, %s5775_s26 }
 0x32c   :  { %3322 = vrot.lane.b32.xlu0 %v3293_v57, %s5772_s21 }
 0x32e   :  { %3796 = vrot.lane.b32.xlu1 %v3767_v23, %s5775_s26 }
 0x330   :  { %3324 = vrot.lane.b32.xlu0 %v3295_v42, %s5772_s21 }
 0x332   :  { %3798 = vrot.lane.b32.xlu1 %v3769_v6, %s5775_s26 }
 0x334   :  { %3728 = vrot.lane.b32.xlu0 %v3699_v15, %s5772_s21 }
 0x336   :  { %3730 = vrot.lane.b32.xlu1 %v3701_v28, %s5772_s21 }
 0x338   :  { %3396 = vrot.lane.b32.xlu0 %v3367_v51, %s5775_s26 }
 0x33a   :  { %3398 = vrot.lane.b32.xlu1 %v3369_v46, %s5775_s26 }
 0x33c   :  { %3326 = vrot.lane.b32.xlu0 %v3297_v16, %s5772_s21 }
 0x33e   :  { %3800 = vrot.lane.b32.xlu1 %v3771_v30, %s5775_s26 }
 0x340   :  { %3328 = vrot.lane.b32.xlu0 %v3299_v62, %s5772_s21 }
 0x342   :  { %3802 = vrot.lane.b32.xlu1 %v3773_v17, %s5775_s26 }
 0x344   :  { %3732 = vrot.lane.b32.xlu0 %v3703_v13, %s5772_s21 }
 0x348   :  { %3400 = vrot.lane.b32.xlu0 %v3371_v31, %s5775_s26 }
 0x358   :  { %v3715_v1 = vpop.permute.xlu1 %3714 }
 0x359   :  { %3744 = vst.msk [vmem:[#allocation5 + $0x4b] sm:$0xff] %vm3340_vm14, %v3715_v1 }
 0x364   :  { %v3311_v5 = vpop.permute.xlu0 %3310  ;;  %v3383_v7 = vpop.permute.xlu1 %3382 }
 0x365   :  { %3341 = vst.msk [vmem:[#allocation5] sm:$0xff] %vm3340_vm14, %v3311_v5 }
 0x366   :  { %3413 = vst.msk [vmem:[#allocation5] sm:$0xff] %vm3412_vm15, %v3383_v7 }
 0x368   :  { %v3785_v39 = vpop.permute.xlu1 %3784 }
 0x369   :  { %3814 = vst.msk [vmem:[#allocation5 + $0x4b] sm:$0xff] %vm3412_vm15, %v3785_v39 }
 0x36d   :  { %v3424_v2 = vld [vmem:[#allocation5] sm:$0xff] }
 0x36e   :  { %5603 = vmatprep.mubr.msk.f32.mxu0 %vm3434_vm0, %v3424_v2 }
 0x370   :  { %v3824_v35 = vld [vmem:[#allocation5 + $0x4b] sm:$0xff] }
 0x371   :  { %5624 = vmatprep.mubr.msk.f32.mxu1 %vm3434_vm0, %v3824_v35 }
 0x372   :  { %v3313_v52 = vpop.permute.xlu0 %3312 }
 0x373   :  { %3342 = vst.msk [vmem:[#allocation5 + $0x8] sm:$0xff] %vm3340_vm14, %v3313_v52  ;;  %v3787_v56 = vpop.permute.xlu1 %3786 }
 0x376   :  { %v3717_v40 = vpop.permute.xlu0 %3716 }
 0x377   :  { %3745 = vst.msk [vmem:[#allocation5 + $0x53] sm:$0xff] %vm3340_vm14, %v3717_v40  ;;  %v3719_v50 = vpop.permute.xlu1 %3718 }
 0x378   :  { %3815 = vst.msk [vmem:[#allocation5 + $0x53] sm:$0xff] %vm3412_vm15, %v3787_v56 }
 0x379   :  { %3746 = vst.msk [vmem:[#allocation5 + $0x5b] sm:$0xff] %vm3340_vm14, %v3719_v50 }
 0x37a   :  { %v3385_v41 = vpop.permute.xlu0 %3384 }
 0x37b   :  { %3414 = vst.msk [vmem:[#allocation5 + $0x8] sm:$0xff] %vm3412_vm15, %v3385_v41  ;;  %v3387_v21 = vpop.permute.xlu1 %3386 }
 0x37e   :  { %v3315_v10 = vpop.permute.xlu0 %3314 }
 0x37f   :  { %3343 = vst.msk [vmem:[#allocation5 + $0x10] sm:$0xff] %vm3340_vm14, %v3315_v10  ;;  %v3825_v25 = vld [vmem:[#allocation5 + $0x53] sm:$0xff]  ;;  %v3789_v33 = vpop.permute.xlu1 %3788 }
 0x380   :  { %3415 = vst.msk [vmem:[#allocation5 + $0x10] sm:$0xff] %vm3412_vm15, %v3387_v21  ;;  %5625 = vmatmul.mubr.msk.f32.vlgmr.msra.gmra.mrb[38].mxu1 %vm3434_vm0, %v3825_v25  ;;  %3816 = vst.msk [vmem:[#allocation5 + $0x5b] sm:$0xff] %vm3412_vm15, %v3789_v33 }
 0x382   :  { %v3317_v32 = vpop.permute.xlu0 %3316  ;;  %v3425_v58 = vld [vmem:[#allocation5 + $0x8] sm:$0xff] }
 0x383   :  { %3344 = vst.msk [vmem:[#allocation5 + $0x18] sm:$0xff] %vm3340_vm14, %v3317_v32  ;;  %5604 = vmatmul.mubr.msk.f32.vlgmr.msra.gmra.mrb[38].mxu0 %vm3434_vm0, %v3425_v58  ;;  %v3791_v11 = vpop.permute.xlu1 %3790 }
 0x386   :  { %v3721_v0 = vpop.permute.xlu0 %3720 }
 0x387   :  { %3747 = vst.msk [vmem:[#allocation5 + $0x63] sm:$0xff] %vm3340_vm14, %v3721_v0  ;;  %v3426_v4 = vld [vmem:[#allocation5 + $0x10] sm:$0xff]  ;;  %v3723_v37 = vpop.permute.xlu1 %3722  ;;  %v3826_v26 = vld [vmem:[#allocation5 + $0x5b] sm:$0xff] }
 0x388   :  { %3817 = vst.msk [vmem:[#allocation5 + $0x63] sm:$0xff] %vm3412_vm15, %v3791_v11  ;;  %5606 = vmatprep.mubr.msk.f32.mxu0 %vm3434_vm0, %v3426_v4  ;;  %5627 = vmatprep.mubr.msk.f32.mxu1 %vm3434_vm0, %v3826_v26 }
 0x389   :  { %3748 = vst.msk [vmem:[#allocation5 + $0x6b] sm:$0xff] %vm3340_vm14, %v3723_v37 }
 0x38a   :  { %v3389_v36 = vpop.permute.xlu0 %3388 }
 0x38b   :  { %3416 = vst.msk [vmem:[#allocation5 + $0x18] sm:$0xff] %vm3412_vm15, %v3389_v36 }
 0x38c   :  { %v3391_v38 = vpop.permute.xlu1 %3390 }
 0x38e   :  { %v3319_v47 = vpop.permute.xlu0 %3318 }
 0x38f   :  { %3345 = vst.msk [vmem:[#allocation5 + $0x20] sm:$0xff] %vm3340_vm14, %v3319_v47  ;;  %v3827_v14 = vld [vmem:[#allocation5 + $0x63] sm:$0xff] }
 0x390   :  { %v3793_v60 = vpop.permute.xlu1 %3792  ;;  %3417 = vst.msk [vmem:[#allocation5 + $0x20] sm:$0xff] %vm3412_vm15, %v3391_v38  ;;  %5628 = vmatmul.mubr.msk.f32.gmra.mrb[40].mxu1 %vm3434_vm0, %v3827_v14 }
 0x391   :  { %3818 = vst.msk [vmem:[#allocation5 + $0x6b] sm:$0xff] %vm3412_vm15, %v3793_v60 }
 0x392   :  { %v3321_v9 = vpop.permute.xlu0 %3320  ;;  %v3427_v18 = vld [vmem:[#allocation5 + $0x18] sm:$0xff] }
 0x393   :  { %3346 = vst.msk [vmem:[#allocation5 + $0x28] sm:$0xff] %vm3340_vm14, %v3321_v9  ;;  %5607 = vmatmul.mubr.msk.f32.gmra.mrb[40].mxu0 %vm3434_vm0, %v3427_v18 }
 0x394   :  { %v3795_v44 = vpop.permute.xlu1 %3794 }
 0x396   :  { %v3725_v19 = vpop.permute.xlu0 %3724 }
 0x397   :  { %3749 = vst.msk [vmem:[#allocation5 + $0x73] sm:$0xff] %vm3340_vm14, %v3725_v19  ;;  %v3428_v12 = vld [vmem:[#allocation5 + $0x20] sm:$0xff] }
 0x398   :  { %v3727_v20 = vpop.permute.xlu1 %3726  ;;  %v3828_v45 = vld [vmem:[#allocation5 + $0x6b] sm:$0xff]  ;;  %3819 = vst.msk [vmem:[#allocation5 + $0x73] sm:$0xff] %vm3412_vm15, %v3795_v44  ;;  %5609 = vmatprep.mubr.msk.f32.mxu0 %vm3434_vm0, %v3428_v12 }
 0x399   :  { %3750 = vst.msk [vmem:[#allocation5 + $0x7b] sm:$0xff] %vm3340_vm14, %v3727_v20  ;;  %5630 = vmatprep.mubr.msk.f32.mxu1 %vm3434_vm0, %v3828_v45 }
 0x39a   :  { %v3393_v48 = vpop.permute.xlu0 %3392 }
 0x39b   :  { %3418 = vst.msk [vmem:[#allocation5 + $0x28] sm:$0xff] %vm3412_vm15, %v3393_v48 }
 0x39c   :  { %v3395_v61 = vpop.permute.xlu1 %3394 }
 0x39e   :  { %v3323_v3 = vpop.permute.xlu0 %3322 }
 0x39f   :  { %3347 = vst.msk [vmem:[#allocation5 + $0x30] sm:$0xff] %vm3340_vm14, %v3323_v3  ;;  %v3829_v8 = vld [vmem:[#allocation5 + $0x73] sm:$0xff] }
 0x3a0   :  { %v3797_v53 = vpop.permute.xlu1 %3796  ;;  %3419 = vst.msk [vmem:[#allocation5 + $0x30] sm:$0xff] %vm3412_vm15, %v3395_v61  ;;  %5631 = vmatmul.mubr.msk.f32.gmra.mrb[42].mxu1 %vm3434_vm0, %v3829_v8 }
 0x3a1   :  { %3820 = vst.msk [vmem:[#allocation5 + $0x7b] sm:$0xff] %vm3412_vm15, %v3797_v53 }
 0x3a2   :  { %v3325_v43 = vpop.permute.xlu0 %3324  ;;  %v3429_v27 = vld [vmem:[#allocation5 + $0x28] sm:$0xff] }
 0x3a3   :  { %3348 = vst.msk [vmem:[#allocation5 + $0x38] sm:$0xff] %vm3340_vm14, %v3325_v43  ;;  %5610 = vmatmul.mubr.msk.f32.gmra.mrb[42].mxu0 %vm3434_vm0, %v3429_v27  ;;  %v8424_v27 = vmov 0.0  }
 0x3a4   :  { %v3799_v54 = vpop.permute.xlu1 %3798  ;;  %4155 = vst.msk [vmem:[#allocation7 + $0x4d] sm:$0x1] %vm4063_vm4, %v8424_v27  ;;  %4064 = vst.msk [vmem:[#allocation7] sm:$0x1] %vm4063_vm4, %v8424_v27 }
 0x3a5   :  { %4065 = vst.msk [vmem:[#allocation7 + $0x26] sm:$0x1] %vm4063_vm4, %v8424_v27  ;;  %4154 = vst.msk [vmem:[#allocation7 + $0x27] sm:$0x1] %vm4063_vm4, %v8424_v27 }
 0x3a6   :  { %v3729_v63 = vpop.permute.xlu0 %3728 }
 0x3a7   :  { %3751 = vst.msk [vmem:[#allocation5 + $0x83] sm:$0xff] %vm3340_vm14, %v3729_v63  ;;  %v3430_v55 = vld [vmem:[#allocation5 + $0x30] sm:$0xff]  ;;  %v5776_v63 = vmov 0.0|0.0  }
 0x3a8   :  { %v3731_v29 = vpop.permute.xlu1 %3730  ;;  %v3830_v24 = vld [vmem:[#allocation5 + $0x7b] sm:$0xff]  ;;  %3821 = vst.msk [vmem:[#allocation5 + $0x83] sm:$0xff] %vm3412_vm15, %v3799_v54  ;;  %5612 = vmatprep.mubr.msk.f32.mxu0 %vm3434_vm0, %v3430_v55  ;;  %5719 = vmatprep.subr.bf16.mxu0 %v5776_v63 }
 0x3a9   :  { %3752 = vst.msk [vmem:[#allocation5 + $0x8b] sm:$0xff] %vm3340_vm14, %v3731_v29  ;;  %5633 = vmatprep.mubr.msk.f32.mxu1 %vm3434_vm0, %v3830_v24  ;;  %5728 = vmatprep.subr.bf16.mxu1 %v5776_v63 }
 0x3aa   :  { %v3397_v49 = vpop.permute.xlu0 %3396 }
 0x3ab   :  { %3420 = vst.msk [vmem:[#allocation5 + $0x38] sm:$0xff] %vm3412_vm15, %v3397_v49 }
 0x3ac   :  { %v3399_v59 = vpop.permute.xlu1 %3398 }
 0x3ae   :  { %v3327_v34 = vpop.permute.xlu0 %3326 }
 0x3af   :  { %3349 = vst.msk [vmem:[#allocation5 + $0x40] sm:$0xff] %vm3340_vm14, %v3327_v34  ;;  %v3831_v22 = vld [vmem:[#allocation5 + $0x83] sm:$0xff] }
 0x3b0   :  { %v3801_v57 = vpop.permute.xlu1 %3800  ;;  %3421 = vst.msk [vmem:[#allocation5 + $0x40] sm:$0xff] %vm3412_vm15, %v3399_v59  ;;  %5634 = vmatmul.mubr.msk.f32.gmra.mrb[44].mxu1 %vm3434_vm0, %v3831_v22 }
 0x3b1   :  { %3822 = vst.msk [vmem:[#allocation5 + $0x8b] sm:$0xff] %vm3412_vm15, %v3801_v57 }
 0x3b2   :  { %v3329_v23 = vpop.permute.xlu0 %3328  ;;  %v3431_v42 = vld [vmem:[#allocation5 + $0x38] sm:$0xff] }
 0x3b3   :  { %3351 = vst.msk [vmem:[#allocation5 + $0x48] sm:$0x7] %vm3350_vm1, %v3329_v23  ;;  %5613 = vmatmul.mubr.msk.f32.gmra.mrb[44].mxu0 %vm3434_vm0, %v3431_v42 }
 0x3b4   :  { %v3803_v6 = vpop.permute.xlu1 %3802 }
 0x3b6   :  { %v3733_v15 = vpop.permute.xlu0 %3732 }
 0x3b7   :  { %3753 = vst.msk [vmem:[#allocation5 + $0x93] sm:$0x7] %vm3350_vm1, %v3733_v15  ;;  %v3432_v28 = vld [vmem:[#allocation5 + $0x40] sm:$0xff] }
 0x3b8   :  { %v3832_v51 = vld [vmem:[#allocation5 + $0x8b] sm:$0xff]  ;;  %3823 = vst.msk [vmem:[#allocation5 + $0x93] sm:$0x7] %vm3422_vm2, %v3803_v6  ;;  %5615 = vmatprep.mubr.msk.f32.mxu0 %vm3434_vm0, %v3432_v28 }
 0x3b9   :  { %5636 = vmatprep.mubr.msk.f32.mxu1 %vm3434_vm0, %v3832_v51 }
 0x3ba   :  { %v3401_v46 = vpop.permute.xlu0 %3400 }
 0x3bb   :  { %3423 = vst.msk [vmem:[#allocation5 + $0x48] sm:$0x7] %vm3422_vm2, %v3401_v46 }
 0x3bf   :  { %v3833_v16 = vld [vmem:[#allocation5 + $0x93] sm:$0x7] }
 0x3c0   :  { %5637 = vmatmul.mubr.msk.f32.gmra.mrb[46].mxu1 %vm3434_vm0, %v3833_v16 }
 0x3c2   :  { %v3433_v30 = vld [vmem:[#allocation5 + $0x48] sm:$0x7] }
 0x3c3   :  { %5616 = vmatmul.mubr.msk.f32.gmra.mrb[46].mxu0 %vm3434_vm0, %v3433_v30 }
 0x453   :  { %v5626_v62 = vpop.f32.mrb[38].mxu1 }
 0x454   :  { %3980 = vst.msk [vmem:[#allocation6 + $0x53] sm:$0xff] %vm3580_vm3, %v5626_v62  ;;  %v3990_v17 = vsel %vm3580_vm3, %v5626_v62, 0.0  ;;  %v4016_v13 = vmul.f32 %v5626_v62, %v5626_v62  ;;  %v3930_v31 = vpop.f32.mrb[39].mxu1 }
 0x455   :  { %3979 = vst.msk [vmem:[#allocation6 + $0x4b] sm:$0xff] %vm3580_vm3, %v3930_v31  ;;  %v3989_v1 = vsel %vm3580_vm3, %v3930_v31, 0.0  ;;  %v4015_v5 = vmul.f32 %v3930_v31, %v3930_v31 }
 0x456   :  { %v5605_v7 = vpop.f32.mrb[38].mxu0  ;;  %v4026_v39 = vsel %vm3580_vm3, %v4016_v13, 0.0  ;;  %v3991_v2 = vadd.f32 %v3990_v17, %v3989_v1 }
 0x457   :  { %3582 = vst.msk [vmem:[#allocation6 + $0x8] sm:$0xff] %vm3580_vm3, %v5605_v7  ;;  %v3593_v35 = vsel %vm3580_vm3, %v5605_v7, 0.0  ;;  %v3619_v52 = vmul.f32 %v5605_v7, %v5605_v7  ;;  %v3531_v56 = vpop.f32.mrb[39].mxu0  ;;  %v4025_v40 = vsel %vm3580_vm3, %v4015_v5, 0.0 }
 0x458   :  { %3581 = vst.msk [vmem:[#allocation6] sm:$0xff] %vm3580_vm3, %v3531_v56  ;;  %v3592_v50 = vsel %vm3580_vm3, %v3531_v56, 0.0  ;;  %v3618_v41 = vmul.f32 %v3531_v56, %v3531_v56  ;;  %v4027_v21 = vadd.f32 %v4026_v39, %v4025_v40 }
 0x459   :  { %v3629_v10 = vsel %vm3580_vm3, %v3619_v52, 0.0  ;;  %v3594_v25 = vadd.f32 %v3593_v35, %v3592_v50 }
 0x45a   :  { %v3628_v33 = vsel %vm3580_vm3, %v3618_v41, 0.0 }
 0x45b   :  { %v3630_v32 = vadd.f32 %v3629_v10, %v3628_v33 }
 0x463   :  { %v5629_v58 = vpop.f32.mrb[40].mxu1 }
 0x464   :  { %3982 = vst.msk [vmem:[#allocation6 + $0x63] sm:$0xff] %vm3580_vm3, %v5629_v58  ;;  %v3940_v11 = vpop.f32.mrb[41].mxu1  ;;  %v4018_v0 = vmul.f32 %v5629_v58, %v5629_v58  ;;  %v3994_v47 = vsel %vm3580_vm3, %v5629_v58, 0.0 }
 0x465   :  { %3981 = vst.msk [vmem:[#allocation6 + $0x5b] sm:$0xff] %vm3580_vm3, %v3940_v11  ;;  %v3992_v4 = vsel %vm3580_vm3, %v3940_v11, 0.0  ;;  %v4017_v37 = vmul.f32 %v3940_v11, %v3940_v11 }
 0x466   :  { %v5608_v26 = vpop.f32.mrb[40].mxu0  ;;  %v3993_v36 = vadd.f32 %v3992_v4, %v3991_v2  ;;  %v4030_v12 = vsel %vm3580_vm3, %v4018_v0, 0.0 }
 0x467   :  { %3584 = vst.msk [vmem:[#allocation6 + $0x18] sm:$0xff] %vm3580_vm3, %v5608_v26  ;;  %v3621_v38 = vmul.f32 %v5608_v26, %v5608_v26  ;;  %v3541_v14 = vpop.f32.mrb[41].mxu0  ;;  %v4028_v60 = vsel %vm3580_vm3, %v4017_v37, 0.0  ;;  %v3597_v45 = vsel %vm3580_vm3, %v5608_v26, 0.0 }
 0x468   :  { %3583 = vst.msk [vmem:[#allocation6 + $0x10] sm:$0xff] %vm3580_vm3, %v3541_v14  ;;  %v3595_v9 = vsel %vm3580_vm3, %v3541_v14, 0.0  ;;  %v3620_v18 = vmul.f32 %v3541_v14, %v3541_v14  ;;  %v4029_v44 = vadd.f32 %v4028_v60, %v4027_v21  ;;  %v3995_v19 = vadd.f32 %v3994_v47, %v3993_v36 }
 0x469   :  { %v3596_v20 = vadd.f32 %v3595_v9, %v3594_v25  ;;  %v3633_v53 = vsel %vm3580_vm3, %v3621_v38, 0.0 }
 0x46a   :  { %v3631_v48 = vsel %vm3580_vm3, %v3620_v18, 0.0  ;;  %v4031_v61 = vadd.f32 %v4030_v12, %v4029_v44 }
 0x46b   :  { %v3632_v3 = vadd.f32 %v3631_v48, %v3630_v32  ;;  %v3598_v8 = vadd.f32 %v3597_v45, %v3596_v20 }
 0x46d   :  { %v3634_v43 = vadd.f32 %v3633_v53, %v3632_v3 }
 0x473   :  { %v5632_v54 = vpop.f32.mrb[42].mxu1 }
 0x474   :  { %3984 = vst.msk [vmem:[#allocation6 + $0x73] sm:$0xff] %vm3580_vm3, %v5632_v54  ;;  %v3950_v55 = vpop.f32.mrb[43].mxu1  ;;  %v4020_v29 = vmul.f32 %v5632_v54, %v5632_v54  ;;  %v3998_v57 = vsel %vm3580_vm3, %v5632_v54, 0.0 }
 0x475   :  { %3983 = vst.msk [vmem:[#allocation6 + $0x6b] sm:$0xff] %vm3580_vm3, %v3950_v55  ;;  %v3996_v24 = vsel %vm3580_vm3, %v3950_v55, 0.0  ;;  %v4019_v49 = vmul.f32 %v3950_v55, %v3950_v55 }
 0x476   :  { %v5611_v59 = vpop.f32.mrb[42].mxu0  ;;  %v3997_v34 = vadd.f32 %v3996_v24, %v3995_v19  ;;  %v4034_v46 = vsel %vm3580_vm3, %v4020_v29, 0.0 }
 0x477   :  { %3586 = vst.msk [vmem:[#allocation6 + $0x28] sm:$0xff] %vm3580_vm3, %v5611_v59  ;;  %v3623_v22 = vmul.f32 %v5611_v59, %v5611_v59  ;;  %v3551_v23 = vpop.f32.mrb[43].mxu0  ;;  %v4032_v42 = vsel %vm3580_vm3, %v4019_v49, 0.0  ;;  %v3601_v30 = vsel %vm3580_vm3, %v5611_v59, 0.0 }
 0x478   :  { %3585 = vst.msk [vmem:[#allocation6 + $0x20] sm:$0xff] %vm3580_vm3, %v3551_v23  ;;  %v3599_v6 = vsel %vm3580_vm3, %v3551_v23, 0.0  ;;  %v3622_v15 = vmul.f32 %v3551_v23, %v3551_v23  ;;  %v4033_v28 = vadd.f32 %v4032_v42, %v4031_v61  ;;  %v3999_v51 = vadd.f32 %v3998_v57, %v3997_v34 }
 0x479   :  { %v3600_v16 = vadd.f32 %v3599_v6, %v3598_v8  ;;  %v3637_v1 = vsel %vm3580_vm3, %v3623_v22, 0.0 }
 0x47a   :  { %v3635_v62 = vsel %vm3580_vm3, %v3622_v15, 0.0  ;;  %v4035_v17 = vadd.f32 %v4034_v46, %v4033_v28 }
 0x47b   :  { %v3636_v13 = vadd.f32 %v3635_v62, %v3634_v43  ;;  %v3602_v31 = vadd.f32 %v3601_v30, %v3600_v16 }
 0x47d   :  { %v3638_v5 = vadd.f32 %v3637_v1, %v3636_v13 }
 0x483   :  { %v5635_v7 = vpop.f32.mrb[44].mxu1 }
 0x484   :  { %3986 = vst.msk [vmem:[#allocation6 + $0x83] sm:$0xff] %vm3580_vm3, %v5635_v7  ;;  %v3960_v39 = vpop.f32.mrb[45].mxu1  ;;  %v4022_v2 = vmul.f32 %v5635_v7, %v5635_v7  ;;  %v4002_v41 = vsel %vm3580_vm3, %v5635_v7, 0.0 }
 0x485   :  { %3985 = vst.msk [vmem:[#allocation6 + $0x7b] sm:$0xff] %vm3580_vm3, %v3960_v39  ;;  %v4000_v35 = vsel %vm3580_vm3, %v3960_v39, 0.0  ;;  %v4021_v52 = vmul.f32 %v3960_v39, %v3960_v39 }
 0x486   :  { %v5614_v56 = vpop.f32.mrb[44].mxu0  ;;  %v4001_v40 = vadd.f32 %v4000_v35, %v3999_v51  ;;  %v4038_v11 = vsel %vm3580_vm3, %v4022_v2, 0.0 }
 0x487   :  { %3588 = vst.msk [vmem:[#allocation6 + $0x38] sm:$0xff] %vm3580_vm3, %v5614_v56  ;;  %v3625_v50 = vmul.f32 %v5614_v56, %v5614_v56  ;;  %v3561_v21 = vpop.f32.mrb[45].mxu0  ;;  %v4036_v10 = vsel %vm3580_vm3, %v4021_v52, 0.0  ;;  %v3605_v4 = vsel %vm3580_vm3, %v5614_v56, 0.0 }
 0x488   :  { %3587 = vst.msk [vmem:[#allocation6 + $0x30] sm:$0xff] %vm3580_vm3, %v3561_v21  ;;  %v3603_v25 = vsel %vm3580_vm3, %v3561_v21, 0.0  ;;  %v3624_v33 = vmul.f32 %v3561_v21, %v3561_v21  ;;  %v4037_v32 = vadd.f32 %v4036_v10, %v4035_v17  ;;  %v4003_v58 = vadd.f32 %v4002_v41, %v4001_v40 }
 0x489   :  { %v3604_v0 = vadd.f32 %v3603_v25, %v3602_v31  ;;  %v3641_v47 = vsel %vm3580_vm3, %v3625_v50, 0.0 }
 0x48a   :  { %v3639_v37 = vsel %vm3580_vm3, %v3624_v33, 0.0  ;;  %v4039_v26 = vadd.f32 %v4038_v11, %v4037_v32 }
 0x48b   :  { %v3640_v36 = vadd.f32 %v3639_v37, %v3638_v5  ;;  %v3606_v38 = vadd.f32 %v3605_v4, %v3604_v0  ;;  %v4056_v37 = vld [vmem:[%s8301_s2 + $0x2] sm:$0x1] }
 0x48d   :  { %v3642_v14 = vadd.f32 %v3641_v47, %v3640_v36  ;;  %v4157_v47 = vld [vmem:[#allocation6 + $0x4b] ss:$2 sm:$0xff] }
 0x493   :  { %v5638_v60 = vpop.f32.mrb[46].mxu1 }
 0x494   :  { %3988 = vst.msk [vmem:[#allocation6 + $0x93] sm:$0x7] %vm3590_vm5, %v5638_v60  ;;  %v3970_v9 = vpop.f32.mrb[47].mxu1  ;;  %v4024_v18 = vmul.f32 %v5638_v60, %v5638_v60  ;;  %v4006_v48 = vsel %vm3590_vm5, %v5638_v60, 0.0  ;;  %v4178_v60 = vld [vmem:[#allocation6 + $0x7c] ss:$2 sm:$0xff] }
 0x495   :  { %3987 = vst.msk [vmem:[#allocation6 + $0x8b] sm:$0xff] %vm3580_vm3, %v3970_v9  ;;  %v4004_v44 = vsel %vm3580_vm3, %v3970_v9, 0.0  ;;  %v4023_v19 = vmul.f32 %v3970_v9, %v3970_v9 }
 0x496   :  { %v5617_v12 = vpop.f32.mrb[46].mxu0  ;;  %v4005_v20 = vadd.f32 %v4004_v44, %v4003_v58  ;;  %v4042_v55 = vsel %vm3590_vm5, %v4024_v18, 0.0  ;;  %v8425_v18 = vld [vmem:[#allocation14_spill] sm:$0xff] }
 0x497   :  { %3591 = vst.msk [vmem:[#allocation6 + $0x48] sm:$0x7] %vm3590_vm5, %v5617_v12  ;;  %v3627_v45 = vmul.f32 %v5617_v12, %v5617_v12  ;;  %v3571_v61 = vpop.f32.mrb[47].mxu0  ;;  %v4040_v3 = vsel %vm3580_vm3, %v4023_v19, 0.0  ;;  %v3609_v24 = vsel %vm3590_vm5, %v5617_v12, 0.0 }
 0x498   :  { %3589 = vst.msk [vmem:[#allocation6 + $0x40] sm:$0xff] %vm3580_vm3, %v3571_v61  ;;  %v3607_v8 = vsel %vm3580_vm3, %v3571_v61, 0.0  ;;  %v3626_v53 = vmul.f32 %v3571_v61, %v3571_v61  ;;  %v4007_v43 = vadd.f32 %v4006_v48, %v4005_v20  ;;  %v4041_v54 = vadd.f32 %v4040_v3, %v4039_v26 }
 0x499   :  { %v3608_v29 = vadd.f32 %v3607_v8, %v3606_v38  ;;  %v3645_v23 = vsel %vm3590_vm5, %v3627_v45, 0.0  ;;  %v4057_v38 = vld [vmem:[%s8301_s2 + $0x3] sm:$0x1] }
 0x49a   :  { %v3643_v49 = vsel %vm3580_vm3, %v3626_v53, 0.0  ;;  %v4008_v59 = vrot.slane %v4007_v43, 4  ;;  %v4043_v34 = vadd.f32 %v4042_v55, %v4041_v54  ;;  %v4172_v53 = vld [vmem:[#allocation6 + $0x4c] ss:$2 sm:$0xff] }
 0x49b   :  { %v3610_v22 = vadd.f32 %v3609_v24, %v3608_v29  ;;  %v3644_v57 = vadd.f32 %v3643_v49, %v3642_v14  ;;  %v4163_v14 = vld [vmem:[#allocation6 + $0x7b] ss:$2 sm:$0xff]  ;;  %v4174_v49 = vld [vmem:[#allocation6 + $0x5c] ss:$2 sm:$0xff] }
 0x49c   :  { %v4009_v42 = vadd.f32 %v4008_v59, %v4007_v43  ;;  %v4044_v6 = vrot.slane %v4043_v34, 4  ;;  %v4165_v19 = vld [vmem:[#allocation6 + $0x8b] ss:$2 sm:$0x1f]  ;;  %v4159_v43 = vld [vmem:[#allocation6 + $0x5b] ss:$2 sm:$0xff] }
 0x49d   :  { %v3611_v15 = vrot.slane %v3610_v22, 4  ;;  %v3646_v28 = vadd.f32 %v3645_v23, %v3644_v57  ;;  %v4198_v12 = vld [vmem:[#allocation6 + $0x7d] ss:$2 sm:$0xff]  ;;  %v4180_v61 = vld [vmem:[#allocation6 + $0x8c] ss:$2 sm:$0x1f] }
 0x49e   :  { %v4010_v51 = vrot.slane %v4009_v42, 2  ;;  %v4045_v46 = vadd.f32 %v4044_v6, %v4043_v34  ;;  %v4200_v8 = vld [vmem:[#allocation6 + $0x8d] ss:$2 sm:$0x1f]  ;;  %v4194_v34 = vld [vmem:[#allocation6 + $0x5d] ss:$2 sm:$0xff] }
 0x49f   :  { %v3612_v16 = vadd.f32 %v3611_v15, %v3610_v22  ;;  %v3647_v30 = vrot.slane %v3646_v28, 4  ;;  %v4192_v59 = vld [vmem:[#allocation6 + $0x4d] ss:$2 sm:$0xff]  ;;  %v4066_v6 = vld [vmem:[#allocation6] ss:$2 sm:$0xff] }
 0x4a0   :  { %v4011_v62 = vadd.f32 %v4010_v51, %v4009_v42  ;;  %v4046_v31 = vrot.slane %v4045_v46, 2  ;;  %v4068_v15 = vld [vmem:[#allocation6 + $0x10] ss:$2 sm:$0xff] }
 0x4a1   :  { %v3613_v17 = vrot.slane %v3612_v16, 2  ;;  %v3648_v13 = vadd.f32 %v3647_v30, %v3646_v28  ;;  %v4085_v30 = vld [vmem:[#allocation6 + $0x1] ss:$2 sm:$0xff] }
 0x4a2   :  { %v4012_v1 = vrot.slane %v4011_v62, 1  ;;  %v4047_v39 = vadd.f32 %v4046_v31, %v4045_v46 }
 0x4a3   :  { %v3614_v5 = vadd.f32 %v3613_v17, %v3612_v16  ;;  %v3649_v7 = vrot.slane %v3648_v13, 2 }
 0x4a4   :  { %v4013_v52 = vadd.f32 %v4012_v1, %v4011_v62  ;;  %v4048_v56 = vrot.slane %v4047_v39, 1  ;;  %v4087_v62 = vld [vmem:[#allocation6 + $0x11] ss:$2 sm:$0xff] }
 0x4a5   :  { %v3615_v2 = vrot.slane %v3614_v5, 1  ;;  %v3650_v35 = vadd.f32 %v3649_v7, %v3648_v13  ;;  %v4107_v7 = vld [vmem:[#allocation6 + $0x12] ss:$2 sm:$0xff] }
 0x4a6   :  { %v4049_v41 = vadd.f32 %v4048_v56, %v4047_v39 }
 0x4a7   :  { %v3616_v40 = vadd.f32 %v3615_v2, %v3614_v5  ;;  %v3651_v50 = vrot.slane %v3650_v35, 1  ;;  %v4105_v5 = vld [vmem:[#allocation6 + $0x2] ss:$2 sm:$0xff] }
 0x4a9   :  { %v3652_v21 = vadd.f32 %v3651_v50, %v3650_v35  ;;  %v4014_v10 = vadd.f32 %v4013_v52, %v3616_v40 }
 0x4ab   :  { %v4050_v25 = vadd.f32 %v4049_v41, %v3652_v21  ;;  %v4051_v33 = vmul.f32 0.006666667, %v4014_v10  ;;  %v4161_v21 = vld [vmem:[#allocation6 + $0x6b] ss:$2 sm:$0xff]  ;;  %v4176_v10 = vld [vmem:[#allocation6 + $0x6c] ss:$2 sm:$0xff] }
 0x4ad   :  { %v4052_v32 = vmul.f32 0.006666667, %v4050_v25  ;;  %v4053_v58 = vmul.f32 %v4051_v33, %v4051_v33  ;;  %v4196_v25 = vld [vmem:[#allocation6 + $0x6d] ss:$2 sm:$0xff] }
 0x4af   :  { %v4054_v11 = vsub.f32 %v4052_v32, %v4053_v58 }
 0x4b1   :  { %v4055_v0 = vmax.f32 %v4054_v11, 0.0 }
 0x4b3   :  { %v4058_v4 = vadd.f32 1e-05, %v4055_v0 }
 0x4b5   :  { %5757 = vrsqrt.f32 %v4058_v4 }
 0x4bf   :  { %v5758_v26 = vpop.eup %5757 }
 0x4c0   :  { %v4060_v36 = vmul.f32 %v5758_v26, %v4056_v37 }
 0x4c2   :  { %v4061_v9 = vmul.f32 %v4060_v36, %v4051_v33  ;;  %v8086_v44 = vrot.slane %v4060_v36, %v8425_v18 }
 0x4c4   :  { %v4062_v20 = vsub.f32 %v4057_v38, %v4061_v9  ;;  %v4169_v45 = vmul.f32 %v4163_v14, %v8086_v44  ;;  %v4170_v48 = vmul.f32 %v4165_v19, %v8086_v44  ;;  %v4184_v3 = vmul.f32 %v4178_v60, %v8086_v44  ;;  %v4070_v19 = vld [vmem:[#allocation6 + $0x20] ss:$2 sm:$0xff] }
 0x4c5   :  { %v4185_v54 = vmul.f32 %v4180_v61, %v8086_v44  ;;  %v4204_v55 = vmul.f32 %v4198_v12, %v8086_v44  ;;  %v4205_v29 = vmul.f32 %v4200_v8, %v8086_v44  ;;  %v4166_v24 = vmul.f32 %v4157_v47, %v8086_v44  ;;  %v4072_v61 = vld [vmem:[#allocation6 + $0x30] ss:$2 sm:$0xff] }
 0x4c6   :  { %v8096_v22 = vrot.slane %v4062_v20, %v8425_v18  ;;  %v4189_v57 = vmax.f32 %v4169_v45, %v4184_v3  ;;  %v4167_v23 = vmul.f32 %v4159_v43, %v8086_v44  ;;  %v4181_v42 = vmul.f32 %v4172_v53, %v8086_v44 }
 0x4c7   :  { %v4190_v28 = vmax.f32 %v4170_v48, %v4185_v54  ;;  %v4182_v51 = vmul.f32 %v4174_v49, %v8086_v44  ;;  %v4201_v46 = vmul.f32 %v4192_v59, %v8086_v44  ;;  %v4202_v16 = vmul.f32 %v4194_v34, %v8086_v44  ;;  %v4089_v48 = vld [vmem:[#allocation6 + $0x21] ss:$2 sm:$0xff]  ;;  %v4091_v54 = vld [vmem:[#allocation6 + $0x31] ss:$2 sm:$0xff]  ;;  %v4111_v49 = vld [vmem:[#allocation6 + $0x32] ss:$2 sm:$0xff] }
 0x4c8   :  { %v4209_v17 = vmax.f32 %v4189_v57, %v4204_v55  ;;  %v4186_v13 = vmax.f32 %v4166_v24, %v4181_v42  ;;  %v4079_v31 = vmul.f32 %v8086_v44, %v4066_v6  ;;  %v4080_v1 = vmul.f32 %v8086_v44, %v4068_v15  ;;  %v4109_v24 = vld [vmem:[#allocation6 + $0x22] ss:$2 sm:$0xff] }
 0x4c9   :  { %v4210_v39 = vmax.f32 %v4190_v28, %v4205_v29  ;;  %v4187_v2 = vmax.f32 %v4167_v23, %v4182_v51  ;;  %v4094_v35 = vmul.f32 %v4085_v30, %v8086_v44  ;;  %v4095_v52 = vmul.f32 %v4087_v62, %v8086_v44  ;;  %v4074_v42 = vld [vmem:[#allocation6 + $0x40] ss:$2 sm:$0x1f]  ;;  %v4236_v62 = vld [vmem:[%s8300_s1 + $0x28] sm:$0xff] }
 0x4ca   :  { %v4214_v56 = vadd.f32 %v4209_v17, %v8096_v22  ;;  %v4206_v40 = vmax.f32 %v4186_v13, %v4201_v46  ;;  %v4114_v50 = vmul.f32 %v4105_v5, %v8086_v44  ;;  %v4115_v41 = vmul.f32 %v4107_v7, %v8086_v44  ;;  %v4237_v17 = vld [vmem:[%s8300_s1 + $0x30] sm:$0xff]  ;;  %v4093_v13 = vld [vmem:[#allocation6 + $0x41] ss:$2 sm:$0x1f] }
 0x4cb   :  { %v8111_v33 = vadd.f32 %v4210_v39, %v8096_v22  ;;  %v4207_v32 = vmax.f32 %v4187_v2, %v4202_v16  ;;  %v4099_v58 = vmax.f32 %v4079_v31, %v4094_v35  ;;  %v4100_v11 = vmax.f32 %v4080_v1, %v4095_v52  ;;  %v4238_v35 = vld [vmem:[%s8300_s1 + $0x38] sm:$0xff]  ;;  %v4239_v52 = vld [vmem:[%s8300_s1 + $0x40] sm:$0xff] }
 0x4cc   :  { %v4211_v0 = vadd.f32 %v4206_v40, %v8096_v22  ;;  %v4168_v4 = vmul.f32 %v4161_v21, %v8086_v44  ;;  %v4183_v37 = vmul.f32 %v4176_v10, %v8086_v44  ;;  %v4203_v26 = vmul.f32 %v4196_v25, %v8086_v44 }
 0x4cd   :  { %v4212_v36 = vadd.f32 %v4207_v32, %v8096_v22  ;;  %v4119_v38 = vmax.f32 %v4099_v58, %v4114_v50  ;;  %v4120_v47 = vmax.f32 %v4100_v11, %v4115_v41  ;;  %vm4219_vm6 = vcmp.ge.f32.partialorder %v4214_v56, 0.0 }
 0x4ce   :  { %vm4216_vm11 = vcmp.ge.f32.partialorder %v4211_v0, 0.0  ;;  %v4221_v14 = vmul.f32 0.2, %v4211_v0  ;;  %v4188_v60 = vmax.f32 %v4168_v4, %v4183_v37  ;;  %v4224_v9 = vmul.f32 0.2, %v4214_v56  ;;  %v4241_v37 = vld [vmem:[%s8300_s1 + $0x50] sm:$0xff] }
 0x4cf   :  { %vm4217_vm14 = vcmp.ge.f32.partialorder %v4212_v36, 0.0  ;;  %v4222_v12 = vmul.f32 0.2, %v4212_v36  ;;  %v4128_v20 = vadd.f32 %v8096_v22, %v4119_v38  ;;  %v4129_v45 = vadd.f32 %v8096_v22, %v4120_v47 }
 0x4d0   :  { %v4226_v3 = vsel %vm4216_vm11, %v4211_v0, %v4221_v14  ;;  %v4208_v8 = vmax.f32 %v4188_v60, %v4203_v26  ;;  %v4229_v53 = vsel %vm4219_vm6, %v4214_v56, %v4224_v9  ;;  %v4081_v43 = vmul.f32 %v8086_v44, %v4070_v19  ;;  %v4113_v56 = vld [vmem:[#allocation6 + $0x42] ss:$2 sm:$0x1f] }
 0x4d1   :  { %v4227_v55 = vsel %vm4217_vm14, %v4212_v36, %v4222_v12  ;;  %4231 = vst.msk [vmem:[#allocation7 + $0x28] sm:$0xff] %vm3580_vm3, %v4226_v3  ;;  %vm4133_vm15 = vcmp.ge.f32.partialorder %v4128_v20, 0.0  ;;  %vm4134_vm1 = vcmp.ge.f32.partialorder %v4129_v45, 0.0  ;;  %v4138_v29 = vmul.f32 0.2, %v4128_v20  ;;  %4234 = vst.msk [vmem:[#allocation7 + $0x40] sm:$0xff] %vm3580_vm3, %v4229_v53 }
 0x4d2   :  { %4232 = vst.msk [vmem:[#allocation7 + $0x30] sm:$0xff] %vm3580_vm3, %v4227_v55  ;;  %v4139_v59 = vmul.f32 0.2, %v4129_v45  ;;  %v4213_v34 = vadd.f32 %v4208_v8, %v8096_v22  ;;  %v4082_v57 = vmul.f32 %v8086_v44, %v4072_v61  ;;  %v4096_v23 = vmul.f32 %v4089_v48, %v8086_v44 }
 0x4d3   :  { %v4143_v6 = vsel %vm4133_vm15, %v4128_v20, %v4138_v29  ;;  %v4097_v15 = vmul.f32 %v4091_v54, %v8086_v44  ;;  %v4116_v28 = vmul.f32 %v4109_v24, %v8086_v44  ;;  %v4117_v51 = vmul.f32 %v4111_v49, %v8086_v44 }
 0x4d4   :  { %v4144_v46 = vsel %vm4134_vm1, %v4129_v45, %v4139_v59  ;;  %4148 = vst.msk [vmem:[#allocation7 + $0x1] sm:$0xff] %vm3580_vm3, %v4143_v6  ;;  %vm4218_vm2 = vcmp.ge.f32.partialorder %v4213_v34, 0.0  ;;  %v4223_v16 = vmul.f32 0.2, %v4213_v34  ;;  %v4101_v30 = vmax.f32 %v4081_v43, %v4096_v23 }
 0x4d5   :  { %4149 = vst.msk [vmem:[#allocation7 + $0x9] sm:$0xff] %vm3580_vm3, %v4144_v46  ;;  %v4102_v31 = vmax.f32 %v4082_v57, %v4097_v15  ;;  %vm4220_vm4 = vcmp.ge.f32.partialorder %v8111_v33, 0.0  ;;  %v4225_v1 = vmul.f32 0.2, %v8111_v33  ;;  %v4083_v5 = vmul.f32 %v8086_v44, %v4074_v42 }
 0x4d6   :  { %v4228_v7 = vsel %vm4218_vm2, %v4213_v34, %v4223_v16  ;;  %v4121_v39 = vmax.f32 %v4101_v30, %v4116_v28  ;;  %v4098_v2 = vmul.f32 %v4093_v13, %v8086_v44  ;;  %v5720_v41 = vpack.c.bf16 %v4237_v17, %v4236_v62 }
 0x4d7   :  { %4233 = vst.msk [vmem:[#allocation7 + $0x38] sm:$0xff] %vm3580_vm3, %v4228_v7  ;;  %v4122_v40 = vmax.f32 %v4102_v31, %v4117_v51  ;;  %v4230_v50 = vsel %vm4220_vm4, %v8111_v33, %v4225_v1  ;;  %v4118_v25 = vmul.f32 %v4113_v56, %v8086_v44  ;;  %v5723_v0 = vpack.c.bf16 %v4239_v52, %v4238_v35  ;;  %v4240_v44 = vld [vmem:[%s8300_s1 + $0x48] sm:$0xff] }
 0x4d8   :  { %v4130_v21 = vadd.f32 %v8096_v22, %v4121_v39  ;;  %4235 = vst.msk [vmem:[#allocation7 + $0x48] sm:$0x1f] %vm4152_vm9, %v4230_v50  ;;  %v4103_v10 = vmax.f32 %v4083_v5, %v4098_v2  ;;  %5721 = vmatpush3.bf16.msra.mxu0 %v5720_v41  ;;  %5730 = vmatpush3.bf16.msra.mxu1 %v5720_v41  ;;  %vm5777_vm14 = vmmov 0   ;;  %vm4271_vm1 = vcmask 256128  }
 0x4d9   :  { %v4429_v32 = vld [vmem:[#allocation7 + $0x28] ss:$2 sm:$0xff]  ;;  %v4131_v58 = vadd.f32 %v8096_v22, %v4122_v40  ;;  %v4420_v11 = vld [vmem:[#allocation7 + $0x27] ss:$2 sm:$0xff]  ;;  %5722 = vmatprep.subr.bf16.mxu0 %v5776_v63  ;;  %5731 = vmatprep.subr.bf16.mxu1 %v5776_v63  ;;  %v5726_v19 = vpack.c.bf16 %v4241_v37, %v4240_v44  ;;  %vm4294_vm2 = vcmask 387328  }
 0x4da   :  { %4437 = vrot.lane.b32.xlu1 %v4429_v32, %s5775_s26  ;;  %vm4135_vm6 = vcmp.ge.f32.partialorder %v4130_v21, 0.0  ;;  %v4140_v4 = vmul.f32 0.2, %v4130_v21  ;;  %v4123_v33 = vmax.f32 %v4103_v10, %v4118_v25  ;;  %4425 = vst.msk [vmem:[#allocation8 + $0x13] sm:$0xff] %vm3580_vm3, %v4420_v11  ;;  %5651 = vmatprep.mubr.msk.f32.mxu0 %vm5777_vm14, %v8424_v27  ;;  %v4450_v60 = vld [vmem:[#allocation7 + $0x29] ss:$2 sm:$0xff] }
 0x4db   :  { %vm4136_vm11 = vcmp.ge.f32.partialorder %v4131_v58, 0.0  ;;  %v4141_v26 = vmul.f32 0.2, %v4131_v58  ;;  %5672 = vmatprep.mubr.msk.f32.mxu1 %vm5777_vm14, %v8424_v27 }
 0x4dc   :  { %v4251_v36 = vld [vmem:[#allocation7 + $0x1] ss:$2 sm:$0xff]  ;;  %v4145_v38 = vsel %vm4135_vm6, %v4130_v21, %v4140_v4  ;;  %v4132_v47 = vadd.f32 %v8096_v22, %v4123_v33  ;;  %v4242_v14 = vld [vmem:[#allocation7] ss:$2 sm:$0xff]  ;;  %5724 = vmatpush3.bf16.msra.mxu0 %v5723_v0  ;;  %5733 = vmatpush3.bf16.msra.mxu1 %v5723_v0 }
 0x4dd   :  { %4259 = vrot.lane.b32.xlu0 %v4251_v36, %s5775_s26  ;;  %v4146_v9 = vsel %vm4136_vm11, %v4131_v58, %v4141_v26  ;;  %4150 = vst.msk [vmem:[#allocation7 + $0x11] sm:$0xff] %vm3580_vm3, %v4145_v38  ;;  %4247 = vst.msk [vmem:[#allocation8] sm:$0xff] %vm3580_vm3, %v4242_v14  ;;  %5725 = vmatprep.subr.bf16.mxu0 %v5776_v63  ;;  %v4274_v12 = vld [vmem:[#allocation7 + $0x2] ss:$2 sm:$0xff] }
 0x4de   :  { %4458 = vrot.lane.b32.xlu1 %v4450_v60, %s5778_s0  ;;  %4151 = vst.msk [vmem:[#allocation7 + $0x19] sm:$0xff] %vm3580_vm3, %v4146_v9  ;;  %vm4137_vm15 = vcmp.ge.f32.partialorder %v4132_v47, 0.0  ;;  %v4142_v22 = vmul.f32 0.2, %v4132_v47  ;;  %5734 = vmatprep.subr.bf16.mxu1 %v5776_v63  ;;  %v4422_v20 = vld [vmem:[#allocation7 + $0x37] ss:$2 sm:$0xff] }
 0x4df   :  { %v4431_v45 = vld [vmem:[#allocation7 + $0x38] ss:$2 sm:$0xff]  ;;  %4426 = vst.msk [vmem:[#allocation8 + $0x1b] sm:$0xff] %vm3580_vm3, %v4422_v20  ;;  %v4424_v61 = vld [vmem:[#allocation7 + $0x47] ss:$2 sm:$0x7] }
 0x4e0   :  { %v4147_v48 = vsel %vm4137_vm15, %v4132_v47, %v4142_v22  ;;  %5727 = vmatpush3.bf16.msra.mxu0 %v5726_v19  ;;  %5736 = vmatpush3.bf16.msra.mxu1 %v5726_v19  ;;  %4427 = vst.msk [vmem:[#allocation8 + $0x23] sm:$0x7] %vm3590_vm5, %v4424_v61  ;;  %v4452_v8 = vld [vmem:[#allocation7 + $0x39] ss:$2 sm:$0xff]  ;;  %vm4939_vm15 = vcmask 25600  }
 0x4e1   :  { %4282 = vrot.lane.b32.xlu0 %v4274_v12, %s5778_s0  ;;  %4153 = vst.msk [vmem:[#allocation7 + $0x21] sm:$0x1f] %vm4152_vm9, %v4147_v48  ;;  %5737 = vmatprep.subr.bf16.mxu0 %v5776_v63  ;;  %v4433_v54 = vld [vmem:[#allocation7 + $0x48] ss:$2 sm:$0x7]  ;;  %vm4268_vm9 = vcmask 261248  }
 0x4e2   :  { %4439 = vrot.lane.b32.xlu1 %v4431_v45, %s5775_s26  ;;  %5740 = vmatprep.subr.bf16.mxu1 %v5776_v63  ;;  %v4454_v63 = vld [vmem:[#allocation7 + $0x49] ss:$2 sm:$0x7] }
 0x4e5   :  { %v4253_v3 = vld [vmem:[#allocation7 + $0x11] ss:$2 sm:$0xff]  ;;  %v4244_v53 = vld [vmem:[#allocation7 + $0x10] ss:$2 sm:$0xff] }
 0x4e6   :  { %4261 = vrot.lane.b32.xlu0 %v4253_v3, %s5775_s26  ;;  %4460 = vrot.lane.b32.xlu1 %v4452_v8, %s5778_s0  ;;  %4248 = vst.msk [vmem:[#allocation8 + $0x8] sm:$0xff] %vm3580_vm3, %v4244_v53  ;;  %v4276_v43 = vld [vmem:[#allocation7 + $0x12] ss:$2 sm:$0xff]  ;;  %vm4291_vm3 = vcmask 392448  }
 0x4e8   :  { %v4246_v55 = vld [vmem:[#allocation7 + $0x20] ss:$2 sm:$0x7]  ;;  %v4255_v29 = vld [vmem:[#allocation7 + $0x21] ss:$2 sm:$0x7] }
 0x4e9   :  { %4249 = vst.msk [vmem:[#allocation8 + $0x10] sm:$0x7] %vm3590_vm5, %v4246_v55  ;;  %v4278_v24 = vld [vmem:[#allocation7 + $0x22] ss:$2 sm:$0x7]  ;;  %vm4299_vm5 = vcmask 392192  }
 0x4ea   :  { %4284 = vrot.lane.b32.xlu0 %v4276_v43, %s5778_s0  ;;  %4441 = vrot.lane.b32.xlu1 %v4433_v54, %s5775_s26 }
 0x4ee   :  { %4263 = vrot.lane.b32.xlu0 %v4255_v29, %s5775_s26  ;;  %4462 = vrot.lane.b32.xlu1 %v4454_v63, %s5778_s0 }
 0x4f2   :  { %4286 = vrot.lane.b32.xlu0 %v4278_v24, %s5778_s0 }
 0x54c   :  { %v4438_v49 = vpop.permute.xlu1 %4437 }
 0x54d   :  { %4446 = vst.msk [vmem:[#allocation8 + $0x13] sm:$0xff] %vm4268_vm9, %v4438_v49 }
 0x54f   :  { %v4260_v59 = vpop.permute.xlu0 %4259 }
 0x550   :  { %4269 = vst.msk [vmem:[#allocation8] sm:$0xff] %vm4268_vm9, %v4260_v59  ;;  %v4459_v34 = vpop.permute.xlu1 %4458 }
 0x551   :  { %4467 = vst.msk [vmem:[#allocation8 + $0x13] sm:$0xff] %vm4291_vm3, %v4459_v34 }
 0x553   :  { %v4283_v57 = vpop.permute.xlu0 %4282 }
 0x554   :  { %4292 = vst.msk [vmem:[#allocation8] sm:$0xff] %vm4291_vm3, %v4283_v57  ;;  %v4440_v23 = vpop.permute.xlu1 %4439 }
 0x555   :  { %4447 = vst.msk [vmem:[#allocation8 + $0x1b] sm:$0xff] %vm4268_vm9, %v4440_v23 }
 0x558   :  { %v4262_v42 = vpop.permute.xlu0 %4261  ;;  %v4461_v6 = vpop.permute.xlu1 %4460  ;;  %v4470_v15 = vld [vmem:[#allocation8 + $0x13] sm:$0xff] }
 0x559   :  { %4270 = vst.msk [vmem:[#allocation8 + $0x8] sm:$0xff] %vm4268_vm9, %v4262_v42  ;;  %5673 = vmatmul.mubr.msk.f32.vlgmr.msra.gmra.mrb[48].mxu1 %vm4299_vm5, %v4470_v15 }
 0x55a   :  { %4468 = vst.msk [vmem:[#allocation8 + $0x1b] sm:$0xff] %vm4291_vm3, %v4461_v6  ;;  %5675 = vmatprep.mubr.msk.f32.mxu1 %vm5777_vm14, %v8424_v27 }
 0x55b   :  { %v4296_v28 = vld [vmem:[#allocation8] sm:$0xff] }
 0x55c   :  { %v4285_v51 = vpop.permute.xlu0 %4284  ;;  %5652 = vmatmul.mubr.msk.f32.vlgmr.msra.gmra.mrb[48].mxu0 %vm4299_vm5, %v4296_v28  ;;  %v4442_v46 = vpop.permute.xlu1 %4441 }
 0x55d   :  { %4293 = vst.msk [vmem:[#allocation8 + $0x8] sm:$0xff] %vm4291_vm3, %v4285_v51  ;;  %5654 = vmatprep.mubr.msk.f32.mxu0 %vm5777_vm14, %v8424_v27 }
 0x55e   :  { %4448 = vst.msk [vmem:[#allocation8 + $0x23] sm:$0x7] %vm4271_vm1, %v4442_v46 }
 0x560   :  { %v4264_v16 = vpop.permute.xlu0 %4263  ;;  %v4463_v30 = vpop.permute.xlu1 %4462 }
 0x561   :  { %v4471_v62 = vld [vmem:[#allocation8 + $0x1b] sm:$0xff]  ;;  %4272 = vst.msk [vmem:[#allocation8 + $0x10] sm:$0x7] %vm4271_vm1, %v4264_v16 }
 0x562   :  { %4469 = vst.msk [vmem:[#allocation8 + $0x23] sm:$0x7] %vm4294_vm2, %v4463_v30  ;;  %5676 = vmatmul.mubr.msk.f32.gmra.mrb[50].mxu1 %vm4299_vm5, %v4471_v62 }
 0x563   :  { %5678 = vmatprep.mubr.msk.f32.mxu1 %vm5777_vm14, %v8424_v27 }
 0x564   :  { %v4287_v17 = vpop.permute.xlu0 %4286  ;;  %v4297_v13 = vld [vmem:[#allocation8 + $0x8] sm:$0xff] }
 0x565   :  { %4295 = vst.msk [vmem:[#allocation8 + $0x10] sm:$0x7] %vm4294_vm2, %v4287_v17  ;;  %5655 = vmatmul.mubr.msk.f32.gmra.mrb[50].mxu0 %vm4299_vm5, %v4297_v13 }
 0x566   :  { %5657 = vmatprep.mubr.msk.f32.mxu0 %vm5777_vm14, %v8424_v27 }
 0x569   :  { %v4472_v31 = vld [vmem:[#allocation8 + $0x23] sm:$0x7] }
 0x56a   :  { %5679 = vmatmul.mubr.msk.f32.gmra.mrb[52].mxu1 %vm4299_vm5, %v4472_v31 }
 0x56b   :  { %5696 = vmatprep.mubr.msk.f32.mxu1 %vm5777_vm14, %v8424_v27 }
 0x56c   :  { %v4298_v1 = vld [vmem:[#allocation8 + $0x10] sm:$0x7] }
 0x56d   :  { %5658 = vmatmul.mubr.msk.f32.gmra.mrb[52].mxu0 %vm4299_vm5, %v4298_v1 }
 0x56e   :  { %5687 = vmatprep.mubr.msk.f32.mxu0 %vm5777_vm14, %v8424_v27  ;;  %vm4774_vm14 = vcmask 28672  }
 0x62c   :  { %v4548_v5 = vpop.f32.mrb[48].mxu1 }
 0x62d   :  { %4562 = vst.msk [vmem:[#allocation9 + $0x13] sm:$0xff] %vm1079_vm8, %v4548_v5  ;;  %v5674_v7 = vpop.f32.mrb[49].mxu1  ;;  %v4577_v35 = vmul.f32 %v4548_v5, %v4548_v5  ;;  %v4565_v56 = vsel %vm1079_vm8, %v4548_v5, 0.0 }
 0x62f   :  { %v4375_v39 = vpop.f32.mrb[48].mxu0  ;;  %v4580_v25 = vsel %vm1079_vm8, %v4577_v35, 0.0 }
 0x630   :  { %4389 = vst.msk [vmem:[#allocation9] sm:$0xff] %vm1079_vm8, %v4375_v39  ;;  %v5653_v2 = vpop.f32.mrb[49].mxu0  ;;  %v4404_v10 = vmul.f32 %v4375_v39, %v4375_v39  ;;  %v4392_v0 = vsel %vm1079_vm8, %v4375_v39, 0.0 }
 0x632   :  { %v4407_v26 = vsel %vm1079_vm8, %v4404_v10, 0.0  ;;  %v4598_v10 = vld [vmem:[%s8301_s2 + $0x5] sm:$0x1] }
 0x635   :  { %v4553_v52 = vpop.f32.mrb[50].mxu1 }
 0x636   :  { %4563 = vst.msk [vmem:[#allocation9 + $0x1b] sm:$0xff] %vm1079_vm8, %v4553_v52  ;;  %v4566_v40 = vsel %vm1079_vm8, %v4553_v52, 0.0  ;;  %v4578_v50 = vmul.f32 %v4553_v52, %v4553_v52  ;;  %v5677_v41 = vpop.f32.mrb[51].mxu1 }
 0x637   :  { %v4567_v21 = vadd.f32 %v4566_v40, %v4565_v56 }
 0x638   :  { %v4581_v32 = vsel %vm1079_vm8, %v4578_v50, 0.0  ;;  %v4380_v58 = vpop.f32.mrb[50].mxu0  ;;  %v4597_v50 = vld [vmem:[%s8301_s2 + $0x4] sm:$0x1] }
 0x639   :  { %v4582_v11 = vadd.f32 %v4581_v32, %v4580_v25  ;;  %4390 = vst.msk [vmem:[#allocation9 + $0x8] sm:$0xff] %vm1079_vm8, %v4380_v58  ;;  %v4393_v4 = vsel %vm1079_vm8, %v4380_v58, 0.0  ;;  %v4405_v33 = vmul.f32 %v4380_v58, %v4380_v58  ;;  %v5656_v44 = vpop.f32.mrb[51].mxu0 }
 0x63a   :  { %v4394_v37 = vadd.f32 %v4393_v4, %v4392_v0 }
 0x63b   :  { %v4408_v36 = vsel %vm1079_vm8, %v4405_v33, 0.0 }
 0x63c   :  { %v4409_v38 = vadd.f32 %v4408_v36, %v4407_v26 }
 0x63d   :  { %v4558_v47 = vpop.f32.mrb[52].mxu1 }
 0x63e   :  { %4564 = vst.msk [vmem:[#allocation9 + $0x23] sm:$0x7] %vm3278_vm13, %v4558_v47  ;;  %v4568_v14 = vsel %vm3278_vm13, %v4558_v47, 0.0  ;;  %v4579_v60 = vmul.f32 %v4558_v47, %v4558_v47  ;;  %v5680_v9 = vpop.f32.mrb[53].mxu1 }
 0x63f   :  { %v4569_v19 = vadd.f32 %v4568_v14, %v4567_v21 }
 0x640   :  { %v4583_v22 = vsel %vm3278_vm13, %v4579_v60, 0.0  ;;  %v4385_v12 = vpop.f32.mrb[52].mxu0  ;;  %v4606_v32 = vld [vmem:[#allocation9] ss:$2 sm:$0xff]  ;;  %v4616_v4 = vld [vmem:[#allocation9 + $0x1] ss:$2 sm:$0xff] }
 0x641   :  { %v4570_v20 = vrot.slane %v4569_v19, 4  ;;  %v4584_v45 = vadd.f32 %v4583_v22, %v4582_v11  ;;  %4391 = vst.msk [vmem:[#allocation9 + $0x10] sm:$0x7] %vm3278_vm13, %v4385_v12  ;;  %v4395_v48 = vsel %vm3278_vm13, %v4385_v12, 0.0  ;;  %v4406_v61 = vmul.f32 %v4385_v12, %v4385_v12  ;;  %v5659_v3 = vpop.f32.mrb[53].mxu0 }
 0x642   :  { %v4396_v8 = vadd.f32 %v4395_v48, %v4394_v37  ;;  %v4648_v11 = vld [vmem:[#allocation9 + $0x13] ss:$2 sm:$0xff] }
 0x643   :  { %v4571_v53 = vadd.f32 %v4570_v20, %v4569_v19  ;;  %v4585_v43 = vrot.slane %v4584_v45, 4  ;;  %v4410_v54 = vsel %vm3278_vm13, %v4406_v61, 0.0 }
 0x644   :  { %v4397_v55 = vrot.slane %v4396_v8, 4  ;;  %v4411_v29 = vadd.f32 %v4410_v54, %v4409_v38  ;;  %v4654_v38 = vld [vmem:[#allocation9 + $0x14] ss:$2 sm:$0xff] }
 0x645   :  { %v4572_v63 = vrot.slane %v4571_v53, 2  ;;  %v4586_v24 = vadd.f32 %v4585_v43, %v4584_v45  ;;  %v4650_v60 = vld [vmem:[#allocation9 + $0x23] ss:$2 sm:$0x1] }
 0x646   :  { %v4398_v49 = vadd.f32 %v4397_v55, %v4396_v8  ;;  %v4412_v59 = vrot.slane %v4411_v29, 4  ;;  %v4656_v45 = vld [vmem:[#allocation9 + $0x24] ss:$2 sm:$0x1] }
 0x647   :  { %v4573_v34 = vadd.f32 %v4572_v63, %v4571_v53  ;;  %v4587_v57 = vrot.slane %v4586_v24, 2  ;;  %v4662_v53 = vld [vmem:[#allocation9 + $0x15] ss:$2 sm:$0xff] }
 0x648   :  { %v4399_v23 = vrot.slane %v4398_v49, 2  ;;  %v4413_v42 = vadd.f32 %v4412_v59, %v4411_v29  ;;  %v4608_v0 = vld [vmem:[#allocation9 + $0x10] ss:$2 sm:$0x1] }
 0x649   :  { %v4574_v6 = vrot.slane %v4573_v34, 1  ;;  %v4588_v15 = vadd.f32 %v4587_v57, %v4586_v24  ;;  %v4618_v26 = vld [vmem:[#allocation9 + $0x11] ss:$2 sm:$0x1]  ;;  %v4624_v14 = vld [vmem:[#allocation9 + $0x2] ss:$2 sm:$0xff] }
 0x64a   :  { %v4400_v28 = vadd.f32 %v4399_v23, %v4398_v49  ;;  %v4414_v51 = vrot.slane %v4413_v42, 2  ;;  %v4626_v22 = vld [vmem:[#allocation9 + $0x12] ss:$2 sm:$0x1] }
 0x64b   :  { %v4589_v46 = vrot.slane %v4588_v15, 1  ;;  %v4575_v62 = vadd.f32 %v4574_v6, %v4573_v34  ;;  %v4664_v29 = vld [vmem:[#allocation9 + $0x25] ss:$2 sm:$0x1] }
 0x64c   :  { %v4401_v16 = vrot.slane %v4400_v28, 1  ;;  %v4415_v30 = vadd.f32 %v4414_v51, %v4413_v42 }
 0x64d   :  { %v4590_v31 = vadd.f32 %v4589_v46, %v4588_v15  ;;  %v4679_v46 = vld [vmem:[%s8300_s1 + $0x58] sm:$0xff] }
 0x64e   :  { %v4402_v17 = vadd.f32 %v4401_v16, %v4400_v28  ;;  %v4416_v13 = vrot.slane %v4415_v30, 1  ;;  %v4680_v16 = vld [vmem:[%s8300_s1 + $0x60] sm:$0xff] }
 0x650   :  { %v4417_v1 = vadd.f32 %v4416_v13, %v4415_v30  ;;  %v4576_v5 = vadd.f32 %v4575_v62, %v4402_v17  ;;  %v5738_v17 = vpack.c.bf16 %v4680_v16, %v4679_v46  ;;  %v4907_v16 = vld [vmem:[%s8301_s2 + $0x6] sm:$0x1] }
 0x652   :  { %v4591_v7 = vadd.f32 %v4590_v31, %v4417_v1  ;;  %v4592_v39 = vmul.f32 0.02631579, %v4576_v5  ;;  %5739 = vmatpush3.bf16.msra.mxu0 %v5738_v17  ;;  %5742 = vmatpush3.bf16.msra.mxu1 %v5738_v17  ;;  %v4908_v17 = vld [vmem:[%s8301_s2 + $0x7] sm:$0x1] }
 0x653   :  { %5685 = vmatprep.subr.mxu0 %v8424_v27  ;;  %5694 = vmatprep.subr.mxu1 %v8424_v27 }
 0x654   :  { %v4593_v2 = vmul.f32 0.02631579, %v4591_v7  ;;  %v4594_v35 = vmul.f32 %v4592_v39, %v4592_v39  ;;  %v4681_v7 = vld [vmem:[%s8300_s1 + $0x68] sm:$0xff] }
 0x656   :  { %v4595_v52 = vsub.f32 %v4593_v2, %v4594_v35  ;;  %5686 = vmatpush3.msra.mxu0 %v4681_v7  ;;  %5695 = vmatpush3.msra.mxu1 %v4681_v7 }
 0x658   :  { %v4596_v56 = vmax.f32 %v4595_v52, 0.0 }
 0x65a   :  { %v4599_v40 = vadd.f32 1e-05, %v4596_v56 }
 0x65c   :  { %5759 = vrsqrt.f32 %v4599_v40 }
 0x666   :  { %v5760_v41 = vpop.eup %5759 }
 0x667   :  { %v4601_v21 = vmul.f32 %v5760_v41, %v4597_v50 }
 0x669   :  { %v4602_v25 = vmul.f32 %v4601_v21, %v4592_v39  ;;  %v4612_v58 = vrot.slane %v4601_v21, %v8425_v18 }
 0x66b   :  { %v4603_v33 = vsub.f32 %v4598_v10, %v4602_v25  ;;  %v4613_v44 = vmul.f32 %v4612_v58, %v4606_v32  ;;  %v4614_v37 = vmul.f32 %v4612_v58, %v4608_v0  ;;  %v4619_v36 = vmul.f32 %v4616_v4, %v4612_v58 }
 0x66c   :  { %v4620_v47 = vmul.f32 %v4618_v26, %v4612_v58  ;;  %v4651_v9 = vmul.f32 %v4648_v11, %v4612_v58  ;;  %v4627_v12 = vmul.f32 %v4624_v14, %v4612_v58  ;;  %v4652_v20 = vmul.f32 %v4650_v60, %v4612_v58 }
 0x66d   :  { %v4621_v19 = vmax.f32 %v4613_v44, %v4619_v36  ;;  %v4657_v48 = vmul.f32 %v4654_v38, %v4612_v58  ;;  %v4628_v3 = vmul.f32 %v4626_v22, %v4612_v58  ;;  %v4658_v8 = vmul.f32 %v4656_v45, %v4612_v58 }
 0x66e   :  { %v4622_v61 = vmax.f32 %v4614_v37, %v4620_v47  ;;  %v4634_v54 = vrot.slane %v4603_v33, %v8425_v18  ;;  %v4665_v63 = vmul.f32 %v4662_v53, %v4612_v58  ;;  %v4666_v59 = vmul.f32 %v4664_v29, %v4612_v58 }
 0x66f   :  { %v4629_v43 = vmax.f32 %v4621_v19, %v4627_v12  ;;  %v4659_v55 = vmax.f32 %v4651_v9, %v4657_v48  ;;  %v4660_v49 = vmax.f32 %v4652_v20, %v4658_v8 }
 0x670   :  { %v4630_v24 = vmax.f32 %v4622_v61, %v4628_v3 }
 0x671   :  { %v4635_v34 = vadd.f32 %v4634_v54, %v4629_v43  ;;  %v4667_v57 = vmax.f32 %v4659_v55, %v4665_v63  ;;  %v4668_v42 = vmax.f32 %v4660_v49, %v4666_v59 }
 0x672   :  { %v4636_v23 = vadd.f32 %v4634_v54, %v4630_v24 }
 0x673   :  { %vm4637_vm13 = vcmp.ge.f32.partialorder %v4635_v34, 0.0  ;;  %v4639_v6 = vmul.f32 0.2, %v4635_v34  ;;  %v4669_v15 = vadd.f32 %v4667_v57, %v4634_v54  ;;  %v4670_v51 = vadd.f32 %v4668_v42, %v4634_v54 }
 0x674   :  { %vm4638_vm4 = vcmp.ge.f32.partialorder %v4636_v23, 0.0  ;;  %v4640_v28 = vmul.f32 0.2, %v4636_v23 }
 0x675   :  { %v4641_v30 = vsel %vm4637_vm13, %v4635_v34, %v4639_v6  ;;  %vm4671_vm6 = vcmp.ge.f32.partialorder %v4669_v15, 0.0  ;;  %v4673_v62 = vmul.f32 0.2, %v4669_v15  ;;  %vm4672_vm11 = vcmp.ge.f32.partialorder %v4670_v51, 0.0 }
 0x676   :  { %v4642_v13 = vsel %vm4638_vm4, %v4636_v23, %v4640_v28  ;;  %4643 = vst.msk [vmem:[#allocation10 + $0x1] sm:$0xff] %vm1079_vm8, %v4641_v30  ;;  %v4674_v31 = vmul.f32 0.2, %v4670_v51 }
 0x677   :  { %4644 = vst.msk [vmem:[#allocation10 + $0x9] sm:$0x1] %vm2626_vm12, %v4642_v13  ;;  %v4675_v1 = vsel %vm4671_vm6, %v4669_v15, %v4673_v62 }
 0x678   :  { %v4676_v5 = vsel %vm4672_vm11, %v4670_v51, %v4674_v31  ;;  %4677 = vst.msk [vmem:[#allocation10 + $0xc] sm:$0xff] %vm1079_vm8, %v4675_v1  ;;  %vm4690_vm8 = vcmask 127040  }
 0x679   :  { %4678 = vst.msk [vmem:[#allocation10 + $0x14] sm:$0x1] %vm2626_vm12, %v4676_v5  ;;  %vm4698_vm12 = vcmask 192640  }
 0x67d   :  { %v4682_v39 = vld [vmem:[#allocation10] ss:$2 sm:$0x1f] }
 0x67e   :  { %v4685_v2 = vld [vmem:[#allocation10 + $0x1] ss:$2 sm:$0x1f]  ;;  %4683 = vst.msk [vmem:[#allocation11] sm:$0x1f] %vm2939_vm10, %v4682_v39 }
 0x67f   :  { %4687 = vrot.lane.b32.xlu0 %v4685_v2, %s5772_s21  ;;  %v4794_v35 = vld [vmem:[#allocation10 + $0xb] ss:$2 sm:$0x1f]  ;;  %v4693_v56 = vld [vmem:[#allocation10 + $0x2] ss:$2 sm:$0x1f] }
 0x680   :  { %v4797_v52 = vld [vmem:[#allocation10 + $0xc] ss:$2 sm:$0x1f]  ;;  %4795 = vst.msk [vmem:[#allocation11 + $0x5] sm:$0x1f] %vm2939_vm10, %v4794_v35  ;;  %vm4914_vm10 = vcmask 24576  }
 0x681   :  { %4799 = vrot.lane.b32.xlu1 %v4797_v52, %s5772_s21  ;;  %v4804_v40 = vld [vmem:[#allocation10 + $0xd] ss:$2 sm:$0x1f]  ;;  %4941 = vst.msk [vmem:[#allocation13 + $0x4] sm:$0x1] %vm4914_vm10, %v8424_v27 }
 0x682   :  { %4942 = vst.msk [vmem:[#allocation13 + $0x7] sm:$0x1] %vm4914_vm10, %v8424_v27  ;;  %4915 = vst.msk [vmem:[#allocation13] sm:$0x1] %vm4914_vm10, %v8424_v27 }
 0x683   :  { %4695 = vrot.lane.b32.xlu0 %v4693_v56, %s5775_s26  ;;  %4916 = vst.msk [vmem:[#allocation13 + $0x3] sm:$0x1] %vm4914_vm10, %v8424_v27 }
 0x685   :  { %4806 = vrot.lane.b32.xlu1 %v4804_v40, %s5775_s26 }
 0x6f1   :  { %v4688_v50 = vpop.permute.xlu0 %4687 }
 0x6f2   :  { %4691 = vst.msk [vmem:[#allocation11] sm:$0x1f] %vm4690_vm8, %v4688_v50 }
 0x6f3   :  { %v4800_v41 = vpop.permute.xlu1 %4799 }
 0x6f4   :  { %4802 = vst.msk [vmem:[#allocation11 + $0x5] sm:$0x1f] %vm4690_vm8, %v4800_v41 }
 0x6f5   :  { %v4696_v21 = vpop.permute.xlu0 %4695 }
 0x6f6   :  { %4699 = vst.msk [vmem:[#allocation11] sm:$0x1f] %vm4698_vm12, %v4696_v21 }
 0x6f7   :  { %v4807_v10 = vpop.permute.xlu1 %4806 }
 0x6f8   :  { %4809 = vst.msk [vmem:[#allocation11 + $0x5] sm:$0x1f] %vm4698_vm12, %v4807_v10 }
 0x6fd   :  { %v4700_v25 = vld [vmem:[#allocation11] sm:$0x1f] }
 0x6fe   :  { %5688 = vmatmul.mubr.msk.f32.vlgmr.msra.gmra.mrb[54].mxu0 %vm3434_vm0, %v4700_v25 }
 0x6ff   :  { %v4810_v32 = vld [vmem:[#allocation11 + $0x5] sm:$0x1f] }
 0x700   :  { %5697 = vmatmul.mubr.msk.f32.vlgmr.msra.gmra.mrb[54].mxu1 %vm3434_vm0, %v4810_v32 }
 0x7d1   :  { %v4770_v58 = vpop.f32.mrb[54].mxu0 }
 0x7d2   :  { %4775 = vst.msk [vmem:[#allocation12] sm:$0x1f] %vm4774_vm14, %v4770_v58  ;;  %v4776_v11 = vsel %vm4774_vm14, %v4770_v58, 0.0  ;;  %v4784_v0 = vmul.f32 %v4770_v58, %v4770_v58  ;;  %v5689_v4 = vpop.f32.mrb[55].mxu0 }
 0x7d3   :  { %v4777_v33 = vrot.slane %v4776_v11, 4  ;;  %v4880_v44 = vpop.f32.mrb[54].mxu1 }
 0x7d4   :  { %v4785_v37 = vsel %vm4774_vm14, %v4784_v0, 0.0  ;;  %4884 = vst.msk [vmem:[#allocation12 + $0x5] sm:$0x1f] %vm4774_vm14, %v4880_v44  ;;  %v4885_v26 = vsel %vm4774_vm14, %v4880_v44, 0.0  ;;  %v4893_v36 = vmul.f32 %v4880_v44, %v4880_v44  ;;  %v5698_v38 = vpop.f32.mrb[55].mxu1 }
 0x7d5   :  { %v4778_v47 = vadd.f32 %v4777_v33, %v4776_v11  ;;  %v4786_v27 = vrot.slane %v4785_v37, 4  ;;  %v4886_v14 = vrot.slane %v4885_v26, 4  ;;  %v4959_v38 = vld [vmem:[%s8301_s2 + $0x8] sm:$0xf] }
 0x7d6   :  { %v4894_v60 = vsel %vm4774_vm14, %v4893_v36, 0.0 }
 0x7d7   :  { %v4779_v9 = vrot.slane %v4778_v47, 2  ;;  %v4787_v19 = vadd.f32 %v4786_v27, %v4785_v37  ;;  %v4887_v22 = vadd.f32 %v4886_v14, %v4885_v26  ;;  %v4895_v12 = vrot.slane %v4894_v60, 4 }
 0x7d9   :  { %v4780_v20 = vadd.f32 %v4779_v9, %v4778_v47  ;;  %v4788_v45 = vrot.slane %v4787_v19, 2  ;;  %v4888_v48 = vrot.slane %v4887_v22, 2  ;;  %v4896_v61 = vadd.f32 %v4895_v12, %v4894_v60  ;;  %v4917_v1 = vld [vmem:[#allocation12] ss:$2 sm:$0x3] }
 0x7da   :  { %v4924_v5 = vld [vmem:[#allocation12 + $0x1] ss:$2 sm:$0x3]  ;;  %v4928_v56 = vld [vmem:[#allocation12 + $0x2] ss:$2 sm:$0x3] }
 0x7db   :  { %v4781_v3 = vrot.slane %v4780_v20, 1  ;;  %v4789_v8 = vadd.f32 %v4788_v45, %v4787_v19  ;;  %v4889_v53 = vadd.f32 %v4888_v48, %v4887_v22  ;;  %v4897_v43 = vrot.slane %v4896_v61, 2  ;;  %v4944_v35 = vld [vmem:[#allocation12 + $0x5] ss:$2 sm:$0x3] }
 0x7dc   :  { %v4947_v52 = vld [vmem:[#allocation12 + $0x6] ss:$2 sm:$0x3]  ;;  %v4951_v10 = vld [vmem:[#allocation12 + $0x7] ss:$2 sm:$0x3] }
 0x7dd   :  { %v4782_v54 = vadd.f32 %v4781_v3, %v4780_v20  ;;  %v4790_v55 = vrot.slane %v4789_v8, 1  ;;  %v4890_v29 = vrot.slane %v4889_v53, 1  ;;  %v4898_v63 = vadd.f32 %v4897_v43, %v4896_v61 }
 0x7df   :  { %v4791_v24 = vadd.f32 %v4790_v55, %v4789_v8  ;;  %v4891_v49 = vadd.f32 %v4890_v29, %v4889_v53  ;;  %v4899_v59 = vrot.slane %v4898_v63, 1 }
 0x7e1   :  { %v4892_v34 = vadd.f32 %v4891_v49, %v4782_v54  ;;  %v4900_v57 = vadd.f32 %v4899_v59, %v4898_v63  ;;  %v4960_v63 = vld [vmem:[%s8301_s2 + $0xc] sm:$0x1] }
 0x7e3   :  { %v4901_v23 = vadd.f32 %v4900_v57, %v4791_v24  ;;  %v4902_v42 = vmul.f32 0.1, %v4892_v34 }
 0x7e5   :  { %v4903_v6 = vmul.f32 0.1, %v4901_v23  ;;  %v4904_v15 = vmul.f32 %v4902_v42, %v4902_v42 }
 0x7e7   :  { %v4905_v28 = vsub.f32 %v4903_v6, %v4904_v15 }
 0x7e9   :  { %v4906_v51 = vmax.f32 %v4905_v28, 0.0 }
 0x7eb   :  { %v4909_v46 = vadd.f32 1e-05, %v4906_v51 }
 0x7ed   :  { %5761 = vrsqrt.f32 %v4909_v46 }
 0x7f7   :  { %v5762_v30 = vpop.eup %5761 }
 0x7f8   :  { %v4911_v62 = vmul.f32 %v5762_v30, %v4907_v16 }
 0x7fa   :  { %v4912_v13 = vmul.f32 %v4911_v62, %v4902_v42  ;;  %v4921_v31 = vrot.slane %v4911_v62, %v8425_v18 }
 0x7fc   :  { %v4913_v7 = vsub.f32 %v4908_v17, %v4912_v13  ;;  %v4922_v39 = vmul.f32 %v4921_v31, %v4917_v1  ;;  %v4925_v2 = vmul.f32 %v4924_v5, %v4921_v31  ;;  %v4945_v40 = vmul.f32 %v4944_v35, %v4921_v31 }
 0x7fd   :  { %v4948_v50 = vmul.f32 %v4947_v52, %v4921_v31  ;;  %v4929_v21 = vmul.f32 %v4928_v56, %v4921_v31  ;;  %v4952_v32 = vmul.f32 %v4951_v10, %v4921_v31 }
 0x7fe   :  { %v4926_v41 = vmax.f32 %v4922_v39, %v4925_v2  ;;  %v4934_v11 = vrot.slane %v4913_v7, %v8425_v18 }
 0x7ff   :  { %v4949_v25 = vmax.f32 %v4945_v40, %v4948_v50 }
 0x800   :  { %v4930_v58 = vmax.f32 %v4926_v41, %v4929_v21 }
 0x801   :  { %v4953_v0 = vmax.f32 %v4949_v25, %v4952_v32 }
 0x802   :  { %v4935_v4 = vadd.f32 %v4934_v11, %v4930_v58 }
 0x803   :  { %v4954_v33 = vadd.f32 %v4953_v0, %v4934_v11 }
 0x804   :  { %vm4936_vm0 = vcmp.ge.f32.partialorder %v4935_v4, 0.0  ;;  %v4937_v44 = vmul.f32 0.2, %v4935_v4 }
 0x805   :  { %vm4955_vm9 = vcmp.ge.f32.partialorder %v4954_v33, 0.0  ;;  %v4956_v37 = vmul.f32 0.2, %v4954_v33 }
 0x806   :  { %v4938_v26 = vsel %vm4936_vm0, %v4935_v4, %v4937_v44 }
 0x807   :  { %4940 = vst.msk [vmem:[#allocation13 + $0x1] sm:$0x3] %vm4939_vm15, %v4938_v26  ;;  %v4957_v36 = vsel %vm4955_vm9, %v4954_v33, %v4956_v37 }
 0x808   :  { %4958 = vst.msk [vmem:[#allocation13 + $0x5] sm:$0x3] %vm4939_vm15, %v4957_v36 }
 0x80e   :  { %v4961_v47 = vld [vmem:[#allocation13] sm:$0xf] }
 0x80f   :  { %v4983_v27 = vld [vmem:[#allocation13 + $0x4] sm:$0xf]  ;;  %v4962_v14 = vmul.f32 %v4961_v47, %v4959_v38 }
 0x810   :  { %v4984_v18 = vmul.f32 %v4983_v27, %v4959_v38 }
 0x811   :  { %v4963_v60 = vsel %vm129_vm7, %v4962_v14, 0.0 }
 0x812   :  { %v4985_v9 = vsel %vm129_vm7, %v4984_v18, 0.0  ;;  %4964 = vadd.xlane.f32.xlu0 %v4963_v60  ;;  %vm4981_vm7 = vcmask 0  }
 0x813   :  { %4986 = vadd.xlane.f32.xlu1 %v4985_v9 }
 0x89f   :  { %v4965_v19 = vpop.xlane.xlu0 %4964 }
 0x8a0   :  { %v4987_v22 = vpop.xlane.xlu1 %4986  ;;  %v4966_v12 = vrot.slane %v4965_v19, 4 }
 0x8a1   :  { %v4988_v20 = vrot.slane %v4987_v22, 4 }
 0x8a2   :  { %v4967_v45 = vadd.f32 %v4966_v12, %v4965_v19 }
 0x8a3   :  { %v4989_v48 = vadd.f32 %v4988_v20, %v4987_v22 }
 0x8a4   :  { %v4968_v61 = vrot.slane %v4967_v45, 2 }
 0x8a5   :  { %v4990_v3 = vrot.slane %v4989_v48, 2 }
 0x8a6   :  { %v4969_v8 = vadd.f32 %v4968_v61, %v4967_v45 }
 0x8a7   :  { %v4991_v53 = vadd.f32 %v4990_v3, %v4989_v48 }
 0x8a8   :  { %v4970_v43 = vrot.slane %v4969_v8, 1 }
 0x8a9   :  { %v4992_v54 = vrot.slane %v4991_v53, 1 }
 0x8aa   :  { %v4971_v55 = vadd.f32 %v4970_v43, %v4969_v8 }
 0x8ab   :  { %v4993_v29 = vadd.f32 %v4992_v54, %v4991_v53 }
 0x8ac   :  { %5743 = vpush %v4971_v55 }
 0x8ad   :  { %5745 = vpush %v4993_v29 }
 0x8dd   :  { %s5744_s12 = spop %5743 }
 0x8de   :  { %v4973_v24 = vstv %s5744_s12  ;;  %s5746_s13 = spop %5745 }
 0x8df   :  { %v4974_v49 = vadd.f32 %v4973_v24, %v4960_v63  ;;  %v4995_v59 = vstv %s5746_s13 }
 0x8e0   :  { %v4996_v34 = vadd.f32 %v4995_v59, %v4960_v63 }
 0x8e1   :  { %v5341_v57 = vmul.f32 -1.442695, %v4974_v49 }
 0x8e2   :  { %v5342_v23 = vmul.f32 -1.442695, %v4996_v34 }
 0x8e3   :  { %5763 = vpow2.f32 %v5341_v57 }
 0x8e4   :  { %5765 = vpow2.f32 %v5342_v23 }
 0x8ed   :  { %v5764_v42 = vpop.eup %5763 }
 0x8ee   :  { %v5766_v6 = vpop.eup %5765  ;;  %v4978_v15 = vadd.f32 1.0, %v5764_v42 }
 0x8ef   :  { %v5000_v28 = vadd.f32 1.0, %v5766_v6 }
 0x8f0   :  { %5767 = vrcp.f32 %v4978_v15 }
 0x8f1   :  { %5769 = vrcp.f32 %v5000_v28 }
 0x8fa   :  { %v5768_v51 = vpop.eup %5767 }
 0x8fb   :  { %v5770_v46 = vpop.eup %5769  ;;  %4982 = vst.msk [vmem:[%s8302_s3] sm:$0x1] %vm4981_vm7, %v5768_v51 }
 0x8fc   :  { %5003 = vst.msk [vmem:[%s8302_s3 + $0x1] sm:$0x1] %vm4981_vm7, %v5770_v46 }

</bundles_post_ra>
